<compile_context>
chip_gen: v7x
topology: tpu7x:2x2x1
jax: 0.10.0
libtpu: 0.0.40
codegen_flags: <defaults>
</compile_context>

<pallas_src>
import functools

import jax
import jax.numpy as jnp
from jax import lax
from jax.experimental import pallas as pl
from jax.experimental.pallas import tpu as pltpu

F32 = jnp.float32
CDT = jnp.bfloat16   # MXU operand dtype for the pair path (one-hots are exact in bf16)
EPS = 1e-8


def _dot(a, b):
    return jnp.dot(a, b, preferred_element_type=jnp.float32)


# ---------------------------------------------------------------------------
# Single fused kernel: all interaction layers + in-kernel filter generation.
# grid = (n_layers, n_pair_tiles), both "arbitrary" (resident accumulators).
#   q_ref  : [N, F]   scalar features   (output ref, VMEM-resident state)
#   mu_ref : [N, 3F]  vector features, component c at lanes [c*F:(c+1)*F]
# ---------------------------------------------------------------------------
def painn_stack_kernel(idx_i_ref, idx_j_ref, r_ref, q0_ref, wf_ref, bf_ref,
                       wi1_ref, bi1_ref, wi2_ref, bi2_ref,
                       wmix_ref, bmix_ref, wt1_ref, bt1_ref, wt2_ref, bt2_ref,
                       q_ref, mu_ref,
                       gm_lo_s, acc_s, *,
                       cutoff, rbf_coeff, n_rbf):
    N, F = q0_ref.shape
    TP = r_ref.shape[0]
    l = pl.program_id(0)
    t = pl.program_id(1)
    n_layers = pl.num_programs(0)
    n_tiles = pl.num_programs(1)

    # ---- very first grid step: load initial atom state into the resident outputs ----
    @pl.when(jnp.logical_and(l == 0, t == 0))
    def _init_state():
        q_ref[...] = q0_ref[...]
        mu_ref[...] = jnp.zeros_like(mu_ref)

    # ---- once per layer: interatomic context net + reset the scatter accumulator ----
    @pl.when(t == 0)
    def _layer_begin():
        h = jax.nn.silu(_dot(q_ref[...], wi1_ref[...]) + bi1_ref[...])
        x = _dot(h, wi2_ref[...]) + bi2_ref[...]                   # [N, 3F]
        # gather source = [x | mu] lane-concatenated, bf16, ONE gather matmul per tile
        gm_lo_s[...] = jnp.concatenate([x, mu_ref[...]], axis=-1).astype(CDT)
        acc_s[...] = jnp.zeros_like(acc_s)

    # ---- every (layer, pair tile): filters (recomputed) + gather + scatter-add ----
    r = r_ref[...]                                                 # [TP, 3]
    d2 = r[:, 0:1] ** 2 + r[:, 1:2] ** 2 + r[:, 2:3] ** 2
    d = jnp.sqrt(d2)                                               # [TP, 1]
    dirv = r * (1.0 / d)                                           # [TP, 3]

    centers = lax.broadcasted_iota(jnp.int32, (1, n_rbf), 1).astype(F32) \
        * (cutoff / (n_rbf - 1))
    phi = jnp.exp(rbf_coeff * (d - centers) ** 2)                  # [TP, n_rbf]
    fcut = jnp.where(d < cutoff,
                     0.5 * (jnp.cos(d * (jnp.pi / cutoff)) + 1.0),
                     0.0)                                          # exactly 0 on padded pairs
    w = (_dot(phi, wf_ref[...]) + bf_ref[...]) * fcut              # [TP, 3F]

    atoms_j = lax.broadcasted_iota(jnp.int32, (TP, N), 1)
    G = (idx_j_ref[...] == atoms_j).astype(CDT)                    # [TP, N] one-hot(idx_j)
    gathered = _dot(G, gm_lo_s[...])                               # [TP, 6F] = [x[j] | mu[j]]
    xj = gathered[:, :3 * F]
    muj = gathered[:, 3 * F:]

    dq_p = w[:, :F] * xj[:, :F]                                    # [TP, F]
    dmuR_p = w[:, F:2 * F] * xj[:, F:2 * F]                        # [TP, F]
    dmumu_p = w[:, 2 * F:] * xj[:, 2 * F:]                         # [TP, F]
    dmu_p = [dmuR_p * dirv[:, c:c + 1] + dmumu_p * muj[:, c * F:(c + 1) * F]
             for c in range(3)]
    upd = jnp.concatenate([dq_p] + dmu_p, axis=-1).astype(CDT)     # [TP, 4F]

    # scatter_add over idx_i as a plain MXU matmul with the one-hot built transposed
    atoms_i = lax.broadcasted_iota(jnp.int32, (N, TP), 0)
    Si = (atoms_i == idx_i_ref[...]).astype(CDT)                   # [N, TP] one-hot(idx_i)^T
    acc_s[...] += _dot(Si, upd)                                    # [N, 4F] f32

    # ---- once per layer, after the last pair tile: intra-atomic update ----
    @pl.when(t == n_tiles - 1)
    def _layer_end():
        q = q_ref[...] + acc_s[:, :F]                              # [N, F]
        mu = mu_ref[...] + acc_s[:, F:]                            # [N, 3F]

        wmix = wmix_ref[...]                                       # [F, 2F]
        bmix = jnp.broadcast_to(bmix_ref[...], (N, 2 * F))         # hoisted broadcast
        mu_vn2 = jnp.zeros((N, F), F32)
        vw = jnp.zeros((N, F), F32)
        mu_W = []
        for c in range(3):
            mix = _dot(mu[:, c * F:(c + 1) * F], wmix) + bmix
            mV, mW = mix[:, :F], mix[:, F:]
            mu_vn2 += mV * mV
            vw += mV * mW
            mu_W.append(mW)
        mu_vn = jnp.sqrt(mu_vn2 + EPS)                             # [N, F]

        ctx = jnp.concatenate([q, mu_vn], axis=-1)                 # [N, 2F]
        h2 = jax.nn.silu(_dot(ctx, wt1_ref[...]) + bt1_ref[...])
        x2 = _dot(h2, wt2_ref[...]) + bt2_ref[...]                 # [N, 3F]

        q_ref[...] = x2[:, :F] + x2[:, 2 * F:] * vw
        mu_ref[...] = jnp.concatenate(
            [x2[:, F:2 * F] * mu_W[c] for c in range(3)], axis=-1)


def run_painn_stack(q0, idx_i_row, idx_j_col, r_pad, p, *, cutoff, n_rbf,
                    pair_tile, vmem_limit_bytes=48 * 1024 * 1024):
    N_pad, F = q0.shape
    P_pad = r_pad.shape[0]
    L = p['wi1'].shape[0]
    n_t = P_pad // pair_tile
    width = cutoff / (n_rbf - 1)
    rbf_coeff = -0.5 / width ** 2

    kernel = functools.partial(painn_stack_kernel, cutoff=cutoff,
                               rbf_coeff=rbf_coeff, n_rbf=n_rbf)

    def fixed(shape):
        return pl.BlockSpec(shape, lambda l, t: tuple(0 for _ in shape))

    def per_layer(shape):
        return pl.BlockSpec((None,) + shape,
                            lambda l, t: (l,) + tuple(0 for _ in shape))

    in_specs = [
        pl.BlockSpec((1, pair_tile), lambda l, t: (0, t)),     # idx_i (lane-major row)
        pl.BlockSpec((pair_tile, 1), lambda l, t: (t, 0)),     # idx_j (sublane column)
        pl.BlockSpec((pair_tile, 3), lambda l, t: (t, 0)),     # r_ij tile
        fixed((N_pad, F)),                                     # q0
        pl.BlockSpec((n_rbf, 3 * F), lambda l, t: (0, l)),     # filter-net W slice (layer l)
        pl.BlockSpec((1, 3 * F), lambda l, t: (0, l)),         # filter-net b slice (layer l)
        per_layer((F, F)), per_layer((1, F)),                  # wi1, bi1
        per_layer((F, 3 * F)), per_layer((1, 3 * F)),          # wi2, bi2
        per_layer((F, 2 * F)), per_layer((1, 2 * F)),          # wmix, bmix
        per_layer((2 * F, F)), per_layer((1, F)),              # wt1, bt1
        per_layer((F, 3 * F)), per_layer((1, 3 * F)),          # wt2, bt2
    ]
    out_specs = (fixed((N_pad, F)), fixed((N_pad, 3 * F)))
    out_shape = (jax.ShapeDtypeStruct((N_pad, F), F32),
                 jax.ShapeDtypeStruct((N_pad, 3 * F), F32))
    scratch = [
        pltpu.VMEM((N_pad, 6 * F), CDT),    # gm_lo_s  ([x | mu] bf16 gather source)
        pltpu.VMEM((N_pad, 4 * F), F32),    # acc_s    ([dq | dmu] scatter accumulator)
    ]
    return pl.pallas_call(
        kernel,
        out_shape=out_shape,
        grid=(L, n_t),
        in_specs=in_specs,
        out_specs=out_specs,
        scratch_shapes=scratch,
        compiler_params=pltpu.CompilerParams(
            dimension_semantics=("arbitrary", "arbitrary"),
            vmem_limit_bytes=vmem_limit_bytes),
    )(idx_i_row, idx_j_col, r_pad, q0,
      p['wf'], p['bf'],
      p['wi1'], p['bi1'], p['wi2'], p['bi2'],
      p['wmix'], p['bmix'], p['wt1'], p['bt1'], p['wt2'], p['bt2'])


# ---------------------------------------------------------------------------
# Parameter init (deterministic, synthetic) — per-layer weights stacked along axis 0
# ---------------------------------------------------------------------------
def init_dense(key, d_in, d_out):
    wk, bk = jax.random.split(key)
    bound = 1.0 / jnp.sqrt(d_in)
    w = jax.random.uniform(wk, (d_in, d_out), F32, -bound, bound)
    b = jax.random.uniform(bk, (1, d_out), F32, -bound, bound)
    return w, b


def init_params(key, n_atom_basis, n_interactions, n_rbf, max_z):
    F = n_atom_basis
    L = n_interactions
    keys = jax.random.split(key, 2 + L)
    emb = jax.random.normal(keys[0], (max_z, F), F32)
    emb = emb.at[0].set(0.0)                           # padding_idx=0
    wf, bf = init_dense(keys[1], n_rbf, L * 3 * F)

    wi1, bi1, wi2, bi2, wmix, bmix, wt1, bt1, wt2, bt2 = ([] for _ in range(10))
    for i in range(L):
        k = jax.random.split(keys[2 + i], 5)
        w, b = init_dense(k[0], F, F);       wi1.append(w);  bi1.append(b)
        w, b = init_dense(k[1], F, 3 * F);   wi2.append(w);  bi2.append(b)
        w, b = init_dense(k[2], F, 2 * F);   wmix.append(w); bmix.append(b)
        w, b = init_dense(k[3], 2 * F, F);   wt1.append(w);  bt1.append(b)
        w, b = init_dense(k[4], F, 3 * F);   wt2.append(w);  bt2.append(b)

    st = jnp.stack
    return dict(embedding=emb, wf=wf, bf=bf,
                wi1=st(wi1), bi1=st(bi1), wi2=st(wi2), bi2=st(bi2),
                wmix=st(wmix), bmix=st(bmix), wt1=st(wt1), bt1=st(bt1),
                wt2=st(wt2), bt2=st(bt2))


# ---------------------------------------------------------------------------
# PaiNN forward (glue in plain JAX, hot path in the single fused Pallas kernel)
# ---------------------------------------------------------------------------
def painn_forward(Z, r_ij, idx_i, idx_j, params, n_interactions, n_atom_basis,
                  cutoff, n_rbf, pair_tile=128, atom_tile=128):
    # pair_tile / atom_tile: use 128 on v5e, 256 on v6e/v7x (MXU height); demo uses 128.
    F = n_atom_basis
    N = Z.shape[0]
    P = idx_i.shape[0]
    n_t = pl.cdiv(P, pair_tile)
    P_pad = n_t * pair_tile
    pad_p = P_pad - P
    N_pad = pl.cdiv(N, atom_tile) * atom_tile

    # pad the pair list; padded pairs get d = 2*cutoff => fcut exactly 0 => no effect
    r_pad = jnp.pad(r_ij.astype(F32), ((0, pad_p), (0, 0)))
    r_pad = r_pad.at[P:].set(jnp.array([2.0 * cutoff, 0.0, 0.0], F32))
    ii = jnp.pad(idx_i.astype(jnp.int32), (0, pad_p)).reshape(1, P_pad)
    jj = jnp.pad(idx_j.astype(jnp.int32), (0, pad_p)).reshape(P_pad, 1)

    # embedding gather stays in XLA; padded atoms get zero features
    q0 = params['embedding'][Z].astype(F32)
    q0 = jnp.pad(q0, ((0, N_pad - N), (0, 0)))

    q, mu = run_painn_stack(q0, ii, jj, r_pad, params,
                            cutoff=cutoff, n_rbf=n_rbf, pair_tile=pair_tile)

    return {
        'scalar_representation': q[:N],                     # [N, F]
        'vector_representation': mu[:N].reshape(N, 3, F),   # [N, 3, F]
    }


# ---------------------------------------------------------------------------
# Pure-JAX reference (literal translation of the PyTorch forward) for checking
# ---------------------------------------------------------------------------
def painn_reference(Z, r_ij, idx_i, idx_j, params, n_interactions, n_atom_basis,
                    cutoff, n_rbf):
    F = n_atom_basis
    n_atoms = Z.shape[0]
    d_ij = jnp.linalg.norm(r_ij, axis=1, keepdims=True).astype(F32)
    dir_ij = r_ij / d_ij
    offsets = jnp.linspace(0.0, cutoff, n_rbf, dtype=F32)
    width = cutoff / (n_rbf - 1)
    coeff = -0.5 / width ** 2
    phi = jnp.exp(coeff * (d_ij - offsets[None, :]) ** 2)
    fcut = 0.5 * (jnp.cos(d_ij * jnp.pi / cutoff) + 1.0) * (d_ij < cutoff).astype(F32)
    filters = (phi @ params['wf'] + params['bf']) * fcut

    q = params['embedding'][Z][:, None, :]              # [N,1,F]
    mu = jnp.zeros((n_atoms, 3, F), F32)

    for i in range(n_interactions):
        Wij = filters[:, i * 3 * F:(i + 1) * 3 * F][:, None, :]
        x = jax.nn.silu(q @ params['wi1'][i] + params['bi1'][i]) @ params['wi2'][i] + params['bi2'][i]
        xj = x[idx_j]
        muj = mu[idx_j]
        xw = Wij * xj
        dq, dmuR, dmumu = xw[..., :F], xw[..., F:2 * F], xw[..., 2 * F:]
        dq = jax.ops.segment_sum(dq, idx_i, n_atoms)
        dmu = dmuR * dir_ij[..., None] + dmumu * muj
        dmu = jax.ops.segment_sum(dmu, idx_i, n_atoms)
        q = q + dq
        mu = mu + dmu
        mu_mix = mu @ params['wmix'][i] + params['bmix'][i]
        mu_V, mu_W = mu_mix[..., :F], mu_mix[..., F:]
        mu_Vn = jnp.sqrt(jnp.sum(mu_V ** 2, axis=-2, keepdims=True) + EPS)
        ctx = jnp.concatenate([q, mu_Vn], axis=-1)
        x2 = jax.nn.silu(ctx @ params['wt1'][i] + params['bt1'][i]) @ params['wt2'][i] + params['bt2'][i]
        dq_i, dmu_i, dqmu_i = x2[..., :F], x2[..., F:2 * F], x2[..., 2 * F:]
        dmu_i = dmu_i * mu_W
        dqmu_i = dqmu_i * jnp.sum(mu_V * mu_W, axis=1, keepdims=True)
        q = dq_i + dqmu_i
        mu = dmu_i
    return q.squeeze(1), mu


# ---------------------------------------------------------------------------
if __name__ == "__main__":
    key = jax.random.PRNGKey(0)
    # F is a multiple of 128 (lane width); atom and pair dims are padded to 128 so the
    # one-hot gather/scatter matmuls fill the MXU.  Everything else is kept tiny.
    n_atoms, n_atom_basis, n_interactions = 8, 128, 3
    n_rbf, max_z, cutoff = 16, 100, 5.0
    pair_tile = 128
    atom_tile = 128

    k1, k2, k3 = jax.random.split(key, 3)
    Z = jax.random.randint(k1, (n_atoms,), 1, max_z)
    pos = jax.random.uniform(k2, (n_atoms, 3), F32, 0.0, 3.0)

    # full neighbor list (all ordered pairs i != j) -> P = 56, padded to 128 (1 pair tile)
    pairs = [(a, b) for a in range(n_atoms) for b in range(n_atoms) if a != b]
    idx_i = jnp.array([p[0] for p in pairs], dtype=jnp.int32)
    idx_j = jnp.array([p[1] for p in pairs], dtype=jnp.int32)
    r_ij = pos[idx_j] - pos[idx_i]

    params = init_params(k3, n_atom_basis, n_interactions, n_rbf, max_z)

    out = painn_forward(Z, r_ij, idx_i, idx_j, params,
                        n_interactions, n_atom_basis, cutoff, n_rbf,
                        pair_tile=pair_tile, atom_tile=atom_tile)
    q = jax.block_until_ready(out['scalar_representation'])
    mu = jax.block_until_ready(out['vector_representation'])

    q_ref, mu_ref = painn_reference(Z, r_ij, idx_i, idx_j, params,
                                    n_interactions, n_atom_basis, cutoff, n_rbf)

    assert q.shape == (n_atoms, n_atom_basis)
    assert mu.shape == (n_atoms, 3, n_atom_basis)
    # bf16 pair path (one-hot gather/scatter + gathered state) with f32 accumulation
    assert jnp.allclose(q, q_ref, atol=2e-2, rtol=2e-2), "scalar mismatch"
    assert jnp.allclose(mu, mu_ref, atol=2e-2, rtol=2e-2), "vector mismatch"
    print("KERNEL_OK")
</pallas_src>

<mosaic_0001>
module attributes {stable_mosaic.version = 11 : i64} {
  func.func @painn_stack_kernel(%arg0: i32, %arg1: i32, %arg2: memref<1x128xi32, #tpu.memory_space<vmem>>, %arg3: memref<128x1xi32, #tpu.memory_space<vmem>>, %arg4: memref<128x3xf32, #tpu.memory_space<vmem>>, %arg5: memref<128x128xf32, #tpu.memory_space<vmem>>, %arg6: memref<16x384xf32, #tpu.memory_space<vmem>>, %arg7: memref<1x384xf32, #tpu.memory_space<vmem>>, %arg8: memref<1x128x128xf32, #tpu.memory_space<vmem>>, %arg9: memref<1x1x128xf32, #tpu.memory_space<vmem>>, %arg10: memref<1x128x384xf32, #tpu.memory_space<vmem>>, %arg11: memref<1x1x384xf32, #tpu.memory_space<vmem>>, %arg12: memref<1x128x256xf32, #tpu.memory_space<vmem>>, %arg13: memref<1x1x256xf32, #tpu.memory_space<vmem>>, %arg14: memref<1x256x128xf32, #tpu.memory_space<vmem>>, %arg15: memref<1x1x128xf32, #tpu.memory_space<vmem>>, %arg16: memref<1x128x384xf32, #tpu.memory_space<vmem>>, %arg17: memref<1x1x384xf32, #tpu.memory_space<vmem>>, %arg18: memref<128x128xf32, #tpu.memory_space<vmem>>, %arg19: memref<128x384xf32, #tpu.memory_space<vmem>>, %arg20: memref<128x768xbf16, #tpu.memory_space<vmem>>, %arg21: memref<128x512xf32, #tpu.memory_space<vmem>>) attributes {dimension_semantics = [#tpu.dimension_semantics<arbitrary>, #tpu.dimension_semantics<arbitrary>], iteration_bounds = array<i64: 3, 1>, scalar_prefetch = 0 : i64, scratch_operands = 2 : i64, tpu.core_type = #tpu.core_type<tc>, window_params = [{transform_indices = @transform_0, window_bounds = array<i64: 1, 128>}, {transform_indices = @transform_1, window_bounds = array<i64: 128, 1>}, {transform_indices = @transform_2, window_bounds = array<i64: 128, 3>}, {pipeline_mode = #tpu.pipeline_mode<synchronous>, transform_indices = @transform_3, window_bounds = array<i64: 128, 128>}, {transform_indices = @transform_4, window_bounds = array<i64: 16, 384>}, {transform_indices = @transform_5, window_bounds = array<i64: 1, 384>}, {transform_indices = @transform_6, window_bounds = array<i64: 1, 128, 128>}, {transform_indices = @transform_7, window_bounds = array<i64: 1, 1, 128>}, {transform_indices = @transform_8, window_bounds = array<i64: 1, 128, 384>}, {transform_indices = @transform_9, window_bounds = array<i64: 1, 1, 384>}, {transform_indices = @transform_10, window_bounds = array<i64: 1, 128, 256>}, {transform_indices = @transform_11, window_bounds = array<i64: 1, 1, 256>}, {transform_indices = @transform_12, window_bounds = array<i64: 1, 256, 128>}, {transform_indices = @transform_13, window_bounds = array<i64: 1, 1, 128>}, {transform_indices = @transform_14, window_bounds = array<i64: 1, 128, 384>}, {transform_indices = @transform_15, window_bounds = array<i64: 1, 1, 384>}, {pipeline_mode = #tpu.pipeline_mode<synchronous>, transform_indices = @transform_16, window_bounds = array<i64: 128, 128>}, {pipeline_mode = #tpu.pipeline_mode<synchronous>, transform_indices = @transform_17, window_bounds = array<i64: 128, 384>}]} {
    %c0_i32 = arith.constant 0 : i32
    %0 = arith.cmpi eq, %arg0, %c0_i32 : i32
    %c0_i32_0 = arith.constant 0 : i32
    %1 = arith.cmpi eq, %arg1, %c0_i32_0 : i32
    %2 = arith.andi %0, %1 : i1
    %3 = arith.extui %2 : i1 to i32
    %c0_i32_1 = arith.constant 0 : i32
    %4 = arith.cmpi ne, %3, %c0_i32_1 : i32
    scf.if %4 {
      %c0_31 = arith.constant 0 : index
      %c0_32 = arith.constant 0 : index
      %105 = vector.load %arg5[%c0_31, %c0_32] : memref<128x128xf32, #tpu.memory_space<vmem>>, vector<128x128xf32>
      %c0_33 = arith.constant 0 : index
      %c0_34 = arith.constant 0 : index
      %106 = vector.load %arg18[%c0_33, %c0_34] : memref<128x128xf32, #tpu.memory_space<vmem>>, vector<128x128xf32>
      tpu.vector_store %arg18[%c0_33, %c0_34], %105 {strides = array<i32>} : memref<128x128xf32, #tpu.memory_space<vmem>>, vector<128x128xf32>,
      %cst_35 = arith.constant 0.000000e+00 : f32
      %107 = vector.broadcast %cst_35 : f32 to vector<128x384xf32>
      %c0_36 = arith.constant 0 : index
      %c0_37 = arith.constant 0 : index
      %108 = vector.load %arg19[%c0_36, %c0_37] : memref<128x384xf32, #tpu.memory_space<vmem>>, vector<128x384xf32>
      tpu.vector_store %arg19[%c0_36, %c0_37], %107 {strides = array<i32>} : memref<128x384xf32, #tpu.memory_space<vmem>>, vector<128x384xf32>,
    } else {
    }
    %c0_i32_2 = arith.constant 0 : i32
    %5 = arith.cmpi eq, %arg1, %c0_i32_2 : i32
    %6 = arith.extui %5 : i1 to i32
    %c0_i32_3 = arith.constant 0 : i32
    %7 = arith.cmpi ne, %6, %c0_i32_3 : i32
    scf.if %7 {
      %c0_31 = arith.constant 0 : index
      %c0_32 = arith.constant 0 : index
      %105 = vector.load %arg18[%c0_31, %c0_32] : memref<128x128xf32, #tpu.memory_space<vmem>>, vector<128x128xf32>
      %c0_33 = arith.constant 0 : index
      %c0_34 = arith.constant 0 : index
      %c0_35 = arith.constant 0 : index
      %106 = vector.load %arg8[%c0_33, %c0_34, %c0_35] : memref<1x128x128xf32, #tpu.memory_space<vmem>>, vector<1x128x128xf32>
      %107 = vector.shape_cast %106 : vector<1x128x128xf32> to vector<128x128xf32>
      %cst_36 = arith.constant dense<0.000000e+00> : vector<128x128xf32>
      %108 = tpu.matmul %105, %107, %cst_36 {dimension_numbers = #tpu.dot_dimension_numbers<[1], [0], [0], [1], [0, 0, 1, 1], [], []>} : vector<128x128xf32>, vector<128x128xf32>, vector<128x128xf32> -> vector<128x128xf32>
      %c0_37 = arith.constant 0 : index
      %c0_38 = arith.constant 0 : index
      %c0_39 = arith.constant 0 : index
      %109 = vector.load %arg9[%c0_37, %c0_38, %c0_39] : memref<1x1x128xf32, #tpu.memory_space<vmem>>, vector<1x1x128xf32>
      %110 = vector.shape_cast %109 : vector<1x1x128xf32> to vector<1x128xf32>
      %111 = vector.broadcast %110 : vector<1x128xf32> to vector<128x128xf32>
      %112 = arith.addf %108, %111 : vector<128x128xf32>
      %113 = arith.negf %112 : vector<128x128xf32>
      %114 = math.exp %113 : vector<128x128xf32>
      %cst_40 = arith.constant 1.000000e+00 : f32
      %115 = vector.broadcast %cst_40 : f32 to vector<128x128xf32>
      %116 = arith.addf %115, %114 : vector<128x128xf32>
      %117 = arith.divf %115, %116 : vector<128x128xf32>
      %118 = arith.mulf %112, %117 : vector<128x128xf32>
      %c0_41 = arith.constant 0 : index
      %c0_42 = arith.constant 0 : index
      %c0_43 = arith.constant 0 : index
      %119 = vector.load %arg10[%c0_41, %c0_42, %c0_43] : memref<1x128x384xf32, #tpu.memory_space<vmem>>, vector<1x128x384xf32>
      %120 = vector.shape_cast %119 : vector<1x128x384xf32> to vector<128x384xf32>
      %cst_44 = arith.constant dense<0.000000e+00> : vector<128x384xf32>
      %121 = tpu.matmul %118, %120, %cst_44 {dimension_numbers = #tpu.dot_dimension_numbers<[1], [0], [0], [1], [0, 0, 1, 1], [], []>} : vector<128x128xf32>, vector<128x384xf32>, vector<128x384xf32> -> vector<128x384xf32>
      %c0_45 = arith.constant 0 : index
      %c0_46 = arith.constant 0 : index
      %c0_47 = arith.constant 0 : index
      %122 = vector.load %arg11[%c0_45, %c0_46, %c0_47] : memref<1x1x384xf32, #tpu.memory_space<vmem>>, vector<1x1x384xf32>
      %123 = vector.shape_cast %122 : vector<1x1x384xf32> to vector<1x384xf32>
      %124 = vector.broadcast %123 : vector<1x384xf32> to vector<128x384xf32>
      %125 = arith.addf %121, %124 : vector<128x384xf32>
      %c0_48 = arith.constant 0 : index
      %c0_49 = arith.constant 0 : index
      %126 = vector.load %arg19[%c0_48, %c0_49] : memref<128x384xf32, #tpu.memory_space<vmem>>, vector<128x384xf32>
      %127 = tpu.concatenate %125, %126 in 1 : vector<128x384xf32>, vector<128x384xf32> -> vector<128x768xf32>
      %128 = arith.truncf %127 : vector<128x768xf32> to vector<128x768xbf16>
      %c0_50 = arith.constant 0 : index
      %c0_51 = arith.constant 0 : index
      %129 = vector.load %arg20[%c0_50, %c0_51] : memref<128x768xbf16, #tpu.memory_space<vmem>>, vector<128x768xbf16>
      tpu.vector_store %arg20[%c0_50, %c0_51], %128 {strides = array<i32>} : memref<128x768xbf16, #tpu.memory_space<vmem>>, vector<128x768xbf16>,
      %cst_52 = arith.constant 0.000000e+00 : f32
      %130 = vector.broadcast %cst_52 : f32 to vector<128x512xf32>
      %c0_53 = arith.constant 0 : index
      %c0_54 = arith.constant 0 : index
      %131 = vector.load %arg21[%c0_53, %c0_54] : memref<128x512xf32, #tpu.memory_space<vmem>>, vector<128x512xf32>
      tpu.vector_store %arg21[%c0_53, %c0_54], %130 {strides = array<i32>} : memref<128x512xf32, #tpu.memory_space<vmem>>, vector<128x512xf32>,
    } else {
    }
    %c0 = arith.constant 0 : index
    %c0_4 = arith.constant 0 : index
    %8 = vector.load %arg4[%c0, %c0_4] : memref<128x3xf32, #tpu.memory_space<vmem>>, vector<128x3xf32>
    %9 = vector.extract_strided_slice %8 {offsets = [0, 0], sizes = [128, 1], strides = [1, 1]} : vector<128x3xf32> to vector<128x1xf32>
    %10 = arith.mulf %9, %9 : vector<128x1xf32>
    %11 = vector.extract_strided_slice %8 {offsets = [0, 1], sizes = [128, 1], strides = [1, 1]} : vector<128x3xf32> to vector<128x1xf32>
    %12 = arith.mulf %11, %11 : vector<128x1xf32>
    %13 = arith.addf %10, %12 : vector<128x1xf32>
    %14 = vector.extract_strided_slice %8 {offsets = [0, 2], sizes = [128, 1], strides = [1, 1]} : vector<128x3xf32> to vector<128x1xf32>
    %15 = arith.mulf %14, %14 : vector<128x1xf32>
    %16 = arith.addf %13, %15 : vector<128x1xf32>
    %17 = math.sqrt %16 : vector<128x1xf32>
    %cst = arith.constant 1.000000e+00 : f32
    %18 = vector.broadcast %cst : f32 to vector<128x1xf32>
    %19 = arith.divf %18, %17 : vector<128x1xf32>
    %20 = vector.broadcast %19 : vector<128x1xf32> to vector<128x3xf32>
    %21 = arith.mulf %8, %20 : vector<128x3xf32>
    %22 = tpu.iota {dimensions = array<i32: 1>} : vector<1x16xi32>
    %23 = arith.sitofp %22 : vector<1x16xi32> to vector<1x16xf32>
    %cst_5 = arith.constant 0.333333343 : f32
    %24 = vector.broadcast %cst_5 : f32 to vector<1x16xf32>
    %25 = arith.mulf %23, %24 : vector<1x16xf32>
    %26 = vector.broadcast %17 : vector<128x1xf32> to vector<128x16xf32>
    %27 = vector.broadcast %25 : vector<1x16xf32> to vector<128x16xf32>
    %28 = arith.subf %26, %27 : vector<128x16xf32>
    %29 = arith.mulf %28, %28 : vector<128x16xf32>
    %cst_6 = arith.constant -4.500000e+00 : f32
    %30 = vector.broadcast %cst_6 : f32 to vector<128x16xf32>
    %31 = arith.mulf %30, %29 : vector<128x16xf32>
    %32 = math.exp %31 : vector<128x16xf32>
    %cst_7 = arith.constant 5.000000e+00 : f32
    %33 = vector.broadcast %cst_7 : f32 to vector<128x1xf32>
    %34 = arith.cmpf olt, %17, %33 : vector<128x1xf32>
    %cst_8 = arith.constant 0.628318548 : f32
    %35 = vector.broadcast %cst_8 : f32 to vector<128x1xf32>
    %36 = arith.mulf %17, %35 : vector<128x1xf32>
    %37 = math.cos %36 : vector<128x1xf32>
    %cst_9 = arith.constant 1.000000e+00 : f32
    %38 = vector.broadcast %cst_9 : f32 to vector<128x1xf32>
    %39 = arith.addf %37, %38 : vector<128x1xf32>
    %cst_10 = arith.constant 5.000000e-01 : f32
    %40 = vector.broadcast %cst_10 : f32 to vector<128x1xf32>
    %41 = arith.mulf %40, %39 : vector<128x1xf32>
    %cst_11 = arith.constant 0.000000e+00 : f32
    %42 = vector.broadcast %cst_11 : f32 to vector<128x1xf32>
    %43 = arith.select %34, %41, %42 : vector<128x1xi1>, vector<128x1xf32>
    %c0_12 = arith.constant 0 : index
    %c0_13 = arith.constant 0 : index
    %44 = vector.load %arg6[%c0_12, %c0_13] : memref<16x384xf32, #tpu.memory_space<vmem>>, vector<16x384xf32>
    %cst_14 = arith.constant dense<0.000000e+00> : vector<128x384xf32>
    %45 = tpu.matmul %32, %44, %cst_14 {dimension_numbers = #tpu.dot_dimension_numbers<[1], [0], [0], [1], [0, 0, 1, 1], [], []>} : vector<128x16xf32>, vector<16x384xf32>, vector<128x384xf32> -> vector<128x384xf32>
    %c0_15 = arith.constant 0 : index
    %c0_16 = arith.constant 0 : index
    %46 = vector.load %arg7[%c0_15, %c0_16] : memref<1x384xf32, #tpu.memory_space<vmem>>, vector<1x384xf32>
    %47 = vector.broadcast %46 : vector<1x384xf32> to vector<128x384xf32>
    %48 = arith.addf %45, %47 : vector<128x384xf32>
    %49 = vector.broadcast %43 : vector<128x1xf32> to vector<128x384xf32>
    %50 = arith.mulf %48, %49 : vector<128x384xf32>
    %51 = tpu.iota {dimensions = array<i32: 1>} : vector<128x128xi32>
    %c0_17 = arith.constant 0 : index
    %c0_18 = arith.constant 0 : index
    %52 = vector.load %arg3[%c0_17, %c0_18] : memref<128x1xi32, #tpu.memory_space<vmem>>, vector<128x1xi32>
    %53 = vector.broadcast %52 : vector<128x1xi32> to vector<128x128xi32>
    %54 = arith.cmpi eq, %53, %51 : vector<128x128xi32>
    %55 = arith.extui %54 : vector<128x128xi1> to vector<128x128xi32>
    %56 = arith.sitofp %55 : vector<128x128xi32> to vector<128x128xf32>
    %57 = arith.truncf %56 : vector<128x128xf32> to vector<128x128xbf16>
    %c0_19 = arith.constant 0 : index
    %c0_20 = arith.constant 0 : index
    %58 = vector.load %arg20[%c0_19, %c0_20] : memref<128x768xbf16, #tpu.memory_space<vmem>>, vector<128x768xbf16>
    %cst_21 = arith.constant dense<0.000000e+00> : vector<128x768xf32>
    %59 = tpu.matmul %57, %58, %cst_21 {dimension_numbers = #tpu.dot_dimension_numbers<[1], [0], [0], [1], [0, 0, 1, 1], [], []>} : vector<128x128xbf16>, vector<128x768xbf16>, vector<128x768xf32> -> vector<128x768xf32>
    %60 = vector.extract_strided_slice %59 {offsets = [0, 0], sizes = [128, 384], strides = [1, 1]} : vector<128x768xf32> to vector<128x384xf32>
    %61 = vector.extract_strided_slice %59 {offsets = [0, 384], sizes = [128, 384], strides = [1, 1]} : vector<128x768xf32> to vector<128x384xf32>
    %62 = vector.extract_strided_slice %50 {offsets = [0, 0], sizes = [128, 128], strides = [1, 1]} : vector<128x384xf32> to vector<128x128xf32>
    %63 = vector.extract_strided_slice %60 {offsets = [0, 0], sizes = [128, 128], strides = [1, 1]} : vector<128x384xf32> to vector<128x128xf32>
    %64 = arith.mulf %62, %63 : vector<128x128xf32>
    %65 = vector.extract_strided_slice %50 {offsets = [0, 128], sizes = [128, 128], strides = [1, 1]} : vector<128x384xf32> to vector<128x128xf32>
    %66 = vector.extract_strided_slice %60 {offsets = [0, 128], sizes = [128, 128], strides = [1, 1]} : vector<128x384xf32> to vector<128x128xf32>
    %67 = arith.mulf %65, %66 : vector<128x128xf32>
    %68 = vector.extract_strided_slice %50 {offsets = [0, 256], sizes = [128, 128], strides = [1, 1]} : vector<128x384xf32> to vector<128x128xf32>
    %69 = vector.extract_strided_slice %60 {offsets = [0, 256], sizes = [128, 128], strides = [1, 1]} : vector<128x384xf32> to vector<128x128xf32>
    %70 = arith.mulf %68, %69 : vector<128x128xf32>
    %71 = vector.extract_strided_slice %21 {offsets = [0, 0], sizes = [128, 1], strides = [1, 1]} : vector<128x3xf32> to vector<128x1xf32>
    %72 = vector.broadcast %71 : vector<128x1xf32> to vector<128x128xf32>
    %73 = arith.mulf %67, %72 : vector<128x128xf32>
    %74 = vector.extract_strided_slice %61 {offsets = [0, 0], sizes = [128, 128], strides = [1, 1]} : vector<128x384xf32> to vector<128x128xf32>
    %75 = arith.mulf %70, %74 : vector<128x128xf32>
    %76 = arith.addf %73, %75 : vector<128x128xf32>
    %77 = vector.extract_strided_slice %21 {offsets = [0, 1], sizes = [128, 1], strides = [1, 1]} : vector<128x3xf32> to vector<128x1xf32>
    %78 = vector.broadcast %77 : vector<128x1xf32> to vector<128x128xf32>
    %79 = arith.mulf %67, %78 : vector<128x128xf32>
    %80 = vector.extract_strided_slice %61 {offsets = [0, 128], sizes = [128, 128], strides = [1, 1]} : vector<128x384xf32> to vector<128x128xf32>
    %81 = arith.mulf %70, %80 : vector<128x128xf32>
    %82 = arith.addf %79, %81 : vector<128x128xf32>
    %83 = vector.extract_strided_slice %21 {offsets = [0, 2], sizes = [128, 1], strides = [1, 1]} : vector<128x3xf32> to vector<128x1xf32>
    %84 = vector.broadcast %83 : vector<128x1xf32> to vector<128x128xf32>
    %85 = arith.mulf %67, %84 : vector<128x128xf32>
    %86 = vector.extract_strided_slice %61 {offsets = [0, 256], sizes = [128, 128], strides = [1, 1]} : vector<128x384xf32> to vector<128x128xf32>
    %87 = arith.mulf %70, %86 : vector<128x128xf32>
    %88 = arith.addf %85, %87 : vector<128x128xf32>
    %89 = tpu.concatenate %64, %76, %82, %88 in 1 : vector<128x128xf32>, vector<128x128xf32>, vector<128x128xf32>, vector<128x128xf32> -> vector<128x512xf32>
    %90 = arith.truncf %89 : vector<128x512xf32> to vector<128x512xbf16>
    %91 = tpu.iota {dimensions = array<i32: 0>} : vector<128x128xi32>
    %c0_22 = arith.constant 0 : index
    %c0_23 = arith.constant 0 : index
    %92 = vector.load %arg2[%c0_22, %c0_23] : memref<1x128xi32, #tpu.memory_space<vmem>>, vector<1x128xi32>
    %93 = vector.broadcast %92 : vector<1x128xi32> to vector<128x128xi32>
    %94 = arith.cmpi eq, %91, %93 : vector<128x128xi32>
    %95 = arith.extui %94 : vector<128x128xi1> to vector<128x128xi32>
    %96 = arith.sitofp %95 : vector<128x128xi32> to vector<128x128xf32>
    %97 = arith.truncf %96 : vector<128x128xf32> to vector<128x128xbf16>
    %c0_24 = arith.constant 0 : index
    %c0_25 = arith.constant 0 : index
    %98 = vector.load %arg21[%c0_24, %c0_25] : memref<128x512xf32, #tpu.memory_space<vmem>>, vector<128x512xf32>
    %cst_26 = arith.constant dense<0.000000e+00> : vector<128x512xf32>
    %99 = tpu.matmul %97, %90, %cst_26 {dimension_numbers = #tpu.dot_dimension_numbers<[1], [0], [0], [1], [0, 0, 1, 1], [], []>} : vector<128x128xbf16>, vector<128x512xbf16>, vector<128x512xf32> -> vector<128x512xf32>
    %100 = arith.addf %98, %99 : vector<128x512xf32>
    %c0_27 = arith.constant 0 : index
    %c0_28 = arith.constant 0 : index
    %101 = vector.load %arg21[%c0_27, %c0_28] : memref<128x512xf32, #tpu.memory_space<vmem>>, vector<128x512xf32>
    tpu.vector_store %arg21[%c0_27, %c0_28], %100 {strides = array<i32>} : memref<128x512xf32, #tpu.memory_space<vmem>>, vector<128x512xf32>,
    %c0_i32_29 = arith.constant 0 : i32
    %102 = arith.cmpi eq, %arg1, %c0_i32_29 : i32
    %103 = arith.extui %102 : i1 to i32
    %c0_i32_30 = arith.constant 0 : i32
    %104 = arith.cmpi ne, %103, %c0_i32_30 : i32
    scf.if %104 {
      %c0_31 = arith.constant 0 : index
      %c0_32 = arith.constant 0 : index
      %105 = vector.load %arg18[%c0_31, %c0_32] : memref<128x128xf32, #tpu.memory_space<vmem>>, vector<128x128xf32>
      %c0_33 = arith.constant 0 : index
      %c0_34 = arith.constant 0 : index
      %106 = vector.load %arg21[%c0_33, %c0_34] : memref<128x512xf32, #tpu.memory_space<vmem>>, vector<128x128xf32>
      %107 = arith.addf %105, %106 : vector<128x128xf32>
      %c0_35 = arith.constant 0 : index
      %c0_36 = arith.constant 0 : index
      %108 = vector.load %arg19[%c0_35, %c0_36] : memref<128x384xf32, #tpu.memory_space<vmem>>, vector<128x384xf32>
      %c0_37 = arith.constant 0 : index
      %c128 = arith.constant 128 : index
      %109 = vector.load %arg21[%c0_37, %c128] : memref<128x512xf32, #tpu.memory_space<vmem>>, vector<128x384xf32>
      %110 = arith.addf %108, %109 : vector<128x384xf32>
      %c0_38 = arith.constant 0 : index
      %c0_39 = arith.constant 0 : index
      %c0_40 = arith.constant 0 : index
      %111 = vector.load %arg12[%c0_38, %c0_39, %c0_40] : memref<1x128x256xf32, #tpu.memory_space<vmem>>, vector<1x128x256xf32>
      %112 = vector.shape_cast %111 : vector<1x128x256xf32> to vector<128x256xf32>
      %c0_41 = arith.constant 0 : index
      %c0_42 = arith.constant 0 : index
      %c0_43 = arith.constant 0 : index
      %113 = vector.load %arg13[%c0_41, %c0_42, %c0_43] : memref<1x1x256xf32, #tpu.memory_space<vmem>>, vector<1x1x256xf32>
      %114 = vector.shape_cast %113 : vector<1x1x256xf32> to vector<1x256xf32>
      %115 = vector.shape_cast %114 : vector<1x256xf32> to vector<1x256xf32>
      %116 = vector.broadcast %115 : vector<1x256xf32> to vector<128x256xf32>
      %cst_44 = arith.constant 0.000000e+00 : f32
      %117 = vector.broadcast %cst_44 : f32 to vector<128x128xf32>
      %cst_45 = arith.constant 0.000000e+00 : f32
      %118 = vector.broadcast %cst_45 : f32 to vector<128x128xf32>
      %119 = vector.extract_strided_slice %110 {offsets = [0, 0], sizes = [128, 128], strides = [1, 1]} : vector<128x384xf32> to vector<128x128xf32>
      %cst_46 = arith.constant dense<0.000000e+00> : vector<128x256xf32>
      %120 = tpu.matmul %119, %112, %cst_46 {dimension_numbers = #tpu.dot_dimension_numbers<[1], [0], [0], [1], [0, 0, 1, 1], [], []>} : vector<128x128xf32>, vector<128x256xf32>, vector<128x256xf32> -> vector<128x256xf32>
      %121 = arith.addf %120, %116 : vector<128x256xf32>
      %122 = vector.extract_strided_slice %121 {offsets = [0, 0], sizes = [128, 128], strides = [1, 1]} : vector<128x256xf32> to vector<128x128xf32>
      %123 = vector.extract_strided_slice %121 {offsets = [0, 128], sizes = [128, 128], strides = [1, 1]} : vector<128x256xf32> to vector<128x128xf32>
      %124 = arith.mulf %122, %122 : vector<128x128xf32>
      %125 = arith.addf %117, %124 : vector<128x128xf32>
      %126 = arith.mulf %122, %123 : vector<128x128xf32>
      %127 = arith.addf %118, %126 : vector<128x128xf32>
      %128 = vector.extract_strided_slice %110 {offsets = [0, 128], sizes = [128, 128], strides = [1, 1]} : vector<128x384xf32> to vector<128x128xf32>
      %cst_47 = arith.constant dense<0.000000e+00> : vector<128x256xf32>
      %129 = tpu.matmul %128, %112, %cst_47 {dimension_numbers = #tpu.dot_dimension_numbers<[1], [0], [0], [1], [0, 0, 1, 1], [], []>} : vector<128x128xf32>, vector<128x256xf32>, vector<128x256xf32> -> vector<128x256xf32>
      %130 = arith.addf %129, %116 : vector<128x256xf32>
      %131 = vector.extract_strided_slice %130 {offsets = [0, 0], sizes = [128, 128], strides = [1, 1]} : vector<128x256xf32> to vector<128x128xf32>
      %132 = vector.extract_strided_slice %130 {offsets = [0, 128], sizes = [128, 128], strides = [1, 1]} : vector<128x256xf32> to vector<128x128xf32>
      %133 = arith.mulf %131, %131 : vector<128x128xf32>
      %134 = arith.addf %125, %133 : vector<128x128xf32>
      %135 = arith.mulf %131, %132 : vector<128x128xf32>
      %136 = arith.addf %127, %135 : vector<128x128xf32>
      %137 = vector.extract_strided_slice %110 {offsets = [0, 256], sizes = [128, 128], strides = [1, 1]} : vector<128x384xf32> to vector<128x128xf32>
      %cst_48 = arith.constant dense<0.000000e+00> : vector<128x256xf32>
      %138 = tpu.matmul %137, %112, %cst_48 {dimension_numbers = #tpu.dot_dimension_numbers<[1], [0], [0], [1], [0, 0, 1, 1], [], []>} : vector<128x128xf32>, vector<128x256xf32>, vector<128x256xf32> -> vector<128x256xf32>
      %139 = arith.addf %138, %116 : vector<128x256xf32>
      %140 = vector.extract_strided_slice %139 {offsets = [0, 0], sizes = [128, 128], strides = [1, 1]} : vector<128x256xf32> to vector<128x128xf32>
      %141 = vector.extract_strided_slice %139 {offsets = [0, 128], sizes = [128, 128], strides = [1, 1]} : vector<128x256xf32> to vector<128x128xf32>
      %142 = arith.mulf %140, %140 : vector<128x128xf32>
      %143 = arith.addf %134, %142 : vector<128x128xf32>
      %144 = arith.mulf %140, %141 : vector<128x128xf32>
      %145 = arith.addf %136, %144 : vector<128x128xf32>
      %cst_49 = arith.constant 9.99999993E-9 : f32
      %146 = vector.broadcast %cst_49 : f32 to vector<128x128xf32>
      %147 = arith.addf %143, %146 : vector<128x128xf32>
      %148 = math.sqrt %147 : vector<128x128xf32>
      %149 = tpu.concatenate %107, %148 in 1 : vector<128x128xf32>, vector<128x128xf32> -> vector<128x256xf32>
      %c0_50 = arith.constant 0 : index
      %c0_51 = arith.constant 0 : index
      %c0_52 = arith.constant 0 : index
      %150 = vector.load %arg14[%c0_50, %c0_51, %c0_52] : memref<1x256x128xf32, #tpu.memory_space<vmem>>, vector<1x256x128xf32>
      %151 = vector.shape_cast %150 : vector<1x256x128xf32> to vector<256x128xf32>
      %cst_53 = arith.constant dense<0.000000e+00> : vector<128x128xf32>
      %152 = tpu.matmul %149, %151, %cst_53 {dimension_numbers = #tpu.dot_dimension_numbers<[1], [0], [0], [1], [0, 0, 1, 1], [], []>} : vector<128x256xf32>, vector<256x128xf32>, vector<128x128xf32> -> vector<128x128xf32>
      %c0_54 = arith.constant 0 : index
      %c0_55 = arith.constant 0 : index
      %c0_56 = arith.constant 0 : index
      %153 = vector.load %arg15[%c0_54, %c0_55, %c0_56] : memref<1x1x128xf32, #tpu.memory_space<vmem>>, vector<1x1x128xf32>
      %154 = vector.shape_cast %153 : vector<1x1x128xf32> to vector<1x128xf32>
      %155 = vector.broadcast %154 : vector<1x128xf32> to vector<128x128xf32>
      %156 = arith.addf %152, %155 : vector<128x128xf32>
      %157 = arith.negf %156 : vector<128x128xf32>
      %158 = math.exp %157 : vector<128x128xf32>
      %cst_57 = arith.constant 1.000000e+00 : f32
      %159 = vector.broadcast %cst_57 : f32 to vector<128x128xf32>
      %160 = arith.addf %159, %158 : vector<128x128xf32>
      %161 = arith.divf %159, %160 : vector<128x128xf32>
      %162 = arith.mulf %156, %161 : vector<128x128xf32>
      %c0_58 = arith.constant 0 : index
      %c0_59 = arith.constant 0 : index
      %c0_60 = arith.constant 0 : index
      %163 = vector.load %arg16[%c0_58, %c0_59, %c0_60] : memref<1x128x384xf32, #tpu.memory_space<vmem>>, vector<1x128x384xf32>
      %164 = vector.shape_cast %163 : vector<1x128x384xf32> to vector<128x384xf32>
      %cst_61 = arith.constant dense<0.000000e+00> : vector<128x384xf32>
      %165 = tpu.matmul %162, %164, %cst_61 {dimension_numbers = #tpu.dot_dimension_numbers<[1], [0], [0], [1], [0, 0, 1, 1], [], []>} : vector<128x128xf32>, vector<128x384xf32>, vector<128x384xf32> -> vector<128x384xf32>
      %c0_62 = arith.constant 0 : index
      %c0_63 = arith.constant 0 : index
      %c0_64 = arith.constant 0 : index
      %166 = vector.load %arg17[%c0_62, %c0_63, %c0_64] : memref<1x1x384xf32, #tpu.memory_space<vmem>>, vector<1x1x384xf32>
      %167 = vector.shape_cast %166 : vector<1x1x384xf32> to vector<1x384xf32>
      %168 = vector.broadcast %167 : vector<1x384xf32> to vector<128x384xf32>
      %169 = arith.addf %165, %168 : vector<128x384xf32>
      %170 = vector.extract_strided_slice %169 {offsets = [0, 0], sizes = [128, 128], strides = [1, 1]} : vector<128x384xf32> to vector<128x128xf32>
      %171 = vector.extract_strided_slice %169 {offsets = [0, 256], sizes = [128, 128], strides = [1, 1]} : vector<128x384xf32> to vector<128x128xf32>
      %172 = arith.mulf %171, %145 : vector<128x128xf32>
      %173 = arith.addf %170, %172 : vector<128x128xf32>
      %c0_65 = arith.constant 0 : index
      %c0_66 = arith.constant 0 : index
      %174 = vector.load %arg18[%c0_65, %c0_66] : memref<128x128xf32, #tpu.memory_space<vmem>>, vector<128x128xf32>
      tpu.vector_store %arg18[%c0_65, %c0_66], %173 {strides = array<i32>} : memref<128x128xf32, #tpu.memory_space<vmem>>, vector<128x128xf32>,
      %175 = vector.extract_strided_slice %169 {offsets = [0, 128], sizes = [128, 128], strides = [1, 1]} : vector<128x384xf32> to vector<128x128xf32>
      %176 = arith.mulf %175, %123 : vector<128x128xf32>
      %177 = vector.extract_strided_slice %169 {offsets = [0, 128], sizes = [128, 128], strides = [1, 1]} : vector<128x384xf32> to vector<128x128xf32>
      %178 = arith.mulf %177, %132 : vector<128x128xf32>
      %179 = vector.extract_strided_slice %169 {offsets = [0, 128], sizes = [128, 128], strides = [1, 1]} : vector<128x384xf32> to vector<128x128xf32>
      %180 = arith.mulf %179, %141 : vector<128x128xf32>
      %181 = tpu.concatenate %176, %178, %180 in 1 : vector<128x128xf32>, vector<128x128xf32>, vector<128x128xf32> -> vector<128x384xf32>
      %c0_67 = arith.constant 0 : index
      %c0_68 = arith.constant 0 : index
      %182 = vector.load %arg19[%c0_67, %c0_68] : memref<128x384xf32, #tpu.memory_space<vmem>>, vector<128x384xf32>
      tpu.vector_store %arg19[%c0_67, %c0_68], %181 {strides = array<i32>} : memref<128x384xf32, #tpu.memory_space<vmem>>, vector<128x384xf32>,
    } else {
    }
    return
  }
  func.func @transform_0(%arg0: i32, %arg1: i32) -> (i32, i32) {
    %c0_i32 = arith.constant 0 : i32
    %c0_i32_0 = arith.constant 0 : i32
    return %c0_i32, %arg1 : i32, i32
  }
  func.func @transform_1(%arg0: i32, %arg1: i32) -> (i32, i32) {
    %c0_i32 = arith.constant 0 : i32
    %c0_i32_0 = arith.constant 0 : i32
    return %arg1, %c0_i32 : i32, i32
  }
  func.func @transform_2(%arg0: i32, %arg1: i32) -> (i32, i32) {
    %c0_i32 = arith.constant 0 : i32
    %c0_i32_0 = arith.constant 0 : i32
    return %arg1, %c0_i32 : i32, i32
  }
  func.func @transform_3(%arg0: i32, %arg1: i32) -> (i32, i32) {
    %c0_i32 = arith.constant 0 : i32
    %c0_i32_0 = arith.constant 0 : i32
    %c0_i32_1 = arith.constant 0 : i32
    return %c0_i32, %c0_i32_0 : i32, i32
  }
  func.func @transform_4(%arg0: i32, %arg1: i32) -> (i32, i32) {
    %c0_i32 = arith.constant 0 : i32
    %c0_i32_0 = arith.constant 0 : i32
    return %c0_i32, %arg0 : i32, i32
  }
  func.func @transform_5(%arg0: i32, %arg1: i32) -> (i32, i32) {
    %c0_i32 = arith.constant 0 : i32
    %c0_i32_0 = arith.constant 0 : i32
    return %c0_i32, %arg0 : i32, i32
  }
  func.func @transform_6(%arg0: i32, %arg1: i32) -> (i32, i32, i32) {
    %c0_i32 = arith.constant 0 : i32
    %c0_i32_0 = arith.constant 0 : i32
    %c0_i32_1 = arith.constant 0 : i32
    return %arg0, %c0_i32, %c0_i32_0 : i32, i32, i32
  }
  func.func @transform_7(%arg0: i32, %arg1: i32) -> (i32, i32, i32) {
    %c0_i32 = arith.constant 0 : i32
    %c0_i32_0 = arith.constant 0 : i32
    %c0_i32_1 = arith.constant 0 : i32
    return %arg0, %c0_i32, %c0_i32_0 : i32, i32, i32
  }
  func.func @transform_8(%arg0: i32, %arg1: i32) -> (i32, i32, i32) {
    %c0_i32 = arith.constant 0 : i32
    %c0_i32_0 = arith.constant 0 : i32
    %c0_i32_1 = arith.constant 0 : i32
    return %arg0, %c0_i32, %c0_i32_0 : i32, i32, i32
  }
  func.func @transform_9(%arg0: i32, %arg1: i32) -> (i32, i32, i32) {
    %c0_i32 = arith.constant 0 : i32
    %c0_i32_0 = arith.constant 0 : i32
    %c0_i32_1 = arith.constant 0 : i32
    return %arg0, %c0_i32, %c0_i32_0 : i32, i32, i32
  }
  func.func @transform_10(%arg0: i32, %arg1: i32) -> (i32, i32, i32) {
    %c0_i32 = arith.constant 0 : i32
    %c0_i32_0 = arith.constant 0 : i32
    %c0_i32_1 = arith.constant 0 : i32
    return %arg0, %c0_i32, %c0_i32_0 : i32, i32, i32
  }
  func.func @transform_11(%arg0: i32, %arg1: i32) -> (i32, i32, i32) {
    %c0_i32 = arith.constant 0 : i32
    %c0_i32_0 = arith.constant 0 : i32
    %c0_i32_1 = arith.constant 0 : i32
    return %arg0, %c0_i32, %c0_i32_0 : i32, i32, i32
  }
  func.func @transform_12(%arg0: i32, %arg1: i32) -> (i32, i32, i32) {
    %c0_i32 = arith.constant 0 : i32
    %c0_i32_0 = arith.constant 0 : i32
    %c0_i32_1 = arith.constant 0 : i32
    return %arg0, %c0_i32, %c0_i32_0 : i32, i32, i32
  }
  func.func @transform_13(%arg0: i32, %arg1: i32) -> (i32, i32, i32) {
    %c0_i32 = arith.constant 0 : i32
    %c0_i32_0 = arith.constant 0 : i32
    %c0_i32_1 = arith.constant 0 : i32
    return %arg0, %c0_i32, %c0_i32_0 : i32, i32, i32
  }
  func.func @transform_14(%arg0: i32, %arg1: i32) -> (i32, i32, i32) {
    %c0_i32 = arith.constant 0 : i32
    %c0_i32_0 = arith.constant 0 : i32
    %c0_i32_1 = arith.constant 0 : i32
    return %arg0, %c0_i32, %c0_i32_0 : i32, i32, i32
  }
  func.func @transform_15(%arg0: i32, %arg1: i32) -> (i32, i32, i32) {
    %c0_i32 = arith.constant 0 : i32
    %c0_i32_0 = arith.constant 0 : i32
    %c0_i32_1 = arith.constant 0 : i32
    return %arg0, %c0_i32, %c0_i32_0 : i32, i32, i32
  }
  func.func @transform_16(%arg0: i32, %arg1: i32) -> (i32, i32) {
    %c0_i32 = arith.constant 0 : i32
    %c0_i32_0 = arith.constant 0 : i32
    %c0_i32_1 = arith.constant 0 : i32
    return %c0_i32, %c0_i32_0 : i32, i32
  }
  func.func @transform_17(%arg0: i32, %arg1: i32) -> (i32, i32) {
    %c0_i32 = arith.constant 0 : i32
    %c0_i32_0 = arith.constant 0 : i32
    %c0_i32_1 = arith.constant 0 : i32
    return %c0_i32, %c0_i32_0 : i32, i32
  }
}

</mosaic_0001>

<bundles_post_ra>
// kernel: tpu_custom_call.1
= control target key start
LH: loop header
LB: loop body
LE: loop exit
PB: predicated region body
PF: predicated region fallthrough
CT: control target
= control target key end

     0   :  { %s15896_s0 = inlined_call_operand.vmem [shape: s32[1,128], index: 0, kind: input, shape index: {}]   ;;  %s15897_s1 = inlined_call_operand.vmem [shape: s32[128,1], index: 1, kind: input, shape index: {}]   ;;  %s15898_s2 = inlined_call_operand.vmem [shape: f32[128,3], index: 2, kind: input, shape index: {}]   ;;  %s15899_s3 = inlined_call_operand.vmem [shape: f32[128,128], index: 3, kind: input, shape index: {}]   ;;  %s15900_s4 = inlined_call_operand.vmem [shape: f32[16,1152], index: 4, kind: input, shape index: {}]   ;;  %s15901_s5 = inlined_call_operand.hbm [shape: f32[1,1152], index: 5, kind: input, shape index: {}]   ;;  %s15902_s6 = inlined_call_operand.hbm [shape: f32[3,128,128], index: 6, kind: input, shape index: {}]   ;;  %s15903_s7 = inlined_call_operand.hbm [shape: f32[3,1,128], index: 7, kind: input, shape index: {}]   ;;  %s15904_s8 = inlined_call_operand.hbm [shape: f32[3,128,384], index: 8, kind: input, shape index: {}]   ;;  %s15905_s9 = inlined_call_operand.vmem [shape: f32[3,1,384], index: 9, kind: input, shape index: {}]   ;;  %s15906_s10 = inlined_call_operand.hbm [shape: f32[3,128,256], index: 10, kind: input, shape index: {}]   ;;  %s15907_s11 = inlined_call_operand.vmem [shape: f32[3,1,256], index: 11, kind: input, shape index: {}]   ;;  %s15908_s12 = inlined_call_operand.hbm [shape: f32[3,256,128], index: 12, kind: input, shape index: {}]   ;;  %s15909_s13 = inlined_call_operand.vmem [shape: f32[3,1,128], index: 13, kind: input, shape index: {}]   ;;  %s15910_s14 = inlined_call_operand.hbm [shape: f32[3,128,384], index: 14, kind: input, shape index: {}]   ;;  %s15911_s15 = inlined_call_operand.vmem [shape: f32[3,1,384], index: 15, kind: input, shape index: {}]   ;;  %s15912_s16 = inlined_call_operand.hbm [shape: f32[128,128], index: 16, kind: output, shape index: {0}]   ;;  %s15913_s17 = inlined_call_operand.hbm [shape: f32[128,384], index: 17, kind: output, shape index: {1}]  }
   0x1   :  { %16136 = sst [smem:[#allocation87_spill]] %s15896_s0 }
   0x2   :  { %16137 = sst [smem:[#allocation88_spill]] %s15897_s1 }
   0x3   :  { %16138 = sst [smem:[#allocation89_spill]] %s15898_s2 }
   0x4   :  { %16139 = sst [smem:[#allocation90_spill]] %s15899_s3 }
   0x5   :  { %16140 = sst [smem:[#allocation91_spill]] %s15900_s4 }
   0x6   :  { %16141 = sst [smem:[#allocation92_spill]] %s15901_s5 }
   0x7   :  { %16142 = sst [smem:[#allocation93_spill]] %s15902_s6 }
   0x8   :  { %16143 = sst [smem:[#allocation94_spill]] %s15903_s7 }
   0x9   :  { %16144 = sst [smem:[#allocation95_spill]] %s15904_s8 }
   0xa   :  { %16145 = sst [smem:[#allocation96_spill]] %s15905_s9 }
   0xb   :  { %16146 = sst [smem:[#allocation97_spill]] %s15906_s10 }
   0xc   :  { %16147 = sst [smem:[#allocation98_spill]] %s15907_s11 }
   0xd   :  { %16148 = sst [smem:[#allocation99_spill]] %s15908_s12 }
   0xe   :  { %16149 = sst [smem:[#allocation100_spill]] %s15910_s14 }
   0xf   :  { %16150 = sst [smem:[#allocation101_spill]] %s15911_s15 }
  0x10   :  { %16151 = sst [smem:[#allocation102_spill]] %s15912_s16 }
  0x11   :  { %16152 = sst [smem:[#allocation103_spill]] %s15913_s17 }
  0x12   :  { %23 = vsyncpa [#allocation6], 0 }
  0x13   :  { %25 = vsyncpa [#allocation6 + $0x1], 0 }
  0x14   :  { %26 = vsyncpa [#allocation9], 0 }
  0x15   :  { %28 = vsyncpa [#allocation9 + $0x1], 0 }
  0x16   :  { %29 = vsyncpa [#allocation12], 0 }
  0x17   :  { %31 = vsyncpa [#allocation12 + $0x1], 0 }
  0x18   :  { %32 = vsyncpa [#allocation15], 0 }
  0x19   :  { %34 = vsyncpa [#allocation15 + $0x1], 0 }
  0x1a   :  { %35 = vsyncpa [#allocation7], 0 }
  0x1b   :  { %36 = vsyncpa [#allocation19], 0  ;;  %s10299_s24 = smov 0   ;;  %s10301_s25 = smov 0  }
  0x1c   :  { %s10303_s26 = smov 0   ;;  %s10305_s27 = smov 0  }
  0x1d   :  { %s10307_s28 = smov 0   ;;  %s10309_s29 = smov 0  }
  0x1e LB: > { %16153 = sst [smem:[#allocation26_spill]] %s10162_s26  ;;  %s10328_s0 = sadd.s32 4294967295, %s10174_s29   ;;  %s10174_s29 = sphi %s10309_s29, %s42_s29   ;;  %s10170_s28 = sphi %s10307_s28, %s16611_s28   ;;  %s10166_s27 = sphi %s10305_s27, %s16610_s27   ;;  %s10162_s26 = sphi %s10303_s26, %s16609_s26   ;;  %s10158_s25 = sphi %s10301_s25, %s16613_s25   ;;  %s10154_s24 = sphi %s10299_s24, %s16612_s24  }
  0x1f   : > { %16154 = sst [smem:[#allocation27_spill]] %s10170_s28  ;;  %s54_s30 = sadd.s32 1, %s10170_s28 }
  0x20   : > { %p56_p0 = scmp.ge.s32.totalorder %s54_s30, 3  ;;  %s160_s18 = sadd.s32 1, %s10162_s26 }
  0x21   : > { %p167_p1 = scmp.ne.s32.totalorder %s10162_s26, %s10158_s25  ;;  %p168_p2 = scmp.eq.s32.totalorder %s10174_s29, 0 }
  0x22   : > { %s16615_s30 = smov (%p56_p0, %s54_s30), 0  ;;  %p199_p4 = scmp.ne.s32.totalorder %s10158_s25, %s10154_s24 }
  0x23   : > { %16155 = sst [smem:[#allocation28_spill]] %s16615_s30  ;;  %p10337_p3 = por %p168_p2, %p167_p1 }
  0x24   : > { %s157_s1 = ssub.s32 %s10170_s28, %s16615_s30  ;;  %p200_p5 = scmp.eq.s32.totalorder %s10328_s0, 0 }
  0x25   : > { %p158_p6 = scmp.eq.s32.totalorder %s157_s1, 0  ;;  %p8359_p8 = scmp.ge.s32.totalorder %s10174_s29, 3 }
  0x26   : > { %p10345_p7 = por %p200_p5, %p199_p4 }
  0x27   : > { %s10350_s21 = scalar_select %p158_p6, %s10162_s26, %s160_s18  }
  0x28   : > { %s16157_s20 = scalar_select %p10345_p7, 1, 0 }
  0x29   : > { %16158 = sst [smem:[#allocation29_spill]] %s10350_s21  ;;  %548 = sbr.rel (%p8359_p8) target bundleno = 265 (0x109), region = 32 }
  0x30   : > { %551 = sbr.rel (!%p10337_p3) target bundleno = 60 (0x3c), region = 36  ;;  %s553_s22 = sand.u32 (%p10337_p3), 1, %s10162_s26  }
  0x31   : > { %s8629_s23 = smul.u32 (%p10337_p3), 24, %s10170_s28  ;;  %s16159_s4 = sld [smem:[#allocation91_spill]] (%p10337_p3) }
  0x32   : > { %s9321_s24 = smul.u32 (%p10337_p3), 48, %s553_s22 }
  0x34   : > { %s555_s18 = scalar_lea.vmem (%p10337_p3), [#allocation4], %s9321_s24 }
  0x37   : > { %s558_s1 = scalar_lea.vmem %s16159_s4, %s8629_s23 }
  0x38   : > { %v571_v0 = vld [vmem:[%s558_s1] sm:$0xff]  ;;  %v573_v1 = vld [vmem:[%s558_s1 + $0x8] sm:$0xff]  ;;  %v575_v2 = vld [vmem:[%s558_s1 + $0x10] sm:$0xff] }
  0x39   : > { %572 = vst [vmem:[%s555_s18] sm:$0xff] %v571_v0  ;;  %574 = vst [vmem:[%s555_s18 + $0x8] sm:$0xff] %v573_v1  ;;  %v577_v3 = vld [vmem:[%s558_s1 + $0x48] sm:$0xff]  ;;  %v579_v4 = vld [vmem:[%s558_s1 + $0x50] sm:$0xff] }
  0x3a   : > { %576 = vst [vmem:[%s555_s18 + $0x10] sm:$0xff] %v575_v2  ;;  %v581_v5 = vld [vmem:[%s558_s1 + $0x58] sm:$0xff]  ;;  %578 = vst [vmem:[%s555_s18 + $0x18] sm:$0xff] %v577_v3 }
  0x3b   : > { %580 = vst [vmem:[%s555_s18 + $0x20] sm:$0xff] %v579_v4  ;;  %582 = vst [vmem:[%s555_s18 + $0x28] sm:$0xff] %v581_v5 }
  0x3c PF: > { %s10361_s16 = sand.u32 1, %s10162_s26   ;;  %s10364_s30 = sand.u32 1, %s10174_s29  }
  0x3d   : > { %s8362_s22 = sshll.u32 %s10361_s16, 7  ;;  %s8631_s23 = sshll.u32 %s10170_s28, 11 }
  0x3e   : > { %s16160_s6 = sld [smem:[#allocation93_spill]]  ;;  %s612_s18 = scalar_lea.vmem [#allocation8], %s8362_s22 }
  0x3f   : > { %s619_s21 = sshll.u32 %s612_s18, 4  ;;  %s15921_s26 = scalar_lea.sflag [#allocation9], %s10364_s30  ;;  %s10373_s21 = int_to_ptr.vmem [resolvable:$true] %s619_s21 }
  0x44   : > { %s10371_s1 = scalar_lea.hbm %s16160_s6, %s8631_s23  ;;  %s9860_s4 = scalar_lea.hbm %s16160_s6, 6144 }
  0x45   : > { %s9856_s17 = scalar_lea.hbm %s10371_s1, 2048  ;;  %p9861_p12 = scmp.lt.u32.totalorder %s10371_s1, %s16160_s6 }
  0x46   : > { %p9857_p9 = scmp.ne.s32.totalorder %s10371_s1, %s9856_s17  ;;  %p9862_p13 = scmp.lt.u32.totalorder %s9860_s4, %s9856_s17 }
  0x47   : > { %p9864_p1 = scmp.lt.u32.totalorder %s9856_s17, %s10371_s1 }
  0x48   : > { %p9858_p10 = pnand %p9857_p9, %p10337_p3  ;;  %p9863_p0 = por %p9862_p13, %p9861_p12 }
  0x4a   : > { %p9859_p11 = pneg %p9858_p10  ;;  %p9865_p2 = por %p9864_p1, %p9863_p0 }
  0x4c   : > { %p9866_p4 = pnand %p9865_p2, %p9859_p11 }
  0x4e   : > { %9869 = shalt.err (!%p9866_p4)
}
  0x4f   : > { %s9870_s22 = scalar_lea.vmem %s10373_s21, 2048  ;;  %s10176_s2 = smov [#allocation8]  }
  0x50   : > { %p9871_p5 = scmp.ne.s32.totalorder %s10373_s21, %s9870_s22  ;;  %s9874_s3 = sshll.u32 %s10176_s2, 4  ;;  %s9875_s3 = int_to_ptr.vmem [resolvable:$false] %s9874_s3 }
  0x51   : > { %s9876_s18 = scalar_lea.vmem %s9875_s3, 4096  ;;  %p9877_p9 = scmp.lt.s32.totalorder %s10373_s21, %s9875_s3 }
  0x52   : > { %p9872_p6 = pnand %p9871_p5, %p10337_p3  ;;  %p9878_p10 = scmp.lt.s32.totalorder %s9876_s18, %s9870_s22 }
  0x54   : > { %p9873_p8 = pneg %p9872_p6  ;;  %p9879_p12 = por %p9878_p10, %p9877_p9 }
  0x56   : > { %p9880_p13 = pnand %p9879_p12, %p9873_p8 }
  0x58   : > { %9883 = shalt.err (!%p9880_p13)
}
  0x59   : > { %s15924_s17 = smov 128   ;;  %s15925_s4 = smov 8  }
  0x5a   : > { %9396 = dma.hbm_to_vmem [thread:$0]  (%p10337_p3), %s10371_s1, 2048, %s10373_s21, %s15921_s26, %s15924_s17, %s15924_s17, %s15925_s4  }
  0x5b   : > { %s15923_s23 = smul.u32 384, %s10361_s16  ;;  %s8367_s22 = sshll.u32 %s10361_s16, 8 }
  0x5c   : > { %s15922_s24 = smul.u32 6144, %s10170_s28  ;;  %s16161_s8 = sld [smem:[#allocation95_spill]] }
  0x5d   : > { %s650_s6 = scalar_lea.vmem [#allocation11], %s15923_s23  ;;  %s15928_s9 = scalar_lea.sflag [#allocation12], %s10364_s30 }
  0x5e   : > { %s657_s15 = sshll.u32 %s650_s6, 4  ;;  %s10414_s15 = int_to_ptr.vmem [resolvable:$true] %s657_s15 }
  0x62   : > { %s10410_s18 = scalar_lea.hbm %s16161_s8, %s15922_s24  ;;  %s9888_s2 = scalar_lea.hbm %s16161_s8, 18432 }
  0x63   : > { %s9884_s21 = scalar_lea.hbm %s10410_s18, 6144  ;;  %p9889_p2 = scmp.lt.u32.totalorder %s10410_s18, %s16161_s8 }
  0x64   : > { %p9885_p11 = scmp.ne.s32.totalorder %s10410_s18, %s9884_s21  ;;  %p9890_p4 = scmp.lt.u32.totalorder %s9888_s2, %s9884_s21 }
  0x65   : > { %p9892_p6 = scmp.lt.u32.totalorder %s9884_s21, %s10410_s18 }
  0x66   : > { %p9886_p0 = pnand %p9885_p11, %p10337_p3  ;;  %p9891_p5 = por %p9890_p4, %p9889_p2 }
  0x68   : > { %p9887_p1 = pneg %p9886_p0  ;;  %p9893_p8 = por %p9892_p6, %p9891_p5 }
  0x6a   : > { %p9894_p9 = pnand %p9893_p8, %p9887_p1 }
  0x6c   : > { %9897 = shalt.err (!%p9894_p9)
}
  0x6d   : > { %s9898_s6 = scalar_lea.vmem %s10414_s15, 6144  ;;  %s10179_s26 = smov [#allocation11]  }
  0x6e   : > { %p9899_p10 = scmp.ne.s32.totalorder %s10414_s15, %s9898_s6  ;;  %s9902_s1 = sshll.u32 %s10179_s26, 4  ;;  %s9903_s1 = int_to_ptr.vmem [resolvable:$false] %s9902_s1 }
  0x6f   : > { %s9904_s24 = scalar_lea.vmem %s9903_s1, 12288  ;;  %p9905_p11 = scmp.lt.s32.totalorder %s10414_s15, %s9903_s1 }
  0x70   : > { %p9900_p12 = pnand %p9899_p10, %p10337_p3  ;;  %p9906_p0 = scmp.lt.s32.totalorder %s9904_s24, %s9898_s6 }
  0x72   : > { %p9901_p13 = pneg %p9900_p12  ;;  %p9907_p2 = por %p9906_p0, %p9905_p11 }
  0x74   : > { %p9908_p4 = pnand %p9907_p2, %p9901_p13 }
  0x76   : > { %9911 = shalt.err (!%p9908_p4)
}
  0x77   : > { %s15926_s21 = smov 384   ;;  %s15927_s2 = smov 24  }
  0x78   : > { %9398 = dma.hbm_to_vmem [thread:$0]  (%p10337_p3), %s10410_s18, 6144, %s10414_s15, %s15928_s9, %s15926_s21, %s15926_s21, %s15927_s2  }
  0x79   : > { %s8632_s3 = sshll.u32 %s10170_s28, 12  ;;  %s10446_s6 = scalar_lea.vmem [#allocation13], %s8367_s22 }
  0x7a   : > { %s16162_s10 = sld [smem:[#allocation97_spill]]  ;;  %s16163_s12 = sld [smem:[#allocation99_spill]] }
  0x7b   : > { %s706_s15 = scalar_lea.vmem [#allocation14], %s8367_s22  ;;  %s9322_s21 = smul.u32 3, %s10361_s16 }
  0x7c   : > { %s713_s18 = sshll.u32 %s706_s15, 4  ;;  %s15930_s2 = scalar_lea.sflag [#allocation15], %s10364_s30  ;;  %s10461_s18 = int_to_ptr.vmem [resolvable:$true] %s713_s18 }
  0x80   : > { %s10452_s23 = scalar_lea.hbm %s16162_s10, %s8632_s3  ;;  %s10457_s8 = scalar_lea.hbm %s16163_s12, %s8632_s3 }
  0x81   : > { %s9912_s9 = scalar_lea.hbm %s10457_s8, 4096  ;;  %s9916_s4 = scalar_lea.hbm %s16163_s12, 12288 }
  0x82   : > { %p9913_p1 = scmp.ne.s32.totalorder %s10457_s8, %s9912_s9  ;;  %p9917_p8 = scmp.lt.u32.totalorder %s10457_s8, %s16163_s12 }
  0x83   : > { %p9918_p9 = scmp.lt.u32.totalorder %s9916_s4, %s9912_s9  ;;  %p9920_p12 = scmp.lt.u32.totalorder %s9912_s9, %s10457_s8 }
  0x84   : > { %p9914_p5 = pnand %p9913_p1, %p10337_p3 }
  0x85   : > { %p9919_p10 = por %p9918_p9, %p9917_p8 }
  0x86   : > { %p9915_p6 = pneg %p9914_p5 }
  0x87   : > { %p9921_p13 = por %p9920_p12, %p9919_p10 }
  0x89   : > { %p9922_p11 = pnand %p9921_p13, %p9915_p6 }
  0x8b   : > { %9925 = shalt.err (!%p9922_p11)
}
  0x8c   : > { %s9926_s22 = scalar_lea.vmem %s10461_s18, 4096  ;;  %s10182_s15 = smov [#allocation14]  }
  0x8d   : > { %p9927_p0 = scmp.ne.s32.totalorder %s10461_s18, %s9926_s22  ;;  %s9930_s1 = sshll.u32 %s10182_s15, 4  ;;  %s9931_s1 = int_to_ptr.vmem [resolvable:$false] %s9930_s1 }
  0x8e   : > { %s9932_s17 = scalar_lea.vmem %s9931_s1, 8192  ;;  %p9933_p1 = scmp.lt.s32.totalorder %s10461_s18, %s9931_s1 }
  0x8f   : > { %p9928_p2 = pnand %p9927_p0, %p10337_p3  ;;  %p9934_p5 = scmp.lt.s32.totalorder %s9932_s17, %s9926_s22 }
  0x91   : > { %p9929_p4 = pneg %p9928_p2  ;;  %p9935_p8 = por %p9934_p5, %p9933_p1 }
  0x93   : > { %p9936_p9 = pnand %p9935_p8, %p9929_p4 }
  0x95   : > { %9939 = shalt.err (!%p9936_p9)
}
  0x96   : > { %s16164_s9 = smov 8   ;;  %s16165_s4 = smov 128  }
  0x97   : > { %9400 = dma.hbm_to_vmem [thread:$0]  (%p10337_p3), %s10457_s8, 4096, %s10461_s18, %s15930_s2, %s16165_s4, %s16165_s4, %s16164_s9  }
  0x98   : > { %s8630_s3 = smul.u32 48, %s10170_s28  ;;  %s593_s24 = scalar_lea.vmem [#allocation5], %s9322_s21 }
  0x99   : > { %s601_s22 = sshll.u32 %s593_s24, 4  ;;  %s16166_s5 = sld [smem:[#allocation92_spill]]  ;;  %s602_s22 = int_to_ptr.vmem [resolvable:$true] %s601_s22 }
  0x9a   : > { %s590_s26 = scalar_lea.sflag [#allocation6], %s10361_s16 }
  0x9f   : > { %s10497_s17 = scalar_lea.hbm %s16166_s5, %s8630_s3  ;;  %s9944_s21 = scalar_lea.hbm %s16166_s5, 144 }
  0xa0   : > { %s9940_s12 = scalar_lea.hbm %s10497_s17, 48  ;;  %p9945_p13 = scmp.lt.u32.totalorder %s10497_s17, %s16166_s5 }
  0xa1   : > { %p9941_p6 = scmp.ne.s32.totalorder %s10497_s17, %s9940_s12  ;;  %p9946_p11 = scmp.lt.u32.totalorder %s9944_s21, %s9940_s12 }
  0xa2   : > { %p9948_p2 = scmp.lt.u32.totalorder %s9940_s12, %s10497_s17 }
  0xa3   : > { %p9942_p10 = pnand %p9941_p6, %p10337_p3  ;;  %p9947_p0 = por %p9946_p11, %p9945_p13 }
  0xa5   : > { %p9943_p12 = pneg %p9942_p10  ;;  %p9949_p4 = por %p9948_p2, %p9947_p0 }
  0xa7   : > { %p9950_p1 = pnand %p9949_p4, %p9943_p12 }
  0xa9   : > { %9953 = shalt.err (!%p9950_p1)
}
  0xaa   : > { %s9954_s3 = scalar_lea.vmem %s602_s22, 48  ;;  %s10183_s24 = smov [#allocation5]  }
  0xab   : > { %p9955_p5 = scmp.ne.s32.totalorder %s602_s22, %s9954_s3  ;;  %s9958_s15 = sshll.u32 %s10183_s24, 4  ;;  %s9959_s15 = int_to_ptr.vmem [resolvable:$false] %s9958_s15 }
  0xac   : > { %s9960_s1 = scalar_lea.vmem %s9959_s15, 96  ;;  %p9961_p6 = scmp.lt.s32.totalorder %s602_s22, %s9959_s15 }
  0xad   : > { %p9956_p8 = pnand %p9955_p5, %p10337_p3  ;;  %p9962_p10 = scmp.lt.s32.totalorder %s9960_s1, %s9954_s3 }
  0xaf   : > { %p9957_p9 = pneg %p9956_p8  ;;  %p9963_p7 = por %p9962_p10, %p9961_p6 }
  0xb1   : > { %p9964_p11 = pnand %p9963_p7, %p9957_p9 }
  0xb3   : > { %9967 = shalt.err (!%p9964_p11)
}
  0xb4   : > { %9395 = dma.hbm_to_vmem [thread:$0]  (%p10337_p3), %s10497_s17, 48, %s602_s22, %s590_s26  }
  0xb5   : > { %s8365_s12 = sshll.u32 %s10170_s28, 4  ;;  %s632_s8 = scalar_lea.vmem [#allocation10], %s10361_s16 }
  0xb6   : > { %s639_s18 = sshll.u32 %s632_s8, 4  ;;  %s16167_s7 = sld [smem:[#allocation94_spill]]  ;;  %s640_s18 = int_to_ptr.vmem [resolvable:$true] %s639_s18 }
  0xbc   : > { %s637_s4 = scalar_lea.hbm %s16167_s7, %s8365_s12  ;;  %s9972_s1 = scalar_lea.hbm %s16167_s7, 48 }
  0xbd   : > { %s9968_s24 = scalar_lea.hbm %s637_s4, 16  ;;  %p9973_p0 = scmp.lt.u32.totalorder %s637_s4, %s16167_s7 }
  0xbe   : > { %p9969_p12 = scmp.ne.s32.totalorder %s637_s4, %s9968_s24  ;;  %p9974_p2 = scmp.lt.u32.totalorder %s9972_s1, %s9968_s24 }
  0xbf   : > { %p9976_p1 = scmp.lt.u32.totalorder %s9968_s24, %s637_s4 }
  0xc0   : > { %p9970_p7 = pnand %p9969_p12, %p10337_p3  ;;  %p9975_p4 = por %p9974_p2, %p9973_p0 }
  0xc2   : > { %p9971_p13 = pneg %p9970_p7  ;;  %p9977_p5 = por %p9976_p1, %p9975_p4 }
  0xc4   : > { %p9978_p8 = pnand %p9977_p5, %p9971_p13 }
  0xc6   : > { %9981 = shalt.err (!%p9978_p8)
}
  0xc7   : > { %s9982_s26 = scalar_lea.vmem %s640_s18, 16  ;;  %s10184_s22 = smov [#allocation10]  }
  0xc8   : > { %p9983_p9 = scmp.ne.s32.totalorder %s640_s18, %s9982_s26  ;;  %s9986_s17 = sshll.u32 %s10184_s22, 4  ;;  %s9987_s17 = int_to_ptr.vmem [resolvable:$false] %s9986_s17 }
  0xc9   : > { %s9988_s12 = scalar_lea.vmem %s9987_s17, 32  ;;  %p9989_p11 = scmp.lt.s32.totalorder %s640_s18, %s9987_s17 }
  0xca   : > { %p9984_p6 = pnand %p9983_p9, %p10337_p3  ;;  %p9990_p12 = scmp.lt.s32.totalorder %s9988_s12, %s9982_s26 }
  0xcc   : > { %p9985_p10 = pneg %p9984_p6  ;;  %p9991_p7 = por %p9990_p12, %p9989_p11 }
  0xce   : > { %p9992_p0 = pnand %p9991_p7, %p9985_p10 }
  0xd0   : > { %9995 = shalt.err (!%p9992_p0)
}
  0xd1   : > { %s16168_s5 = scalar_lea.sflag [#allocation9], %s10364_s30  ;;  %s16169_s2 = sshll.u32 %s10446_s6, 4  ;;  %s10538_s2 = int_to_ptr.vmem [resolvable:$true] %s16169_s2 }
  0xd2   : > { %9397 = dma.hbm_to_vmem [thread:$0]  (%p10337_p3), %s637_s4, 16, %s640_s18, %s16168_s5  }
  0xd3   : > { %s9996_s8 = scalar_lea.hbm %s10452_s23, 4096  ;;  %s10000_s24 = scalar_lea.hbm %s16162_s10, 12288 }
  0xd4   : > { %p9997_p13 = scmp.ne.s32.totalorder %s10452_s23, %s9996_s8  ;;  %p10001_p1 = scmp.lt.u32.totalorder %s10452_s23, %s16162_s10 }
  0xd5   : > { %p10002_p5 = scmp.lt.u32.totalorder %s10000_s24, %s9996_s8  ;;  %p10004_p9 = scmp.lt.u32.totalorder %s9996_s8, %s10452_s23 }
  0xd6   : > { %p9998_p2 = pnand %p9997_p13, %p10337_p3 }
  0xd7   : > { %p10003_p8 = por %p10002_p5, %p10001_p1 }
  0xd8   : > { %p9999_p4 = pneg %p9998_p2 }
  0xd9   : > { %p10005_p6 = por %p10004_p9, %p10003_p8 }
  0xdb   : > { %p10006_p10 = pnand %p10005_p6, %p9999_p4 }
  0xdd   : > { %10009 = shalt.err (!%p10006_p10)
}
  0xde   : > { %s10010_s6 = scalar_lea.vmem %s10538_s2, 4096  ;;  %s10185_s18 = smov [#allocation13]  }
  0xdf   : > { %p10011_p11 = scmp.ne.s32.totalorder %s10538_s2, %s10010_s6  ;;  %s10014_s4 = sshll.u32 %s10185_s18, 4  ;;  %s10015_s4 = int_to_ptr.vmem [resolvable:$false] %s10014_s4 }
  0xe0   : > { %s10016_s1 = scalar_lea.vmem %s10015_s4, 8192  ;;  %p10017_p0 = scmp.lt.s32.totalorder %s10538_s2, %s10015_s4 }
  0xe1   : > { %p10012_p12 = pnand %p10011_p11, %p10337_p3  ;;  %p10018_p13 = scmp.lt.s32.totalorder %s10016_s1, %s10010_s6 }
  0xe3   : > { %p10013_p7 = pneg %p10012_p12  ;;  %p10019_p2 = por %p10018_p13, %p10017_p0 }
  0xe5   : > { %p10020_p1 = pnand %p10019_p2, %p10013_p7 }
  0xe7   : > { %10023 = shalt.err (!%p10020_p1)
}
  0xe8   : > { %s10186_s26 = smov 256   ;;  %s10187_s22 = smov 16  }
  0xe9   : > { %s16170_s17 = scalar_lea.sflag [#allocation12], %s10364_s30  ;;  %s16171_s12 = smul.u32 6144, %s10170_s28 }
  0xea   : > { %9399 = dma.hbm_to_vmem [thread:$0]  (%p10337_p3), %s10452_s23, 4096, %s10538_s2, %s16170_s17, %s10186_s26, %s10186_s26, %s10187_s22  }
  0xeb   : > { %s16172_s14 = sld [smem:[#allocation100_spill]]  ;;  %s16173_s9 = smul.u32 384, %s10361_s16 }
  0xed   : > { %s733_s24 = scalar_lea.vmem [#allocation16], %s16173_s9 }
  0xee   : > { %s740_s3 = sshll.u32 %s733_s24, 4  ;;  %s10572_s3 = int_to_ptr.vmem [resolvable:$true] %s740_s3 }
  0xf1   : > { %s10568_s21 = scalar_lea.hbm %s16172_s14, %s16171_s12  ;;  %s10028_s6 = scalar_lea.hbm %s16172_s14, 18432 }
  0xf2   : > { %s10024_s15 = scalar_lea.hbm %s10568_s21, 6144  ;;  %p10029_p9 = scmp.lt.u32.totalorder %s10568_s21, %s16172_s14 }
  0xf3   : > { %p10025_p4 = scmp.ne.s32.totalorder %s10568_s21, %s10024_s15  ;;  %p10030_p6 = scmp.lt.u32.totalorder %s10028_s6, %s10024_s15 }
  0xf4   : > { %p10032_p11 = scmp.lt.u32.totalorder %s10024_s15, %s10568_s21 }
  0xf5   : > { %p10026_p5 = pnand %p10025_p4, %p10337_p3  ;;  %p10031_p10 = por %p10030_p6, %p10029_p9 }
  0xf7   : > { %p10027_p8 = pneg %p10026_p5  ;;  %p10033_p12 = por %p10032_p11, %p10031_p10 }
  0xf9   : > { %p10034_p7 = pnand %p10033_p12, %p10027_p8 }
  0xfb   : > { %10037 = shalt.err (!%p10034_p7)
}
  0xfc   : > { %s10038_s16 = scalar_lea.vmem %s10572_s3, 6144  ;;  %s10188_s1 = smov [#allocation16]  }
  0xfd   : > { %p10039_p0 = scmp.ne.s32.totalorder %s10572_s3, %s10038_s16  ;;  %s10042_s26 = sshll.u32 %s10188_s1, 4  ;;  %s10043_s26 = int_to_ptr.vmem [resolvable:$false] %s10042_s26 }
  0xfe   : > { %s10044_s22 = scalar_lea.vmem %s10043_s26, 12288  ;;  %p10045_p1 = scmp.lt.s32.totalorder %s10572_s3, %s10043_s26 }
  0xff   : > { %p10040_p13 = pnand %p10039_p0, %p10337_p3  ;;  %p10046_p4 = scmp.lt.s32.totalorder %s10044_s22, %s10038_s16 }
 0x101   : > { %p10041_p2 = pneg %p10040_p13  ;;  %p10047_p5 = por %p10046_p4, %p10045_p1 }
 0x103   : > { %p10048_p9 = pnand %p10047_p5, %p10041_p2 }
 0x105   : > { %10051 = shalt.err (!%p10048_p9)
}
 0x106   : > { %s16174_s17 = smov 24   ;;  %s16175_s12 = smov 384  }
 0x107   : > { %s16176_s5 = scalar_lea.sflag [#allocation15], %s10364_s30 }
 0x108   : > { %9401 = dma.hbm_to_vmem [thread:$0]  (%p10337_p3), %s10568_s21, 6144, %s10572_s3, %s16176_s5, %s16175_s12, %s16175_s12, %s16174_s17  }
 0x109 PF: > { %p8374_p8 = scmp.ge.s32.totalorder %s10174_s29, 1  ;;  %p755_p6 = scmp.lt.s32.totalorder %s10174_s29, 4 }
 0x10b   : > { %p756_p10 = pnand %p8374_p8, %p755_p6 }
 0x10d   : > { %759 = sbr.rel (%p756_p10) target bundleno = 2472 (0x9a8), region = 103 }
 0x114   : > { %s10603_s8 = sand.u32 1, %s10158_s25   ;;  %p16177_p3 = scmp.ne.s32.totalorder %s16157_s20, 0 }
 0x115   : > { %s9327_s19 = smul.u32 48, %s10603_s8  ;;  %s769_s24 = scalar_lea.sflag [#allocation6], %s10603_s8 }
 0x116   : > { %s9328_s9 = smul.u32 3, %s10603_s8 }
 0x117   : > { %s10607_s30 = scalar_lea.vmem [#allocation4], %s9327_s19 }
 0x118   : > { %s10610_s21 = scalar_lea.vmem [#allocation5], %s9328_s9 }
 0x119   : > { %10129 = dma.done.wait (%p16177_p3), %s769_s24, 48  }
 0x11a   : > { %10131 = vsyncadd (%p16177_p3), %s769_s24, 4294967248  ;;  %s777_s3 = sand.u32 1, %s10328_s0   ;;  %s8375_s15 = sshll.u32 %s10603_s8, 7 }
 0x11b   : > { %s778_s23 = scalar_lea.sflag [#allocation9], %s777_s3  ;;  %s10618_s2 = scalar_lea.vmem [#allocation8], %s8375_s15 }
 0x11c   : > { %10133 = dma.done.wait (%p16177_p3), %s778_s23, 2064  }
 0x11d   : > { %10135 = vsyncadd (%p16177_p3), %s778_s23, 4294965232  ;;  %s9329_s6 = smul.u32 384, %s10603_s8  ;;  %s795_s4 = scalar_lea.sflag [#allocation12], %s777_s3 }
 0x11f   : > { %s10626_s16 = scalar_lea.vmem [#allocation11], %s9329_s6 }
 0x120   : > { %10137 = dma.done.wait (%p16177_p3), %s795_s4, 10240  }
 0x121   : > { %10139 = vsyncadd (%p16177_p3), %s795_s4, 4294957056  ;;  %s8376_s1 = sshll.u32 %s10603_s8, 8  ;;  %s813_s22 = scalar_lea.sflag [#allocation15], %s777_s3 }
 0x122   : > { %s10633_s26 = scalar_lea.vmem [#allocation13], %s8376_s1  ;;  %s10635_s17 = scalar_lea.vmem [#allocation14], %s8376_s1 }
 0x123   : > { %10141 = dma.done.wait (%p16177_p3), %s813_s22, 10240  }
 0x124   : > { %10143 = vsyncadd (%p16177_p3), %s813_s22, 4294957056  ;;  %p949_p11 = scmp.lt.s32.totalorder %s10166_s27, 2  ;;  %p965_p12 = scmp.eq.s32.totalorder %s10166_s27, 0 }
 0x125   : > { %s16178_s11 = sld [smem:[#allocation98_spill]]  ;;  %s16179_s1 = sld [smem:[#allocation96_spill]]  ;;  %v10189_v12 = vmov (%p965_p12), 0.0  }
 0x126   : > { %s16617_s27 = smov (!%p949_p11, %s10166_s27), 2  ;;  %s16180_s10 = sld [smem:[#allocation101_spill]]  ;;  %1003 = vst [vmem:[#allocation18] sm:$0xff] (%p965_p12), %v10189_v12  ;;  %1004 = vst [vmem:[#allocation18 + $0x8] sm:$0xff] (%p965_p12), %v10189_v12 }
 0x127   : > { %s9330_s12 = smul.u32 3, %s16617_s27  ;;  %s8378_s5 = sshll.u32 %s16617_s27, 1  ;;  %1005 = vst [vmem:[#allocation18 + $0x10] sm:$0xff] (%p965_p12), %v10189_v12  ;;  %1006 = vst [vmem:[#allocation18 + $0x18] sm:$0xff] (%p965_p12), %v10189_v12 }
 0x128   : > { %s959_s15 = scalar_lea.vmem %s15909_s13, %s16617_s27  ;;  %s10667_s28 = scalar_lea.vmem [#allocation16], %s9329_s6  ;;  %1007 = vst [vmem:[#allocation18 + $0x20] sm:$0xff] (%p965_p12), %v10189_v12  ;;  %1008 = vst [vmem:[#allocation18 + $0x28] sm:$0xff] (%p965_p12), %v10189_v12 }
 0x129   : > { %970 = sbr.rel (!%p965_p12) target bundleno = 327 (0x147), region = 139  ;;  %s16181_s9 = sld [smem:[#allocation90_spill]] (%p965_p12)  ;;  %1009 = vst [vmem:[#allocation18 + $0x30] sm:$0xff] (%p965_p12), %v10189_v12  ;;  %1010 = vst [vmem:[#allocation18 + $0x38] sm:$0xff] (%p965_p12), %v10189_v12 }
 0x12a   : > { %1011 = vst [vmem:[#allocation18 + $0x40] sm:$0xff] (%p965_p12), %v10189_v12  ;;  %1012 = vst [vmem:[#allocation18 + $0x48] sm:$0xff] (%p965_p12), %v10189_v12 }
 0x12b   : > { %s10651_s24 = scalar_lea.vmem %s16178_s11, %s8378_s5  ;;  %s10660_s22 = scalar_lea.vmem %s16179_s1, %s9330_s12  ;;  %1013 = vst [vmem:[#allocation18 + $0x50] sm:$0xff] (%p965_p12), %v10189_v12  ;;  %1014 = vst [vmem:[#allocation18 + $0x58] sm:$0xff] (%p965_p12), %v10189_v12 }
 0x12c   : > { %s10665_s14 = scalar_lea.vmem %s16180_s10, %s9330_s12  ;;  %1015 = vst [vmem:[#allocation18 + $0x60] sm:$0xff] (%p965_p12), %v10189_v12  ;;  %1016 = vst [vmem:[#allocation18 + $0x68] sm:$0xff] (%p965_p12), %v10189_v12 }
 0x12d   : > { %1017 = vst [vmem:[#allocation18 + $0x70] sm:$0xff] (%p965_p12), %v10189_v12  ;;  %1018 = vst [vmem:[#allocation18 + $0x78] sm:$0xff] (%p965_p12), %v10189_v12 }
 0x12e   : > { %1019 = vst [vmem:[#allocation18 + $0x80] sm:$0xff] (%p965_p12), %v10189_v12  ;;  %1020 = vst [vmem:[#allocation18 + $0x88] sm:$0xff] (%p965_p12), %v10189_v12 }
 0x12f   : > { %v971_v6 = vld [vmem:[%s16181_s9] sm:$0xff] (%p965_p12)  ;;  %v972_v7 = vld [vmem:[%s16181_s9 + $0x8] sm:$0xff] (%p965_p12)  ;;  %v973_v8 = vld [vmem:[%s16181_s9 + $0x10] sm:$0xff] (%p965_p12)  ;;  %1021 = vst [vmem:[#allocation18 + $0x90] sm:$0xff] (%p965_p12), %v10189_v12 }
 0x130   : > { %987 = vst [vmem:[#allocation17] sm:$0xff] %v971_v6  ;;  %988 = vst [vmem:[#allocation17 + $0x8] sm:$0xff] %v972_v7  ;;  %v974_v9 = vld [vmem:[%s16181_s9 + $0x18] sm:$0xff]  ;;  %v975_v10 = vld [vmem:[%s16181_s9 + $0x20] sm:$0xff] }
 0x131   : > { %989 = vst [vmem:[#allocation17 + $0x10] sm:$0xff] %v973_v8  ;;  %v976_v11 = vld [vmem:[%s16181_s9 + $0x28] sm:$0xff]  ;;  %1022 = vst [vmem:[#allocation18 + $0x98] sm:$0xff] %v10189_v12  ;;  %v977_v13 = vld [vmem:[%s16181_s9 + $0x30] sm:$0xff] }
 0x132   : > { %1023 = vst [vmem:[#allocation18 + $0xa0] sm:$0xff] %v10189_v12  ;;  %1024 = vst [vmem:[#allocation18 + $0xa8] sm:$0xff] %v10189_v12  ;;  %v978_v14 = vld [vmem:[%s16181_s9 + $0x38] sm:$0xff]  ;;  %v979_v15 = vld [vmem:[%s16181_s9 + $0x40] sm:$0xff] }
 0x133   : > { %1025 = vst [vmem:[#allocation18 + $0xb0] sm:$0xff] %v10189_v12  ;;  %1026 = vst [vmem:[#allocation18 + $0xb8] sm:$0xff] %v10189_v12  ;;  %v980_v16 = vld [vmem:[%s16181_s9 + $0x48] sm:$0xff]  ;;  %v981_v17 = vld [vmem:[%s16181_s9 + $0x50] sm:$0xff] }
 0x134   : > { %1027 = vst [vmem:[#allocation18 + $0xc0] sm:$0xff] %v10189_v12  ;;  %1028 = vst [vmem:[#allocation18 + $0xc8] sm:$0xff] %v10189_v12  ;;  %v982_v18 = vld [vmem:[%s16181_s9 + $0x58] sm:$0xff]  ;;  %v983_v19 = vld [vmem:[%s16181_s9 + $0x60] sm:$0xff] }
 0x135   : > { %1029 = vst [vmem:[#allocation18 + $0xd0] sm:$0xff] %v10189_v12  ;;  %1030 = vst [vmem:[#allocation18 + $0xd8] sm:$0xff] %v10189_v12  ;;  %v984_v20 = vld [vmem:[%s16181_s9 + $0x68] sm:$0xff]  ;;  %v985_v21 = vld [vmem:[%s16181_s9 + $0x70] sm:$0xff] }
 0x136   : > { %1031 = vst [vmem:[#allocation18 + $0xe0] sm:$0xff] %v10189_v12  ;;  %1032 = vst [vmem:[#allocation18 + $0xe8] sm:$0xff] %v10189_v12  ;;  %v986_v22 = vld [vmem:[%s16181_s9 + $0x78] sm:$0xff] }
 0x137   : > { %1033 = vst [vmem:[#allocation18 + $0xf0] sm:$0xff] %v10189_v12  ;;  %1034 = vst [vmem:[#allocation18 + $0xf8] sm:$0xff] %v10189_v12 }
 0x138   : > { %1035 = vst [vmem:[#allocation18 + $0x100] sm:$0xff] %v10189_v12  ;;  %1036 = vst [vmem:[#allocation18 + $0x108] sm:$0xff] %v10189_v12 }
 0x139   : > { %1037 = vst [vmem:[#allocation18 + $0x110] sm:$0xff] %v10189_v12  ;;  %1038 = vst [vmem:[#allocation18 + $0x118] sm:$0xff] %v10189_v12 }
 0x13a   : > { %1039 = vst [vmem:[#allocation18 + $0x120] sm:$0xff] %v10189_v12  ;;  %1040 = vst [vmem:[#allocation18 + $0x128] sm:$0xff] %v10189_v12 }
 0x13b   : > { %1041 = vst [vmem:[#allocation18 + $0x130] sm:$0xff] %v10189_v12  ;;  %1042 = vst [vmem:[#allocation18 + $0x138] sm:$0xff] %v10189_v12 }
 0x13c   : > { %1043 = vst [vmem:[#allocation18 + $0x140] sm:$0xff] %v10189_v12  ;;  %1044 = vst [vmem:[#allocation18 + $0x148] sm:$0xff] %v10189_v12 }
 0x13d   : > { %1045 = vst [vmem:[#allocation18 + $0x150] sm:$0xff] %v10189_v12  ;;  %1046 = vst [vmem:[#allocation18 + $0x158] sm:$0xff] %v10189_v12 }
 0x13e   : > { %1047 = vst [vmem:[#allocation18 + $0x160] sm:$0xff] %v10189_v12  ;;  %1048 = vst [vmem:[#allocation18 + $0x168] sm:$0xff] %v10189_v12 }
 0x13f   : > { %1049 = vst [vmem:[#allocation18 + $0x170] sm:$0xff] %v10189_v12  ;;  %1050 = vst [vmem:[#allocation18 + $0x178] sm:$0xff] %v10189_v12 }
 0x140   : > { %990 = vst [vmem:[#allocation17 + $0x18] sm:$0xff] %v974_v9  ;;  %991 = vst [vmem:[#allocation17 + $0x20] sm:$0xff] %v975_v10 }
 0x141   : > { %992 = vst [vmem:[#allocation17 + $0x28] sm:$0xff] %v976_v11  ;;  %993 = vst [vmem:[#allocation17 + $0x30] sm:$0xff] %v977_v13 }
 0x142   : > { %994 = vst [vmem:[#allocation17 + $0x38] sm:$0xff] %v978_v14  ;;  %995 = vst [vmem:[#allocation17 + $0x40] sm:$0xff] %v979_v15 }
 0x143   : > { %996 = vst [vmem:[#allocation17 + $0x48] sm:$0xff] %v980_v16  ;;  %997 = vst [vmem:[#allocation17 + $0x50] sm:$0xff] %v981_v17 }
 0x144   : > { %998 = vst [vmem:[#allocation17 + $0x58] sm:$0xff] %v982_v18  ;;  %999 = vst [vmem:[#allocation17 + $0x60] sm:$0xff] %v983_v19 }
 0x145   : > { %1000 = vst [vmem:[#allocation17 + $0x68] sm:$0xff] %v984_v20  ;;  %1001 = vst [vmem:[#allocation17 + $0x70] sm:$0xff] %v985_v21 }
 0x146   : > { %1002 = vst [vmem:[#allocation17 + $0x78] sm:$0xff] %v986_v22 }
 0x147 PF: > { %s16182_s6 = sld [smem:[#allocation89_spill]]  ;;  %v1070_v24 = vld [vmem:[%s10618_s2] sm:$0xff]  ;;  %v1071_v25 = vld [vmem:[%s10618_s2 + $0x8] sm:$0xff]  ;;  %v1072_v29 = vld [vmem:[%s10618_s2 + $0x10] sm:$0xff]  ;;  %s10190_s4 = smov 127   ;;  %v15932_v9 = vmov 0  }
 0x148   : > { %v9025_v27 = vpack.c.bf16 %v1071_v25, %v1070_v24  ;;  %v1073_v30 = vld [vmem:[%s10618_s2 + $0x18] sm:$0xff]  ;;  %v1074_v33 = vld [vmem:[%s10618_s2 + $0x20] sm:$0xff]  ;;  %v1075_v34 = vld [vmem:[%s10618_s2 + $0x28] sm:$0xff]  ;;  %s10191_s19 = smov 126   ;;  %9495 = vset.pattern.permute.xlu0 %v15932_v9  ;;  %9496 = vset.pattern.permute.xlu1 %v15932_v9  ;;  %s16208_s7 = sld [smem:[#allocation88_spill]] }
 0x149   : > { %v9029_v32 = vpack.c.bf16 %v1073_v30, %v1072_v29  ;;  %v9033_v36 = vpack.c.bf16 %v1075_v34, %v1074_v33  ;;  %v1076_v37 = vld [vmem:[%s10618_s2 + $0x30] sm:$0xff]  ;;  %v1077_v38 = vld [vmem:[%s10618_s2 + $0x38] sm:$0xff]  ;;  %v1078_v43 = vld [vmem:[%s10618_s2 + $0x40] sm:$0xff]  ;;  %s16240_s1 = scalar_lea.vmem [#allocation10], %s10603_s8  ;;  %p9417_p7 = scmp.eq.s32.totalorder %s10328_s0, 2 }
 0x14a   : > { %9026 = vmatprep.subr.bf16.mxu0 %v9025_v27  ;;  %v9037_v42 = vpack.c.bf16 %v1077_v38, %v1076_v37  ;;  %v1079_v44 = vld [vmem:[%s10618_s2 + $0x48] sm:$0xff]  ;;  %v1080_v48 = vld [vmem:[%s10618_s2 + $0x50] sm:$0xff]  ;;  %v1081_v49 = vld [vmem:[%s10618_s2 + $0x58] sm:$0xff] }
 0x14b   : > { %9028 = vmatpush3.bf16.msra.mxu0 %v9025_v27  ;;  %v9041_v47 = vpack.c.bf16 %v1079_v44, %v1078_v43  ;;  %v9045_v52 = vpack.c.bf16 %v1081_v49, %v1080_v48  ;;  %v1082_v53 = vld [vmem:[%s10618_s2 + $0x60] sm:$0xff]  ;;  %v1083_v54 = vld [vmem:[%s10618_s2 + $0x68] sm:$0xff]  ;;  %v1084_v58 = vld [vmem:[%s10618_s2 + $0x70] sm:$0xff] }
 0x14c   : > { %9030 = vmatprep.subr.bf16.mxu0 %v9029_v32  ;;  %v9049_v57 = vpack.c.bf16 %v1083_v54, %v1082_v53  ;;  %v1085_v59 = vld [vmem:[%s10618_s2 + $0x78] sm:$0xff]  ;;  %v1058_v8 = vld [vmem:[#allocation17 + $0x20] sm:$0xff]  ;;  %v1059_v11 = vld [vmem:[#allocation17 + $0x28] sm:$0xff]  ;;  %s16463_s2 = sld [smem:[#allocation87_spill]] }
 0x14d   : > { %v1929_v23 = vld [vmem:[%s16182_s6] sm:$0xff]  ;;  %v1930_v28 = vld [vmem:[%s16182_s6 + $0x8] sm:$0xff]  ;;  %v1931_v35 = vld [vmem:[%s16182_s6 + $0x10] sm:$0xff]  ;;  %v9053_v62 = vpack.c.bf16 %v1085_v59, %v1084_v58 }
 0x14e   : > { %v10722_v26 = vmul.f32 %v1929_v23, %v1929_v23  ;;  %v10729_v31 = vmul.f32 %v1930_v28, %v1930_v28  ;;  %v10744_v39 = vmul.f32 %v1931_v35, %v1931_v35  ;;  %v1932_v40 = vld [vmem:[%s16182_s6 + $0x18] sm:$0xff]  ;;  %v1054_v41 = vld [vmem:[#allocation17] sm:$0xff]  ;;  %v1933_v46 = vld [vmem:[%s16182_s6 + $0x20] sm:$0xff] }
 0x14f   : > { %9032 = vmatpush3.bf16.msra.mxu0 %v9029_v32  ;;  %8861 = vmatprep.mubr.f32.mxu0 %v1054_v41  ;;  %v10755_v45 = vmul.f32 %v1932_v40, %v1932_v40  ;;  %v10766_v50 = vmul.f32 %v1933_v46, %v1933_v46  ;;  %v1934_v51 = vld [vmem:[%s16182_s6 + $0x28] sm:$0xff]  ;;  %v1935_v56 = vld [vmem:[%s16182_s6 + $0x30] sm:$0xff]  ;;  %v1936_v61 = vld [vmem:[%s16182_s6 + $0x38] sm:$0xff] }
 0x150   : > { %1977 = vrot.lane.b32.xlu0 %v10722_v26, %s10190_s4  ;;  %1979 = vrot.lane.b32.xlu1 %v10729_v31, %s10190_s4  ;;  %v10777_v55 = vmul.f32 %v1934_v51, %v1934_v51  ;;  %v10788_v60 = vmul.f32 %v1935_v56, %v1935_v56  ;;  %v10797_v63 = vmul.f32 %v1936_v61, %v1936_v61  ;;  %v1937_v0 = vld [vmem:[%s16182_s6 + $0x40] sm:$0xff]  ;;  %v1055_v2 = vld [vmem:[#allocation17 + $0x8] sm:$0xff]  ;;  %v1938_v3 = vld [vmem:[%s16182_s6 + $0x48] sm:$0xff] }
 0x151   : > { %9034 = vmatprep.subr.bf16.mxu0 %v9033_v36  ;;  %v10806_v1 = vmul.f32 %v1937_v0, %v1937_v0  ;;  %v1056_v4 = vld [vmem:[#allocation17 + $0x10] sm:$0xff]  ;;  %v10815_v5 = vmul.f32 %v1938_v3, %v1938_v3  ;;  %v1057_v6 = vld [vmem:[#allocation17 + $0x18] sm:$0xff]  ;;  %v1939_v7 = vld [vmem:[%s16182_s6 + $0x50] sm:$0xff] }
 0x152   : > { %v10826_v10 = vmul.f32 %v1939_v7, %v1939_v7  ;;  %v1940_v12 = vld [vmem:[%s16182_s6 + $0x58] sm:$0xff]  ;;  %v1061_v15 = vld [vmem:[#allocation17 + $0x38] sm:$0xff]  ;;  %v1062_v17 = vld [vmem:[#allocation17 + $0x40] sm:$0xff] }
 0x153   : > { %9036 = vmatpush3.bf16.msra.mxu0 %v9033_v36  ;;  %v1060_v13 = vld [vmem:[#allocation17 + $0x30] sm:$0xff]  ;;  %v10835_v14 = vmul.f32 %v1940_v12, %v1940_v12  ;;  %v1941_v16 = vld [vmem:[%s16182_s6 + $0x60] sm:$0xff]  ;;  %v1063_v19 = vld [vmem:[#allocation17 + $0x48] sm:$0xff] }
 0x154   : > { %2041 = vrot.lane.b32.xlu0 %v10722_v26, %s10191_s19  ;;  %2043 = vrot.lane.b32.xlu1 %v10729_v31, %s10191_s19  ;;  %v10844_v18 = vmul.f32 %v1941_v16, %v1941_v16  ;;  %v1942_v20 = vld [vmem:[%s16182_s6 + $0x68] sm:$0xff]  ;;  %v1064_v21 = vld [vmem:[#allocation17 + $0x50] sm:$0xff]  ;;  %v1065_v23 = vld [vmem:[#allocation17 + $0x58] sm:$0xff] }
 0x155   : > { %9038 = vmatprep.subr.bf16.mxu0 %v9037_v42  ;;  %v10853_v22 = vmul.f32 %v1942_v20, %v1942_v20  ;;  %v1943_v24 = vld [vmem:[%s16182_s6 + $0x70] sm:$0xff]  ;;  %v1066_v25 = vld [vmem:[#allocation17 + $0x60] sm:$0xff]  ;;  %v1944_v29 = vld [vmem:[%s16182_s6 + $0x78] sm:$0xff] }
 0x156   : > { %v10862_v27 = vmul.f32 %v1943_v24, %v1943_v24  ;;  %v1067_v28 = vld [vmem:[#allocation17 + $0x68] sm:$0xff]  ;;  %v1068_v30 = vld [vmem:[#allocation17 + $0x70] sm:$0xff]  ;;  %v10871_v32 = vmul.f32 %v1944_v29, %v1944_v29  ;;  %v1069_v33 = vld [vmem:[#allocation17 + $0x78] sm:$0xff] }
 0x157   : > { %9040 = vmatpush3.bf16.msra.mxu0 %v9037_v42  ;;  %v1351_v43 = vld [vmem:[%s10626_s16 + $0x8] sm:$0xff]  ;;  %v1354_v44 = vld [vmem:[%s10626_s16 + $0x20] sm:$0xff]  ;;  %v1360_v58 = vld [vmem:[%s10626_s16 + $0x50] sm:$0xff] }
 0x158   : > { %1981 = vrot.lane.b32.xlu0 %v10744_v39, %s10190_s4  ;;  %2045 = vrot.lane.b32.xlu1 %v10744_v39, %s10191_s19  ;;  %v9057_v51 = vpack.c.bf16 %v1354_v44, %v1351_v43  ;;  %v1355_v53 = vld [vmem:[%s10626_s16 + $0x28] sm:$0xff]  ;;  %v1358_v0 = vld [vmem:[%s10626_s16 + $0x40] sm:$0xff] }
 0x159   : > { %9042 = vmatprep.subr.bf16.mxu0 %v9041_v47  ;;  %v1366_v12 = vld [vmem:[%s10626_s16 + $0x80] sm:$0xff]  ;;  %v1365_v16 = vld [vmem:[%s10626_s16 + $0x78] sm:$0xff]  ;;  %v1367_v24 = vld [vmem:[%s10626_s16 + $0x88] sm:$0xff] }
 0x15a   : > { %9058 = vmatprep.subr.bf16.mxu1 %v9057_v51  ;;  %v1380_v9 = vld [vmem:[%s10626_s16 + $0xf0] sm:$0xff] }
 0x15b   : > { %9044 = vmatpush3.bf16.msra.mxu0 %v9041_v47  ;;  %v1353_v47 = vld [vmem:[%s10626_s16 + $0x18] sm:$0xff] }
 0x15c   : > { %1983 = vrot.lane.b32.xlu0 %v10755_v45, %s10190_s4  ;;  %2047 = vrot.lane.b32.xlu1 %v10755_v45, %s10191_s19 }
 0x15d   : > { %9046 = vmatprep.subr.bf16.mxu0 %v9045_v52 }
 0x15f   : > { %9048 = vmatpush3.bf16.msra.mxu0 %v9045_v52 }
 0x160   : > { %1985 = vrot.lane.b32.xlu0 %v10766_v50, %s10190_s4  ;;  %2049 = vrot.lane.b32.xlu1 %v10766_v50, %s10191_s19 }
 0x161   : > { %9050 = vmatprep.subr.bf16.mxu0 %v9049_v57 }
 0x163   : > { %9052 = vmatpush3.bf16.msra.mxu0 %v9049_v57  ;;  %v1357_v57 = vld [vmem:[%s10626_s16 + $0x38] sm:$0xff] }
 0x164   : > { %1987 = vrot.lane.b32.xlu0 %v10777_v55, %s10190_s4  ;;  %2051 = vrot.lane.b32.xlu1 %v10777_v55, %s10191_s19  ;;  %v9061_v61 = vpack.c.bf16 %v1360_v58, %v1357_v57 }
 0x165   : > { %9054 = vmatprep.subr.bf16.mxu0 %v9053_v62 }
 0x167   : > { %9056 = vmatpush3.bf16.msra.mxu0 %v9053_v62  ;;  %v1356_v62 = vld [vmem:[%s10626_s16 + $0x30] sm:$0xff] }
 0x168   : > { %1989 = vrot.lane.b32.xlu0 %v10788_v60, %s10190_s4  ;;  %2053 = vrot.lane.b32.xlu1 %v10788_v60, %s10191_s19 }
 0x16a   : > { %8862 = vmatmul.mubr.f32.vlgmr.msra.gmra.mrb[0].mxu0 %v1055_v2 }
 0x16b   : > { %8864 = vmatprep.mubr.f32.mxu0 %v1056_v4  ;;  %v1361_v4 = vld [vmem:[%s10626_s16 + $0x58] sm:$0xff] }
 0x16c   : > { %1991 = vrot.lane.b32.xlu0 %v10797_v63, %s10190_s4  ;;  %2055 = vrot.lane.b32.xlu1 %v10797_v63, %s10191_s19  ;;  %v9093_v7 = vpack.c.bf16 %v1361_v4, %v1358_v0 }
 0x16e   : > { %8865 = vmatmul.mubr.f32.gmra.mrb[2].mxu0 %v1057_v6 }
 0x16f   : > { %8867 = vmatprep.mubr.f32.mxu0 %v1058_v8 }
 0x170   : > { %1993 = vrot.lane.b32.xlu0 %v10806_v1, %s10190_s4  ;;  %2057 = vrot.lane.b32.xlu1 %v10806_v1, %s10191_s19 }
 0x172   : > { %8868 = vmatmul.mubr.f32.gmra.mrb[4].mxu0 %v1059_v11  ;;  %v1363_v11 = vld [vmem:[%s10626_s16 + $0x68] sm:$0xff] }
 0x173   : > { %8870 = vmatprep.mubr.f32.mxu0 %v1060_v13 }
 0x174   : > { %1995 = vrot.lane.b32.xlu0 %v10815_v5, %s10190_s4  ;;  %2059 = vrot.lane.b32.xlu1 %v10815_v5, %s10191_s19 }
 0x176   : > { %8871 = vmatmul.mubr.f32.gmra.mrb[6].mxu0 %v1061_v15  ;;  %v1362_v15 = vld [vmem:[%s10626_s16 + $0x60] sm:$0xff] }
 0x177   : > { %8873 = vmatprep.mubr.f32.mxu0 %v1062_v17  ;;  %v1364_v17 = vld [vmem:[%s10626_s16 + $0x70] sm:$0xff] }
 0x178   : > { %1997 = vrot.lane.b32.xlu0 %v10826_v10, %s10190_s4  ;;  %2061 = vrot.lane.b32.xlu1 %v10826_v10, %s10191_s19 }
 0x17a   : > { %8874 = vmatmul.mubr.f32.gmra.mrb[8].mxu0 %v1063_v19 }
 0x17b   : > { %8876 = vmatprep.mubr.f32.mxu0 %v1064_v21 }
 0x17c   : > { %1999 = vrot.lane.b32.xlu0 %v10835_v14, %s10190_s4  ;;  %2063 = vrot.lane.b32.xlu1 %v10835_v14, %s10191_s19 }
 0x17e   : > { %8877 = vmatmul.mubr.f32.gmra.mrb[10].mxu0 %v1065_v23 }
 0x17f   : > { %8879 = vmatprep.mubr.f32.mxu0 %v1066_v25 }
 0x180   : > { %2001 = vrot.lane.b32.xlu0 %v10844_v18, %s10190_s4  ;;  %2065 = vrot.lane.b32.xlu1 %v10844_v18, %s10191_s19 }
 0x182   : > { %8880 = vmatmul.mubr.f32.gmra.mrb[12].mxu0 %v1067_v28 }
 0x183   : > { %8882 = vmatprep.mubr.f32.mxu0 %v1068_v30  ;;  %v9067_v30 = vpack.c.bf16 %v1365_v16, %v1362_v15 }
 0x184   : > { %2003 = vrot.lane.b32.xlu0 %v10853_v22, %s10190_s4  ;;  %2067 = vrot.lane.b32.xlu1 %v10853_v22, %s10191_s19 }
 0x186   : > { %8883 = vmatmul.mubr.f32.gmra.mrb[14].mxu0 %v1069_v33  ;;  %v9097_v33 = vpack.c.bf16 %v1367_v24, %v1364_v17 }
 0x188   : > { %2005 = vrot.lane.b32.xlu0 %v10862_v27, %s10190_s4  ;;  %2069 = vrot.lane.b32.xlu1 %v10862_v27, %s10191_s19 }
 0x18c   : > { %2007 = vrot.lane.b32.xlu0 %v10871_v32, %s10190_s4  ;;  %2071 = vrot.lane.b32.xlu1 %v10871_v32, %s10191_s19 }
 0x1c2   : > { %v1978_v34 = vpop.permute.xlu0 %1977  ;;  %v1980_v36 = vpop.permute.xlu1 %1979 }
 0x1c3   : > { %v2025_v35 = vadd.f32 %v1978_v34, %v10722_v26  ;;  %v2026_v37 = vadd.f32 %v1980_v36, %v10729_v31  ;;  %v1350_v26 = vld [vmem:[%s10626_s16] sm:$0xff]  ;;  %v1352_v31 = vld [vmem:[%s10626_s16 + $0x10] sm:$0xff] }
 0x1c4   : > { %v9059_v52 = vpack.c.bf16 %v1353_v47, %v1350_v26  ;;  %v9089_v54 = vpack.c.bf16 %v1355_v53, %v1352_v31  ;;  %v1372_v36 = vld [vmem:[%s10626_s16 + $0xb0] sm:$0xff]  ;;  %v1371_v31 = vld [vmem:[%s10626_s16 + $0xa8] sm:$0xff]  ;;  %v1370_v53 = vld [vmem:[%s10626_s16 + $0xa0] sm:$0xff] }
 0x1c5   : > { %v1368_v47 = vld [vmem:[%s10626_s16 + $0x90] sm:$0xff] }
 0x1c6   : > { %v2042_v38 = vpop.permute.xlu0 %2041  ;;  %v2044_v41 = vpop.permute.xlu1 %2043  ;;  %9060 = vmatpush1.bf16.msra.mxu1 %v9059_v52  ;;  %9090 = vmatprep.subr.bf16.mxu0 %v9089_v54 }
 0x1c7   : > { %v10881_v40 = vadd.f32 %v2042_v38, %v2025_v35  ;;  %v10883_v42 = vadd.f32 %v2044_v41, %v2026_v37  ;;  %9092 = vmatpush3.bf16.msra.mxu0 %v9089_v54  ;;  %9062 = vmatprep.subr.bf16.mxu1 %v9061_v61  ;;  %v1369_v35 = vld [vmem:[%s10626_s16 + $0x98] sm:$0xff] }
 0x1c8   : > { %9094 = vmatprep.subr.bf16.mxu0 %v9093_v7  ;;  %v9069_v41 = vpack.c.bf16 %v1372_v36, %v1369_v35  ;;  %v1373_v54 = vld [vmem:[%s10626_s16 + $0xb8] sm:$0xff] }
 0x1c9   : > { %9520 = vrsqrt.f32 %v10881_v40  ;;  %vm2107_vm0 = vcmp.eq.f32.partialorder %v10881_v40, inf  ;;  %vm2109_vm1 = vcmp.eq.f32.partialorder %v10881_v40, 0.0  ;;  %v2110_v23 = vand.u32 2147483648, %v10881_v40 }
 0x1ca   : > { %9522 = vrsqrt.f32 %v10883_v42  ;;  %v1982_v46 = vpop.permute.xlu0 %1981  ;;  %v2046_v49 = vpop.permute.xlu1 %2045  ;;  %vm2114_vm2 = vcmp.eq.f32.partialorder %v10883_v42, inf  ;;  %v2117_v29 = vand.u32 2147483648, %v10883_v42  ;;  %vm2116_vm3 = vcmp.eq.f32.partialorder %v10883_v42, 0.0 }
 0x1cb   : > { %v2027_v48 = vadd.f32 %v1982_v46, %v10744_v39  ;;  %v1359_v39 = vld [vmem:[%s10626_s16 + $0x48] sm:$0xff]  ;;  %9096 = vmatpush3.bf16.msra.mxu0 %v9093_v7 }
 0x1cc   : > { %v9063_v6 = vpack.c.bf16 %v1359_v39, %v1356_v62  ;;  %9098 = vmatprep.subr.bf16.mxu0 %v9097_v33 }
 0x1cd   : > { %v10894_v56 = vadd.f32 %v2046_v49, %v2027_v48 }
 0x1ce   : > { %v1984_v59 = vpop.permute.xlu0 %1983  ;;  %v2048_v3 = vpop.permute.xlu1 %2047  ;;  %9064 = vmatpush1.bf16.msra.mxu1 %v9063_v6 }
 0x1cf   : > { %9524 = vrsqrt.f32 %v10894_v56  ;;  %v2028_v2 = vadd.f32 %v1984_v59, %v10755_v45  ;;  %v9065_v45 = vpack.c.bf16 %v1366_v12, %v1363_v11  ;;  %9100 = vmatpush3.bf16.msra.mxu0 %v9097_v33  ;;  %vm2121_vm4 = vcmp.eq.f32.partialorder %v10894_v56, inf }
 0x1d0   : > { %v2124_v49 = vand.u32 2147483648, %v10894_v56  ;;  %vm2123_vm5 = vcmp.eq.f32.partialorder %v10894_v56, 0.0 }
 0x1d1   : > { %v10904_v8 = vadd.f32 %v2048_v3, %v2028_v2  ;;  %9066 = vmatprep.subr.bf16.mxu1 %v9065_v45  ;;  %v9101_v2 = vpack.c.bf16 %v1373_v54, %v1370_v53 }
 0x1d2   : > { %v1986_v13 = vpop.permute.xlu0 %1985  ;;  %v2050_v21 = vpop.permute.xlu1 %2049  ;;  %9068 = vmatpush1.bf16.msra.mxu1 %v9067_v30 }
 0x1d3   : > { %v9521_v19 = vpop.eup %9520  ;;  %9526 = vrsqrt.f32 %v10904_v8  ;;  %v2029_v20 = vadd.f32 %v1986_v13, %v10766_v50  ;;  %9070 = vmatprep.subr.bf16.mxu1 %v9069_v41  ;;  %vm2128_vm6 = vcmp.eq.f32.partialorder %v10904_v8, inf  ;;  %v2131_v0 = vand.u32 2147483648, %v10904_v8  ;;  %9102 = vmatprep.subr.bf16.mxu0 %v9101_v2 }
 0x1d4   : > { %v9523_v25 = vpop.eup %9522  ;;  %v2106_v28 = vmul.f32 %v9521_v19, %v10881_v40  ;;  %vm2130_vm7 = vcmp.eq.f32.partialorder %v10904_v8, 0.0  ;;  %9104 = vmatpush3.bf16.msra.mxu0 %v9101_v2 }
 0x1d5   : > { %v10920_v34 = vadd.f32 %v2050_v21, %v2029_v20  ;;  %v2113_v50 = vmul.f32 %v9523_v25, %v10883_v42 }
 0x1d6   : > { %v1988_v37 = vpop.permute.xlu0 %1987  ;;  %v2108_v38 = vsel %vm2107_vm0, %v10881_v40, %v2106_v28  ;;  %v2052_v44 = vpop.permute.xlu1 %2051 }
 0x1d7   : > { %v2030_v43 = vadd.f32 %v1988_v37, %v10777_v55  ;;  %v10932_v46 = vsel %vm2109_vm1, %v2110_v23, %v2108_v38  ;;  %v2115_v26 = vsel %vm2114_vm2, %v10883_v42, %v2113_v50  ;;  %9528 = vrsqrt.f32 %v10920_v34 }
 0x1d8   : > { %16183 = vst [vmem:[#allocation30_spill] sm:$0xff] %v10932_v46  ;;  %2351 = vperm.xlu0 %9495, %v10932_v46   ;;  %v10942_v48 = vsel %vm2116_vm3, %v2117_v29, %v2115_v26  ;;  %v9071_v42 = vpack.c.bf16 %v1371_v31, %v1368_v47  ;;  %vm2135_vm8 = vcmp.eq.f32.partialorder %v10920_v34, inf  ;;  %vm2137_vm10 = vcmp.eq.f32.partialorder %v10920_v34, 0.0 }
 0x1d9   : > { %v9525_v55 = vpop.eup %9524  ;;  %v10945_v40 = vadd.f32 %v2052_v44, %v2030_v43  ;;  %2356 = vperm.xlu1 %9496, %v10942_v48   ;;  %v10986_v23 = vmul.f32 0.62831855, %v10932_v46 }
 0x1da   : > { %v1990_v51 = vpop.permute.xlu0 %1989  ;;  %v2120_v52 = vmul.f32 %v9525_v55, %v10894_v56  ;;  %v2054_v58 = vpop.permute.xlu1 %2053  ;;  %9072 = vmatpush1.bf16.msra.mxu1 %v9071_v42 }
 0x1db   : > { %9530 = vrsqrt.f32 %v10945_v40  ;;  %v2031_v57 = vadd.f32 %v1990_v51, %v10788_v60  ;;  %vm2142_vm9 = vcmp.eq.f32.partialorder %v10945_v40, inf  ;;  %v2145_v24 = vand.u32 2147483648, %v10945_v40 }
 0x1dc   : > { %v2122_v59 = vsel %vm2121_vm4, %v10894_v56, %v2120_v52  ;;  %vm2144_vm11 = vcmp.eq.f32.partialorder %v10945_v40, 0.0  ;;  %v2544_v37 = vand.u32 2139095040, %v10986_v23 }
 0x1dd   : > { %v9527_v61 = vpop.eup %9526  ;;  %v10958_v62 = vadd.f32 %v2054_v58, %v2031_v57  ;;  %v10960_v39 = vsel %vm2123_vm5, %v2124_v49, %v2122_v59 }
 0x1de   : > { %16184 = vst [vmem:[#allocation31_spill] sm:$0xff] %v10960_v39  ;;  %v1992_v3 = vpop.permute.xlu0 %1991  ;;  %2361 = vperm.xlu1 %9496, %v10960_v39   ;;  %v2127_v4 = vmul.f32 %v9527_v61, %v10904_v8  ;;  %v2056_v56 = vpop.permute.xlu1 %2055  ;;  %v2545_v51 = vshrl.u32 %v2544_v37, 23  ;;  %v11021_v52 = vmul.f32 0.62831855, %v10960_v39 }
 0x1df   : > { %v2032_v60 = vadd.f32 %v1992_v3, %v10797_v63  ;;  %9532 = vrsqrt.f32 %v10958_v62  ;;  %vm2149_vm12 = vcmp.eq.f32.partialorder %v10958_v62, inf  ;;  %v2152_v43 = vand.u32 2147483648, %v10958_v62 }
 0x1e0   : > { %v2129_v6 = vsel %vm2128_vm6, %v10904_v8, %v2127_v4  ;;  %v2138_v8 = vand.u32 2147483648, %v10920_v34  ;;  %vm2151_vm14 = vcmp.eq.f32.partialorder %v10958_v62, 0.0  ;;  %v2750_v3 = vand.u32 2139095040, %v11021_v52 }
 0x1e1   : > { %v10969_v7 = vadd.f32 %v2056_v56, %v2032_v60  ;;  %v10971_v11 = vsel %vm2130_vm7, %v2131_v0, %v2129_v6  ;;  %v9529_v13 = vpop.eup %9528  ;;  %v8397_v0 = vadd.s32 4294967169, %v2545_v51 }
 0x1e2   : > { %16185 = vst [vmem:[#allocation32_spill] sm:$0xff] %v10971_v11  ;;  %v1994_v12 = vpop.permute.xlu0 %1993  ;;  %2366 = vperm.xlu0 %9495, %v10971_v11   ;;  %v2058_v63 = vpop.permute.xlu1 %2057  ;;  %v2134_v19 = vmul.f32 %v9529_v13, %v10920_v34  ;;  %v11039_v56 = vmul.f32 0.62831855, %v10971_v11 }
 0x1e3   : > { %9534 = vrsqrt.f32 %v10969_v7  ;;  %v2033_v45 = vadd.f32 %v1994_v12, %v10806_v1  ;;  %vm2156_vm13 = vcmp.eq.f32.partialorder %v10969_v7, inf  ;;  %vm2158_vm15 = vcmp.eq.f32.partialorder %v10969_v7, 0.0 }
 0x1e4   : > { %v2136_v25 = vsel %vm2135_vm8, %v10920_v34, %v2134_v19  ;;  %v11003_v34 = vmul.f32 0.62831855, %v10942_v48  ;;  %v2159_v53 = vand.u32 2147483648, %v10969_v7  ;;  %16190 = vst [vmem:[#allocation37_spill] sm:$0xff] %v11039_v56  ;;  %v2551_v13 = vadd.s32 1, %v8397_v0 }
 0x1e5   : > { %v9531_v15 = vpop.eup %9530  ;;  %v10976_v16 = vadd.f32 %v2058_v63, %v2033_v45  ;;  %v10995_v30 = vsel %vm2137_vm10, %v2138_v8, %v2136_v25  ;;  %v2751_v45 = vshrl.u32 %v2750_v3, 23  ;;  %v2853_v8 = vand.u32 2139095040, %v11039_v56 }
 0x1e6   : > { %v1996_v17 = vpop.permute.xlu0 %1995  ;;  %v2141_v20 = vmul.f32 %v9531_v15, %v10945_v40  ;;  %v2060_v1 = vpop.permute.xlu1 %2059  ;;  %16186 = vst [vmem:[#allocation33_spill] sm:$0xff] %v10995_v30  ;;  %2371 = vperm.xlu1 %9496, %v10995_v30   ;;  %v2647_v55 = vand.u32 2139095040, %v11003_v34  ;;  %vm2552_vm3 = vcmp.gt.s32.totalorder %v2551_v13, 0 }
 0x1e7   : > { %v2034_v21 = vadd.f32 %v1996_v17, %v10815_v5  ;;  %9536 = vrsqrt.f32 %v10976_v16  ;;  %vm2163_vm0 = vcmp.eq.f32.partialorder %v10976_v16, inf  ;;  %vm2165_vm1 = vcmp.eq.f32.partialorder %v10976_v16, 0.0 }
 0x1e8   : > { %v2143_v28 = vsel %vm2142_vm9, %v10945_v40, %v2141_v20  ;;  %v2166_v19 = vand.u32 2147483648, %v10976_v16 }
 0x1e9   : > { %v10993_v29 = vadd.f32 %v2060_v1, %v2034_v21  ;;  %v9533_v33 = vpop.eup %9532  ;;  %v10999_v36 = vsel %vm2144_vm11, %v2145_v24, %v2143_v28 }
 0x1ea   : > { %v1998_v5 = vpop.permute.xlu0 %1997  ;;  %v2062_v35 = vpop.permute.xlu1 %2061  ;;  %16187 = vst [vmem:[#allocation34_spill] sm:$0xff] %v10999_v36  ;;  %2376 = vperm.xlu0 %9495, %v10999_v36   ;;  %v2148_v41 = vmul.f32 %v9533_v33, %v10958_v62  ;;  %v11058_v28 = vmul.f32 0.62831855, %v10999_v36 }
 0x1eb   : > { %v2035_v50 = vadd.f32 %v1998_v5, %v10826_v10  ;;  %9538 = vrsqrt.f32 %v10993_v29  ;;  %vm2170_vm2 = vcmp.eq.f32.partialorder %v10993_v29, inf  ;;  %v8405_v5 = vadd.s32 4294967169, %v2751_v45 }
 0x1ec   : > { %v2150_v40 = vsel %vm2149_vm12, %v10958_v62, %v2148_v41  ;;  %v2648_v62 = vshrl.u32 %v2647_v55, 23  ;;  %16192 = vst [vmem:[#allocation39_spill] sm:$0xff] %v11058_v28  ;;  %vm2172_vm4 = vcmp.eq.f32.partialorder %v10993_v29, 0.0  ;;  %v2173_v37 = vand.u32 2147483648, %v10993_v29 }
 0x1ed   : > { %v9535_v38 = vpop.eup %9534  ;;  %v11011_v10 = vadd.f32 %v2062_v35, %v2035_v50  ;;  %v11023_v42 = vsel %vm2151_vm14, %v2152_v43, %v2150_v40  ;;  %v2553_v40 = vsel %vm2552_vm3, %v2551_v13, 0 }
 0x1ee   : > { %v2000_v44 = vpop.permute.xlu0 %1999  ;;  %v2155_v26 = vmul.f32 %v9535_v38, %v10969_v7  ;;  %v2064_v31 = vpop.permute.xlu1 %2063  ;;  %16188 = vst [vmem:[#allocation35_spill] sm:$0xff] %v11023_v42  ;;  %2381 = vperm.xlu1 %9496, %v11023_v42   ;;  %v8401_v12 = vadd.s32 4294967169, %v2648_v62 }
 0x1ef   : > { %v2036_v47 = vadd.f32 %v2000_v44, %v10835_v14  ;;  %9540 = vrsqrt.f32 %v11011_v10  ;;  %v3059_v44 = vand.u32 2139095040, %v11058_v28  ;;  %vm2177_vm6 = vcmp.eq.f32.partialorder %v11011_v10, inf }
 0x1f0   : > { %v2157_v49 = vsel %vm2156_vm13, %v10969_v7, %v2155_v26  ;;  %v2654_v25 = vadd.s32 1, %v8401_v12  ;;  %v11075_v26 = vmul.f32 0.62831855, %v11023_v42  ;;  %vm2179_vm7 = vcmp.eq.f32.partialorder %v11011_v10, 0.0 }
 0x1f1   : > { %v9537_v54 = vpop.eup %9536  ;;  %v11028_v57 = vadd.f32 %v2064_v31, %v2036_v47  ;;  %v11031_v61 = vsel %vm2158_vm15, %v2159_v53, %v2157_v49 }
 0x1f2   : > { %v2002_v14 = vpop.permute.xlu0 %2001  ;;  %v2066_v59 = vpop.permute.xlu1 %2065  ;;  %16189 = vst [vmem:[#allocation36_spill] sm:$0xff] %v11031_v61  ;;  %2386 = vperm.xlu0 %9495, %v11031_v61   ;;  %v2162_v4 = vmul.f32 %v9537_v54, %v10976_v16  ;;  %16194 = vst [vmem:[#allocation41_spill] sm:$0xff] %v11075_v26  ;;  %vm2655_vm5 = vcmp.gt.s32.totalorder %v2654_v25, 0 }
 0x1f3   : > { %v2037_v58 = vadd.f32 %v2002_v14, %v10844_v18  ;;  %9542 = vrsqrt.f32 %v11028_v57  ;;  %v2180_v14 = vand.u32 2147483648, %v11011_v10  ;;  %vm2184_vm8 = vcmp.eq.f32.partialorder %v11028_v57, inf }
 0x1f4   : > { %v2164_v63 = vsel %vm2163_vm0, %v10976_v16, %v2162_v4  ;;  %vm2186_vm9 = vcmp.eq.f32.partialorder %v11028_v57, 0.0  ;;  %v2187_v3 = vand.u32 2147483648, %v11028_v57 }
 0x1f5   : > { %v11034_v2 = vadd.f32 %v2066_v59, %v2037_v58  ;;  %v9539_v18 = vpop.eup %9538  ;;  %v11060_v33 = vsel %vm2165_vm1, %v2166_v19, %v2164_v63  ;;  %v3060_v58 = vshrl.u32 %v3059_v44, 23  ;;  %v3162_v59 = vand.u32 2139095040, %v11075_v26  ;;  %v1385_v26 = vld [vmem:[%s10626_s16 + $0x118] sm:$0xff] }
 0x1f6   : > { %v2004_v60 = vpop.permute.xlu0 %2003  ;;  %v2068_v7 = vpop.permute.xlu1 %2067  ;;  %v2169_v20 = vmul.f32 %v9539_v18, %v10993_v29  ;;  %16193 = vst [vmem:[#allocation40_spill] sm:$0xff] %v11060_v33  ;;  %2391 = vperm.xlu1 %9496, %v11060_v33   ;;  %v2656_v18 = vsel %vm2655_vm5, %v2654_v25, 0 }
 0x1f7   : > { %v2038_v6 = vadd.f32 %v2004_v60, %v10853_v22  ;;  %9544 = vrsqrt.f32 %v11034_v2  ;;  %v11053_v22 = vmul.f32 0.62831855, %v10995_v30  ;;  %v11097_v60 = vand.u32 31, %v2553_v40 }
 0x1f8   : > { %v2171_v16 = vsel %vm2170_vm2, %v10993_v29, %v2169_v20  ;;  %v2757_v29 = vadd.s32 1, %v8405_v5  ;;  %vm2191_vm10 = vcmp.eq.f32.partialorder %v11034_v2, inf  ;;  %vm2193_vm12 = vcmp.eq.f32.partialorder %v11034_v2, 0.0 }
 0x1f9   : > { %v11047_v15 = vadd.f32 %v2068_v7, %v2038_v6  ;;  %16191 = vst [vmem:[#allocation38_spill] sm:$0xff] %v11053_v22  ;;  %v9541_v24 = vpop.eup %9540  ;;  %v2956_v38 = vand.u32 2139095040, %v11053_v22  ;;  %v11077_v31 = vsel %vm2172_vm4, %v2173_v37, %v2171_v16  ;;  %v2194_v7 = vand.u32 2147483648, %v11034_v2 }
 0x1fa   : > { %v2006_v17 = vpop.permute.xlu0 %2005  ;;  %v2070_v1 = vpop.permute.xlu1 %2069  ;;  %v2176_v43 = vmul.f32 %v9541_v24, %v11011_v10  ;;  %16195 = vst [vmem:[#allocation42_spill] sm:$0xff] %v11077_v31  ;;  %2396 = vperm.xlu0 %9495, %v11077_v31   ;;  %vm2758_vm11 = vcmp.gt.s32.totalorder %v2757_v29, 0  ;;  %v11123_v24 = vmul.f32 0.62831855, %v11060_v33  ;;  %v11129_v16 = vshrl.u32 %v2553_v40, 5 }
 0x1fb   : > { %v2039_v21 = vadd.f32 %v2006_v17, %v10862_v27  ;;  %9546 = vrsqrt.f32 %v11047_v15  ;;  %v2854_v27 = vshrl.u32 %v2853_v8, 23  ;;  %v2957_v51 = vshrl.u32 %v2956_v38, 23 }
 0x1fc   : > { %9548 = vrcp.f32 %v10932_v46  ;;  %v2178_v54 = vsel %vm2177_vm6, %v11011_v10, %v2176_v43  ;;  %v11102_v10 = vmul.f32 0.62831855, %v11031_v61  ;;  %v8417_v8 = vadd.s32 4294967169, %v3060_v58  ;;  %16199 = vst [vmem:[#allocation46_spill] sm:$0xff] %v11123_v24 }
 0x1fd   : > { %v11066_v50 = vadd.f32 %v2070_v1, %v2039_v21  ;;  %v9543_v55 = vpop.eup %9542  ;;  %9550 = vrcp.f32 %v10942_v48  ;;  %v8409_v49 = vadd.s32 4294967169, %v2854_v27  ;;  %v11092_v0 = vsel %vm2179_vm7, %v2180_v14, %v2178_v54 }
 0x1fe   : > { %v2008_v35 = vpop.permute.xlu0 %2007  ;;  %v2072_v47 = vpop.permute.xlu1 %2071  ;;  %v2183_v62 = vmul.f32 %v9543_v55, %v11028_v57  ;;  %16196 = vst [vmem:[#allocation43_spill] sm:$0xff] %v11092_v0  ;;  %16197 = vst [vmem:[#allocation44_spill] sm:$0xff] %v11102_v10  ;;  %2401 = vperm.xlu1 %9496, %v11092_v0   ;;  %v8413_v63 = vadd.s32 4294967169, %v2957_v51  ;;  %v3163_v17 = vshrl.u32 %v3162_v59, 23  ;;  %v3265_v21 = vand.u32 2139095040, %v11102_v10 }
 0x1ff   : > { %v2040_v41 = vadd.f32 %v2008_v35, %v10871_v32  ;;  %9552 = vrsqrt.f32 %v11066_v50  ;;  %v2860_v13 = vadd.s32 1, %v8409_v49  ;;  %vm2198_vm13 = vcmp.eq.f32.partialorder %v11047_v15, inf }
 0x200   : > { %9554 = vrcp.f32 %v10960_v39  ;;  %v2185_v6 = vsel %vm2184_vm8, %v11028_v57, %v2183_v62  ;;  %v11116_v57 = vand.u32 31, %v2656_v18  ;;  %v11132_v27 = vsub.s32 32, %v11097_v60 }
 0x201   : > { %v9545_v32 = vpop.eup %9544  ;;  %v11085_v53 = vadd.f32 %v2072_v47, %v2040_v41  ;;  %v11109_v45 = vsel %vm2186_vm9, %v2187_v3, %v2185_v6  ;;  %v11134_v35 = vshrl.u32 %v2656_v18, 5  ;;  %v2759_v37 = vsel %vm2758_vm11, %v2757_v29, 0 }
 0x202   : > { %v2190_v4 = vmul.f32 %v9545_v32, %v11034_v2  ;;  %16198 = vst [vmem:[#allocation45_spill] sm:$0xff] %v11109_v45  ;;  %2406 = vperm.xlu0 %9495, %v11109_v45   ;;  %vm2861_vm14 = vcmp.gt.s32.totalorder %v2860_v13, 0  ;;  %v2963_v38 = vadd.s32 1, %v8413_v63  ;;  %v3066_v41 = vadd.s32 1, %v8417_v8 }
 0x203   : > { %9556 = vrsqrt.f32 %v11085_v53  ;;  %v8421_v43 = vadd.s32 4294967169, %v3163_v17  ;;  %v3266_v44 = vshrl.u32 %v3265_v21, 23  ;;  %v11139_v47 = vmul.f32 0.62831855, %v11077_v31 }
 0x204   : > { %v2192_v19 = vsel %vm2191_vm10, %v11034_v2, %v2190_v4  ;;  %9558 = vrcp.f32 %v10971_v11  ;;  %vm2200_vm15 = vcmp.eq.f32.partialorder %v11047_v15, 0.0  ;;  %v11144_v40 = vsub.s32 32, %v11116_v57 }
 0x205   : > { %v9547_v12 = vpop.eup %9546  ;;  %v11125_v25 = vsel %vm2193_vm12, %v2194_v7, %v2192_v19  ;;  %16201 = vst [vmem:[#allocation48_spill] sm:$0xff] %v11139_v47  ;;  %v3368_v32 = vand.u32 2139095040, %v11123_v24  ;;  %v2201_v29 = vand.u32 2147483648, %v11047_v15  ;;  %v11151_v54 = vshrl.u32 %v2759_v37, 5 }
 0x206   : > { %v11114_v20 = vpop.eup %9548  ;;  %16200 = vst [vmem:[#allocation47_spill] sm:$0xff] %v11125_v25  ;;  %v2197_v5 = vmul.f32 %v9547_v12, %v11047_v15  ;;  %2411 = vperm.xlu1 %9496, %v11125_v25   ;;  %v11153_v14 = vand.u32 31, %v2759_v37  ;;  %9560 = vrcp.f32 %v10995_v30  ;;  %vm2205_vm0 = vcmp.eq.f32.partialorder %v11066_v50, inf  ;;  %v1378_v37 = vld [vmem:[%s10626_s16 + $0xe0] sm:$0xff] }
 0x207   : > { %v11120_v1 = vpop.eup %9550  ;;  %16202 = vst [vmem:[#allocation49_spill] sm:$0xff] %v11151_v54  ;;  %v2862_v59 = vsel %vm2861_vm14, %v2860_v13, 0  ;;  %vm2964_vm1 = vcmp.gt.s32.totalorder %v2963_v38, 0  ;;  %vm3067_vm2 = vcmp.gt.s32.totalorder %v3066_v41, 0  ;;  %v8425_v3 = vadd.s32 4294967169, %v3266_v44 }
 0x208   : > { %v2199_v55 = vsel %vm2198_vm13, %v11047_v15, %v2197_v5  ;;  %16203 = vst [vmem:[#allocation50_spill] sm:$0xff] %v11153_v14  ;;  %v3169_v15 = vadd.s32 1, %v8421_v43  ;;  %v3471_v4 = vand.u32 2139095040, %v11139_v47  ;;  %vm2207_vm3 = vcmp.eq.f32.partialorder %v11066_v50, 0.0  ;;  %v1383_v47 = vld [vmem:[%s10626_s16 + $0x108] sm:$0xff] }
 0x209   : > { %v9553_v2 = vpop.eup %9552  ;;  %v11158_v62 = vsel %vm2200_vm15, %v2201_v29, %v2199_v55  ;;  %v3369_v18 = vshrl.u32 %v3368_v32, 23  ;;  %v11164_v6 = vmul.f32 0.62831855, %v11092_v0  ;;  %v2208_v12 = vand.u32 2147483648, %v11066_v50  ;;  %v1377_v55 = vld [vmem:[%s10626_s16 + $0xd8] sm:$0xff] }
 0x20a   : > { %v2204_v49 = vmul.f32 %v9553_v2, %v11066_v50  ;;  %v11149_v51 = vpop.eup %9554  ;;  %16204 = vst [vmem:[#allocation51_spill] sm:$0xff] %v11158_v62  ;;  %2416 = vperm.xlu0 %9495, %v11158_v62   ;;  %v11171_v63 = vsub.s32 32, %v11153_v14  ;;  %v11173_v8 = vand.u32 31, %v2862_v59  ;;  %9562 = vrcp.f32 %v10999_v36  ;;  %v1375_v2 = vld [vmem:[%s10626_s16 + $0xc8] sm:$0xff]  ;;  %v4743_v29 = vld [vmem:[%s16208_s7] sm:$0xff]  ;;  %v1382_v36 = vld [vmem:[%s10626_s16 + $0x100] sm:$0xff] }
 0x20b   : > { %16205 = vst [vmem:[#allocation52_spill] sm:$0xff] %v11164_v6  ;;  %v11177_v19 = vshrl.u32 %v2862_v59, 5  ;;  %v2965_v21 = vsel %vm2964_vm1, %v2963_v38, 0  ;;  %v11181_v5 = vsel %vm3067_vm2, %v3066_v41, 0  ;;  %vm3170_vm4 = vcmp.gt.s32.totalorder %v3169_v15, 0  ;;  %v1374_v38 = vld [vmem:[%s10626_s16 + $0xc0] sm:$0xff] }
 0x20c   : > { %v2206_v7 = vsel %vm2205_vm0, %v11066_v50, %v2204_v49  ;;  %16206 = vst [vmem:[#allocation53_spill] sm:$0xff] %v11171_v63  ;;  %v3272_v43 = vadd.s32 1, %v8425_v3  ;;  %v3472_v44 = vshrl.u32 %v3471_v4, 23  ;;  %vm2212_vm5 = vcmp.eq.f32.partialorder %v11085_v53, inf  ;;  %v1379_v59 = vld [vmem:[%s10626_s16 + $0xe8] sm:$0xff] }
 0x20d   : > { %v9557_v58 = vpop.eup %9556  ;;  %v11183_v50 = vsel %vm2207_vm3, %v2208_v12, %v2206_v7  ;;  %v8429_v41 = vadd.s32 4294967169, %v3369_v18  ;;  %v3574_v32 = vand.u32 2139095040, %v11164_v6  ;;  %vm2214_vm6 = vcmp.eq.f32.partialorder %v11085_v53, 0.0  ;;  %v1381_v7 = vld [vmem:[%s10626_s16 + $0xf8] sm:$0xff]  ;;  %v1384_v12 = vld [vmem:[%s10626_s16 + $0x110] sm:$0xff] }
 0x20e   : > { %v11168_v13 = vpop.eup %9558  ;;  %v2211_v17 = vmul.f32 %v9557_v58, %v11085_v53  ;;  %16207 = vst [vmem:[#allocation54_spill] sm:$0xff] %v11183_v50  ;;  %2421 = vperm.xlu1 %9496, %v11183_v50   ;;  %v1376_v58 = vld [vmem:[%s10626_s16 + $0xd0] sm:$0xff]  ;;  %v11200_v3 = vsub.s32 32, %v11173_v8  ;;  %v11202_v4 = vand.u32 31, %v2965_v21  ;;  %9564 = vrcp.f32 %v11023_v42 }
 0x20f   : > { %v2215_v18 = vand.u32 2147483648, %v11085_v53  ;;  %v3171_v6 = vsel %vm3170_vm4, %v3169_v15, 0  ;;  %v9073_v24 = vpack.c.bf16 %v1378_v37, %v1375_v2  ;;  %v9075_v30 = vpack.c.bf16 %v1377_v55, %v1374_v38  ;;  %v4745_v15 = vld [vmem:[%s16208_s7 + $0x10] sm:$0xff]  ;;  %v1390_v38 = vld [vmem:[%s10626_s16 + $0x140] sm:$0xff] }
 0x210   : > { %v2213_v49 = vsel %vm2212_vm5, %v11085_v53, %v2211_v17  ;;  %16209 = vst [vmem:[#allocation55_spill] sm:$0xff] %v11202_v4  ;;  %v11210_v17 = vand.u32 31, %v11181_v5  ;;  %v11216_v39 = vpop.eup %9560  ;;  %vm3273_vm7 = vcmp.gt.s32.totalorder %v3272_v43, 0  ;;  %v8433_v42 = vadd.s32 4294967169, %v3472_v44  ;;  %v1387_v37 = vld [vmem:[%s10626_s16 + $0x128] sm:$0xff]  ;;  %v1388_v53 = vld [vmem:[%s10626_s16 + $0x130] sm:$0xff] }
 0x211   : > { %v11220_v10 = vsel %vm2214_vm6, %v2215_v18, %v2213_v49  ;;  %v9105_v2 = vpack.c.bf16 %v1379_v59, %v1376_v58  ;;  %v3375_v55 = vadd.s32 1, %v8429_v41  ;;  %v3575_v22 = vshrl.u32 %v3574_v32, 23  ;;  %9074 = vmatprep.subr.bf16.mxu1 %v9073_v24  ;;  %v4744_v41 = vld [vmem:[%s16208_s7 + $0x8] sm:$0xff] }
 0x212   : > { %16210 = vst [vmem:[#allocation56_spill] sm:$0xff] %v11210_v17  ;;  %4760 = vperm.xlu1 %9496, %v4743_v29   ;;  %16211 = vst [vmem:[#allocation57_spill] sm:$0xff] %v11220_v10  ;;  %v11228_v11 = vmul.f32 0.62831855, %v11109_v45  ;;  %2426 = vperm.xlu0 %9495, %v11220_v10   ;;  %v9077_v44 = vpack.c.bf16 %v1384_v12, %v1381_v7  ;;  %v1391_v29 = vld [vmem:[%s10626_s16 + $0x148] sm:$0xff]  ;;  %v11233_v49 = vshrl.u32 %v2965_v21, 5  ;;  %9566 = vrcp.f32 %v11031_v61 }
 0x213   : > { %9076 = vmatpush1.bf16.msra.mxu1 %v9075_v30  ;;  %9106 = vmatprep.subr.bf16.mxu0 %v9105_v2  ;;  %v9079_v32 = vpack.c.bf16 %v1383_v47, %v1380_v9  ;;  %v9109_v58 = vpack.c.bf16 %v1385_v26, %v1382_v36  ;;  %v11240_v24 = vsub.s32 32, %v11202_v4  ;;  %v11242_v59 = vand.u32 31, %v3171_v6  ;;  %v1386_v7 = vld [vmem:[%s10626_s16 + $0x120] sm:$0xff]  ;;  %v1389_v12 = vld [vmem:[%s10626_s16 + $0x138] sm:$0xff] }
 0x214   : > { %16212 = vst [vmem:[#allocation58_spill] sm:$0xff] %v11228_v11  ;;  %16213 = vst [vmem:[#allocation59_spill] sm:$0xff] %v11233_v49  ;;  %v3274_v21 = vsel %vm3273_vm7, %v3272_v43, 0  ;;  %9108 = vmatpush3.bf16.msra.mxu0 %v9105_v2  ;;  %9078 = vmatprep.subr.bf16.mxu1 %v9077_v44  ;;  %v9081_v18 = vpack.c.bf16 %v1390_v38, %v1387_v37  ;;  %v11247_v61 = vpop.eup %9562  ;;  %v11250_v9 = vshrl.u32 %v11181_v5, 5  ;;  %v11253_v30 = vsub.s32 32, %v11210_v17  ;;  %v1393_v47 = vld [vmem:[%s10626_s16 + $0x158] sm:$0xff] }
 0x215   : > { %16214 = vst [vmem:[#allocation60_spill] sm:$0xff] %v11240_v24  ;;  %16215 = vst [vmem:[#allocation61_spill] sm:$0xff] %v11242_v59  ;;  %v3478_v36 = vadd.s32 1, %v8433_v42  ;;  %9110 = vmatprep.subr.bf16.mxu0 %v9109_v58  ;;  %v9113_v26 = vpack.c.bf16 %v1391_v29, %v1388_v53  ;;  %v1396_v43 = vld [vmem:[%s10626_s16 + $0x170] sm:$0xff]  ;;  %9568 = vrcp.f32 %v11060_v33  ;;  %vm3376_vm8 = vcmp.gt.s32.totalorder %v3375_v55, 0  ;;  %v4747_v5 = vld [vmem:[%s16208_s7 + $0x20] sm:$0xff] }
 0x216   : > { %16216 = vst [vmem:[#allocation62_spill] sm:$0xff] %v11250_v9  ;;  %16217 = vst [vmem:[#allocation63_spill] sm:$0xff] %v11253_v30  ;;  %4766 = vperm.xlu1 %9496, %v4745_v15   ;;  %v8437_v2 = vadd.s32 4294967169, %v3575_v22  ;;  %v3677_v37 = vand.u32 2139095040, %v11228_v11  ;;  %4763 = vperm.xlu0 %9495, %v4744_v41   ;;  %v1394_v38 = vld [vmem:[%s10626_s16 + $0x160] sm:$0xff]  ;;  %v1397_v42 = vld [vmem:[%s10626_s16 + $0x178] sm:$0xff]  ;;  %v9083_v22 = vpack.c.bf16 %v1389_v12, %v1386_v7  ;;  %9570 = vrcp.f32 %v11077_v31 }
 0x217   : > { %v11264_v15 = vshrl.u32 %v3171_v6, 5  ;;  %v11266_v44 = vand.u32 31, %v3274_v21  ;;  %v4746_v53 = vld [vmem:[%s16208_s7 + $0x18] sm:$0xff]  ;;  %9080 = vmatpush1.bf16.msra.mxu1 %v9079_v32  ;;  %v11272_v29 = vsub.s32 32, %v11242_v59  ;;  %v11274_v41 = vshrl.u32 %v3274_v21, 5  ;;  %v1395_v11 = vld [vmem:[%s10626_s16 + $0x168] sm:$0xff] }
 0x218   : > { %9112 = vmatpush3.bf16.msra.mxu0 %v9109_v58  ;;  %9082 = vmatprep.subr.bf16.mxu1 %v9081_v18  ;;  %v9085_v33 = vpack.c.bf16 %v1396_v43, %v1393_v47  ;;  %v1392_v6 = vld [vmem:[%s10626_s16 + $0x150] sm:$0xff]  ;;  %v3377_v49 = vsel %vm3376_vm8, %v3375_v55, 0  ;;  %vm3479_vm9 = vcmp.gt.s32.totalorder %v3478_v36, 0  ;;  %v11283_v32 = vmul.f32 0.62831855, %v11125_v25  ;;  %v4749_v21 = vld [vmem:[%s16208_s7 + $0x30] sm:$0xff] }
 0x219   : > { %16218 = vst [vmem:[#allocation64_spill] sm:$0xff] %v11264_v15  ;;  %16219 = vst [vmem:[#allocation65_spill] sm:$0xff] %v11266_v44  ;;  %v11279_v15 = vpop.eup %9564  ;;  %9114 = vmatprep.subr.bf16.mxu0 %v9113_v26  ;;  %v9117_v58 = vpack.c.bf16 %v1397_v42, %v1394_v38  ;;  %9572 = vrcp.f32 %v11092_v0  ;;  %v11289_v18 = vadd.s32 1, %v8437_v2  ;;  %v3678_v7 = vshrl.u32 %v3677_v37, 23  ;;  %v4238_v55 = vld [vmem:[%s10607_s30 + $0x8] sm:$0xff]  ;;  %v4241_v47 = vld [vmem:[%s10607_s30 + $0x20] sm:$0xff] }
 0x21a   : > { %16220 = vst [vmem:[#allocation66_spill] sm:$0xff] %v11272_v29  ;;  %16221 = vst [vmem:[#allocation67_spill] sm:$0xff] %v11274_v41  ;;  %4772 = vperm.xlu1 %9496, %v4747_v5   ;;  %4769 = vperm.xlu0 %9495, %v4746_v53   ;;  %v15966_v12 = vmov 0.0   ;;  %v15973_v43 = vand.u32 2147483647, %v11003_v34  ;;  %v11296_v5 = vsub.s32 32, %v11266_v44  ;;  %9574 = vrcp.f32 %v11109_v45 }
 0x21b   : > { %16222 = vst [vmem:[#allocation68_spill] sm:$0xff] %v11283_v32  ;;  %1479 = vmatprep.mubr.f32.mxu1 %v15966_v12  ;;  %v11298_v31 = vshrl.u32 %v3377_v49, 5  ;;  %v4748_v2 = vld [vmem:[%s16208_s7 + $0x28] sm:$0xff]  ;;  %9084 = vmatpush1.bf16.msra.mxu1 %v9083_v22  ;;  %v9087_v37 = vpack.c.bf16 %v1395_v11, %v1392_v6  ;;  %v11304_v38 = vand.u32 31, %v3377_v49  ;;  %v11307_v42 = vsel %vm3479_vm9, %v3478_v36, 0  ;;  %v4751_v22 = vld [vmem:[%s16208_s7 + $0x40] sm:$0xff] }
 0x21c   : > { %16223 = vst [vmem:[#allocation69_spill] sm:$0xff] %v11296_v5  ;;  %9116 = vmatpush3.bf16.msra.mxu0 %v9113_v26  ;;  %9086 = vmatprep.subr.bf16.mxu1 %v9085_v33  ;;  %v2651_v53 = vand.u32 8388607, %v15973_v43  ;;  %v15976_v12 = vmov 683565275   ;;  %v11313_v45 = vpop.eup %9566  ;;  %v9121_v11 = vpack.c.bf16 %v4241_v47, %v4238_v55  ;;  %vm3582_vm10 = vcmp.gt.s32.totalorder %v11289_v18, 0 }
 0x21d   : > { %16224 = vst [vmem:[#allocation70_spill] sm:$0xff] %v11298_v31  ;;  %16225 = vst [vmem:[#allocation71_spill] sm:$0xff] %v11304_v38  ;;  %v2661_v0 = vshll.u32 %v15976_v12, %v11116_v57  ;;  %v3780_v31 = vand.u32 2139095040, %v11283_v32  ;;  %9118 = vmatprep.subr.bf16.mxu0 %v9117_v58  ;;  %v15974_v49 = vmov 2475754826   ;;  %v8441_v26 = vadd.s32 4294967169, %v3678_v7 }
 0x21e   : > { %4778 = vperm.xlu1 %9496, %v4749_v21   ;;  %v2662_v36 = vshrl.u32 %v15974_v49, %v11144_v40  ;;  %v2664_v33 = vshll.u32 %v15974_v49, %v11116_v57  ;;  %4775 = vperm.xlu0 %9495, %v4748_v2   ;;  %v2660_v6 = vshrl.u32 %v15976_v12, %v11144_v40  ;;  %v15984_v21 = vmov 2131351028   ;;  %v4750_v47 = vld [vmem:[%s16208_s7 + $0x38] sm:$0xff] }
 0x21f   : > { %v2665_v55 = vshrl.u32 %v15984_v21, %v11144_v40  ;;  %9088 = vmatpush1.bf16.msra.mxu1 %v9087_v37  ;;  %v2667_v7 = vshll.u32 %v15984_v21, %v11116_v57  ;;  %v15988_v2 = vmov 2102212464   ;;  %v11337_v32 = vpop.eup %9568  ;;  %v2652_v29 = vor.u32 8388608, %v2651_v53  ;;  %v4753_v53 = vld [vmem:[%s16208_s7 + $0x50] sm:$0xff] }
 0x220   : > { %v2663_v43 = vor.u32 %v2662_v36, %v2661_v0  ;;  %v2668_v49 = vshrl.u32 %v15988_v2, %v11144_v40  ;;  %v2670_v12 = vshll.u32 %v15988_v2, %v11116_v57  ;;  %9120 = vmatpush3.bf16.msra.mxu0 %v9117_v58  ;;  %v15993_v41 = vmov 920167782   ;;  %v11346_v58 = vpop.eup %9570 }
 0x221   : > { %v2666_v59 = vor.u32 %v2665_v55, %v2664_v33  ;;  %v2671_v37 = vshrl.u32 %v15993_v41, %v11144_v40  ;;  %v2673_v0 = vshll.u32 %v15993_v41, %v11116_v57  ;;  %v3781_v36 = vshrl.u32 %v3780_v31, 23  ;;  %9122 = vmatprep.subr.bf16.mxu0 %v9121_v11  ;;  %v4752_v31 = vld [vmem:[%s16208_s7 + $0x48] sm:$0xff] }
 0x222   : > { %4784 = vperm.xlu1 %9496, %v4751_v22   ;;  %v2669_v21 = vor.u32 %v2668_v49, %v2667_v7  ;;  %v15990_v44 = vmov 1326507024   ;;  %vm2676_vm11 = vcmp.lt.s32.totalorder %v11134_v35, 1  ;;  %4781 = vperm.xlu0 %9495, %v4750_v47   ;;  %vm2677_vm12 = vcmp.lt.s32.totalorder %v11134_v35, 2 }
 0x223   : > { %v2674_v2 = vshrl.u32 %v15990_v44, %v11144_v40  ;;  %v2672_v33 = vor.u32 %v2671_v37, %v2670_v12  ;;  %vm2678_vm13 = vcmp.lt.s32.totalorder %v11134_v35, 3  ;;  %vm2679_vm14 = vcmp.lt.s32.totalorder %v11134_v35, 4  ;;  %v11363_v49 = vpop.eup %9572 }
 0x224   : > { %v2680_v40 = vsel %vm2676_vm11, %v2660_v6, %v2663_v43  ;;  %v2681_v11 = vsel %vm2679_vm14, %v2669_v21, 2102212464  ;;  %v2684_v12 = vsel %vm2676_vm11, %v2663_v43, %v2666_v59  ;;  %v2688_v47 = vsel %vm2676_vm11, %v2666_v59, %v2669_v21 }
 0x225   : > { %v2675_v57 = vor.u32 %v2674_v2, %v2673_v0  ;;  %v2682_v22 = vsel %vm2678_vm13, %v2666_v59, %v2681_v11  ;;  %v2685_v55 = vsel %vm2679_vm14, %v2672_v33, 920167782  ;;  %v2692_v7 = vshll.u32 %v2652_v29, 8  ;;  %v11371_v2 = vpop.eup %9574  ;;  %v4755_v59 = vld [vmem:[%s16208_s7 + $0x60] sm:$0xff] }
 0x226   : > { %v11376_v6 = vsel %vm3582_vm10, %v11289_v18, 0  ;;  %v11378_v43 = vadd.s32 1, %v8441_v26  ;;  %4790 = vperm.xlu1 %9496, %v4753_v53   ;;  %v2686_v37 = vsel %vm2678_vm13, %v2669_v21, %v2685_v55  ;;  %4787 = vperm.xlu0 %9495, %v4752_v31   ;;  %v2683_v29 = vsel %vm2677_vm12, %v2680_v40, %v2682_v22  ;;  %v4754_v31 = vld [vmem:[%s16208_s7 + $0x58] sm:$0xff] }
 0x227   : > { %v2689_v0 = vsel %vm2679_vm14, %v2675_v57, 1326507024  ;;  %v2687_v18 = vsel %vm2677_vm12, %v2684_v12, %v2686_v37  ;;  %v15992_v53 = vand.u32 2147483647, %v10986_v23  ;;  %v11395_v21 = vmul.f32 0.62831855, %v11158_v62 }
 0x228   : > { %v2690_v26 = vsel %vm2678_vm13, %v2672_v33, %v2689_v0  ;;  %v11402_v11 = vmul.u32.u64.low %v2692_v7, %v2687_v18  ;;  %v11403_v40 = vmul.u32.u64.high %v2692_v7, %v2687_v18, %v11402_v11  ;;  %v11406_v12 = vadd.s32 4294967169, %v3781_v36  ;;  %v4757_v36 = vld [vmem:[%s16208_s7 + $0x70] sm:$0xff] }
 0x229   : > { %16226 = vst [vmem:[#allocation72_spill] sm:$0xff] %v11395_v21  ;;  %v2691_v57 = vsel %vm2677_vm12, %v2688_v47, %v2690_v26  ;;  %v2548_v55 = vand.u32 8388607, %v15992_v53  ;;  %v2699_v37 = vmul.u32 %v2692_v7, %v2683_v29  ;;  %v16227_v0 = vmov 683565275  }
 0x22a   : > { %v11408_v22 = vmul.u32.u64.low %v2692_v7, %v2691_v57  ;;  %v11409_v33 = vmul.u32.u64.high %v2692_v7, %v2691_v57, %v11408_v22  ;;  %4796 = vperm.xlu1 %9496, %v4755_v59   ;;  %v2558_v44 = vshll.u32 %v16227_v0, %v11097_v60  ;;  %v16228_v35 = vmov 2475754826   ;;  %4793 = vperm.xlu0 %9495, %v4754_v31   ;;  %v4756_v31 = vld [vmem:[%s16208_s7 + $0x68] sm:$0xff] }
 0x22b   : > { %v2559_v47 = vshrl.u32 %v16228_v35, %v11132_v27  ;;  %v2561_v18 = vshll.u32 %v16228_v35, %v11097_v60  ;;  %v2557_v26 = vshrl.u32 %v16227_v0, %v11132_v27  ;;  %v16229_v59 = vmov 2131351028  }
 0x22c   : > { %v2562_v7 = vshrl.u32 %v16229_v59, %v11132_v27  ;;  %v2564_v29 = vshll.u32 %v16229_v59, %v11097_v60  ;;  %v16230_v57 = vmov 2102212464   ;;  %v2702_v53 = vadd.s32 1, %v11403_v40 }
 0x22d   : > { %v2565_v22 = vshrl.u32 %v16230_v57, %v11132_v27  ;;  %v2560_v41 = vor.u32 %v2559_v47, %v2558_v44  ;;  %v2567_v5 = vshll.u32 %v16230_v57, %v11097_v60  ;;  %v16231_v24 = vmov 920167782  }
 0x22e   : > { %v2568_v4 = vshrl.u32 %v16231_v24, %v11132_v27  ;;  %vm2701_vm15 = vc.u32 %v11409_v33, %v11402_v11  ;;  %v2549_v9 = vor.u32 8388608, %v2548_v55  ;;  %v2563_v30 = vor.u32 %v2562_v7, %v2561_v18  ;;  %4802 = vperm.xlu1 %9496, %v4757_v36   ;;  %4799 = vperm.xlu0 %9495, %v4756_v31   ;;  %v4758_v55 = vld [vmem:[%s16208_s7 + $0x78] sm:$0xff] }
 0x22f   : > { %v2566_v17 = vor.u32 %v2565_v22, %v2564_v29  ;;  %v2703_v28 = vsel %vm2701_vm15, %v2702_v53, %v11403_v40  ;;  %v2570_v63 = vshll.u32 %v16231_v24, %v11097_v60  ;;  %v16232_v44 = vmov 1326507024  }
 0x230   : > { %v2569_v54 = vor.u32 %v2568_v4, %v2567_v5  ;;  %v2571_v47 = vshrl.u32 %v16232_v44, %v11132_v27  ;;  %v2704_v14 = vadd.s32 %v2703_v28, %v2699_v37  ;;  %vm2573_vm0 = vcmp.lt.s32.totalorder %v11129_v16, 1 }
 0x231   : > { %vm2574_vm1 = vcmp.lt.s32.totalorder %v11129_v16, 2  ;;  %vm2575_vm2 = vcmp.lt.s32.totalorder %v11129_v16, 3  ;;  %vm2576_vm3 = vcmp.lt.s32.totalorder %v11129_v16, 4  ;;  %v2577_v4 = vsel %vm2573_vm0, %v2557_v26, %v2560_v41 }
 0x232   : > { %v2572_v53 = vor.u32 %v2571_v47, %v2570_v63  ;;  %v2581_v60 = vsel %vm2573_vm0, %v2560_v41, %v2563_v30  ;;  %v2705_v5 = vadd.s32 536870912, %v2704_v14  ;;  %v2578_v40 = vsel %vm2576_vm3, %v2566_v17, 2102212464  ;;  %2251 = vperm.xlu1 %9496, %v11114_v20   ;;  %4805 = vperm.xlu0 %9495, %v4758_v55  }
 0x233   : > { %v2582_v27 = vsel %vm2576_vm3, %v2569_v54, 920167782  ;;  %v2585_v18 = vsel %vm2573_vm0, %v2563_v30, %v2566_v17  ;;  %v2579_v28 = vsel %vm2575_vm2, %v2563_v30, %v2578_v40  ;;  %v2589_v7 = vshll.u32 %v2549_v9, 8 }
 0x234   : > { %v2583_v37 = vsel %vm2575_vm2, %v2566_v17, %v2582_v27  ;;  %v2586_v36 = vsel %vm2576_vm3, %v2572_v53, 1326507024  ;;  %vm3685_vm4 = vcmp.gt.s32.totalorder %v11378_v43, 0  ;;  %v11458_v63 = vshrl.u32 %v2705_v5, 30 }
 0x235   : > { %v2584_v41 = vsel %vm2574_vm1, %v2581_v60, %v2583_v37  ;;  %v2587_v26 = vsel %vm2575_vm2, %v2569_v54, %v2586_v36  ;;  %v11465_v20 = vand.u32 31, %v11307_v42  ;;  %v2580_v22 = vsel %vm2574_vm1, %v2577_v4, %v2579_v28  ;;  %v11507_v28 = vld [vmem:[%s16240_s1] ss:$0 sm:$0xff] }
 0x236   : > { %v2588_v30 = vsel %vm2574_vm1, %v2585_v18, %v2587_v26  ;;  %v11469_v17 = vmul.u32.u64.low %v2589_v7, %v2584_v41  ;;  %v11470_v29 = vmul.u32.u64.high %v2589_v7, %v2584_v41, %v11469_v17  ;;  %v2707_v9 = vshll.u32 %v11458_v63, 30  ;;  %2261 = vperm.xlu1 %9496, %v11149_v51   ;;  %2256 = vperm.xlu0 %9495, %v11120_v1  }
 0x237   : > { %16233 = vst [vmem:[#allocation73_spill] sm:$0xff] %v11465_v20  ;;  %v11476_v31 = vmul.u32.u64.low %v2589_v7, %v2588_v30  ;;  %v11477_v47 = vmul.u32.u64.high %v2589_v7, %v2588_v30, %v11476_v31  ;;  %v11480_v54 = vsub.s32 32, %v11304_v38  ;;  %v11483_v55 = vand.u32 31, %v11376_v6 }
 0x238   : > { %v3686_v53 = vsel %vm3685_vm4, %v11378_v43, 0  ;;  %v3787_v60 = vadd.s32 1, %v11406_v12  ;;  %9576 = vrcp.f32 %v11125_v25  ;;  %v3883_v16 = vand.u32 2139095040, %v11395_v21 }
 0x239   : > { %16234 = vst [vmem:[#allocation74_spill] sm:$0xff] %v11480_v54  ;;  %16235 = vst [vmem:[#allocation75_spill] sm:$0xff] %v11483_v55  ;;  %v16009_v4 = vlaneseq  ;;  %v11491_v5 = vsub.s32 %v2704_v14, %v2707_v9  ;;  %v11494_v40 = vshrl.u32 %v11307_v42, 5  ;;  %v11497_v27 = vsub.s32 32, %v11465_v20 }
 0x23a   : > { %v2596_v43 = vmul.u32 %v2589_v7, %v2580_v22  ;;  %v2599_v12 = vadd.s32 1, %v11470_v29  ;;  %v11501_v51 = vshrl.u32 %v11376_v6, 5  ;;  %v11503_v18 = vand.u32 31, %v3686_v53  ;;  %2271 = vperm.xlu1 %9496, %v11216_v39   ;;  %2266 = vperm.xlu0 %9495, %v11168_v13  }
 0x23b   : > { %16236 = vst [vmem:[#allocation76_spill] sm:$0xff] %v11494_v40  ;;  %16237 = vst [vmem:[#allocation77_spill] sm:$0xff] %v11497_v27  ;;  %v2710_v1 = vsub.s32 0, %v11491_v5  ;;  %vm2598_vm5 = vc.u32 %v11477_v47, %v11469_v17  ;;  %v11513_v14 = vsub.s32 32, %v11483_v55  ;;  %vm3788_vm6 = vcmp.gt.s32.totalorder %v3787_v60, 0 }
 0x23c   : > { %16238 = vst [vmem:[#allocation78_spill] sm:$0xff] %v11501_v51  ;;  %16239 = vst [vmem:[#allocation79_spill] sm:$0xff] %v11503_v18  ;;  %9578 = vrcp.f32 %v11158_v62  ;;  %v2600_v42 = vsel %vm2598_vm5, %v2599_v12, %v11470_v29  ;;  %v11518_v6 = vshrl.u32 %v3686_v53, 5  ;;  %v11520_v37 = vshrl.u32 %v3883_v16, 23 }
 0x23d   : > { %16241 = vst [vmem:[#allocation80_spill] sm:$0xff] %v11513_v14  ;;  %v8863_v36 = vpop.f32.mrb[0].mxu0  ;;  %v11524_v7 = vand.u32 127, %v16009_v4  ;;  %v8402_v41 = vmin.u32 %v2710_v1, %v11491_v5  ;;  %9580 = vrcp.f32 %v11183_v50  ;;  %v11529_v26 = vmul.f32 0.62831855, %v11183_v50 }
 0x23e   : > { %16242 = vst [vmem:[#allocation81_spill] sm:$0xff] %v11518_v6  ;;  %16243 = vst [vmem:[#allocation82_spill] sm:$0xff] %v11520_v37  ;;  %v11532_v39 = vadd.f32 %v8863_v36, %v11507_v28  ;;  %v1159_v30 = vpop.f32.mrb[1].mxu0  ;;  %v2601_v29 = vadd.s32 %v2600_v42, %v2596_v43  ;;  %v11535_v9 = vsub.s32 32, %v11503_v18  ;;  %v11538_v13 = vsel %vm3788_vm6, %v3787_v60, 0  ;;  %2281 = vperm.xlu1 %9496, %v11279_v15  }
 0x23f   : > { %16244 = vst [vmem:[#allocation83_spill] sm:$0xff] %v11524_v7  ;;  %16245 = vst [vmem:[#allocation84_spill] sm:$0xff] %v11529_v26  ;;  %v11541_v22 = vadd.f32 %v11507_v28, %v1159_v30  ;;  %v2712_v31 = vclz %v8402_v41  ;;  %9582 = vrcp.f32 %v11220_v10  ;;  %v2730_v16 = vsub.s32 4, %v11458_v63  ;;  %2276 = vperm.xlu0 %9495, %v11247_v61   ;;  %v11555_v41 = vld [vmem:[%s10607_s30] sm:$0xff]  ;;  %v11558_v30 = vld [vmem:[%s10607_s30 + $0x18] sm:$0xff] }
 0x240   : > { %16246 = vst [vmem:[#allocation85_spill] sm:$0xff] %v11535_v9  ;;  %16247 = vst [vmem:[#allocation86_spill] sm:$0xff] %v11538_v13  ;;  %v8382_v53 = vmul.f32 -1.442695, %v11532_v39  ;;  %v2602_v43 = vadd.s32 536870912, %v2601_v29  ;;  %v2347_v1 = vcvt.s32.f32 %v11524_v7  ;;  %vm2646_vm7 = vcmp.lt.s32.totalorder %v11003_v34, 0 }
 0x241   : > { %v8381_v60 = vmul.f32 -1.442695, %v11541_v22  ;;  %v8866_v12 = vpop.f32.mrb[2].mxu0  ;;  %v8403_v42 = vadd.s32 4294967294, %v2712_v31  ;;  %v16248_v4 = vand.u32 2147483647, %v11003_v34  ;;  %v11624_v9 = vadd.s32 %v11469_v17, %v11477_v47 }
 0x242   : > { %9584 = vpow2.f32 %v8382_v53  ;;  %v11552_v36 = vadd.f32 %v8866_v12, %v11507_v28  ;;  %v1169_v15 = vpop.f32.mrb[3].mxu0  ;;  %v11566_v50 = vshrl.u32 %v2602_v43, 30  ;;  %v9577_v25 = vpop.eup %9576  ;;  %2291 = vperm.xlu1 %9496, %v11337_v32   ;;  %v11582_v21 = vmul.f32 0.33333334, %v2347_v1 }
 0x243   : > { %vm11562_vm8 = vcmp.le.f32.partialorder %v16248_v4, 0.7853982  ;;  %9586 = vpow2.f32 %v8381_v60  ;;  %v11569_v31 = vadd.f32 %v11507_v28, %v1169_v15  ;;  %vm8404_vm9 = vcmp.lt.s32.totalorder %v8403_v42, 0  ;;  %2286 = vperm.xlu0 %9495, %v11313_v45  }
 0x244   : > { %v8384_v12 = vmul.f32 -1.442695, %v11552_v36  ;;  %v11574_v62 = vsel %vm8404_vm9, 0, %v8403_v42  ;;  %v2731_v4 = vsel %vm2646_vm7, %v2730_v16, %v11458_v63  ;;  %v2604_v43 = vshll.u32 %v11566_v50, 30 }
 0x245   : > { %v8383_v60 = vmul.f32 -1.442695, %v11569_v31  ;;  %v8869_v15 = vpop.f32.mrb[4].mxu0  ;;  %v2720_v53 = vsub.s32 4294967266, %v11574_v62  ;;  %v2700_v16 = vadd.s32 %v11402_v11, %v11409_v33  ;;  %v2733_v32 = vsel %vm11562_vm8, 0, %v2731_v4 }
 0x246   : > { %v9579_v42 = vpop.eup %9578  ;;  %9588 = vpow2.f32 %v8384_v12  ;;  %v11588_v51 = vadd.f32 %v8869_v15, %v11507_v28  ;;  %v1179_v63 = vpop.f32.mrb[5].mxu0  ;;  %v11592_v45 = vsub.s32 %v2601_v29, %v2604_v43  ;;  %v16251_v14 = vand.u32 2147483647, %v11039_v56  ;;  %2301 = vperm.xlu1 %9496, %v11363_v49  }
 0x247   : > { %9590 = vpow2.f32 %v8383_v60  ;;  %v11595_v1 = vadd.f32 %v11507_v28, %v1179_v63  ;;  %v9581_v12 = vpop.eup %9580  ;;  %v2716_v11 = vsub.s32 32, %v11574_v62  ;;  %v2721_v33 = vadd.s32 127, %v2720_v53  ;;  %2296 = vperm.xlu0 %9495, %v11346_v58  }
 0x248   : > { %v11601_v55 = vand.u32 8388607, %v16251_v14  ;;  %v8386_v15 = vmul.f32 -1.442695, %v11588_v51  ;;  %v2607_v29 = vsub.s32 0, %v11592_v45  ;;  %v11611_v4 = vshrl.u32 %v16227_v0, %v11200_v3 }
 0x249   : > { %v8385_v43 = vmul.f32 -1.442695, %v11595_v1  ;;  %v8872_v60 = vpop.f32.mrb[6].mxu0  ;;  %v2867_v14 = vshll.u32 %v16227_v0, %v11173_v8  ;;  %v2868_v49 = vshrl.u32 %v16228_v35, %v11200_v3  ;;  %v9583_v63 = vpop.eup %9582  ;;  %v11620_v58 = vand.u32 3, %v2733_v32 }
 0x24a   : > { %9592 = vpow2.f32 %v8386_v15  ;;  %v11618_v53 = vadd.f32 %v8872_v60, %v11507_v28  ;;  %v1189_v6 = vpop.f32.mrb[7].mxu0  ;;  %v8398_v54 = vmin.u32 %v2607_v29, %v11592_v45  ;;  %2311 = vperm.xlu1 %9496, %v9577_v25   ;;  %v2717_v32 = vshll.u32 %v11491_v5, %v11574_v62 }
 0x24b   : > { %9594 = vpow2.f32 %v8385_v43  ;;  %v11627_v18 = vadd.f32 %v11507_v28, %v1189_v6  ;;  %v2718_v60 = vshrl.u32 %v2700_v16, %v2716_v11  ;;  %v2722_v40 = vshll.u32 %v2721_v33, 23  ;;  %2306 = vperm.xlu0 %9495, %v11371_v2  }
 0x24c   : > { %v9585_v7 = vpop.eup %9584  ;;  %v8388_v15 = vmul.f32 -1.442695, %v11618_v53  ;;  %v11636_v43 = vor.u32 %v2868_v49, %v2867_v14  ;;  %v2870_v29 = vshll.u32 %v16228_v35, %v11173_v8  ;;  %v2871_v5 = vshrl.u32 %v16229_v59, %v11200_v3 }
 0x24d   : > { %v9587_v20 = vpop.eup %9586  ;;  %v1287_v17 = vadd.f32 1.0, %v9585_v7  ;;  %v8387_v47 = vmul.f32 -1.442695, %v11627_v18  ;;  %v8875_v6 = vpop.f32.mrb[8].mxu0  ;;  %v2609_v7 = vclz %v8398_v54  ;;  %v2873_v16 = vshll.u32 %v16229_v59, %v11173_v8 }
 0x24e   : > { %v1286_v25 = vadd.f32 1.0, %v9587_v20  ;;  %9596 = vpow2.f32 %v8388_v15  ;;  %v11641_v38 = vadd.f32 %v8875_v6, %v11507_v28  ;;  %v1199_v62 = vpop.f32.mrb[9].mxu0  ;;  %2321 = vperm.xlu1 %9496, %v9581_v12   ;;  %v2719_v33 = vor.u32 %v2718_v60, %v2717_v32 }
 0x24f   : > { %9598 = vrcp.f32 %v1287_v17  ;;  %v11646_v2 = vadd.f32 %v11507_v28, %v1199_v62  ;;  %v2723_v14 = vor.u32 4788187, %v2722_v40  ;;  %2316 = vperm.xlu0 %9495, %v9579_v42   ;;  %v2874_v54 = vshrl.u32 %v16230_v57, %v11200_v3 }
 0x250   : > { %v9589_v11 = vpop.eup %9588  ;;  %9600 = vrcp.f32 %v1286_v25  ;;  %v8390_v20 = vmul.f32 -1.442695, %v11641_v38  ;;  %vm2543_vm10 = vcmp.lt.s32.totalorder %v10986_v23, 0  ;;  %v11658_v32 = vor.u32 %v2871_v5, %v2870_v29 }
 0x251   : > { %v9591_v49 = vpop.eup %9590  ;;  %v1289_v15 = vadd.f32 1.0, %v9589_v11  ;;  %9602 = vpow2.f32 %v8387_v47  ;;  %v8389_v17 = vmul.f32 -1.442695, %v11646_v2  ;;  %v8878_v6 = vpop.f32.mrb[10].mxu0  ;;  %v8399_v60 = vadd.s32 4294967294, %v2609_v7 }
 0x252   : > { %v1288_v62 = vadd.f32 1.0, %v9591_v49  ;;  %9604 = vpow2.f32 %v8390_v20  ;;  %v11655_v27 = vadd.f32 %v8878_v6, %v11507_v28  ;;  %v1209_v12 = vpop.f32.mrb[11].mxu0  ;;  %v11665_v47 = vshll.u32 %v16230_v57, %v11173_v8 }
 0x253   : > { %9606 = vrcp.f32 %v1289_v15  ;;  %v11661_v40 = vadd.f32 %v11507_v28, %v1209_v12  ;;  %v2724_v20 = vand.u32 2147483647, %v2723_v14  ;;  %v2726_v49 = vcvt.s32.f32 %v2719_v33  ;;  %2326 = vperm.xlu0 %9495, %v9583_v63  }
 0x254   : > { %v9593_v25 = vpop.eup %9592  ;;  %9608 = vrcp.f32 %v1288_v62  ;;  %v8392_v11 = vmul.f32 -1.442695, %v11655_v27  ;;  %v11669_v15 = vor.u32 %v2874_v54, %v2873_v16  ;;  %vm8400_vm11 = vcmp.lt.s32.totalorder %v8399_v60, 0 }
 0x255   : > { %v9595_v6 = vpop.eup %9594  ;;  %v1291_v10 = vadd.f32 1.0, %v9593_v25  ;;  %9610 = vpow2.f32 %v8389_v17  ;;  %v8391_v29 = vmul.f32 -1.442695, %v11661_v40  ;;  %v8881_v5 = vpop.f32.mrb[12].mxu0  ;;  %v2627_v63 = vsub.s32 4, %v11566_v50 }
 0x256   : > { %v1290_v7 = vadd.f32 1.0, %v9595_v6  ;;  %9612 = vpow2.f32 %v8392_v11  ;;  %v11672_v12 = vadd.f32 %v8881_v5, %v11507_v28  ;;  %v1219_v13 = vpop.f32.mrb[13].mxu0  ;;  %v11680_v17 = vmul.f32 %v2726_v49, %v2724_v20 }
 0x257   : > { %v2352_v42 = vpop.permute.xlu0 %2351  ;;  %9614 = vrcp.f32 %v1291_v10  ;;  %v11676_v33 = vadd.f32 %v11507_v28, %v1219_v13  ;;  %v11684_v54 = vshrl.u32 %v16231_v24, %v11200_v3  ;;  %v16252_v6 = vand.u32 2147483647, %v10986_v23 }
 0x258   : > { %v2429_v62 = vsub.f32 %v2352_v42, %v11582_v21  ;;  %v2357_v26 = vpop.permute.xlu1 %2356  ;;  %v9597_v14 = vpop.eup %9596  ;;  %9616 = vrcp.f32 %v1290_v7  ;;  %v8394_v16 = vmul.f32 -1.442695, %v11672_v12  ;;  %vm2882_vm13 = vcmp.lt.s32.totalorder %v11177_v19, 1 }
 0x259   : > { %v9599_v25 = vpop.eup %9598  ;;  %v1293_v42 = vadd.f32 1.0, %v9597_v14  ;;  %9618 = vpow2.f32 %v8391_v29  ;;  %v8393_v10 = vmul.f32 -1.442695, %v11676_v33  ;;  %v8884_v13 = vpop.f32.mrb[14].mxu0  ;;  %v2430_v11 = vsub.f32 %v2357_v26, %v11582_v21 }
 0x25a   : > { %vm11690_vm12 = vcmp.le.f32.partialorder %v16252_v6, 0.7853982  ;;  %v9601_v20 = vpop.eup %9600  ;;  %9620 = vpow2.f32 %v8394_v16  ;;  %v11695_v49 = vadd.f32 %v8884_v13, %v11507_v28  ;;  %v1229_v7 = vpop.f32.mrb[15].mxu0  ;;  %v2445_v56 = vmul.f32 %v2429_v62, %v2429_v62 }
 0x25b   : > { %v2612_v29 = vsel %vm8400_vm11, 0, %v8399_v60  ;;  %v9603_v14 = vpop.eup %9602  ;;  %v1334_v57 = vmul.f32 %v9601_v20, %v11541_v22  ;;  %v11700_v26 = vadd.f32 %v11507_v28, %v1229_v7  ;;  %v11705_v6 = vsel %vm2543_vm10, %v2627_v63, %v11566_v50 }
 0x25c   : > { %v2613_v59 = vsub.s32 32, %v2612_v29  ;;  %v9605_v16 = vpop.eup %9604  ;;  %v1335_v13 = vmul.f32 %v9599_v25, %v11532_v39  ;;  %v1292_v35 = vadd.f32 1.0, %v9603_v14  ;;  %9622 = vpow2.f32 %v8393_v10 }
 0x25d   : > { %v8396_v62 = vmul.f32 -1.442695, %v11695_v49  ;;  %v2362_v60 = vpop.permute.xlu1 %2361  ;;  %v9607_v0 = vpop.eup %9606  ;;  %9624 = vrcp.f32 %v1293_v42  ;;  %v1295_v22 = vadd.f32 1.0, %v9605_v16  ;;  %v8395_v28 = vmul.f32 -1.442695, %v11700_v26  ;;  %1480 = vmatmul.mubr.f32.vlgmr.msra.gmra.mrb[0].mxu1 %v1334_v57  ;;  %8917 = vmatprep.mubr.f32.mxu0 %v1334_v57 }
 0x25e   : > { %v2431_v20 = vsub.f32 %v2362_v60, %v11582_v21  ;;  %v9609_v7 = vpop.eup %9608  ;;  %9626 = vrcp.f32 %v1292_v35  ;;  %8918 = vmatmul.mubr.f32.vlgmr.msra.gmra.mrb[16].mxu0 %v1335_v13  ;;  %v16255_v50 = vmov 0.0   ;;  %v2461_v39 = vmul.f32 -4.5, %v2445_v56 }
 0x25f   : > { %1485 = vmatprep.mubr.f32.mxu1 %v16255_v50  ;;  %v2446_v63 = vmul.f32 %v2430_v11, %v2430_v11  ;;  %v2728_v25 = vxor.u32 2147483648, %v11680_v17  ;;  %v9611_v10 = vpop.eup %9610  ;;  %v1336_v14 = vmul.f32 %v9609_v7, %v11569_v31  ;;  %9628 = vrcp.f32 %v1295_v22 }
 0x260   : > { %v16256_v42 = vpack.c.bf16 %v11558_v30, %v11555_v41  ;;  %v2614_v57 = vshll.u32 %v11592_v45, %v2612_v29  ;;  %v2615_v16 = vshrl.u32 %v11624_v9, %v2613_v59  ;;  %v9613_v35 = vpop.eup %9612  ;;  %v1337_v60 = vmul.f32 %v9607_v0, %v11552_v36 }
 0x261   : > { %v1294_v46 = vadd.f32 1.0, %v9611_v10  ;;  %9630 = vpow2.f32 %v8396_v62  ;;  %v2617_v56 = vsub.s32 4294967266, %v2612_v29  ;;  %v9615_v11 = vpop.eup %9614  ;;  %v1297_v37 = vadd.f32 1.0, %v9613_v35  ;;  %1486 = vmatmul.mubr.f32.gmra.mrb[2].mxu1 %v1335_v13  ;;  %8920 = vmatprep.mubr.f32.mxu0 %v1336_v14  ;;  %v2367_v7 = vpop.permute.xlu0 %2366 }
 0x262   : > { %9124 = vmatpush1.bf16.msra.mxu0 %v16256_v42  ;;  %9632 = vpow2.f32 %v8395_v28  ;;  %v2447_v31 = vmul.f32 %v2431_v20, %v2431_v20  ;;  %v11722_v41 = vshll.u32 %v16231_v24, %v11173_v8  ;;  %v9617_v30 = vpop.eup %9616  ;;  %1491 = vmatprep.mubr.f32.mxu1 %v16255_v50  ;;  %v2630_v0 = vsel %vm11690_vm12, 0, %v11705_v6 }
 0x263   : > { %9634 = vrcp.f32 %v1294_v46  ;;  %8921 = vmatmul.mubr.f32.gmra.mrb[18].mxu0 %v1337_v60  ;;  %v2618_v59 = vadd.s32 127, %v2617_v56  ;;  %v11730_v9 = vshrl.u32 %v16232_v44, %v11200_v3  ;;  %v9619_v36 = vpop.eup %9618  ;;  %v1338_v45 = vmul.f32 %v9617_v30, %v11595_v1 }
 0x264   : > { %v2477_v29 = vmul.f32 1.442695, %v2461_v39  ;;  %v2729_v46 = vsel %vm2646_vm7, %v2728_v25, %v11680_v17  ;;  %v2616_v8 = vor.u32 %v2615_v16, %v2614_v57  ;;  %v9621_v13 = vpop.eup %9620  ;;  %v11737_v62 = vmul.f32 %v9615_v11, %v11588_v51 }
 0x265   : > { %v1296_v22 = vadd.f32 1.0, %v9619_v36  ;;  %v2462_v28 = vmul.f32 -4.5, %v2446_v63  ;;  %v2619_v6 = vshll.u32 %v2618_v59, 23  ;;  %9636 = vrcp.f32 %v1297_v37  ;;  %1492 = vmatmul.mubr.f32.gmra.mrb[4].mxu1 %v1336_v14  ;;  %8923 = vmatprep.mubr.f32.mxu0 %v1338_v45  ;;  %v2372_v35 = vpop.permute.xlu1 %2371 }
 0x266   : > { %v1299_v20 = vadd.f32 1.0, %v9621_v13  ;;  %v2463_v3 = vmul.f32 -4.5, %v2447_v31  ;;  %v11741_v1 = vor.u32 %v11684_v54, %v11665_v47  ;;  %v9623_v39 = vpop.eup %9622  ;;  %1497 = vmatprep.mubr.f32.mxu1 %v16255_v50  ;;  %v2432_v51 = vsub.f32 %v2367_v7, %v11582_v21 }
 0x267   : > { %9638 = vrcp.f32 %v1296_v22  ;;  %8924 = vmatmul.mubr.f32.gmra.mrb[20].mxu0 %v11737_v62  ;;  %v2732_v37 = vsel %vm11562_vm8, %v11003_v34, %v2729_v46  ;;  %v11749_v17 = vand.u32 3, %v2630_v0  ;;  %v9625_v63 = vpop.eup %9624  ;;  %v1298_v25 = vadd.f32 1.0, %v9623_v39 }
 0x268   : > { %9640 = vpow2.f32 %v2477_v29  ;;  %v2620_v10 = vor.u32 4788187, %v2619_v6  ;;  %v2623_v47 = vcvt.s32.f32 %v2616_v8  ;;  %v9627_v54 = vpop.eup %9626  ;;  %v11751_v14 = vmul.f32 1.442695, %v2462_v28 }
 0x269   : > { %9642 = vrcp.f32 %v1299_v20  ;;  %v2881_v42 = vor.u32 %v11730_v9, %v11722_v41  ;;  %v9629_v57 = vpop.eup %9628  ;;  %v11757_v61 = vmul.f32 %v9627_v54, %v11627_v18  ;;  %1498 = vmatmul.mubr.f32.gmra.mrb[6].mxu1 %v1337_v60  ;;  %v11759_v16 = vmul.f32 1.442695, %v2463_v3  ;;  %v2377_v60 = vpop.permute.xlu0 %2376 }
 0x26a   : > { %9644 = vrcp.f32 %v1298_v25  ;;  %v2621_v56 = vand.u32 2147483647, %v2620_v10  ;;  %v11762_v31 = vmul.f32 %v9625_v63, %v11618_v53  ;;  %1503 = vmatprep.mubr.f32.mxu1 %v16255_v50  ;;  %v11765_v30 = vmul.f32 %v2432_v51, %v2432_v51 }
 0x26b   : > { %v9631_v11 = vpop.eup %9630  ;;  %9646 = vcosq.f32 %v2732_v37  ;;  %vm2885_vm14 = vcmp.lt.s32.totalorder %v11177_v19, 4  ;;  %8926 = vmatprep.mubr.f32.mxu0 %v11757_v61  ;;  %vm2883_vm15 = vcmp.lt.s32.totalorder %v11177_v19, 2  ;;  %vm2742_vm0 = vcmp.eq.s32.totalorder %v11620_v58, 2 }
 0x26c   : > { %v9633_v41 = vpop.eup %9632  ;;  %v1301_v18 = vadd.f32 1.0, %v9631_v11  ;;  %9648 = vsinq.f32 %v2732_v37  ;;  %v2624_v59 = vmul.f32 %v2623_v47, %v2621_v56  ;;  %8927 = vmatmul.mubr.f32.gmra.mrb[22].mxu0 %v11762_v31  ;;  %vm2884_vm1 = vcmp.lt.s32.totalorder %v11177_v19, 3 }
 0x26d   : > { %v9635_v0 = vpop.eup %9634  ;;  %v1300_v9 = vadd.f32 1.0, %v9633_v41  ;;  %v2887_v53 = vsel %vm2885_vm14, %v11669_v15, 2102212464  ;;  %v2890_v36 = vsel %vm2882_vm13, %v11636_v43, %v11658_v32  ;;  %1504 = vmatmul.mubr.f32.gmra.mrb[8].mxu1 %v1338_v45  ;;  %vm2739_vm2 = vcmp.eq.s32.totalorder %v11620_v58, 0  ;;  %v2382_v28 = vpop.permute.xlu1 %2381 }
 0x26e   : > { %v11781_v29 = vmul.f32 %v9635_v0, %v11646_v2  ;;  %9650 = vrcp.f32 %v1301_v18  ;;  %v2625_v46 = vxor.u32 2147483648, %v2624_v59  ;;  %v2891_v8 = vsel %vm2885_vm14, %v11741_v1, 920167782  ;;  %1509 = vmatprep.mubr.f32.mxu1 %v16255_v50 }
 0x26f   : > { %v11788_v13 = vmul.f32 %v9629_v57, %v11641_v38  ;;  %9652 = vrcp.f32 %v1300_v9  ;;  %v2433_v22 = vsub.f32 %v2372_v35, %v11582_v21  ;;  %vm2738_vm3 = vcmp.lt.s32.totalorder %v11620_v58, 2  ;;  %v9637_v45 = vpop.eup %9636 }
 0x270   : > { %v2886_v2 = vsel %vm2882_vm13, %v11611_v4, %v11636_v43  ;;  %8929 = vmatprep.mubr.f32.mxu0 %v11781_v29  ;;  %v2434_v6 = vsub.f32 %v2377_v60, %v11582_v21  ;;  %vm2736_vm4 = vweird.f32 %v11003_v34  ;;  %v2626_v38 = vsel %vm2543_vm10, %v2625_v46, %v2624_v59 }
 0x271   : > { %v2888_v20 = vsel %vm2884_vm1, %v11658_v32, %v2887_v53  ;;  %v2892_v3 = vsel %vm2884_vm1, %v11669_v15, %v2891_v8  ;;  %v9639_v4 = vpop.eup %9638  ;;  %8930 = vmatmul.mubr.f32.gmra.mrb[24].mxu0 %v11788_v13  ;;  %v2435_v43 = vsub.f32 %v2382_v28, %v11582_v21  ;;  %v2629_v7 = vsel %vm11690_vm12, %v10986_v23, %v2626_v38  ;;  %v2387_v25 = vpop.permute.xlu0 %2386 }
 0x272   : > { %v2893_v39 = vsel %vm2883_vm15, %v2890_v36, %v2892_v3  ;;  %v2894_v51 = vsel %vm2882_vm13, %v11658_v32, %v11669_v15  ;;  %v11819_v37 = vpop.eup %9640  ;;  %v11822_v63 = vmul.f32 %v9639_v4, %v11661_v40  ;;  %1510 = vmatmul.mubr.f32.gmra.mrb[10].mxu1 %v11737_v62  ;;  %9654 = vcosq.f32 %v2629_v7 }
 0x273   : > { %v2895_v5 = vsel %vm2885_vm14, %v2881_v42, 1326507024  ;;  %v16257_v10 = vor.u32 8388608, %v11601_v55  ;;  %v9643_v54 = vpop.eup %9642  ;;  %v11832_v57 = vmul.f32 %v9637_v45, %v11655_v27  ;;  %v2449_v32 = vmul.f32 %v2433_v22, %v2433_v22  ;;  %1515 = vmatprep.mubr.f32.mxu1 %v16255_v50 }
 0x274   : > { %v2436_v40 = vsub.f32 %v2387_v25, %v11582_v21  ;;  %9656 = vsinq.f32 %v2629_v7  ;;  %v9645_v15 = vpop.eup %9644  ;;  %8932 = vmatprep.mubr.f32.mxu0 %v11822_v63  ;;  %v2450_v62 = vmul.f32 %v2434_v6, %v2434_v6  ;;  %v2896_v55 = vsel %vm2884_vm1, %v11741_v1, %v2895_v5 }
 0x275   : > { %v11829_v47 = vshll.u32 %v16257_v10, 8  ;;  %v9647_v27 = vpop.eup %9646  ;;  %v11846_v56 = vmul.f32 %v9645_v15, %v11676_v33  ;;  %8933 = vmatmul.mubr.f32.gmra.mrb[26].mxu0 %v11832_v57  ;;  %v2464_v11 = vmul.f32 -4.5, %v11765_v30  ;;  %vm2510_vm5 = vcmp.lt.f32.partialorder %v10942_v48, 5.0  ;;  %v2392_v46 = vpop.permute.xlu1 %2391  ;;  %v16258_v48 = vld [vmem:[#allocation82_spill] sm:$0xff] }
 0x276   : > { %vm2636_vm6 = vcmp.eq.s32.totalorder %v11749_v17, 0  ;;  %v2889_v1 = vsel %vm2883_vm15, %v2886_v2, %v2888_v20  ;;  %v2897_v41 = vsel %vm2883_vm15, %v2894_v51, %v2896_v55  ;;  %v9649_v18 = vpop.eup %9648  ;;  %1516 = vmatmul.mubr.f32.gmra.mrb[12].mxu1 %v11757_v61  ;;  %v2451_v60 = vmul.f32 %v2435_v43, %v2435_v43 }
 0x277   : > { %v11841_v42 = vmul.u32.u64.low %v11829_v47, %v2893_v39  ;;  %v11842_v35 = vmul.u32.u64.high %v11829_v47, %v2893_v39, %v11841_v42  ;;  %vm4260_vm7 = vcmask 130048   ;;  %v2743_v33 = vxor.u32 2147483648, %v9647_v27  ;;  %8935 = vmatprep.mubr.f32.mxu0 %v11846_v56  ;;  %1521 = vmatprep.mubr.f32.mxu1 %v16255_v50 }
 0x278   : > { %vm2635_vm8 = vcmp.lt.s32.totalorder %v11749_v17, 2  ;;  %v11859_v30 = vmul.u32.u64.low %v11829_v47, %v2897_v41  ;;  %v11860_v59 = vmul.u32.u64.high %v11829_v47, %v2897_v41, %v11859_v30  ;;  %v11863_v0 = vmul.f32 %v9643_v54, %v11672_v12  ;;  %v9651_v9 = vpop.eup %9650 }
 0x279   : > { %9658 = vpow2.f32 %v11751_v14  ;;  %v2452_v19 = vmul.f32 %v2436_v40, %v2436_v40  ;;  %v2740_v61 = vxor.u32 2147483648, %v9649_v18  ;;  %vm2633_vm9 = vweird.f32 %v10986_v23  ;;  %v9653_v22 = vpop.eup %9652  ;;  %v2397_v25 = vpop.permute.xlu0 %2396 }
 0x27a   : > { %v2465_v53 = vmul.f32 -4.5, %v2449_v32  ;;  %v2466_v36 = vmul.f32 -4.5, %v2450_v62  ;;  %v2744_v8 = vsel %vm2742_vm0, %v2743_v33, %v9649_v18  ;;  %v2908_v12 = vadd.s32 1, %v11842_v35  ;;  %8936 = vmatmul.mubr.f32.gmra.mrb[28].mxu0 %v11863_v0  ;;  %1522 = vmatmul.mubr.f32.gmra.mrb[14].mxu1 %v11762_v31 }
 0x27b   : > { %v11873_v14 = vmul.f32 %v9651_v9, %v11695_v49  ;;  %v2437_v2 = vsub.f32 %v2392_v46, %v11582_v21  ;;  %v2741_v45 = vsel %vm2739_vm2, %v9647_v27, %v2740_v61  ;;  %v2905_v28 = vmul.u32 %v11829_v47, %v2889_v1  ;;  %1527 = vmatprep.mubr.f32.mxu1 %v16255_v50  ;;  %v16260_v9 = vld [vmem:[#allocation50_spill] sm:$0xff] }
 0x27c   : > { %v11881_v6 = vmul.f32 %v9653_v22, %v11700_v26  ;;  %v2467_v38 = vmul.f32 -4.5, %v2451_v60  ;;  %v2745_v20 = vsel %vm2738_vm3, %v2741_v45, %v2744_v8  ;;  %vm2639_vm10 = vcmp.eq.s32.totalorder %v11749_v17, 2  ;;  %v9655_v26 = vpop.eup %9654  ;;  %v16259_v17 = vld [vmem:[#allocation30_spill] sm:$0xff] }
 0x27d   : > { %v2483_v49 = vmul.f32 1.442695, %v2464_v11  ;;  %v2468_v3 = vmul.f32 -4.5, %v2452_v19  ;;  %v2746_v4 = vsel %vm2736_vm4, nan, %v2745_v20  ;;  %vm2907_vm11 = vc.u32 %v11860_v59, %v11841_v42  ;;  %v2402_v33 = vpop.permute.xlu1 %2401 }
 0x27e   : > { %9660 = vpow2.f32 %v11759_v16  ;;  %v2485_v43 = vmul.f32 1.442695, %v2465_v53  ;;  %8938 = vmatprep.mubr.f32.mxu0 %v11881_v6  ;;  %v4190_v58 = vadd.f32 1.0, %v2746_v4  ;;  %v2909_v31 = vsel %vm2907_vm11, %v2908_v12, %v11842_v35  ;;  %v9657_v7 = vpop.eup %9656  ;;  %1528 = vmatmul.mubr.f32.gmra.mrb[16].mxu1 %v11781_v29 }
 0x27f   : > { %v2487_v39 = vmul.f32 1.442695, %v2466_v36  ;;  %8939 = vmatmul.mubr.f32.gmra.mrb[30].mxu0 %v11873_v14  ;;  %v2453_v51 = vmul.f32 %v2437_v2, %v2437_v2  ;;  %v2640_v34 = vxor.u32 2147483648, %v9655_v26  ;;  %v2910_v5 = vadd.s32 %v2909_v31, %v2905_v28  ;;  %1533 = vmatprep.mubr.f32.mxu1 %v16255_v50  ;;  %v16262_v36 = vld [vmem:[#allocation53_spill] sm:$0xff] }
 0x280   : > { %v2489_v10 = vmul.f32 1.442695, %v2467_v38  ;;  %4373 = vmatprep.mubr.f32.mxu0 %v16255_v50  ;;  %v2438_v16 = vsub.f32 %v2397_v25, %v11582_v21  ;;  %v4206_v47 = vmul.f32 0.5, %v4190_v58  ;;  %v2637_v54 = vxor.u32 2147483648, %v9657_v7 }
 0x281   : > { %9662 = vpow2.f32 %v2483_v49  ;;  %v2491_v32 = vmul.f32 1.442695, %v2468_v3  ;;  %v2641_v40 = vsel %vm2639_vm10, %v2640_v34, %v9657_v7  ;;  %v2911_v15 = vadd.s32 536870912, %v2910_v5 }
 0x282   : > { %9664 = vpow2.f32 %v2485_v43  ;;  %v4222_v62 = vsel %vm2510_vm5, %v4206_v47, 0.0  ;;  %v2638_v29 = vsel %vm2636_vm6, %v9655_v26, %v2637_v54  ;;  %v2747_v55 = vand.u32 2147483647, %v11021_v52  ;;  %1534 = vmatmul.mubr.f32.gmra.mrb[18].mxu1 %v11788_v13  ;;  %v2407_v43 = vpop.permute.xlu0 %2406 }
 0x283   : > { %v11907_v35 = vpop.eup %9658  ;;  %9666 = vpow2.f32 %v2487_v39  ;;  %v2469_v27 = vmul.f32 -4.5, %v2453_v51  ;;  %8461 = vmatmul.mubr.msk.f32.vlgmr.msra.gmra.mrb[32].mxu0 %vm4260_vm7, %v11819_v37  ;;  %4622 = vperm.xlu0 %9495, %v4222_v62   ;;  %v2642_v11 = vsel %vm2635_vm8, %v2638_v29, %v2641_v40  ;;  %v11913_v1 = vshrl.u32 %v2911_v15, 30 }
 0x284   : > { %v11916_v41 = vadd.s32 4294967169, %v16258_v48  ;;  %9668 = vpow2.f32 %v2489_v10  ;;  %v2454_v18 = vmul.f32 %v2438_v16, %v2438_v16  ;;  %4379 = vmatprep.mubr.f32.mxu0 %v16255_v50  ;;  %v2643_v60 = vsel %vm2633_vm9, nan, %v2642_v11  ;;  %1539 = vmatprep.mubr.f32.mxu1 %v16255_v50 }
 0x285   : > { %9670 = vpow2.f32 %v2491_v32  ;;  %vm2509_vm12 = vcmp.lt.f32.partialorder %v16259_v17, 5.0  ;;  %v4189_v30 = vadd.f32 1.0, %v2643_v60  ;;  %v2913_v19 = vshll.u32 %v11913_v1, 30  ;;  %v2412_v16 = vpop.permute.xlu1 %2411  ;;  %v16266_v17 = vld [vmem:[#allocation49_spill] sm:$0xff] }
 0x286   : > { %v11927_v61 = vand.u32 8388607, %v2747_v55  ;;  %v16261_v13 = vmov 683565275   ;;  %v16263_v46 = vmov 2475754826   ;;  %v2439_v22 = vsub.f32 %v2402_v33, %v11582_v21  ;;  %1540 = vmatmul.mubr.f32.gmra.mrb[20].mxu1 %v11822_v63 }
 0x287   : > { %v2764_v53 = vshll.u32 %v16261_v13, %v16260_v9  ;;  %v2765_v23 = vshrl.u32 %v16263_v46, %v16262_v36  ;;  %v2767_v8 = vshll.u32 %v16263_v46, %v16260_v9  ;;  %v2493_v12 = vmul.f32 1.442695, %v2469_v27  ;;  %8462 = vmatmul.mubr.msk.f32.gmra.mrb[34].mxu0 %vm4260_vm7, %v11907_v35  ;;  %1545 = vmatprep.mubr.f32.mxu1 %v16255_v50 }
 0x288   : > { %v4205_v2 = vmul.f32 0.5, %v4189_v30  ;;  %v11938_v45 = vsub.s32 %v2910_v5, %v2913_v19  ;;  %v11940_v28 = vpop.eup %9660  ;;  %v2470_v38 = vmul.f32 -4.5, %v2454_v18  ;;  %4385 = vmatprep.mubr.f32.mxu0 %v16255_v50  ;;  %v16264_v20 = vmov 2131351028  }
 0x289   : > { %v2768_v49 = vshrl.u32 %v16264_v20, %v16262_v36  ;;  %v16265_v3 = vmov 2102212464   ;;  %v2774_v26 = vshrl.u32 %v16231_v24, %v16262_v36  ;;  %v2770_v63 = vshll.u32 %v16264_v20, %v16260_v9 }
 0x28a   : > { %v2773_v4 = vshll.u32 %v16265_v3, %v16260_v9  ;;  %v4221_v58 = vsel %vm2509_vm12, %v4205_v2, 0.0  ;;  %v2916_v31 = vsub.s32 0, %v11938_v45  ;;  %v2771_v7 = vshrl.u32 %v16265_v3, %v16262_v36  ;;  %1546 = vmatmul.mubr.f32.gmra.mrb[22].mxu1 %v11832_v57 }
 0x28b   : > { %4617 = vperm.xlu1 %9496, %v4221_v58   ;;  %v2906_v39 = vadd.s32 %v11841_v42, %v11860_v59  ;;  %v2763_v51 = vshrl.u32 %v16261_v13, %v16262_v36  ;;  %v2776_v25 = vshll.u32 %v16231_v24, %v16260_v9  ;;  %v2777_v34 = vshrl.u32 %v16232_v44, %v16262_v36  ;;  %v11966_v5 = vpop.eup %9662 }
 0x28c   : > { %v2455_v10 = vmul.f32 %v2439_v22, %v2439_v22  ;;  %v2440_v47 = vsub.f32 %v2407_v43, %v11582_v21  ;;  %8463 = vmatmul.mubr.msk.f32.gmra.mrb[36].mxu0 %vm4260_vm7, %v11940_v28  ;;  %v8410_v42 = vmin.u32 %v2916_v31, %v11938_v45  ;;  %v2755_v59 = vor.u32 8388608, %v11927_v61  ;;  %v11973_v54 = vpop.eup %9664  ;;  %1551 = vmatprep.mubr.f32.mxu1 %v16255_v50  ;;  %v2417_v61 = vpop.permute.xlu0 %2416 }
 0x28d   : > { %9672 = vpow2.f32 %v2493_v12  ;;  %v2441_v32 = vsub.f32 %v2412_v16, %v11582_v21  ;;  %4391 = vmatprep.mubr.f32.mxu0 %v16255_v50  ;;  %v2766_v40 = vor.u32 %v2765_v23, %v2764_v53  ;;  %v2775_v15 = vor.u32 %v2774_v26, %v2773_v4  ;;  %v11978_v62 = vpop.eup %9666 }
 0x28e   : > { %v11980_v29 = vmul.f32 1.442695, %v2470_v38  ;;  %v2918_v27 = vclz %v8410_v42  ;;  %v2769_v11 = vor.u32 %v2768_v49, %v2767_v8  ;;  %v2772_v48 = vor.u32 %v2771_v7, %v2770_v63  ;;  %v11983_v18 = vpop.eup %9668  ;;  %1552 = vmatmul.mubr.f32.gmra.mrb[24].mxu1 %v11846_v56 }
 0x28f   : > { %v2936_v60 = vsub.s32 4, %v11913_v1  ;;  %v2778_v33 = vor.u32 %v2777_v34, %v2776_v25  ;;  %vm2779_vm13 = vcmp.lt.s32.totalorder %v16266_v17, 1  ;;  %vm2782_vm14 = vcmp.lt.s32.totalorder %v16266_v17, 4  ;;  %v11988_v57 = vpop.eup %9670  ;;  %1557 = vmatprep.mubr.f32.mxu1 %v16255_v50 }
 0x290   : > { %v2471_v30 = vmul.f32 -4.5, %v2455_v10  ;;  %v2456_v19 = vmul.f32 %v2440_v47, %v2440_v47  ;;  %8464 = vmatmul.mubr.msk.f32.gmra.mrb[38].mxu0 %vm4260_vm7, %v11966_v5  ;;  %v8411_v9 = vadd.s32 4294967294, %v2918_v27  ;;  %vm2781_vm15 = vcmp.lt.s32.totalorder %v16266_v17, 3 }
 0x291   : > { %v2457_v53 = vmul.f32 %v2441_v32, %v2441_v32  ;;  %v2442_v36 = vsub.f32 %v2417_v61, %v11582_v21  ;;  %4397 = vmatprep.mubr.f32.mxu0 %v16255_v50  ;;  %vm2780_vm0 = vcmp.lt.s32.totalorder %v16266_v17, 2  ;;  %v2788_v23 = vsel %vm2782_vm14, %v2775_v15, 920167782  ;;  %v16267_v32 = vld [vmem:[#allocation37_spill] sm:$0xff] }
 0x292   : > { %vm8412_vm1 = vcmp.lt.s32.totalorder %v8411_v9, 0  ;;  %v2784_v8 = vsel %vm2782_vm14, %v2772_v48, 2102212464  ;;  %v2787_v12 = vsel %vm2779_vm13, %v2766_v40, %v2769_v11  ;;  %v2791_v22 = vsel %vm2779_vm13, %v2769_v11, %v2772_v48  ;;  %1558 = vmatmul.mubr.f32.gmra.mrb[26].mxu1 %v11863_v0 }
 0x293   : > { %v2921_v56 = vsel %vm8412_vm1, 0, %v8411_v9  ;;  %v2789_v2 = vsel %vm2781_vm15, %v2772_v48, %v2788_v23  ;;  %v2792_v38 = vsel %vm2782_vm14, %v2778_v33, 1326507024  ;;  %v12010_v49 = vshll.u32 %v2755_v59, 8  ;;  %1563 = vmatprep.mubr.f32.mxu1 %v16255_v50 }
 0x294   : > { %v2497_v4 = vmul.f32 1.442695, %v2471_v30  ;;  %v2472_v26 = vmul.f32 -4.5, %v2456_v19  ;;  %v2922_v43 = vsub.s32 32, %v2921_v56  ;;  %v2923_v58 = vshll.u32 %v11938_v45, %v2921_v56  ;;  %8465 = vmatmul.mubr.msk.f32.gmra.mrb[40].mxu0 %vm4260_vm7, %v11973_v54 }
 0x295   : > { %v2473_v31 = vmul.f32 -4.5, %v2457_v53  ;;  %v2926_v63 = vsub.s32 4294967266, %v2921_v56  ;;  %v2783_v7 = vsel %vm2779_vm13, %v2763_v51, %v2766_v40  ;;  %v2793_v25 = vsel %vm2781_vm15, %v2775_v15, %v2792_v38  ;;  %4403 = vmatprep.mubr.f32.mxu0 %v16255_v50 }
 0x296   : > { %v2924_v34 = vshrl.u32 %v2906_v39, %v2922_v43  ;;  %v2785_v10 = vsel %vm2781_vm15, %v2769_v11, %v2784_v8  ;;  %v2790_v45 = vsel %vm2780_vm0, %v2787_v12, %v2789_v2  ;;  %v2794_v16 = vsel %vm2780_vm0, %v2791_v22, %v2793_v25  ;;  %v2422_v11 = vpop.permute.xlu1 %2421  ;;  %1564 = vmatmul.mubr.f32.gmra.mrb[28].mxu1 %v11881_v6  ;;  %v16272_v2 = vld [vmem:[#allocation56_spill] sm:$0xff] }
 0x297   : > { %v12028_v51 = vpop.eup %9672  ;;  %v2458_v47 = vmul.f32 %v2442_v36, %v2442_v36  ;;  %v2927_v42 = vadd.s32 127, %v2926_v63  ;;  %v12031_v0 = vmul.u32.u64.low %v12010_v49, %v2794_v16  ;;  %v12032_v59 = vmul.u32.u64.high %v12010_v49, %v2794_v16, %v12031_v0  ;;  %1569 = vmatprep.mubr.f32.mxu1 %v16255_v50  ;;  %v2427_v36 = vpop.permute.xlu0 %2426 }
 0x298   : > { %v2499_v39 = vmul.f32 1.442695, %v2472_v26  ;;  %v16268_v40 = vand.u32 2147483647, %v16267_v32  ;;  %vm2852_vm3 = vcmp.lt.s32.totalorder %v16267_v32, 0  ;;  %v2925_v27 = vor.u32 %v2924_v34, %v2923_v58  ;;  %8466 = vmatmul.mubr.msk.f32.gmra.mrb[42].mxu0 %vm4260_vm7, %v11978_v62 }
 0x299   : > { %v2928_v48 = vshll.u32 %v2927_v42, 23  ;;  %v2786_v33 = vsel %vm2780_vm0, %v2783_v7, %v2785_v10  ;;  %v12046_v30 = vmul.u32.u64.low %v12010_v49, %v2790_v45  ;;  %v12047_v19 = vmul.u32.u64.high %v12010_v49, %v2790_v45, %v12046_v30  ;;  %4409 = vmatprep.mubr.f32.mxu0 %v16255_v50 }
 0x29a   : > { %vm12036_vm2 = vcmp.le.f32.partialorder %v16268_v40, 0.7853982  ;;  %9674 = vpow2.f32 %v11980_v29  ;;  %v2501_v61 = vmul.f32 1.442695, %v2473_v31  ;;  %v2443_v9 = vsub.f32 %v2422_v11, %v11582_v21  ;;  %v16271_v29 = vld [vmem:[#allocation39_spill] sm:$0xff]  ;;  %1570 = vmatmul.mubr.f32.gmra.mrb[30].mxu1 %v11873_v14 }
 0x29b   : > { %v12057_v53 = vsel %vm2852_vm3, %v2936_v60, %v11913_v1  ;;  %9676 = vpow2.f32 %v2497_v4  ;;  %v2474_v17 = vmul.f32 -4.5, %v2458_v47  ;;  %v2929_v23 = vor.u32 4788187, %v2928_v48  ;;  %8945 = vmatprep.mubr.msk.f32.mxu1 %vm4260_vm7, %v11819_v37 }
 0x29c   : > { %v2932_v8 = vcvt.s32.f32 %v2925_v27  ;;  %v2444_v6 = vsub.f32 %v2427_v36, %v11582_v21  ;;  %v2802_v12 = vmul.u32 %v12010_v49, %v2786_v33  ;;  %vm2804_vm4 = vc.u32 %v12032_v59, %v12046_v30  ;;  %8467 = vmatmul.mubr.msk.f32.gmra.mrb[44].mxu0 %vm4260_vm7, %v11983_v18  ;;  %v16273_v49 = vld [vmem:[#allocation63_spill] sm:$0xff] }
 0x29d   : > { %v3056_v22 = vand.u32 2147483647, %v16271_v29  ;;  %9678 = vpow2.f32 %v2499_v39  ;;  %v2930_v1 = vand.u32 2147483647, %v2929_v23  ;;  %v2939_v60 = vsel %vm12036_vm2, 0, %v12057_v53  ;;  %4415 = vmatprep.mubr.f32.mxu0 %v16255_v50 }
 0x29e   : > { %v2805_v56 = vadd.s32 1, %v12047_v19  ;;  %9680 = vpow2.f32 %v2501_v61  ;;  %v2459_v21 = vmul.f32 %v2443_v9, %v2443_v9  ;;  %v3073_v38 = vshll.u32 %v16261_v13, %v16272_v2  ;;  %v16274_v9 = vld [vmem:[#allocation62_spill] sm:$0xff] }
 0x29f   : > { %v3074_v4 = vshrl.u32 %v16263_v46, %v16273_v49  ;;  %v2503_v26 = vmul.f32 1.442695, %v2474_v17  ;;  %v2933_v43 = vmul.f32 %v2932_v8, %v2930_v1  ;;  %v3076_v58 = vshll.u32 %v16263_v46, %v16272_v2 }
 0x2a0   : > { %v2806_v14 = vsel %vm2804_vm4, %v2805_v56, %v12047_v19  ;;  %v2460_v31 = vmul.f32 %v2444_v6, %v2444_v6  ;;  %v3063_v7 = vand.u32 8388607, %v3056_v22  ;;  %v3077_v25 = vshrl.u32 %v16264_v20, %v16273_v49  ;;  %8468 = vmatmul.mubr.msk.f32.gmra.mrb[46].mxu0 %vm4260_vm7, %v11988_v57 }
 0x2a1   : > { %v2807_v63 = vadd.s32 %v2806_v14, %v2802_v12  ;;  %v2934_v37 = vxor.u32 2147483648, %v2933_v43  ;;  %v3075_v34 = vor.u32 %v3074_v4, %v3073_v38  ;;  %v3079_v10 = vshll.u32 %v16264_v20, %v16272_v2  ;;  %4421 = vmatprep.mubr.f32.mxu0 %v16255_v50 }
 0x2a2   : > { %v3080_v45 = vshrl.u32 %v16265_v3, %v16273_v49  ;;  %v3078_v47 = vor.u32 %v3077_v25, %v3076_v58  ;;  %v3082_v42 = vshll.u32 %v16265_v3, %v16272_v2  ;;  %v3083_v0 = vshrl.u32 %v16231_v24, %v16273_v49 }
 0x2a3   : > { %v2808_v16 = vadd.s32 536870912, %v2807_v63  ;;  %v2935_v39 = vsel %vm2852_vm3, %v2934_v37, %v2933_v43  ;;  %v3085_v27 = vshll.u32 %v16231_v24, %v16272_v2  ;;  %v3086_v11 = vshrl.u32 %v16232_v44, %v16273_v49 }
 0x2a4   : > { %v3081_v40 = vor.u32 %v3080_v45, %v3079_v10  ;;  %v12106_v48 = vpop.eup %9674  ;;  %v2938_v33 = vsel %vm12036_vm2, %v16267_v32, %v2935_v39  ;;  %v3084_v61 = vor.u32 %v3083_v0, %v3082_v42  ;;  %vm3088_vm5 = vcmp.lt.s32.totalorder %v16274_v9, 1  ;;  %8469 = vmatmul.mubr.msk.f32.gmra.mrb[48].mxu0 %vm4260_vm7, %v12028_v51 }
 0x2a5   : > { %v12111_v19 = vshrl.u32 %v2808_v16, 30  ;;  %v12116_v53 = vpop.eup %9676  ;;  %9682 = vcosq.f32 %v2938_v33  ;;  %v3064_v17 = vor.u32 8388608, %v3063_v7  ;;  %v3087_v36 = vor.u32 %v3086_v11, %v3085_v27  ;;  %4427 = vmatprep.mubr.f32.mxu0 %v16255_v50 }
 0x2a6   : > { %vm3090_vm6 = vcmp.lt.s32.totalorder %v16274_v9, 3  ;;  %9684 = vsinq.f32 %v2938_v33  ;;  %vm3089_vm8 = vcmp.lt.s32.totalorder %v16274_v9, 2  ;;  %vm3091_vm9 = vcmp.lt.s32.totalorder %v16274_v9, 4 }
 0x2a7   : > { %v2810_v15 = vshll.u32 %v12111_v19, 30  ;;  %v12123_v23 = vpop.eup %9678  ;;  %v2475_v8 = vmul.f32 -4.5, %v2459_v21  ;;  %v3072_v6 = vshrl.u32 %v16261_v13, %v16273_v49  ;;  %v3096_v12 = vsel %vm3088_vm5, %v3075_v34, %v3078_v47  ;;  %v16275_v49 = vld [vmem:[#allocation84_spill] sm:$0xff] }
 0x2a8   : > { %v3097_v1 = vsel %vm3091_vm9, %v3084_v61, 920167782  ;;  %v12131_v56 = vpop.eup %9680  ;;  %v2476_v2 = vmul.f32 -4.5, %v2460_v31  ;;  %v3093_v4 = vsel %vm3091_vm9, %v3081_v40, 2102212464  ;;  %8470 = vmatmul.mubr.msk.f32.gmra.mrb[50].mxu0 %vm4260_vm7, %v12106_v48  ;;  %9686 = vpow2.f32 %v2503_v26 }
 0x2a9   : > { %v12133_v38 = vsub.s32 %v2807_v63, %v2810_v15  ;;  %v3098_v21 = vsel %vm3090_vm6, %v3081_v40, %v3097_v1  ;;  %v2943_v14 = vand.u32 3, %v2939_v60  ;;  %4433 = vmatprep.mubr.f32.mxu0 %v16255_v50  ;;  %v3100_v63 = vsel %vm3088_vm5, %v3078_v47, %v3081_v40 }
 0x2aa   : > { %v3099_v58 = vsel %vm3089_vm8, %v3096_v12, %v3098_v21  ;;  %v3101_v7 = vsel %vm3091_vm9, %v3087_v36, 1326507024  ;;  %v3104_v25 = vshll.u32 %v3064_v17, 8  ;;  %v2505_v37 = vmul.f32 1.442695, %v2475_v8 }
 0x2ab   : > { %v2813_v31 = vsub.s32 0, %v12133_v38  ;;  %v3092_v10 = vsel %vm3088_vm5, %v3072_v6, %v3075_v34  ;;  %v3094_v60 = vsel %vm3090_vm6, %v3078_v47, %v3093_v4  ;;  %v3102_v26 = vsel %vm3090_vm6, %v3084_v61, %v3101_v7  ;;  %v16276_v61 = vld [vmem:[#allocation32_spill] sm:$0xff] }
 0x2ac   : > { %v2507_v45 = vmul.f32 1.442695, %v2476_v2  ;;  %vm2942_vm10 = vweird.f32 %v16267_v32  ;;  %vm2749_vm11 = vcmp.lt.s32.totalorder %v11021_v52, 0  ;;  %8471 = vmatmul.mubr.msk.f32.gmra.mrb[52].mxu0 %vm4260_vm7, %v12116_v53  ;;  %v2833_v42 = vsub.s32 4, %v12111_v19 }
 0x2ad   : > { %v8406_v16 = vmin.u32 %v2813_v31, %v12133_v38  ;;  %v3103_v34 = vsel %vm3089_vm8, %v3100_v63, %v3102_v26  ;;  %v12164_v0 = vmul.u32.u64.low %v3104_v25, %v3099_v58  ;;  %v12165_v47 = vmul.u32.u64.high %v3104_v25, %v3099_v58, %v12164_v0  ;;  %4439 = vmatprep.mubr.f32.mxu0 %v16255_v50  ;;  %v16279_v31 = vld [vmem:[#allocation55_spill] sm:$0xff] }
 0x2ae   : > { %v3095_v40 = vsel %vm3089_vm8, %v3092_v10, %v3094_v60  ;;  %v12171_v27 = vmul.u32.u64.low %v3104_v25, %v3103_v34  ;;  %v12172_v11 = vmul.u32.u64.high %v3104_v25, %v3103_v34, %v12171_v27  ;;  %9688 = vpow2.f32 %v2505_v37 }
 0x2af   : > { %v2815_v39 = vclz %v8406_v16  ;;  %v9683_v33 = vpop.eup %9682  ;;  %vm2512_vm12 = vcmp.lt.f32.partialorder %v16276_v61, 5.0  ;;  %vm2944_vm13 = vcmp.lt.s32.totalorder %v2943_v14, 2  ;;  %vm2945_vm14 = vcmp.eq.s32.totalorder %v2943_v14, 0  ;;  %v16287_v61 = vld [vmem:[#allocation86_spill] sm:$0xff] }
 0x2b0   : > { %vm2948_vm15 = vcmp.eq.s32.totalorder %v2943_v14, 2  ;;  %v9685_v17 = vpop.eup %9684  ;;  %9690 = vpow2.f32 %v2507_v45  ;;  %v2949_v36 = vxor.u32 2147483648, %v9683_v33  ;;  %v2803_v15 = vadd.s32 %v12046_v30, %v12032_v59  ;;  %8472 = vmatmul.mubr.msk.f32.gmra.mrb[54].mxu0 %vm4260_vm7, %v12123_v23  ;;  %v16277_v59 = vld [vmem:[#allocation38_spill] sm:$0xff]  ;;  %v16280_v45 = vld [vmem:[#allocation60_spill] sm:$0xff] }
 0x2b1   : > { %v8407_v8 = vadd.s32 4294967294, %v2815_v39  ;;  %v2946_v9 = vxor.u32 2147483648, %v9685_v17  ;;  %v12182_v6 = vsel %vm2749_vm11, %v2833_v42, %v12111_v19  ;;  %v3111_v12 = vmul.u32 %v3104_v25, %v3095_v40  ;;  %4445 = vmatprep.mubr.f32.mxu0 %v16255_v50 }
 0x2b2   : > { %v3114_v1 = vadd.s32 1, %v12165_v47  ;;  %v2950_v2 = vsel %vm2948_vm15, %v2949_v36, %v9685_v17  ;;  %vm3113_vm1 = vc.u32 %v12172_v11, %v12164_v0  ;;  %v16045_v30 = vand.u32 2147483647, %v16277_v59  ;;  %v12189_v4 = vpop.eup %9686 }
 0x2b3   : > { %vm8408_vm0 = vcmp.lt.s32.totalorder %v8407_v8, 0  ;;  %16278 = vst [vmem:[#allocation82_spill] sm:$0xff] %v12189_v4  ;;  %v2947_v21 = vsel %vm2945_vm14, %v9683_v33, %v2946_v9  ;;  %v2970_v63 = vshll.u32 %v16261_v13, %v16279_v31  ;;  %v2971_v16 = vshrl.u32 %v16263_v46, %v16280_v45 }
 0x2b4   : > { %v2818_v58 = vsel %vm8408_vm0, 0, %v8407_v8  ;;  %v3115_v19 = vsel %vm3113_vm1, %v3114_v1, %v12165_v47  ;;  %v2951_v7 = vsel %vm2944_vm13, %v2947_v21, %v2950_v2  ;;  %8473 = vmatmul.mubr.msk.f32.gmra.mrb[56].mxu0 %vm4260_vm7, %v12131_v56  ;;  %v2973_v42 = vshll.u32 %v16263_v46, %v16279_v31 }
 0x2b5   : > { %v2819_v25 = vsub.s32 32, %v2818_v58  ;;  %v2820_v37 = vshll.u32 %v12133_v38, %v2818_v58  ;;  %v2823_v10 = vsub.s32 4294967266, %v2818_v58  ;;  %v2952_v60 = vsel %vm2942_vm10, nan, %v2951_v7  ;;  %4451 = vmatprep.mubr.f32.mxu0 %v16255_v50 }
 0x2b6   : > { %v3116_v26 = vadd.s32 %v3115_v19, %v3111_v12  ;;  %v4192_v14 = vadd.f32 1.0, %v2952_v60  ;;  %v2974_v38 = vshrl.u32 %v16264_v20, %v16280_v45  ;;  %v2976_v32 = vshll.u32 %v16264_v20, %v16279_v31 }
 0x2b7   : > { %v2821_v34 = vshrl.u32 %v2803_v15, %v2819_v25  ;;  %v2824_v47 = vadd.s32 127, %v2823_v10  ;;  %v2977_v40 = vshrl.u32 %v16265_v3, %v16280_v45  ;;  %v2979_v27 = vshll.u32 %v16265_v3, %v16279_v31 }
 0x2b8   : > { %v3117_v39 = vadd.s32 536870912, %v3116_v26  ;;  %v4208_v33 = vmul.f32 0.5, %v4192_v14  ;;  %v2980_v15 = vshrl.u32 %v16231_v24, %v16280_v45  ;;  %8474 = vmatmul.mubr.msk.f32.gmra.mrb[58].mxu0 %vm4260_vm7, %v12189_v4  ;;  %v12218_v8 = vpop.eup %9688  ;;  %v2960_v12 = vand.u32 8388607, %v16045_v30 }
 0x2b9   : > { %v2822_v17 = vor.u32 %v2821_v34, %v2820_v37  ;;  %v2825_v36 = vshll.u32 %v2824_v47, 23  ;;  %16281 = vst [vmem:[#allocation30_spill] sm:$0xff] %v12218_v8  ;;  %v2982_v1 = vshll.u32 %v16231_v24, %v16279_v31  ;;  %v2983_v2 = vshrl.u32 %v16232_v44, %v16280_v45  ;;  %4457 = vmatprep.mubr.f32.mxu0 %v16255_v50  ;;  %v16283_v47 = vld [vmem:[#allocation59_spill] sm:$0xff] }
 0x2ba   : > { %v12220_v9 = vshrl.u32 %v3117_v39, 30  ;;  %v12229_v21 = vpop.eup %9690  ;;  %v4224_v58 = vsel %vm2512_vm12, %v4208_v33, 0.0  ;;  %v2972_v25 = vor.u32 %v2971_v16, %v2970_v63  ;;  %v2975_v10 = vor.u32 %v2974_v38, %v2973_v42 }
 0x2bb   : > { %16282 = vst [vmem:[#allocation50_spill] sm:$0xff] %v12229_v21  ;;  %v2826_v19 = vor.u32 4788187, %v2825_v36  ;;  %v2829_v7 = vcvt.s32.f32 %v2822_v17  ;;  %4632 = vperm.xlu0 %9495, %v4224_v58   ;;  %v2978_v60 = vor.u32 %v2977_v40, %v2976_v32  ;;  %v2981_v14 = vor.u32 %v2980_v15, %v2979_v27 }
 0x2bc   : > { %v3119_v37 = vshll.u32 %v12220_v9, 30  ;;  %v2984_v34 = vor.u32 %v2983_v2, %v2982_v1  ;;  %vm2985_vm2 = vcmp.lt.s32.totalorder %v16283_v47, 1  ;;  %vm2988_vm3 = vcmp.lt.s32.totalorder %v16283_v47, 4  ;;  %8475 = vmatmul.mubr.msk.f32.gmra.mrb[60].mxu0 %vm4260_vm7, %v12218_v8  ;;  %v16296_v8 = vld [vmem:[#allocation67_spill] sm:$0xff] }
 0x2bd   : > { %v2827_v31 = vand.u32 2147483647, %v2826_v19  ;;  %vm12240_vm4 = vcmp.le.f32.partialorder %v2747_v55, 0.7853982  ;;  %v2969_v16 = vshrl.u32 %v16261_v13, %v16280_v45  ;;  %vm2987_vm5 = vcmp.lt.s32.totalorder %v16283_v47, 3  ;;  %4463 = vmatprep.mubr.f32.mxu0 %v16255_v50 }
 0x2be   : > { %v12244_v63 = vsub.s32 %v3116_v26, %v3119_v37  ;;  %v2836_v38 = vsel %vm12240_vm4, 0, %v12182_v6  ;;  %v2961_v39 = vor.u32 8388608, %v2960_v12  ;;  %v2990_v55 = vsel %vm2988_vm3, %v2978_v60, 2102212464 }
 0x2bf   : > { %v2830_v42 = vmul.f32 %v2829_v7, %v2827_v31  ;;  %vm2986_vm6 = vcmp.lt.s32.totalorder %v16283_v47, 2  ;;  %v2993_v26 = vsel %vm2985_vm2, %v2972_v25, %v2975_v10  ;;  %v2994_v45 = vsel %vm2988_vm3, %v2981_v14, 920167782 }
 0x2c0   : > { %v3122_v32 = vsub.s32 0, %v12244_v63  ;;  %v2995_v27 = vsel %vm2987_vm5, %v2978_v60, %v2994_v45  ;;  %v2997_v6 = vsel %vm2985_vm2, %v2975_v10, %v2978_v60  ;;  %v2998_v33 = vsel %vm2988_vm3, %v2984_v34, 1326507024  ;;  %8476 = vmatmul.mubr.msk.f32.gmra.mrb[62].mxu0 %vm4260_vm7, %v12229_v21 }
 0x2c1   : > { %v2831_v40 = vxor.u32 2147483648, %v2830_v42  ;;  %v12269_v17 = vand.u32 3, %v2836_v38  ;;  %v2989_v15 = vsel %vm2985_vm2, %v2969_v16, %v2972_v25  ;;  %v2991_v12 = vsel %vm2987_vm5, %v2975_v10, %v2990_v55 }
 0x2c2   : > { %v8418_v36 = vmin.u32 %v3122_v32, %v12244_v63  ;;  %v16286_v1 = vmov 0   ;;  %v2996_v58 = vsel %vm2986_vm6, %v2993_v26, %v2995_v27  ;;  %v2999_v19 = vsel %vm2987_vm5, %v2981_v14, %v2998_v33 }
 0x2c3   : > { %5056 = vmatprep.mubr.bf16.mxu0 %v16286_v1  ;;  %v2832_v2 = vsel %vm2749_vm11, %v2831_v40, %v2830_v42  ;;  %v3001_v7 = vshll.u32 %v2961_v39, 8  ;;  %v3142_v60 = vsub.s32 4, %v12220_v9  ;;  %v3000_v10 = vsel %vm2986_vm6, %v2997_v6, %v2999_v19  ;;  %v16292_v6 = vld [vmem:[#allocation44_spill] sm:$0xff]  ;;  %v16294_v19 = vld [vmem:[#allocation65_spill] sm:$0xff] }
 0x2c4   : > { %v2835_v37 = vsel %vm12240_vm4, %v11021_v52, %v2832_v2  ;;  %v3124_v25 = vclz %v8418_v36  ;;  %v2992_v31 = vsel %vm2986_vm6, %v2989_v15, %v2991_v12  ;;  %v12299_v39 = vshrl.u32 %v16287_v61, 5  ;;  %v16293_v36 = vld [vmem:[#allocation69_spill] sm:$0xff] }
 0x2c5   : > { %9692 = vcosq.f32 %v2835_v37  ;;  %v12291_v34 = vmul.u32.u64.low %v3001_v7, %v3000_v10  ;;  %v12292_v16 = vmul.u32.u64.high %v3001_v7, %v3000_v10, %v12291_v34  ;;  %v12302_v55 = vand.u32 31, %v16287_v61  ;;  %v16295_v61 = vld [vmem:[#allocation31_spill] sm:$0xff] }
 0x2c6   : > { %9694 = vsinq.f32 %v2835_v37  ;;  %v8419_v14 = vadd.s32 4294967294, %v3124_v25  ;;  %v12294_v42 = vmul.u32.u64.low %v3001_v7, %v2996_v58  ;;  %v12295_v38 = vmul.u32.u64.high %v3001_v7, %v2996_v58, %v12294_v42  ;;  %16288 = vst [vmem:[#allocation53_spill] sm:$0xff] %v12299_v39 }
 0x2c7   : > { %16289 = vst [vmem:[#allocation49_spill] sm:$0xff] %v12302_v55  ;;  %v12305_v32 = vadd.s32 1, %v11916_v41  ;;  %vm3058_vm8 = vcmp.lt.s32.totalorder %v16271_v29, 0  ;;  %vm12310_vm9 = vcmp.le.f32.partialorder %v3056_v22, 0.7853982  ;;  %v3112_v26 = vadd.s32 %v12164_v0, %v12172_v11 }
 0x2c8   : > { %vm8420_vm10 = vcmp.lt.s32.totalorder %v8419_v14, 0  ;;  %v12319_v45 = vsel %vm3058_vm8, %v3142_v60, %v12220_v9  ;;  %vm2841_vm11 = vcmp.lt.s32.totalorder %v12269_v17, 2  ;;  %vm2842_vm12 = vcmp.eq.s32.totalorder %v12269_v17, 0 }
 0x2c9   : > { %v3127_v41 = vsel %vm8420_vm10, 0, %v8419_v14  ;;  %v3008_v40 = vmul.u32 %v3001_v7, %v2992_v31  ;;  %vm3010_vm13 = vc.u32 %v12292_v16, %v12294_v42  ;;  %vm2839_vm14 = vweird.f32 %v11021_v52 }
 0x2ca   : > { %v3128_v22 = vsub.s32 32, %v3127_v41  ;;  %v3129_v0 = vshll.u32 %v12244_v63, %v3127_v41  ;;  %v3132_v11 = vsub.s32 4294967266, %v3127_v41  ;;  %v3011_v27 = vadd.s32 1, %v12295_v38 }
 0x2cb   : > { %vm2845_vm15 = vcmp.eq.s32.totalorder %v12269_v17, 2  ;;  %v16052_v33 = vand.u32 2147483647, %v16292_v6  ;;  %v3278_v15 = vshrl.u32 %v16261_v13, %v16293_v36  ;;  %v3279_v63 = vshll.u32 %v16261_v13, %v16294_v19 }
 0x2cc   : > { %v3130_v12 = vshrl.u32 %v3112_v26, %v3128_v22  ;;  %v3133_v2 = vadd.s32 127, %v3132_v11  ;;  %v3012_v58 = vsel %vm3010_vm13, %v3011_v27, %v12295_v38  ;;  %v3280_v37 = vshrl.u32 %v16263_v46, %v16293_v36 }
 0x2cd   : > { %v3013_v7 = vadd.s32 %v3012_v58, %v3008_v40  ;;  %v3282_v25 = vshll.u32 %v16263_v46, %v16294_v19  ;;  %v3283_v60 = vshrl.u32 %v16264_v20, %v16293_v36  ;;  %v3285_v34 = vshll.u32 %v16264_v20, %v16294_v19 }
 0x2ce   : > { %v3131_v10 = vor.u32 %v3130_v12, %v3129_v0  ;;  %v3134_v31 = vshll.u32 %v3133_v2, 23  ;;  %v3286_v14 = vshrl.u32 %v16265_v3, %v16293_v36  ;;  %vm2511_vm0 = vcmp.lt.f32.partialorder %v16295_v61, 5.0 }
 0x2cf   : > { %v9693_v38 = vpop.eup %9692  ;;  %v3014_v26 = vadd.s32 536870912, %v3013_v7  ;;  %v3288_v41 = vshll.u32 %v16265_v3, %v16294_v19  ;;  %v3289_v40 = vshrl.u32 %v16231_v24, %v16293_v36  ;;  %v3291_v22 = vshll.u32 %v16231_v24, %v16294_v19 }
 0x2d0   : > { %v9695_v0 = vpop.eup %9694  ;;  %v2846_v11 = vxor.u32 2147483648, %v9693_v38  ;;  %v3135_v27 = vor.u32 4788187, %v3134_v31  ;;  %v3138_v12 = vcvt.s32.f32 %v3131_v10  ;;  %v3292_v2 = vshrl.u32 %v16232_v44, %v16293_v36 }
 0x2d1   : > { %v2843_v58 = vxor.u32 2147483648, %v9695_v0  ;;  %v3015_v30 = vshrl.u32 %v3014_v26, 30  ;;  %v3269_v9 = vand.u32 8388607, %v16052_v33  ;;  %v3281_v43 = vor.u32 %v3280_v37, %v3279_v63 }
 0x2d2   : > { %v2847_v50 = vsel %vm2845_vm15, %v2846_v11, %v9695_v0  ;;  %v3136_v39 = vand.u32 2147483647, %v3135_v27  ;;  %v3284_v1 = vor.u32 %v3283_v60, %v3282_v25  ;;  %v3287_v21 = vor.u32 %v3286_v14, %v3285_v34 }
 0x2d3   : > { %v2844_v19 = vsel %vm2842_vm12, %v9693_v38, %v2843_v58  ;;  %v3016_v31 = vshll.u32 %v3015_v30, 30  ;;  %v3290_v10 = vor.u32 %v3289_v40, %v3288_v41  ;;  %vm3294_vm1 = vcmp.lt.s32.totalorder %v16296_v8, 1 }
 0x2d4   : > { %v2848_v36 = vsel %vm2841_vm11, %v2844_v19, %v2847_v50  ;;  %v3139_v26 = vmul.f32 %v3138_v12, %v3136_v39  ;;  %v3293_v4 = vor.u32 %v3292_v2, %v3291_v22  ;;  %vm3297_vm2 = vcmp.lt.s32.totalorder %v16296_v8, 4 }
 0x2d5   : > { %v2849_v63 = vsel %vm2839_vm14, nan, %v2848_v36  ;;  %v12369_v37 = vsub.s32 %v3013_v7, %v3016_v31  ;;  %v3270_v25 = vor.u32 8388608, %v3269_v9  ;;  %vm3296_vm3 = vcmp.lt.s32.totalorder %v16296_v8, 3  ;;  %v16299_v36 = vld [vmem:[#allocation57_spill] sm:$0xff] }
 0x2d6   : > { %v4191_v60 = vadd.f32 1.0, %v2849_v63  ;;  %v3140_v34 = vxor.u32 2147483648, %v3139_v26  ;;  %v3039_v14 = vsub.s32 4, %v3015_v30  ;;  %vm3295_vm4 = vcmp.lt.s32.totalorder %v16296_v8, 2 }
 0x2d7   : > { %v3019_v17 = vsub.s32 0, %v12369_v37  ;;  %v3299_v50 = vsel %vm3297_vm2, %v3287_v21, 2102212464  ;;  %v3302_v39 = vsel %vm3294_vm1, %v3281_v43, %v3284_v1  ;;  %v3303_v52 = vsel %vm3297_vm2, %v3290_v10, 920167782 }
 0x2d8   : > { %v4207_v7 = vmul.f32 0.5, %v4191_v60  ;;  %v3141_v9 = vsel %vm3058_vm8, %v3140_v34, %v3139_v26  ;;  %v3304_v38 = vsel %vm3296_vm3, %v3287_v21, %v3303_v52  ;;  %v3307_v41 = vsel %vm3297_vm2, %v3293_v4, 1326507024 }
 0x2d9   : > { %v3144_v40 = vsel %vm12310_vm9, %v16271_v29, %v3141_v9  ;;  %v8414_v22 = vmin.u32 %v3019_v17, %v12369_v37  ;;  %v3298_v0 = vsel %vm3294_vm1, %v3278_v15, %v3281_v43  ;;  %v3306_v11 = vsel %vm3294_vm1, %v3284_v1, %v3287_v21 }
 0x2da   : > { %v4223_v27 = vsel %vm2511_vm0, %v4207_v7, 0.0  ;;  %9696 = vcosq.f32 %v3144_v40  ;;  %v3300_v12 = vsel %vm3296_vm3, %v3284_v1, %v3299_v50  ;;  %v3305_v4 = vsel %vm3295_vm4, %v3302_v39, %v3304_v38  ;;  %v16300_v50 = vld [vmem:[#allocation41_spill] sm:$0xff] }
 0x2db   : > { %4627 = vperm.xlu1 %9496, %v4223_v27   ;;  %9698 = vsinq.f32 %v3144_v40  ;;  %v3021_v2 = vclz %v8414_v22  ;;  %v3308_v58 = vsel %vm3296_vm3, %v3290_v10, %v3307_v41  ;;  %v3310_v43 = vshll.u32 %v3270_v25, 8  ;;  %v16305_v27 = vld [vmem:[#allocation34_spill] sm:$0xff] }
 0x2dc   : > { %v12403_v15 = vsub.s32 32, %v12302_v55  ;;  %v16297_v21 = vand.u32 2139095040, %v16275_v49  ;;  %v16298_v1 = vsel %vm12310_vm9, 0, %v12319_v45  ;;  %v3309_v31 = vsel %vm3295_vm4, %v3306_v11, %v3308_v58 }
 0x2dd   : > { %v3149_v19 = vand.u32 3, %v16298_v1  ;;  %v12416_v26 = vmul.f32 0.62831855, %v16299_v36  ;;  %v8415_v10 = vadd.s32 4294967294, %v3021_v2  ;;  %vm2955_vm5 = vcmp.lt.s32.totalorder %v16277_v59, 0 }
 0x2de   : > { %v12407_v61 = vshrl.u32 %v16297_v21, 23  ;;  %v12418_v63 = vmul.u32.u64.low %v3310_v43, %v3309_v31  ;;  %v12419_v25 = vmul.u32.u64.high %v3310_v43, %v3309_v31, %v12418_v63  ;;  %v3301_v60 = vsel %vm3295_vm4, %v3298_v0, %v3300_v12  ;;  %v16304_v0 = vld [vmem:[#allocation61_spill] sm:$0xff] }
 0x2df   : > { %v12424_v34 = vmul.u32.u64.low %v3310_v43, %v3305_v4  ;;  %v12425_v47 = vmul.u32.u64.high %v3310_v43, %v3305_v4, %v12424_v34  ;;  %vm3148_vm6 = vweird.f32 %v16271_v29  ;;  %v3009_v45 = vadd.s32 %v12294_v42, %v12292_v16  ;;  %v16306_v4 = vld [vmem:[#allocation66_spill] sm:$0xff] }
 0x2e0   : > { %vm8416_vm8 = vcmp.lt.s32.totalorder %v8415_v10, 0  ;;  %v12433_v17 = vsel %vm2955_vm5, %v3039_v14, %v3015_v30  ;;  %v16051_v39 = vand.u32 2147483647, %v16300_v50  ;;  %vm3150_vm9 = vcmp.lt.s32.totalorder %v3149_v19, 2 }
 0x2e1   : > { %vm3151_vm10 = vcmp.eq.s32.totalorder %v3149_v19, 0  ;;  %v16301_v8 = vand.u32 2147483647, %v16277_v59  ;;  %v3024_v7 = vsel %vm8416_vm8, 0, %v8415_v10  ;;  %v3317_v42 = vmul.u32 %v3310_v43, %v3301_v60 }
 0x2e2   : > { %v3025_v9 = vsub.s32 32, %v3024_v7  ;;  %v3026_v38 = vshll.u32 %v12369_v37, %v3024_v7  ;;  %v3029_v16 = vsub.s32 4294967266, %v3024_v7  ;;  %vm3154_vm12 = vcmp.eq.s32.totalorder %v3149_v19, 2 }
 0x2e3   : > { %vm12438_vm11 = vcmp.le.f32.partialorder %v16301_v8, 0.7853982  ;;  %vm3319_vm13 = vc.u32 %v12419_v25, %v12424_v34  ;;  %v3320_v14 = vadd.s32 1, %v12425_v47  ;;  %v3166_v22 = vand.u32 8388607, %v16051_v39 }
 0x2e4   : > { %v3027_v41 = vshrl.u32 %v3009_v45, %v3025_v9  ;;  %v3030_v40 = vadd.s32 127, %v3029_v16  ;;  %v3176_v37 = vshll.u32 %v16261_v13, %v16304_v0  ;;  %v9697_v11 = vpop.eup %9696  ;;  %vm2514_vm14 = vcmp.lt.f32.partialorder %v16305_v27, 5.0 }
 0x2e5   : > { %v3321_v12 = vsel %vm3319_vm13, %v3320_v14, %v12425_v47  ;;  %v3177_v2 = vshrl.u32 %v16263_v46, %v16306_v4  ;;  %v3179_v58 = vshll.u32 %v16263_v46, %v16304_v0  ;;  %v3180_v43 = vshrl.u32 %v16264_v20, %v16306_v4  ;;  %v9699_v21 = vpop.eup %9698 }
 0x2e6   : > { %v3155_v1 = vxor.u32 2147483648, %v9697_v11  ;;  %v3028_v31 = vor.u32 %v3027_v41, %v3026_v38  ;;  %v3031_v10 = vshll.u32 %v3030_v40, 23  ;;  %v3322_v63 = vadd.s32 %v3321_v12, %v3317_v42 }
 0x2e7   : > { %v3152_v60 = vxor.u32 2147483648, %v9699_v21  ;;  %v3182_v45 = vshll.u32 %v16264_v20, %v16304_v0  ;;  %v3185_v47 = vshll.u32 %v16265_v3, %v16304_v0  ;;  %v3186_v8 = vshrl.u32 %v16231_v24, %v16306_v4 }
 0x2e8   : > { %v3156_v7 = vsel %vm3154_vm12, %v3155_v1, %v9699_v21  ;;  %v3032_v9 = vor.u32 4788187, %v3031_v10  ;;  %v3035_v16 = vcvt.s32.f32 %v3028_v31  ;;  %v3323_v14 = vadd.s32 536870912, %v3322_v63 }
 0x2e9   : > { %v3153_v39 = vsel %vm3151_vm10, %v9697_v11, %v3152_v60  ;;  %v3183_v38 = vshrl.u32 %v16265_v3, %v16306_v4  ;;  %v3188_v42 = vshll.u32 %v16231_v24, %v16304_v0  ;;  %v3189_v41 = vshrl.u32 %v16232_v44, %v16306_v4  ;;  %v16307_v0 = vld [vmem:[#allocation64_spill] sm:$0xff] }
 0x2ea   : > { %v3157_v40 = vsel %vm3150_vm9, %v3153_v39, %v3156_v7  ;;  %v3033_v12 = vand.u32 2147483647, %v3032_v9  ;;  %v12476_v33 = vshrl.u32 %v3323_v14, 30  ;;  %v3167_v21 = vor.u32 8388608, %v3166_v22 }
 0x2eb   : > { %v3158_v1 = vsel %vm3148_vm6, nan, %v3157_v40  ;;  %v3178_v31 = vor.u32 %v3177_v2, %v3176_v37  ;;  %v3181_v11 = vor.u32 %v3180_v43, %v3179_v58  ;;  %v3187_v10 = vor.u32 %v3186_v8, %v3185_v47 }
 0x2ec   : > { %v4194_v60 = vadd.f32 1.0, %v3158_v1  ;;  %v3036_v30 = vmul.f32 %v3035_v16, %v3033_v12  ;;  %v3325_v36 = vshll.u32 %v12476_v33, 30  ;;  %vm3191_vm15 = vcmp.lt.s32.totalorder %v16307_v0, 1 }
 0x2ed   : > { %v3175_v19 = vshrl.u32 %v16261_v13, %v16306_v4  ;;  %v3184_v39 = vor.u32 %v3183_v38, %v3182_v45  ;;  %v3190_v7 = vor.u32 %v3189_v41, %v3188_v42  ;;  %vm3194_vm0 = vcmp.lt.s32.totalorder %v16307_v0, 4  ;;  %v12501_v45 = vpop.permute.xlu1 %4760 }
 0x2ee   : > { %v4210_v22 = vmul.f32 0.5, %v4194_v60  ;;  %v3037_v9 = vxor.u32 2147483648, %v3036_v30  ;;  %v12485_v29 = vsub.s32 %v3322_v63, %v3325_v36  ;;  %vm3193_vm1 = vcmp.lt.s32.totalorder %v16307_v0, 3  ;;  %16308 = vst [vmem:[#allocation37_spill] sm:$0xff] %v12501_v45 }
 0x2ef   : > { %vm3192_vm2 = vcmp.lt.s32.totalorder %v16307_v0, 2  ;;  %v3196_v37 = vsel %vm3194_vm0, %v3184_v39, 2102212464  ;;  %v3199_v2 = vsel %vm3191_vm15, %v3178_v31, %v3181_v11  ;;  %v3200_v4 = vsel %vm3194_vm0, %v3187_v10, 920167782 }
 0x2f0   : > { %v4226_v58 = vsel %vm2514_vm14, %v4210_v22, 0.0  ;;  %v3038_v36 = vsel %vm2955_vm5, %v3037_v9, %v3036_v30  ;;  %v3328_v43 = vsub.s32 0, %v12485_v29  ;;  %v3207_v63 = vshll.u32 %v3167_v21, 8 }
 0x2f1   : > { %vm3891_vm3 = vcmp.gt.s32.totalorder %v12305_v32, 0  ;;  %4642 = vperm.xlu0 %9495, %v4226_v58   ;;  %v3041_v47 = vsel %vm12438_vm11, %v16277_v59, %v3038_v36  ;;  %v3201_v8 = vsel %vm3193_vm1, %v3184_v39, %v3200_v4  ;;  %v3204_v27 = vsel %vm3194_vm0, %v3190_v7, 1326507024  ;;  %v12547_v22 = vpop.permute.xlu1 %4766  ;;  %v16312_v58 = vld [vmem:[#allocation77_spill] sm:$0xff] }
 0x2f2   : > { %9700 = vcosq.f32 %v3041_v47  ;;  %v16309_v30 = vsel %vm12438_vm11, 0, %v12433_v17  ;;  %v8426_v14 = vmin.u32 %v3328_v43, %v12485_v29  ;;  %v3203_v38 = vsel %vm3191_vm15, %v3181_v11, %v3184_v39  ;;  %16310 = vst [vmem:[#allocation39_spill] sm:$0xff] %v12547_v22 }
 0x2f3   : > { %v12514_v16 = vand.u32 3, %v16309_v30  ;;  %9702 = vsinq.f32 %v3041_v47  ;;  %v3195_v42 = vsel %vm3191_vm15, %v3175_v19, %v3178_v31  ;;  %v3197_v41 = vsel %vm3193_vm1, %v3181_v11, %v3196_v37 }
 0x2f4   : > { %v3202_v40 = vsel %vm3192_vm2, %v3199_v2, %v3201_v8  ;;  %v3330_v52 = vclz %v8426_v14  ;;  %v3205_v17 = vsel %vm3193_vm1, %v3187_v10, %v3204_v27  ;;  %v12534_v1 = vsel %vm3891_vm3, %v12305_v32, 0  ;;  %v16311_v2 = vld [vmem:[#allocation48_spill] sm:$0xff]  ;;  %v16313_v27 = vld [vmem:[#allocation73_spill] sm:$0xff] }
 0x2f5   : > { %v12527_v12 = vmul.u32.u64.low %v3207_v63, %v3202_v40  ;;  %v12528_v21 = vmul.u32.u64.high %v3207_v63, %v3202_v40, %v12527_v12  ;;  %v12537_v31 = vadd.s32 4294967169, %v12407_v61  ;;  %v3206_v60 = vsel %vm3192_vm2, %v3203_v38, %v3205_v17  ;;  %v16315_v38 = vld [vmem:[#allocation33_spill] sm:$0xff] }
 0x2f6   : > { %v8427_v19 = vadd.s32 4294967294, %v3330_v52  ;;  %v3198_v10 = vsel %vm3192_vm2, %v3195_v42, %v3197_v41  ;;  %v12544_v39 = vmul.u32.u64.low %v3207_v63, %v3206_v60  ;;  %v12545_v7 = vmul.u32.u64.high %v3207_v63, %v3206_v60, %v12544_v39  ;;  %v12580_v60 = vpop.permute.xlu1 %4772 }
 0x2f7   : > { %vm3045_vm4 = vweird.f32 %v16277_v59  ;;  %vm3047_vm5 = vcmp.lt.s32.totalorder %v12514_v16, 2  ;;  %vm3048_vm6 = vcmp.eq.s32.totalorder %v12514_v16, 0  ;;  %vm3051_vm8 = vcmp.eq.s32.totalorder %v12514_v16, 2  ;;  %16316 = vst [vmem:[#allocation63_spill] sm:$0xff] %v12580_v60 }
 0x2f8   : > { %v3318_v32 = vadd.s32 %v12424_v34, %v12419_v25  ;;  %vm8428_vm9 = vcmp.lt.s32.totalorder %v8427_v19, 0  ;;  %v3348_v61 = vsub.s32 4, %v12476_v33  ;;  %v3217_v0 = vadd.s32 1, %v12528_v21  ;;  %v12565_v34 = vpop.permute.xlu0 %4763 }
 0x2f9   : > { %v3333_v9 = vsel %vm8428_vm9, 0, %v8427_v19  ;;  %v3214_v37 = vmul.u32 %v3207_v63, %v3198_v10  ;;  %v16055_v4 = vand.u32 2147483647, %v16311_v2  ;;  %v12560_v36 = vshrl.u32 %v16261_v13, %v16312_v58  ;;  %16314 = vst [vmem:[#allocation56_spill] sm:$0xff] %v12565_v34 }
 0x2fa   : > { %v3334_v43 = vsub.s32 32, %v3333_v9  ;;  %v3335_v47 = vshll.u32 %v12485_v29, %v3333_v9  ;;  %v3338_v8 = vsub.s32 4294967266, %v3333_v9  ;;  %v3485_v25 = vshll.u32 %v16261_v13, %v16313_v27 }
 0x2fb   : > { %vm3264_vm10 = vcmp.lt.s32.totalorder %v16292_v6, 0  ;;  %vm3216_vm11 = vc.u32 %v12545_v7, %v12527_v12  ;;  %v3486_v63 = vshrl.u32 %v16263_v46, %v16312_v58  ;;  %v3488_v30 = vshll.u32 %v16263_v46, %v16313_v27 }
 0x2fc   : > { %v3489_v29 = vshrl.u32 %v16264_v20, %v16312_v58  ;;  %v9701_v14 = vpop.eup %9700  ;;  %vm2513_vm12 = vcmp.lt.f32.partialorder %v16315_v38, 5.0  ;;  %v3336_v42 = vshrl.u32 %v3318_v32, %v3334_v43  ;;  %v3339_v41 = vadd.s32 127, %v3338_v8 }
 0x2fd   : > { %v3218_v40 = vsel %vm3216_vm11, %v3217_v0, %v12528_v21  ;;  %v3491_v52 = vshll.u32 %v16264_v20, %v16313_v27  ;;  %v9703_v17 = vpop.eup %9702  ;;  %v3052_v19 = vxor.u32 2147483648, %v9701_v14  ;;  %v3492_v39 = vshrl.u32 %v16265_v3, %v16312_v58 }
 0x2fe   : > { %v3219_v10 = vadd.s32 %v3218_v40, %v3214_v37  ;;  %v3494_v9 = vshll.u32 %v16265_v3, %v16313_v27  ;;  %v3049_v11 = vxor.u32 2147483648, %v9703_v17  ;;  %v16317_v32 = vand.u32 2147483647, %v16292_v6 }
 0x2ff   : > { %v3337_v21 = vor.u32 %v3336_v42, %v3335_v47  ;;  %v3340_v0 = vshll.u32 %v3339_v41, 23  ;;  %v3495_v8 = vshrl.u32 %v16231_v24, %v16312_v58  ;;  %v3053_v37 = vsel %vm3051_vm8, %v3052_v19, %v9703_v17  ;;  %v12604_v42 = vpop.permute.xlu0 %4769 }
 0x300   : > { %vm12588_vm13 = vcmp.le.f32.partialorder %v16317_v32, 0.7853982  ;;  %v3220_v40 = vadd.s32 536870912, %v3219_v10  ;;  %v3475_v60 = vand.u32 8388607, %v16055_v4  ;;  %v3497_v22 = vshll.u32 %v16231_v24, %v16313_v27 }
 0x301   : > { %v3050_v32 = vsel %vm3048_vm6, %v9701_v14, %v3049_v11  ;;  %v3341_v34 = vor.u32 4788187, %v3340_v0  ;;  %v3344_v45 = vcvt.s32.f32 %v3337_v21  ;;  %v3498_v47 = vshrl.u32 %v16232_v44, %v16312_v58  ;;  %v4779_v21 = vpop.permute.xlu1 %4778  ;;  %v16320_v58 = vld [vmem:[#allocation76_spill] sm:$0xff] }
 0x302   : > { %v3054_v41 = vsel %vm3047_vm5, %v3050_v32, %v3053_v37  ;;  %v12608_v17 = vshrl.u32 %v3220_v40, 30  ;;  %v3487_v19 = vor.u32 %v3486_v63, %v3485_v25  ;;  %v3490_v4 = vor.u32 %v3489_v29, %v3488_v30  ;;  %v16321_v63 = vld [vmem:[#allocation83_spill] sm:$0xff] }
 0x303   : > { %v3055_v27 = vsel %vm3045_vm4, nan, %v3054_v41  ;;  %v3342_v49 = vand.u32 2147483647, %v3341_v34  ;;  %v3493_v55 = vor.u32 %v3492_v39, %v3491_v52  ;;  %v3496_v11 = vor.u32 %v3495_v8, %v3494_v9 }
 0x304   : > { %v4193_v14 = vadd.f32 1.0, %v3055_v27  ;;  %v3222_v0 = vshll.u32 %v12608_v17, 30  ;;  %vm3500_vm14 = vcmp.lt.s32.totalorder %v16320_v58, 1  ;;  %vm3503_vm15 = vcmp.lt.s32.totalorder %v16320_v58, 4  ;;  %v4242_v27 = vld [vmem:[%s10607_s30 + $0x28] sm:$0xff] }
 0x305   : > { %v3345_v16 = vmul.f32 %v3344_v45, %v3342_v49  ;;  %v3349_v25 = vsel %vm3264_vm10, %v3348_v61, %v12476_v33  ;;  %vm4813_vm0 = vcmp.eq.s32.totalorder %v4779_v21, %v16321_v63  ;;  %v3499_v59 = vor.u32 %v3498_v47, %v3497_v22  ;;  %v12631_v22 = vpop.permute.xlu0 %4775 }
 0x306   : > { %vm3502_vm1 = vcmp.lt.s32.totalorder %v16320_v58, 3  ;;  %v4209_v34 = vmul.f32 0.5, %v4193_v14  ;;  %v12620_v30 = vsub.s32 %v3219_v10, %v3222_v0  ;;  %v3476_v29 = vor.u32 8388608, %v3475_v60 }
 0x307   : > { %v3505_v52 = vsel %vm3503_vm15, %v3493_v55, 2102212464  ;;  %v3346_v39 = vxor.u32 2147483648, %v3345_v16  ;;  %vm3501_vm2 = vcmp.lt.s32.totalorder %v16320_v58, 2  ;;  %v3508_v49 = vsel %vm3500_vm14, %v3487_v19, %v3490_v4 }
 0x308   : > { %v3509_v33 = vsel %vm3503_vm15, %v3496_v11, 920167782  ;;  %v4225_v45 = vsel %vm2513_vm12, %v4209_v34, 0.0  ;;  %v3225_v61 = vsub.s32 0, %v12620_v30  ;;  %v3504_v60 = vsel %vm3500_vm14, %v12560_v36, %v3487_v19  ;;  %v4239_v19 = vld [vmem:[%s10607_s30 + $0x10] sm:$0xff] }
 0x309   : > { %v3510_v10 = vsel %vm3502_vm1, %v3493_v55, %v3509_v33  ;;  %4637 = vperm.xlu1 %9496, %v4225_v45   ;;  %v3347_v9 = vsel %vm3264_vm10, %v3346_v39, %v3345_v16  ;;  %v3506_v38 = vsel %vm3502_vm1, %v3490_v4, %v3505_v52  ;;  %v3512_v8 = vsel %vm3500_vm14, %v3490_v4, %v3493_v55 }
 0x30a   : > { %v3513_v37 = vsel %vm3503_vm15, %v3499_v59, 1326507024  ;;  %v3350_v36 = vsel %vm12588_vm13, %v16292_v6, %v3347_v9  ;;  %v3351_v40 = vsel %vm12588_vm13, 0, %v3349_v25  ;;  %v8422_v32 = vmin.u32 %v3225_v61, %v12620_v30 }
 0x30b   : > { %v3511_v47 = vsel %vm3501_vm2, %v3508_v49, %v3510_v10  ;;  %9704 = vcosq.f32 %v3350_v36  ;;  %v3245_v41 = vsub.s32 4, %v12608_v17  ;;  %v3514_v55 = vsel %vm3502_vm1, %v3496_v11, %v3513_v37  ;;  %v4782_v49 = vpop.permute.xlu0 %4781 }
 0x30c   : > { %v3516_v4 = vshll.u32 %v3476_v29, 8  ;;  %9706 = vsinq.f32 %v3350_v36  ;;  %v3227_v14 = vclz %v8422_v32  ;;  %v3507_v43 = vsel %vm3501_vm2, %v3504_v60, %v3506_v38 }
 0x30d   : > { %v3515_v0 = vsel %vm3501_vm2, %v3512_v8, %v3514_v55  ;;  %v12672_v11 = vshrl.u32 %v12534_v1, 5  ;;  %v12675_v29 = vand.u32 31, %v12534_v1  ;;  %v9125_v39 = vpack.c.bf16 %v4242_v27, %v4239_v19  ;;  %v16328_v55 = vld [vmem:[#allocation36_spill] sm:$0xff]  ;;  %v16330_v27 = vld [vmem:[#allocation74_spill] sm:$0xff] }
 0x30e   : > { %v12664_v16 = vmul.u32.u64.low %v3516_v4, %v3515_v0  ;;  %v12665_v25 = vmul.u32.u64.high %v3516_v4, %v3515_v0, %v12664_v16  ;;  %v12667_v59 = vmul.u32.u64.low %v3516_v4, %v3511_v47  ;;  %v12668_v34 = vmul.u32.u64.high %v3516_v4, %v3511_v47, %v12667_v59 }
 0x30f   : > { %v8423_v52 = vadd.s32 4294967294, %v3227_v14  ;;  %v12678_v33 = vadd.s32 1, %v12537_v31  ;;  %v3355_v58 = vand.u32 3, %v3351_v40  ;;  %vm3161_vm3 = vcmp.lt.s32.totalorder %v16300_v50, 0  ;;  %9126 = vmatprep.subr.bf16.mxu1 %v9125_v39 }
 0x310   : > { %vm4814_vm4 = vcmp.eq.s32.totalorder %v4782_v49, %v16321_v63  ;;  %vm3354_vm5 = vweird.f32 %v16292_v6  ;;  %v3215_v45 = vadd.s32 %v12527_v12, %v12545_v7  ;;  %v12688_v1 = vsel %vm3161_vm3, %v3245_v41, %v12608_v17  ;;  %9128 = vmatpush3.bf16.msra.mxu1 %v9125_v39  ;;  %v16324_v7 = vld [vmem:[#allocation46_spill] sm:$0xff] }
 0x311   : > { %vm8424_vm6 = vcmp.lt.s32.totalorder %v8423_v52, 0  ;;  %v3523_v61 = vmul.u32 %v3516_v4, %v3507_v43  ;;  %vm12692_vm8 = vmpackc.low %vm4814_vm4, %vm4813_vm0  ;;  %vm3525_vm9 = vc.u32 %v12665_v25, %v12667_v59  ;;  %v3526_v12 = vadd.s32 1, %v12668_v34  ;;  %v16329_v4 = vld [vmem:[#allocation71_spill] sm:$0xff] }
 0x312   : > { %v3230_v60 = vsel %vm8424_vm6, 0, %v8423_v52  ;;  %v3365_v10 = vand.u32 2147483647, %v16324_v7  ;;  %v16325_v17 = vand.u32 2147483647, %v16300_v50  ;;  %vm3356_vm11 = vcmp.lt.s32.totalorder %v3355_v58, 2 }
 0x313   : > { %v3231_v21 = vsub.s32 32, %v3230_v60  ;;  %v3232_v38 = vshll.u32 %v12620_v30, %v3230_v60  ;;  %v3235_v8 = vsub.s32 4294967266, %v3230_v60  ;;  %vm3357_vm12 = vcmp.eq.s32.totalorder %v3355_v58, 0  ;;  %8946 = vmatmul.mubr.msk.f32.vlgmr.msra.gmra.mrb[32].mxu1 %vm4260_vm7, %v11907_v35 }
 0x314   : > { %vm12702_vm10 = vcmp.le.f32.partialorder %v16325_v17, 0.7853982  ;;  %vm3360_vm13 = vcmp.eq.s32.totalorder %v3355_v58, 2  ;;  %v3527_v37 = vsel %vm3525_vm9, %v3526_v12, %v12668_v34  ;;  %vm2516_vm14 = vcmp.lt.f32.partialorder %v16328_v55, 5.0  ;;  %8948 = vmatprep.mubr.msk.f32.mxu1 %vm4260_vm7, %v11940_v28 }
 0x315   : > { %v3233_v36 = vshrl.u32 %v3215_v45, %v3231_v21  ;;  %v3236_v40 = vadd.s32 127, %v3235_v8  ;;  %v3248_v32 = vsel %vm12702_vm10, 0, %v12688_v1  ;;  %v3528_v47 = vadd.s32 %v3527_v37, %v3523_v61  ;;  %v9705_v41 = vpop.eup %9704 }
 0x316   : > { %v12716_v30 = vand.u32 8388607, %v3365_v10  ;;  %v3382_v19 = vshll.u32 %v16261_v13, %v16329_v4  ;;  %v3383_v14 = vshrl.u32 %v16263_v46, %v16330_v27  ;;  %v3385_v43 = vshll.u32 %v16263_v46, %v16329_v4  ;;  %v9707_v35 = vpop.eup %9706 }
 0x317   : > { %v3361_v0 = vxor.u32 2147483648, %v9705_v41  ;;  %v3234_v16 = vor.u32 %v3233_v36, %v3232_v38  ;;  %v3237_v34 = vshll.u32 %v3236_v40, 23  ;;  %v3529_v52 = vadd.s32 536870912, %v3528_v47  ;;  %8949 = vmatmul.mubr.msk.f32.gmra.mrb[34].mxu1 %vm4260_vm7, %v11966_v5 }
 0x318   : > { %v3358_v39 = vxor.u32 2147483648, %v9707_v35  ;;  %v3386_v49 = vshrl.u32 %v16264_v20, %v16330_v27  ;;  %v3391_v45 = vshll.u32 %v16265_v3, %v16329_v4  ;;  %v3392_v61 = vshrl.u32 %v16231_v24, %v16330_v27  ;;  %8951 = vmatprep.mubr.msk.f32.mxu1 %vm4260_vm7, %v11973_v54 }
 0x319   : > { %v3362_v60 = vsel %vm3360_vm13, %v3361_v0, %v9707_v35  ;;  %v3238_v12 = vor.u32 4788187, %v3237_v34  ;;  %v3241_v17 = vcvt.s32.f32 %v3234_v16  ;;  %v12733_v28 = vshrl.u32 %v3529_v52, 30 }
 0x31a   : > { %v3359_v21 = vsel %vm3357_vm12, %v9705_v41, %v3358_v39  ;;  %v3388_v38 = vshll.u32 %v16264_v20, %v16329_v4  ;;  %v3389_v8 = vshrl.u32 %v16265_v3, %v16330_v27  ;;  %v3394_v37 = vshll.u32 %v16231_v24, %v16329_v4 }
 0x31b   : > { %v3363_v36 = vsel %vm3356_vm11, %v3359_v21, %v3362_v60  ;;  %v3239_v40 = vand.u32 2147483647, %v3238_v12  ;;  %v3531_v35 = vshll.u32 %v12733_v28, 30  ;;  %v3395_v5 = vshrl.u32 %v16232_v44, %v16330_v27  ;;  %8952 = vmatmul.mubr.msk.f32.gmra.mrb[36].mxu1 %vm4260_vm7, %v11978_v62  ;;  %v16331_v12 = vld [vmem:[#allocation70_spill] sm:$0xff] }
 0x31c   : > { %v3364_v41 = vsel %vm3354_vm5, nan, %v3363_v36  ;;  %v3381_v0 = vshrl.u32 %v16261_v13, %v16330_v27  ;;  %v3384_v16 = vor.u32 %v3383_v14, %v3382_v19  ;;  %v3393_v34 = vor.u32 %v3392_v61, %v3391_v45  ;;  %8954 = vmatprep.mubr.msk.f32.mxu1 %vm4260_vm7, %v11983_v18 }
 0x31d   : > { %v4196_v4 = vadd.f32 1.0, %v3364_v41  ;;  %v3242_v52 = vmul.f32 %v3241_v17, %v3239_v40  ;;  %v12754_v39 = vsub.s32 %v3528_v47, %v3531_v35  ;;  %v3387_v54 = vor.u32 %v3386_v49, %v3385_v43 }
 0x31e   : > { %v3373_v58 = vor.u32 8388608, %v12716_v30  ;;  %v3390_v60 = vor.u32 %v3389_v8, %v3388_v38  ;;  %vm3397_vm15 = vcmp.lt.s32.totalorder %v16331_v12, 1  ;;  %vm3400_vm0 = vcmp.lt.s32.totalorder %v16331_v12, 4 }
 0x31f   : > { %v4212_v6 = vmul.f32 0.5, %v4196_v4  ;;  %v3243_v19 = vxor.u32 2147483648, %v3242_v52  ;;  %v3534_v27 = vsub.s32 0, %v12754_v39  ;;  %v3396_v47 = vor.u32 %v3395_v5, %v3394_v37  ;;  %8955 = vmatmul.mubr.msk.f32.gmra.mrb[38].mxu1 %vm4260_vm7, %v11988_v57 }
 0x320   : > { %vm3398_vm1 = vcmp.lt.s32.totalorder %v16331_v12, 2  ;;  %vm3399_vm2 = vcmp.lt.s32.totalorder %v16331_v12, 3  ;;  %v3402_v62 = vsel %vm3400_vm0, %v3390_v60, 2102212464  ;;  %v3406_v30 = vsel %vm3400_vm0, %v3393_v34, 920167782  ;;  %8957 = vmatprep.mubr.msk.f32.mxu1 %vm4260_vm7, %v12028_v51 }
 0x321   : > { %v4228_v14 = vsel %vm2516_vm14, %v4212_v6, 0.0  ;;  %v3244_v18 = vsel %vm3161_vm3, %v3243_v19, %v3242_v52  ;;  %v8434_v43 = vmin.u32 %v3534_v27, %v12754_v39  ;;  %v3405_v49 = vsel %vm3397_vm15, %v3384_v16, %v3387_v54  ;;  %v16336_v19 = vld [vmem:[#allocation58_spill] sm:$0xff] }
 0x322   : > { %4652 = vperm.xlu0 %9495, %v4228_v14   ;;  %v3247_v45 = vsel %vm12702_vm10, %v16300_v50, %v3244_v18  ;;  %v3554_v61 = vsub.s32 4, %v12733_v28  ;;  %v3401_v55 = vsel %vm3397_vm15, %v3381_v0, %v3384_v16  ;;  %v3409_v17 = vsel %vm3397_vm15, %v3387_v54, %v3390_v60 }
 0x323   : > { %9708 = vcosq.f32 %v3247_v45  ;;  %v3536_v21 = vclz %v8434_v43  ;;  %v3403_v57 = vsel %vm3399_vm2, %v3387_v54, %v3402_v62  ;;  %v3407_v38 = vsel %vm3399_vm2, %v3390_v60, %v3406_v30  ;;  %8958 = vmatmul.mubr.msk.f32.gmra.mrb[40].mxu1 %vm4260_vm7, %v12106_v48 }
 0x324   : > { %9710 = vsinq.f32 %v3247_v45  ;;  %v3408_v8 = vsel %vm3398_vm1, %v3405_v49, %v3407_v38  ;;  %v3410_v37 = vsel %vm3400_vm0, %v3396_v47, 1326507024  ;;  %v3413_v36 = vshll.u32 %v3373_v58, 8  ;;  %8960 = vmatprep.mubr.msk.f32.mxu1 %vm4260_vm7, %v12116_v53  ;;  %v16337_v47 = vld [vmem:[#allocation79_spill] sm:$0xff]  ;;  %v16339_v49 = vld [vmem:[#allocation85_spill] sm:$0xff] }
 0x325   : > { %v12801_v51 = vand.u32 3, %v3248_v32  ;;  %vm3470_vm3 = vcmp.lt.s32.totalorder %v16311_v2, 0  ;;  %v8435_v40 = vadd.s32 4294967294, %v3536_v21  ;;  %v3411_v35 = vsel %vm3399_vm2, %v3393_v34, %v3410_v37 }
 0x326   : > { %v3404_v5 = vsel %vm3398_vm1, %v3401_v55, %v3403_v57  ;;  %v3412_v41 = vsel %vm3398_vm1, %v3409_v17, %v3411_v35  ;;  %v12812_v9 = vmul.u32.u64.low %v3413_v36, %v3408_v8  ;;  %v12813_v0 = vmul.u32.u64.high %v3413_v36, %v3408_v8, %v12812_v9  ;;  %v16341_v8 = vld [vmem:[#allocation30_spill] sm:$0xff] }
 0x327   : > { %v3524_v1 = vadd.s32 %v12667_v59, %v12665_v25  ;;  %vm8436_vm4 = vcmp.lt.s32.totalorder %v8435_v40, 0  ;;  %v12820_v32 = vmul.u32.u64.low %v3413_v36, %v3412_v41  ;;  %v12821_v16 = vmul.u32.u64.high %v3413_v36, %v3412_v41, %v12820_v32  ;;  %8961 = vmatmul.mubr.msk.f32.gmra.mrb[42].mxu1 %vm4260_vm7, %v12123_v23 }
 0x328   : > { %v16332_v48 = vand.u32 2139095040, %v12416_v26  ;;  %vm3251_vm5 = vweird.f32 %v16300_v50  ;;  %v3539_v4 = vsel %vm8436_vm4, 0, %v8435_v40  ;;  %v12831_v52 = vsel %vm3470_vm3, %v3554_v61, %v12733_v28  ;;  %8963 = vmatprep.mubr.msk.f32.mxu1 %vm4260_vm7, %v12131_v56  ;;  %v16338_v56 = vld [vmem:[#allocation35_spill] sm:$0xff]  ;;  %v16340_v61 = vld [vmem:[#allocation82_spill] sm:$0xff] }
 0x329   : > { %v3540_v53 = vsub.s32 32, %v3539_v4  ;;  %v3541_v54 = vshll.u32 %v12754_v39, %v3539_v4  ;;  %v3544_v25 = vsub.s32 4294967266, %v3539_v4  ;;  %v3420_v59 = vmul.u32 %v3413_v36, %v3404_v5 }
 0x32a   : > { %v12825_v34 = vshrl.u32 %v16332_v48, 23  ;;  %vm3253_vm6 = vcmp.lt.s32.totalorder %v12801_v51, 2  ;;  %vm3254_vm9 = vcmp.eq.s32.totalorder %v12801_v51, 0  ;;  %v16333_v58 = vand.u32 2147483647, %v16311_v2 }
 0x32b   : > { %v3423_v28 = vadd.s32 1, %v12813_v0  ;;  %vm3257_vm11 = vcmp.eq.s32.totalorder %v12801_v51, 2  ;;  %v3542_v39 = vshrl.u32 %v3524_v1, %v3540_v53  ;;  %v3545_v12 = vadd.s32 127, %v3544_v25  ;;  %8964 = vmatmul.mubr.msk.f32.gmra.mrb[44].mxu1 %vm4260_vm7, %v16340_v61 }
 0x32c   : > { %vm12840_vm10 = vcmp.le.f32.partialorder %v16333_v58, 0.7853982  ;;  %vm3422_vm12 = vc.u32 %v12821_v16, %v12812_v9  ;;  %v3674_v27 = vand.u32 2147483647, %v16336_v19  ;;  %v3691_v62 = vshll.u32 %v16261_v13, %v16337_v47  ;;  %8966 = vmatprep.mubr.msk.f32.mxu1 %vm4260_vm7, %v16341_v8 }
 0x32d   : > { %v3557_v23 = vsel %vm12840_vm10, 0, %v12831_v52  ;;  %v3424_v6 = vsel %vm3422_vm12, %v3423_v28, %v12813_v0  ;;  %v9709_v30 = vpop.eup %9708  ;;  %vm2515_vm13 = vcmp.lt.f32.partialorder %v16338_v56, 5.0  ;;  %v3543_v14 = vor.u32 %v3542_v39, %v3541_v54  ;;  %v16342_v54 = vld [vmem:[#allocation50_spill] sm:$0xff] }
 0x32e   : > { %v3546_v18 = vshll.u32 %v3545_v12, 23  ;;  %v3425_v43 = vadd.s32 %v3424_v6, %v3420_v59  ;;  %v3692_v45 = vshrl.u32 %v16263_v46, %v16339_v49  ;;  %v9711_v55 = vpop.eup %9710  ;;  %v3258_v17 = vxor.u32 2147483648, %v9709_v30 }
 0x32f   : > { %v3694_v21 = vshll.u32 %v16263_v46, %v16337_v47  ;;  %v3695_v57 = vshrl.u32 %v16264_v20, %v16339_v49  ;;  %v3697_v38 = vshll.u32 %v16264_v20, %v16337_v47  ;;  %v3255_v37 = vxor.u32 2147483648, %v9711_v55  ;;  %8967 = vmatmul.mubr.msk.f32.gmra.mrb[46].mxu1 %vm4260_vm7, %v16342_v54  ;;  %v4788_v54 = vpop.permute.xlu0 %4787 }
 0x330   : > { %v3547_v36 = vor.u32 4788187, %v3546_v18  ;;  %v3550_v40 = vcvt.s32.f32 %v3543_v14  ;;  %v3426_v35 = vadd.s32 536870912, %v3425_v43  ;;  %v3259_v5 = vsel %vm3257_vm11, %v3258_v17, %v9711_v55 }
 0x331   : > { %v3698_v41 = vshrl.u32 %v16265_v3, %v16339_v49  ;;  %v3700_v0 = vshll.u32 %v16265_v3, %v16337_v47  ;;  %v3701_v1 = vshrl.u32 %v16231_v24, %v16339_v49  ;;  %v3256_v32 = vsel %vm3254_vm9, %v9709_v30, %v3255_v37 }
 0x332   : > { %v3548_v48 = vand.u32 2147483647, %v3547_v36  ;;  %v12880_v4 = vshrl.u32 %v3426_v35, 30  ;;  %v3690_v53 = vshrl.u32 %v16261_v13, %v16339_v49  ;;  %v3260_v25 = vsel %vm3253_vm6, %v3256_v32, %v3259_v5 }
 0x333   : > { %v3681_v59 = vand.u32 8388607, %v3674_v27  ;;  %v3693_v58 = vor.u32 %v3692_v45, %v3691_v62  ;;  %v3703_v28 = vshll.u32 %v16231_v24, %v16337_v47  ;;  %v16343_v39 = vmov 0   ;;  %v16344_v47 = vld [vmem:[#allocation81_spill] sm:$0xff] }
 0x334   : > { %4943 = vmatprep.mubr.bf16.mxu1 %v16343_v39  ;;  %vm3994_vm14 = vcmp.gt.s32.totalorder %v12678_v33, 0  ;;  %v3261_v12 = vsel %vm3251_vm5, nan, %v3260_v25  ;;  %v3551_v6 = vmul.f32 %v3550_v40, %v3548_v48  ;;  %v3428_v30 = vshll.u32 %v12880_v4, 30  ;;  %v4785_v40 = vpop.permute.xlu1 %4784 }
 0x335   : > { %v3704_v51 = vshrl.u32 %v16232_v44, %v16339_v49  ;;  %v4195_v14 = vadd.f32 1.0, %v3261_v12  ;;  %v3696_v18 = vor.u32 %v3695_v57, %v3694_v21  ;;  %v3699_v61 = vor.u32 %v3698_v41, %v3697_v38 }
 0x336   : > { %v3702_v62 = vor.u32 %v3701_v1, %v3700_v0  ;;  %v3552_v45 = vxor.u32 2147483648, %v3551_v6  ;;  %v12899_v55 = vsub.s32 %v3425_v43, %v3428_v30  ;;  %vm3706_vm7 = vcmp.lt.s32.totalorder %v16344_v47, 1 }
 0x337   : > { %vm3709_vm15 = vcmp.lt.s32.totalorder %v16344_v47, 4  ;;  %v4211_v17 = vmul.f32 0.5, %v4195_v14  ;;  %v3682_v50 = vor.u32 8388608, %v3681_v59  ;;  %vm3707_vm0 = vcmp.lt.s32.totalorder %v16344_v47, 2 }
 0x338   : > { %v3711_v8 = vsel %vm3709_vm15, %v3699_v61, 2102212464  ;;  %v3553_v49 = vsel %vm3470_vm3, %v3552_v45, %v3551_v6  ;;  %v3431_v21 = vsub.s32 0, %v12899_v55  ;;  %v3705_v57 = vor.u32 %v3704_v51, %v3703_v28 }
 0x339   : > { %vm3708_vm1 = vcmp.lt.s32.totalorder %v16344_v47, 3  ;;  %v4227_v43 = vsel %vm2515_vm13, %v4211_v17, 0.0  ;;  %v3556_v38 = vsel %vm12840_vm10, %v16311_v2, %v3553_v49  ;;  %v3714_v37 = vsel %vm3706_vm7, %v3693_v58, %v3696_v18  ;;  %v16347_v47 = vld [vmem:[#allocation52_spill] sm:$0xff] }
 0x33a   : > { %v3715_v36 = vsel %vm3709_vm15, %v3702_v62, 920167782  ;;  %4647 = vperm.xlu1 %9496, %v4227_v43   ;;  %9712 = vcosq.f32 %v3556_v38  ;;  %v8430_v35 = vmin.u32 %v3431_v21, %v12899_v55  ;;  %v3710_v5 = vsel %vm3706_vm7, %v3690_v53, %v3693_v58 }
 0x33b   : > { %v3712_v56 = vsel %vm3708_vm1, %v3696_v18, %v3711_v8  ;;  %9714 = vsinq.f32 %v3556_v38  ;;  %vm4815_vm2 = vcmp.eq.s32.totalorder %v4785_v40, %v16321_v63  ;;  %v3716_v41 = vsel %vm3708_vm1, %v3699_v61, %v3715_v36  ;;  %v16349_v38 = vld [vmem:[#allocation75_spill] sm:$0xff] }
 0x33c   : > { %v3718_v0 = vsel %vm3706_vm7, %v3696_v18, %v3699_v61  ;;  %v3433_v1 = vclz %v8430_v35  ;;  %v3717_v32 = vsel %vm3707_vm0, %v3714_v37, %v3716_v41  ;;  %v3719_v48 = vsel %vm3709_vm15, %v3705_v57, 1326507024  ;;  %v16350_v35 = vld [vmem:[#allocation80_spill] sm:$0xff] }
 0x33d   : > { %v3722_v53 = vshll.u32 %v3682_v50, 8  ;;  %v3561_v25 = vand.u32 3, %v3557_v23  ;;  %v3713_v59 = vsel %vm3707_vm0, %v3710_v5, %v3712_v56  ;;  %v3720_v58 = vsel %vm3708_vm1, %v3702_v62, %v3719_v48 }
 0x33e   : > { %vm4816_vm3 = vcmp.eq.s32.totalorder %v4788_v54, %v16321_v63  ;;  %v8431_v28 = vadd.s32 4294967294, %v3433_v1  ;;  %v3721_v12 = vsel %vm3707_vm0, %v3718_v0, %v3720_v58  ;;  %v12955_v60 = vsub.s32 32, %v12675_v29 }
 0x33f   : > { %v12944_v6 = vmul.u32.u64.low %v3722_v53, %v3717_v32  ;;  %v12945_v30 = vmul.u32.u64.high %v3722_v53, %v3717_v32, %v12944_v6  ;;  %vm12950_vm4 = vmpackc.low %vm4816_vm3, %vm4815_vm2  ;;  %v12960_v23 = vsel %vm3994_vm14, %v12678_v33, 0  ;;  %v12966_v18 = vadd.s32 4294967169, %v12825_v34 }
 0x340   : > { %v12962_v51 = vmul.u32.u64.low %v3722_v53, %v3721_v12  ;;  %v12963_v14 = vmul.u32.u64.high %v3722_v53, %v3721_v12, %v12962_v51  ;;  %vm3560_vm5 = vweird.f32 %v16311_v2  ;;  %v3421_v61 = vadd.s32 %v12812_v9, %v12821_v16  ;;  %v16348_v16 = vld [vmem:[#allocation42_spill] sm:$0xff] }
 0x341   : > { %vm8432_vm6 = vcmp.lt.s32.totalorder %v8431_v28, 0  ;;  %vm3562_vm9 = vcmp.lt.s32.totalorder %v3561_v25, 2  ;;  %v3729_v45 = vmul.u32 %v3722_v53, %v3713_v59  ;;  %v3571_v17 = vand.u32 2147483647, %v16347_v47 }
 0x342   : > { %v3436_v62 = vsel %vm8432_vm6, 0, %v8431_v28  ;;  %vm3367_vm10 = vcmp.lt.s32.totalorder %v16324_v7, 0  ;;  %v3732_v34 = vadd.s32 1, %v12945_v30  ;;  %vm3563_vm11 = vcmp.eq.s32.totalorder %v3561_v25, 0 }
 0x343   : > { %v3437_v33 = vsub.s32 32, %v3436_v62  ;;  %v3438_v50 = vshll.u32 %v12899_v55, %v3436_v62  ;;  %v3441_v8 = vsub.s32 4294967266, %v3436_v62  ;;  %vm3566_vm12 = vcmp.eq.s32.totalorder %v3561_v25, 2 }
 0x344   : > { %v3451_v49 = vsub.s32 4, %v12880_v4  ;;  %vm3731_vm13 = vc.u32 %v12963_v14, %v12944_v6  ;;  %v9713_v9 = vpop.eup %9712  ;;  %vm2518_vm14 = vcmp.lt.f32.partialorder %v16348_v16, 5.0  ;;  %v3588_v55 = vshll.u32 %v16261_v13, %v16349_v38 }
 0x345   : > { %v3439_v21 = vshrl.u32 %v3421_v61, %v3437_v33  ;;  %v3442_v57 = vadd.s32 127, %v3441_v8  ;;  %v3733_v43 = vsel %vm3731_vm13, %v3732_v34, %v12945_v30  ;;  %v9715_v37 = vpop.eup %9714  ;;  %v3567_v36 = vxor.u32 2147483648, %v9713_v9 }
 0x346   : > { %v3734_v40 = vadd.s32 %v3733_v43, %v3729_v45  ;;  %v3589_v5 = vshrl.u32 %v16263_v46, %v16350_v35  ;;  %v3591_v56 = vshll.u32 %v16263_v46, %v16349_v38  ;;  %v3564_v41 = vxor.u32 2147483648, %v9715_v37 }
 0x347   : > { %vm12988_vm7 = vcmp.le.f32.partialorder %v3365_v10, 0.7853982  ;;  %v3440_v1 = vor.u32 %v3439_v21, %v3438_v50  ;;  %v3443_v32 = vshll.u32 %v3442_v57, 23  ;;  %v3578_v48 = vand.u32 8388607, %v3571_v17 }
 0x348   : > { %v3568_v53 = vsel %vm3566_vm12, %v3567_v36, %v9715_v37  ;;  %v3735_v54 = vadd.s32 536870912, %v3734_v40  ;;  %v3592_v59 = vshrl.u32 %v16264_v20, %v16350_v35  ;;  %v3594_v58 = vshll.u32 %v16264_v20, %v16349_v38 }
 0x349   : > { %v3565_v28 = vsel %vm3563_vm11, %v9713_v9, %v3564_v41  ;;  %v3444_v10 = vor.u32 4788187, %v3443_v32  ;;  %v3447_v12 = vcvt.s32.f32 %v3440_v1  ;;  %v3597_v30 = vshll.u32 %v16265_v3, %v16349_v38  ;;  %v16353_v32 = vld [vmem:[#allocation78_spill] sm:$0xff] }
 0x34a   : > { %v3569_v51 = vsel %vm3562_vm9, %v3565_v28, %v3568_v53  ;;  %v3736_v61 = vshrl.u32 %v3735_v54, 30  ;;  %v3595_v62 = vshrl.u32 %v16265_v3, %v16350_v35  ;;  %v3598_v45 = vshrl.u32 %v16231_v24, %v16350_v35 }
 0x34b   : > { %v3570_v33 = vsel %vm3560_vm5, nan, %v3569_v51  ;;  %v3445_v50 = vand.u32 2147483647, %v3444_v10  ;;  %v3600_v8 = vshll.u32 %v16231_v24, %v16349_v38  ;;  %v3601_v34 = vshrl.u32 %v16232_v44, %v16350_v35 }
 0x34c   : > { %v4198_v9 = vadd.f32 1.0, %v3570_v33  ;;  %v3452_v25 = vsel %vm3367_vm10, %v3451_v49, %v12880_v4  ;;  %v3737_v21 = vshll.u32 %v3736_v61, 30  ;;  %v3587_v57 = vshrl.u32 %v16261_v13, %v16350_v35 }
 0x34d   : > { %v3448_v43 = vmul.f32 %v3447_v12, %v3445_v50  ;;  %v3590_v37 = vor.u32 %v3589_v5, %v3588_v55  ;;  %v3593_v2 = vor.u32 %v3592_v59, %v3591_v56  ;;  %v3599_v36 = vor.u32 %v3598_v45, %v3597_v30 }
 0x34e   : > { %v4214_v41 = vmul.f32 0.5, %v4198_v9  ;;  %v13018_v1 = vsub.s32 %v3734_v40, %v3737_v21  ;;  %v3596_v38 = vor.u32 %v3595_v62, %v3594_v58  ;;  %vm3603_vm15 = vcmp.lt.s32.totalorder %v16353_v32, 1 }
 0x34f   : > { %v3449_v53 = vxor.u32 2147483648, %v3448_v43  ;;  %v3579_v54 = vor.u32 8388608, %v3578_v48  ;;  %v3602_v28 = vor.u32 %v3601_v34, %v3600_v8  ;;  %vm3606_vm0 = vcmp.lt.s32.totalorder %v16353_v32, 4 }
 0x350   : > { %v4230_v4 = vsel %vm2518_vm14, %v4214_v41, 0.0  ;;  %v3740_v49 = vsub.s32 0, %v13018_v1  ;;  %vm3605_vm1 = vcmp.lt.s32.totalorder %v16353_v32, 3  ;;  %v3608_v55 = vsel %vm3606_vm0, %v3596_v38, 2102212464 }
 0x351   : > { %4662 = vperm.xlu0 %9495, %v4230_v4   ;;  %v3450_v40 = vsel %vm3367_vm10, %v3449_v53, %v3448_v43  ;;  %vm3604_vm2 = vcmp.lt.s32.totalorder %v16353_v32, 2  ;;  %v3611_v35 = vsel %vm3603_vm15, %v3590_v37, %v3593_v2  ;;  %v3612_v16 = vsel %vm3606_vm0, %v3599_v36, 920167782 }
 0x352   : > { %v3453_v5 = vsel %vm12988_vm7, %v16324_v7, %v3450_v40  ;;  %v3454_v56 = vsel %vm12988_vm7, 0, %v3452_v25  ;;  %v8442_v48 = vmin.u32 %v3740_v49, %v13018_v1  ;;  %v3760_v59 = vsub.s32 4, %v3736_v61 }
 0x353   : > { %9716 = vcosq.f32 %v3453_v5  ;;  %v3607_v58 = vsel %vm3603_vm15, %v3587_v57, %v3590_v37  ;;  %v3609_v10 = vsel %vm3605_vm1, %v3593_v2, %v3608_v55  ;;  %v3613_v12 = vsel %vm3605_vm1, %v3596_v38, %v3612_v16  ;;  %v16357_v55 = vld [vmem:[#allocation40_spill] sm:$0xff] }
 0x354   : > { %9718 = vsinq.f32 %v3453_v5  ;;  %v3742_v30 = vclz %v8442_v48  ;;  %v3614_v51 = vsel %vm3604_vm2, %v3611_v35, %v3613_v12  ;;  %v3615_v0 = vsel %vm3603_vm15, %v3593_v2, %v3596_v38 }
 0x355   : > { %v13052_v62 = vadd.s32 1, %v12966_v18  ;;  %v3458_v45 = vand.u32 3, %v3454_v56  ;;  %v3616_v33 = vsel %vm3606_vm0, %v3602_v28, 1326507024  ;;  %v3619_v50 = vshll.u32 %v3579_v54, 8 }
 0x356   : > { %vm3676_vm3 = vcmp.lt.s32.totalorder %v16336_v19, 0  ;;  %v3730_v8 = vadd.s32 %v12944_v6, %v12963_v14  ;;  %v8443_v34 = vadd.s32 4294967294, %v3742_v30  ;;  %v3617_v9 = vsel %vm3605_vm1, %v3599_v36, %v3616_v33 }
 0x357   : > { %v3610_v25 = vsel %vm3604_vm2, %v3607_v58, %v3609_v10  ;;  %v3618_v18 = vsel %vm3604_vm2, %v3615_v0, %v3617_v9  ;;  %v13065_v21 = vmul.u32.u64.low %v3619_v50, %v3614_v51  ;;  %v13066_v57 = vmul.u32.u64.high %v3619_v50, %v3614_v51, %v13065_v21 }
 0x358   : > { %vm8444_vm5 = vcmp.lt.s32.totalorder %v8443_v34, 0  ;;  %v13071_v43 = vsel %vm3676_vm3, %v3760_v59, %v3736_v61  ;;  %v13073_v6 = vmul.u32.u64.low %v3619_v50, %v3618_v18  ;;  %v13074_v14 = vmul.u32.u64.high %v3619_v50, %v3618_v18, %v13073_v6 }
 0x359   : > { %vm3457_vm6 = vweird.f32 %v16324_v7  ;;  %vm3459_vm9 = vcmp.lt.s32.totalorder %v3458_v45, 2  ;;  %vm13079_vm10 = vcmp.le.f32.partialorder %v3674_v27, 0.7853982  ;;  %v3745_v2 = vsel %vm8444_vm5, 0, %v8443_v34  ;;  %v16356_v27 = vld [vmem:[#allocation72_spill] sm:$0xff] }
 0x35a   : > { %v3746_v36 = vsub.s32 32, %v3745_v2  ;;  %v3747_v41 = vshll.u32 %v13018_v1, %v3745_v2  ;;  %v3750_v38 = vsub.s32 4294967266, %v3745_v2  ;;  %v3626_v32 = vmul.u32 %v3619_v50, %v3610_v25 }
 0x35b   : > { %vm3460_vm11 = vcmp.eq.s32.totalorder %v3458_v45, 0  ;;  %vm3463_vm12 = vcmp.eq.s32.totalorder %v3458_v45, 2  ;;  %v3763_v61 = vsel %vm13079_vm10, 0, %v13071_v43  ;;  %v3629_v53 = vadd.s32 1, %v13066_v57 }
 0x35c   : > { %v3748_v54 = vshrl.u32 %v3730_v8, %v3746_v36  ;;  %v3751_v28 = vadd.s32 127, %v3750_v38  ;;  %vm3628_vm13 = vc.u32 %v13074_v14, %v13065_v21  ;;  %v3880_v4 = vand.u32 2147483647, %v16356_v27 }
 0x35d   : > { %v9717_v49 = vpop.eup %9716  ;;  %vm2517_vm14 = vcmp.lt.f32.partialorder %v16357_v55, 5.0  ;;  %v3630_v1 = vsel %vm3628_vm13, %v3629_v53, %v13066_v57  ;;  %v3897_v40 = vshll.u32 %v16261_v13, %v12675_v29  ;;  %v3898_v35 = vshrl.u32 %v16263_v46, %v12955_v60 }
 0x35e   : > { %v3900_v16 = vshll.u32 %v16263_v46, %v12675_v29  ;;  %v9719_v5 = vpop.eup %9718  ;;  %v3464_v56 = vxor.u32 2147483648, %v9717_v49  ;;  %v3749_v48 = vor.u32 %v3748_v54, %v3747_v41  ;;  %v3752_v59 = vshll.u32 %v3751_v28, 23 }
 0x35f   : > { %v3631_v58 = vadd.s32 %v3630_v1, %v3626_v32  ;;  %v3461_v10 = vxor.u32 2147483648, %v9719_v5  ;;  %v3901_v12 = vshrl.u32 %v16264_v20, %v12955_v60  ;;  %v3906_v30 = vshll.u32 %v16265_v3, %v12675_v29 }
 0x360   : > { %v3907_v51 = vshrl.u32 %v16231_v24, %v12955_v60  ;;  %v3465_v0 = vsel %vm3463_vm12, %v3464_v56, %v9719_v5  ;;  %v3753_v33 = vor.u32 4788187, %v3752_v59  ;;  %v3756_v50 = vcvt.s32.f32 %v3749_v48 }
 0x361   : > { %v3632_v8 = vadd.s32 536870912, %v3631_v58  ;;  %v3462_v34 = vsel %vm3460_vm11, %v9717_v49, %v3461_v10  ;;  %v3903_v9 = vshll.u32 %v16264_v20, %v12675_v29  ;;  %v3904_v25 = vshrl.u32 %v16265_v3, %v12955_v60 }
 0x362   : > { %v3909_v18 = vshll.u32 %v16231_v24, %v12675_v29  ;;  %vm4097_vm7 = vcmp.gt.s32.totalorder %v13052_v62, 0  ;;  %v3466_v57 = vsel %vm3459_vm9, %v3462_v34, %v3465_v0  ;;  %v3754_v6 = vand.u32 2147483647, %v3753_v33 }
 0x363   : > { %v13115_v2 = vshrl.u32 %v3632_v8, 30  ;;  %v3910_v36 = vshrl.u32 %v16232_v44, %v12955_v60  ;;  %v3467_v41 = vsel %vm3457_vm6, nan, %v3466_v57  ;;  %v3887_v38 = vand.u32 8388607, %v3880_v4 }
 0x364   : > { %v3899_v32 = vor.u32 %v3898_v35, %v3897_v40  ;;  %v3908_v53 = vor.u32 %v3907_v51, %v3906_v30  ;;  %v4197_v54 = vadd.f32 1.0, %v3467_v41  ;;  %v3757_v29 = vmul.f32 %v3756_v50, %v3754_v6  ;;  %v4794_v6 = vpop.permute.xlu0 %4793 }
 0x365   : > { %v3634_v28 = vshll.u32 %v13115_v2, 30  ;;  %v3902_v45 = vor.u32 %v3901_v12, %v3900_v16  ;;  %v3905_v49 = vor.u32 %v3904_v25, %v3903_v9  ;;  %v3911_v1 = vor.u32 %v3910_v36, %v3909_v18  ;;  %v4791_v12 = vpop.permute.xlu1 %4790 }
 0x366   : > { %vm3912_vm15 = vcmp.lt.s32.totalorder %v12672_v11, 1  ;;  %vm3915_vm0 = vcmp.lt.s32.totalorder %v12672_v11, 4  ;;  %v4213_v5 = vmul.f32 0.5, %v4197_v54  ;;  %v3758_v56 = vxor.u32 2147483648, %v3757_v29 }
 0x367   : > { %v13126_v7 = vsub.s32 %v3631_v58, %v3634_v28  ;;  %vm3914_vm1 = vcmp.lt.s32.totalorder %v12672_v11, 3  ;;  %v3888_v48 = vor.u32 8388608, %v3887_v38  ;;  %v3896_v40 = vshrl.u32 %v16261_v13, %v12955_v60 }
 0x368   : > { %vm3913_vm2 = vcmp.lt.s32.totalorder %v12672_v11, 2  ;;  %v3921_v35 = vsel %vm3915_vm0, %v3908_v53, 920167782  ;;  %v4229_v16 = vsel %vm2517_vm14, %v4213_v5, 0.0  ;;  %v3759_v59 = vsel %vm3676_vm3, %v3758_v56, %v3757_v29  ;;  %v16360_v56 = vld [vmem:[#allocation68_spill] sm:$0xff] }
 0x369   : > { %v3637_v58 = vsub.s32 0, %v13126_v7  ;;  %v3917_v10 = vsel %vm3915_vm0, %v3905_v49, 2102212464  ;;  %4657 = vperm.xlu1 %9496, %v4229_v16   ;;  %v3762_v60 = vsel %vm13079_vm10, %v16336_v19, %v3759_v59  ;;  %v3920_v30 = vsel %vm3912_vm15, %v3899_v32, %v3902_v45  ;;  %v16362_v16 = vld [vmem:[#allocation45_spill] sm:$0xff] }
 0x36a   : > { %v3922_v55 = vsel %vm3914_vm1, %v3905_v49, %v3921_v35  ;;  %v3925_v51 = vsel %vm3915_vm0, %v3911_v1, 1326507024  ;;  %9720 = vcosq.f32 %v3762_v60  ;;  %vm4817_vm3 = vcmp.eq.s32.totalorder %v4791_v12, %v16321_v63 }
 0x36b   : > { %v8438_v0 = vmin.u32 %v3637_v58, %v13126_v7  ;;  %v3924_v33 = vsel %vm3912_vm15, %v3902_v45, %v3905_v49  ;;  %9722 = vsinq.f32 %v3762_v60  ;;  %v13158_v50 = vand.u32 3, %v3763_v61 }
 0x36c   : > { %v3916_v8 = vsel %vm3912_vm15, %v3896_v40, %v3899_v32  ;;  %v3918_v34 = vsel %vm3914_vm1, %v3902_v45, %v3917_v10  ;;  %v3923_v25 = vsel %vm3913_vm2, %v3920_v30, %v3922_v55  ;;  %v3926_v18 = vsel %vm3914_vm1, %v3908_v53, %v3925_v51  ;;  %v16361_v40 = vld [vmem:[#allocation49_spill] sm:$0xff] }
 0x36d   : > { %v3639_v9 = vclz %v8438_v0  ;;  %v3928_v57 = vshll.u32 %v3888_v48, 8  ;;  %v13171_v43 = vsel %vm4097_vm7, %v13052_v62, 0  ;;  %v3657_v37 = vsub.s32 4, %v13115_v2 }
 0x36e   : > { %v3927_v61 = vsel %vm3913_vm2, %v3924_v33, %v3926_v18  ;;  %vm4818_vm5 = vcmp.eq.s32.totalorder %v4794_v6, %v16321_v63  ;;  %v3919_v41 = vsel %vm3913_vm2, %v3916_v8, %v3918_v34  ;;  %vm3766_vm9 = vweird.f32 %v16336_v19 }
 0x36f   : > { %v8439_v36 = vadd.s32 4294967294, %v3639_v9  ;;  %v13179_v38 = vmul.u32.u64.low %v3928_v57, %v3927_v61  ;;  %v13180_v32 = vmul.u32.u64.high %v3928_v57, %v3927_v61, %v13179_v38  ;;  %vm13184_vm6 = vmpackc.low %vm4818_vm5, %vm4817_vm3  ;;  %vm3573_vm10 = vcmp.lt.s32.totalorder %v16347_v47, 0 }
 0x370   : > { %v13190_v62 = vmul.u32.u64.low %v3928_v57, %v3923_v25  ;;  %v13191_v54 = vmul.u32.u64.high %v3928_v57, %v3923_v25, %v13190_v62  ;;  %vm3768_vm11 = vcmp.lt.s32.totalorder %v13158_v50, 2  ;;  %vm3769_vm12 = vcmp.eq.s32.totalorder %v13158_v50, 0 }
 0x371   : > { %v3627_v11 = vadd.s32 %v13065_v21, %v13074_v14  ;;  %vm8440_vm13 = vcmp.lt.s32.totalorder %v8439_v36, 0  ;;  %vm3772_vm14 = vcmp.eq.s32.totalorder %v13158_v50, 2  ;;  %v13202_v28 = vsel %vm3573_vm10, %v3657_v37, %v13115_v2 }
 0x372   : > { %v3642_v29 = vsel %vm8440_vm13, 0, %v8439_v36  ;;  %v3935_v45 = vmul.u32 %v3928_v57, %v3919_v41  ;;  %v3777_v48 = vand.u32 2147483647, %v16360_v56  ;;  %vm3937_vm7 = vc.u32 %v13180_v32, %v13190_v62 }
 0x373   : > { %v3643_v49 = vsub.s32 32, %v3642_v29  ;;  %v3644_v1 = vshll.u32 %v13126_v7, %v3642_v29  ;;  %v3647_v5 = vsub.s32 4294967266, %v3642_v29  ;;  %v3938_v21 = vadd.s32 1, %v13191_v54 }
 0x374   : > { %v3793_v14 = vshrl.u32 %v16261_v13, %v12403_v15  ;;  %v3794_v35 = vshll.u32 %v16261_v13, %v16361_v40  ;;  %v9721_v2 = vpop.eup %9720  ;;  %vm2520_vm15 = vcmp.lt.f32.partialorder %v16362_v16, 5.0  ;;  %vm13216_vm0 = vcmp.le.f32.partialorder %v3571_v17, 0.7853982 }
 0x375   : > { %v3645_v59 = vshrl.u32 %v3627_v11, %v3643_v49  ;;  %v3648_v58 = vadd.s32 127, %v3647_v5  ;;  %v3795_v10 = vshrl.u32 %v16263_v46, %v12403_v15  ;;  %v3797_v60 = vshll.u32 %v16263_v46, %v16361_v40  ;;  %v9723_v12 = vpop.eup %9722 }
 0x376   : > { %v3773_v30 = vxor.u32 2147483648, %v9721_v2  ;;  %v3939_v55 = vsel %vm3937_vm7, %v3938_v21, %v13191_v54  ;;  %v3798_v51 = vshrl.u32 %v16264_v20, %v12403_v15  ;;  %v3800_v17 = vshll.u32 %v16264_v20, %v16361_v40 }
 0x377   : > { %v3770_v0 = vxor.u32 2147483648, %v9723_v12  ;;  %v3646_v33 = vor.u32 %v3645_v59, %v3644_v1  ;;  %v3649_v8 = vshll.u32 %v3648_v58, 23  ;;  %v3940_v34 = vadd.s32 %v3939_v55, %v3935_v45 }
 0x378   : > { %v3774_v9 = vsel %vm3772_vm14, %v3773_v30, %v9723_v12  ;;  %v3801_v25 = vshrl.u32 %v16265_v3, %v12403_v15  ;;  %v3803_v18 = vshll.u32 %v16265_v3, %v16361_v40  ;;  %v3804_v57 = vshrl.u32 %v16231_v24, %v12403_v15  ;;  %v16365_v12 = vld [vmem:[#allocation53_spill] sm:$0xff] }
 0x379   : > { %v3771_v6 = vsel %vm3769_vm12, %v9721_v2, %v3770_v0  ;;  %v3650_v37 = vor.u32 4788187, %v3649_v8  ;;  %v3653_v61 = vcvt.s32.f32 %v3646_v33  ;;  %v3941_v36 = vadd.s32 536870912, %v3940_v34 }
 0x37a   : > { %v3775_v41 = vsel %vm3768_vm11, %v3771_v6, %v3774_v9  ;;  %v3784_v38 = vand.u32 8388607, %v3777_v48  ;;  %v3806_v54 = vshll.u32 %v16231_v24, %v16361_v40  ;;  %v3807_v11 = vshrl.u32 %v16232_v44, %v12403_v15 }
 0x37b   : > { %v3776_v29 = vsel %vm3766_vm9, nan, %v3775_v41  ;;  %v3651_v45 = vand.u32 2147483647, %v3650_v37  ;;  %v3942_v49 = vshrl.u32 %v3941_v36, 30  ;;  %v3796_v1 = vor.u32 %v3795_v10, %v3794_v35 }
 0x37c   : > { %v4200_v5 = vadd.f32 1.0, %v3776_v29  ;;  %v3799_v21 = vor.u32 %v3798_v51, %v3797_v60  ;;  %v3802_v2 = vor.u32 %v3801_v25, %v3800_v17  ;;  %v3805_v50 = vor.u32 %v3804_v57, %v3803_v18 }
 0x37d   : > { %v3654_v59 = vmul.f32 %v3653_v61, %v3651_v45  ;;  %v3943_v58 = vshll.u32 %v3942_v49, 30  ;;  %vm3809_vm1 = vcmp.lt.s32.totalorder %v16365_v12, 1  ;;  %vm3812_vm2 = vcmp.lt.s32.totalorder %v16365_v12, 4 }
 0x37e   : > { %v4216_v40 = vmul.f32 0.5, %v4200_v5  ;;  %v3660_v15 = vsel %vm13216_vm0, 0, %v13202_v28  ;;  %v3808_v19 = vor.u32 %v3807_v11, %v3806_v54  ;;  %vm3811_vm3 = vcmp.lt.s32.totalorder %v16365_v12, 3 }
 0x37f   : > { %v3655_v30 = vxor.u32 2147483648, %v3654_v59  ;;  %v13255_v35 = vsub.s32 %v3940_v34, %v3943_v58  ;;  %v3785_v10 = vor.u32 8388608, %v3784_v38  ;;  %v3814_v60 = vsel %vm3812_vm2, %v3802_v2, 2102212464 }
 0x380   : > { %v4232_v55 = vsel %vm2520_vm15, %v4216_v40, 0.0  ;;  %vm3810_vm5 = vcmp.lt.s32.totalorder %v16365_v12, 2  ;;  %v3817_v51 = vsel %vm3809_vm1, %v3796_v1, %v3799_v21  ;;  %v3818_v28 = vsel %vm3812_vm2, %v3805_v50, 920167782 }
 0x381   : > { %4672 = vperm.xlu0 %9495, %v4232_v55   ;;  %v3656_v17 = vsel %vm3573_vm10, %v3655_v30, %v3654_v59  ;;  %v3946_v0 = vsub.s32 0, %v13255_v35  ;;  %v3813_v33 = vsel %vm3809_vm1, %v3793_v14, %v3796_v1  ;;  %v3819_v16 = vsel %vm3811_vm3, %v3802_v2, %v3818_v28  ;;  %v16366_v55 = vld [vmem:[#allocation43_spill] sm:$0xff] }
 0x382   : > { %v3659_v8 = vsel %vm13216_vm0, %v16347_v47, %v3656_v17  ;;  %v3815_v34 = vsel %vm3811_vm3, %v3799_v21, %v3814_v60  ;;  %v3821_v9 = vsel %vm3809_vm1, %v3799_v21, %v3802_v2  ;;  %v3822_v25 = vsel %vm3812_vm2, %v3808_v19, 1326507024 }
 0x383   : > { %v4100_v18 = vand.u32 31, %v13171_v43  ;;  %9724 = vcosq.f32 %v3659_v8  ;;  %v8450_v14 = vmin.u32 %v3946_v0, %v13255_v35  ;;  %v3820_v57 = vsel %vm3810_vm5, %v3817_v51, %v3819_v16 }
 0x384   : > { %9726 = vsinq.f32 %v3659_v8  ;;  %v3664_v7 = vand.u32 3, %v3660_v15  ;;  %v3823_v6 = vsel %vm3811_vm3, %v3805_v50, %v3822_v25  ;;  %v3825_v37 = vshll.u32 %v3785_v10, 8 }
 0x385   : > { %v3948_v61 = vclz %v8450_v14  ;;  %v3966_v36 = vsub.s32 4, %v3942_v49  ;;  %v3816_v41 = vsel %vm3810_vm5, %v3813_v33, %v3815_v34  ;;  %v3824_v38 = vsel %vm3810_vm5, %v3821_v9, %v3823_v6 }
 0x386   : > { %v13292_v54 = vmul.u32.u64.low %v3825_v37, %v3824_v38  ;;  %v13293_v11 = vmul.u32.u64.high %v3825_v37, %v3824_v38, %v13292_v54  ;;  %v13295_v29 = vmul.u32.u64.low %v3825_v37, %v3820_v57  ;;  %v13296_v45 = vmul.u32.u64.high %v3825_v37, %v3820_v57, %v13295_v29 }
 0x387   : > { %v13300_v1 = vand.u32 31, %v12960_v23  ;;  %v13303_v5 = vshrl.u32 %v13171_v43, 5  ;;  %v13305_v21 = vsub.s32 32, %v4100_v18  ;;  %v8451_v2 = vadd.s32 4294967294, %v3948_v61 }
 0x388   : > { %vm3663_vm9 = vweird.f32 %v16347_v47  ;;  %vm3665_vm10 = vcmp.lt.s32.totalorder %v3664_v7, 2  ;;  %vm3666_vm11 = vcmp.eq.s32.totalorder %v3664_v7, 0  ;;  %vm3882_vm12 = vcmp.lt.s32.totalorder %v16356_v27, 0 }
 0x389   : > { %vm3669_vm13 = vcmp.eq.s32.totalorder %v3664_v7, 2  ;;  %v3936_v50 = vadd.s32 %v13190_v62, %v13180_v32  ;;  %vm8452_vm14 = vcmp.lt.s32.totalorder %v8451_v2, 0  ;;  %v3832_v59 = vmul.u32 %v3825_v37, %v3816_v41 }
 0x38a   : > { %v3951_v58 = vsel %vm8452_vm14, 0, %v8451_v2  ;;  %v13313_v43 = vsel %vm3882_vm12, %v3966_v36, %v3942_v49  ;;  %vm3834_vm7 = vc.u32 %v13293_v11, %v13295_v29  ;;  %v3835_v12 = vadd.s32 1, %v13296_v45 }
 0x38b   : > { %v3952_v40 = vsub.s32 32, %v3951_v58  ;;  %v3953_v15 = vshll.u32 %v13255_v35, %v3951_v58  ;;  %v3956_v19 = vsub.s32 4294967266, %v3951_v58  ;;  %v4086_v30 = vand.u32 2147483647, %v12416_v26 }
 0x38c   : > { %v3836_v32 = vsel %vm3834_vm7, %v3835_v12, %v13296_v45  ;;  %v4103_v62 = vshll.u32 %v16261_v13, %v4100_v18  ;;  %v4104_v10 = vshrl.u32 %v16263_v46, %v13305_v21  ;;  %v4106_v49 = vshll.u32 %v16263_v46, %v4100_v18 }
 0x38d   : > { %v9725_v60 = vpop.eup %9724  ;;  %vm2519_vm15 = vcmp.lt.f32.partialorder %v16366_v55, 5.0  ;;  %v3954_v51 = vshrl.u32 %v3936_v50, %v3952_v40  ;;  %v3957_v28 = vadd.s32 127, %v3956_v19  ;;  %v3837_v17 = vadd.s32 %v3836_v32, %v3832_v59  ;;  %v4797_v50 = vpop.permute.xlu1 %4796 }
 0x38e   : > { %v4107_v35 = vshrl.u32 %v16264_v20, %v13305_v21  ;;  %v9727_v0 = vpop.eup %9726  ;;  %v3670_v33 = vxor.u32 2147483648, %v9725_v60  ;;  %v4109_v16 = vshll.u32 %v16264_v20, %v4100_v18  ;;  %v4110_v8 = vshrl.u32 %v16265_v3, %v13305_v21 }
 0x38f   : > { %v4112_v34 = vshll.u32 %v16265_v3, %v4100_v18  ;;  %v3667_v9 = vxor.u32 2147483648, %v9727_v0  ;;  %vm13334_vm0 = vcmp.le.f32.partialorder %v3880_v4, 0.7853982  ;;  %v3955_v14 = vor.u32 %v3954_v51, %v3953_v15 }
 0x390   : > { %v3958_v57 = vshll.u32 %v3957_v28, 23  ;;  %v3838_v6 = vadd.s32 536870912, %v3837_v17  ;;  %v3671_v37 = vsel %vm3669_vm13, %v3670_v33, %v9727_v0  ;;  %v4113_v61 = vshrl.u32 %v16231_v24, %v13305_v21 }
 0x391   : > { %v4115_v36 = vshll.u32 %v16231_v24, %v4100_v18  ;;  %v4116_v41 = vshrl.u32 %v16232_v44, %v13305_v21  ;;  %v3668_v38 = vsel %vm3666_vm11, %v9725_v60, %v3667_v9  ;;  %v3962_v4 = vcvt.s32.f32 %v3955_v14 }
 0x392   : > { %v3959_v54 = vor.u32 4788187, %v3958_v57  ;;  %v13345_v45 = vshrl.u32 %v3838_v6, 30  ;;  %v3672_v2 = vsel %vm3665_vm10, %v3668_v38, %v3671_v37  ;;  %v4093_v59 = vand.u32 8388607, %v4086_v30  ;;  %v4800_v38 = vpop.permute.xlu0 %4799 }
 0x393   : > { %v4105_v58 = vor.u32 %v4104_v10, %v4103_v62  ;;  %v4108_v12 = vor.u32 %v4107_v35, %v4106_v49  ;;  %v3673_v18 = vsel %vm3663_vm9, nan, %v3672_v2  ;;  %vm4819_vm1 = vcmp.eq.s32.totalorder %v4797_v50, %v16321_v63 }
 0x394   : > { %v3960_v40 = vand.u32 2147483647, %v3959_v54  ;;  %v3840_v15 = vshll.u32 %v13345_v45, 30  ;;  %v4111_v19 = vor.u32 %v4110_v8, %v4109_v16  ;;  %v4199_v32 = vadd.f32 1.0, %v3673_v18 }
 0x395   : > { %v4114_v60 = vor.u32 %v4113_v61, %v4112_v34  ;;  %v4117_v51 = vor.u32 %v4116_v41, %v4115_v36  ;;  %vm4118_vm2 = vcmp.lt.s32.totalorder %v13303_v5, 1  ;;  %v4102_v62 = vshrl.u32 %v16261_v13, %v13305_v21 }
 0x396   : > { %v3963_v7 = vmul.f32 %v3962_v4, %v3960_v40  ;;  %v13355_v28 = vsub.s32 %v3837_v17, %v3840_v15  ;;  %vm4121_vm3 = vcmp.lt.s32.totalorder %v13303_v5, 4  ;;  %v4215_v47 = vmul.f32 0.5, %v4199_v32 }
 0x397   : > { %v4094_v10 = vor.u32 8388608, %v4093_v59  ;;  %vm4119_vm5 = vcmp.lt.s32.totalorder %v13303_v5, 2  ;;  %vm4120_vm9 = vcmp.lt.s32.totalorder %v13303_v5, 3  ;;  %v4123_v0 = vsel %vm4121_vm3, %v4111_v19, 2102212464 }
 0x398   : > { %v3964_v49 = vxor.u32 2147483648, %v3963_v7  ;;  %v3843_v35 = vsub.s32 0, %v13355_v28  ;;  %v4126_v33 = vsel %vm4118_vm2, %v4105_v58, %v4108_v12  ;;  %v4231_v17 = vsel %vm2519_vm15, %v4215_v47, 0.0 }
 0x399   : > { %v4127_v16 = vsel %vm4121_vm3, %v4114_v60, 920167782  ;;  %v4130_v21 = vsel %vm4118_vm2, %v4108_v12, %v4111_v19  ;;  %v4131_v8 = vsel %vm4121_vm3, %v4117_v51, 1326507024  ;;  %4667 = vperm.xlu1 %9496, %v4231_v17   ;;  %v3969_v9 = vsel %vm13334_vm0, 0, %v13313_v43  ;;  %v16371_v51 = vld [vmem:[#allocation84_spill] sm:$0xff] }
 0x39a   : > { %v3965_v34 = vsel %vm3882_vm12, %v3964_v49, %v3963_v7  ;;  %v8446_v14 = vmin.u32 %v3843_v35, %v13355_v28  ;;  %v4122_v57 = vsel %vm4118_vm2, %v4102_v62, %v4105_v58  ;;  %v4124_v6 = vsel %vm4120_vm9, %v4108_v12, %v4123_v0  ;;  %v16372_v17 = vld [vmem:[#allocation51_spill] sm:$0xff] }
 0x39b   : > { %v3968_v55 = vsel %vm13334_vm0, %v16356_v27, %v3965_v34  ;;  %v4128_v37 = vsel %vm4120_vm9, %v4111_v19, %v4127_v16  ;;  %v4132_v61 = vsel %vm4120_vm9, %v4114_v60, %v4131_v8  ;;  %v4134_v25 = vshll.u32 %v4094_v10, 8 }
 0x39c   : > { %9728 = vcosq.f32 %v3968_v55  ;;  %v3845_v43 = vclz %v8446_v14  ;;  %v4129_v36 = vsel %vm4119_vm5, %v4126_v33, %v4128_v37  ;;  %v4133_v41 = vsel %vm4119_vm5, %v4130_v21, %v4132_v61 }
 0x39d   : > { %9730 = vsinq.f32 %v3968_v55  ;;  %v3973_v54 = vand.u32 3, %v3969_v9  ;;  %v4125_v2 = vsel %vm4119_vm5, %v4122_v57, %v4124_v6  ;;  %vm4820_vm10 = vcmp.eq.s32.totalorder %v4800_v38, %v16321_v63 }
 0x39e   : > { %v8447_v4 = vadd.s32 4294967294, %v3845_v43  ;;  %v13393_v59 = vmul.u32.u64.low %v4134_v25, %v4133_v41  ;;  %v13394_v58 = vmul.u32.u64.high %v4134_v25, %v4133_v41, %v13393_v59  ;;  %vm13402_vm11 = vmpackc.low %vm4820_vm10, %vm4819_vm1  ;;  %v13407_v15 = vshrl.u32 %v12960_v23, 5 }
 0x39f   : > { %v13396_v12 = vmul.u32.u64.low %v4134_v25, %v4129_v36  ;;  %v13397_v18 = vmul.u32.u64.high %v4134_v25, %v4129_v36, %v13396_v12  ;;  %v3998_v5 = vsub.s32 32, %v13300_v1  ;;  %v3833_v19 = vadd.s32 %v13295_v29, %v13293_v11 }
 0x3a0   : > { %vm8448_vm12 = vcmp.lt.s32.totalorder %v8447_v4, 0  ;;  %vm3972_vm13 = vweird.f32 %v16356_v27  ;;  %v3863_v60 = vsub.s32 4, %v13345_v45  ;;  %v3983_v50 = vand.u32 2147483647, %v16371_v51 }
 0x3a1   : > { %v3848_v32 = vsel %vm8448_vm12, 0, %v8447_v4  ;;  %v4141_v10 = vmul.u32 %v4134_v25, %v4125_v2  ;;  %vm3974_vm14 = vcmp.lt.s32.totalorder %v3973_v54, 2  ;;  %vm3779_vm7 = vcmp.lt.s32.totalorder %v16360_v56, 0 }
 0x3a2   : > { %v3849_v7 = vsub.s32 32, %v3848_v32  ;;  %v3850_v62 = vshll.u32 %v13355_v28, %v3848_v32  ;;  %v3853_v47 = vsub.s32 4294967266, %v3848_v32  ;;  %vm4143_vm15 = vc.u32 %v13394_v58, %v13396_v12 }
 0x3a3   : > { %v4144_v23 = vadd.s32 1, %v13397_v18  ;;  %vm3975_vm0 = vcmp.eq.s32.totalorder %v3973_v54, 0  ;;  %vm3978_vm1 = vcmp.eq.s32.totalorder %v3973_v54, 2  ;;  %v13423_v49 = vsel %vm3779_vm7, %v3863_v60, %v13345_v45 }
 0x3a4   : > { %v3851_v11 = vshrl.u32 %v3833_v19, %v3849_v7  ;;  %v3854_v29 = vadd.s32 127, %v3853_v47  ;;  %v13428_v35 = vand.u32 8388607, %v3983_v50  ;;  %v4000_v0 = vshll.u32 %v16261_v13, %v13300_v1 }
 0x3a5   : > { %v4145_v28 = vsel %vm4143_vm15, %v4144_v23, %v13397_v18  ;;  %vm2522_vm2 = vcmp.lt.f32.partialorder %v16372_v17, 5.0  ;;  %vm13435_vm3 = vcmp.le.f32.partialorder %v3777_v48, 0.7853982  ;;  %v4001_v34 = vshrl.u32 %v16263_v46, %v3998_v5 }
 0x3a6   : > { %v9729_v33 = vpop.eup %9728  ;;  %v3852_v45 = vor.u32 %v3851_v11, %v3850_v62  ;;  %v3855_v21 = vshll.u32 %v3854_v29, 23  ;;  %v4146_v8 = vadd.s32 %v4145_v28, %v4141_v10  ;;  %v4003_v57 = vshll.u32 %v16263_v46, %v13300_v1 }
 0x3a7   : > { %v9731_v9 = vpop.eup %9730  ;;  %v3979_v14 = vxor.u32 2147483648, %v9729_v33  ;;  %v4009_v55 = vshll.u32 %v16265_v3, %v13300_v1  ;;  %v4010_v6 = vshrl.u32 %v16231_v24, %v3998_v5  ;;  %v4004_v41 = vshrl.u32 %v16264_v20, %v3998_v5 }
 0x3a8   : > { %v3976_v37 = vxor.u32 2147483648, %v9731_v9  ;;  %v3856_v48 = vor.u32 4788187, %v3855_v21  ;;  %v3859_v61 = vcvt.s32.f32 %v3852_v45  ;;  %v4147_v43 = vadd.s32 536870912, %v4146_v8 }
 0x3a9   : > { %v3980_v36 = vsel %vm3978_vm1, %v3979_v14, %v9731_v9  ;;  %v4006_v25 = vshll.u32 %v16264_v20, %v13300_v1  ;;  %v4007_v38 = vshrl.u32 %v16265_v3, %v3998_v5  ;;  %v3999_v59 = vshrl.u32 %v16261_v13, %v3998_v5 }
 0x3aa   : > { %v3977_v46 = vsel %vm3975_vm0, %v9729_v33, %v3976_v37  ;;  %v3857_v4 = vand.u32 2147483647, %v3856_v48  ;;  %v13451_v2 = vshrl.u32 %v4147_v43, 30  ;;  %v4011_v19 = vor.u32 %v4010_v6, %v4009_v55  ;;  %v4806_v37 = vpop.permute.xlu0 %4805 }
 0x3ab   : > { %v3981_v18 = vsel %vm3974_vm14, %v3977_v46, %v3980_v36  ;;  %v4012_v32 = vshll.u32 %v16231_v24, %v13300_v1  ;;  %v4013_v60 = vshrl.u32 %v16232_v44, %v3998_v5  ;;  %v4002_v62 = vor.u32 %v4001_v34, %v4000_v0  ;;  %v4803_v0 = vpop.permute.xlu1 %4802 }
 0x3ac   : > { %v3982_v20 = vsel %vm3972_vm13, nan, %v3981_v18  ;;  %v3860_v7 = vmul.f32 %v3859_v61, %v3857_v4  ;;  %v4149_v3 = vshll.u32 %v13451_v2, 30  ;;  %v4005_v10 = vor.u32 %v4004_v41, %v4003_v57 }
 0x3ad   : > { %v4202_v47 = vadd.f32 1.0, %v3982_v20  ;;  %v4008_v23 = vor.u32 %v4007_v38, %v4006_v25  ;;  %vm4018_vm5 = vcmp.lt.s32.totalorder %v13407_v15, 4  ;;  %vm4015_vm9 = vcmp.lt.s32.totalorder %v13407_v15, 1 }
 0x3ae   : > { %v3861_v13 = vxor.u32 2147483648, %v3860_v7  ;;  %v4150_v54 = vsub.s32 %v4146_v8, %v4149_v3  ;;  %vm4017_vm10 = vcmp.lt.s32.totalorder %v13407_v15, 3  ;;  %v3991_v44 = vor.u32 8388608, %v13428_v35 }
 0x3af   : > { %v4218_v24 = vmul.f32 0.5, %v4202_v47  ;;  %v4014_v27 = vor.u32 %v4013_v60, %v4012_v32  ;;  %v4024_v1 = vsel %vm4018_vm5, %v4011_v19, 920167782  ;;  %vm4016_vm12 = vcmp.lt.s32.totalorder %v13407_v15, 2 }
 0x3b0   : > { %v3862_v5 = vsel %vm3779_vm7, %v3861_v13, %v3860_v7  ;;  %v4152_v11 = vsub.s32 0, %v4150_v54  ;;  %v4020_v29 = vsel %vm4018_vm5, %v4008_v23, 2102212464  ;;  %v4023_v33 = vsel %vm4015_vm9, %v4002_v62, %v4005_v10 }
 0x3b1   : > { %v4234_v28 = vsel %vm2522_vm2, %v4218_v24, 0.0  ;;  %v3865_v35 = vsel %vm13435_vm3, %v16360_v56, %v3862_v5  ;;  %v4025_v45 = vsel %vm4017_vm10, %v4008_v23, %v4024_v1  ;;  %vm4821_vm13 = vcmp.eq.s32.totalorder %v4803_v0, %v16321_v63  ;;  %v16377_v0 = vld [vmem:[#allocation47_spill] sm:$0xff] }
 0x3b2   : > { %4682 = vperm.xlu0 %9495, %v4234_v28   ;;  %9732 = vcosq.f32 %v3865_v35  ;;  %v8458_v21 = vmin.u32 %v4152_v11, %v4150_v54  ;;  %v4027_v17 = vsel %vm4015_vm9, %v4005_v10, %v4008_v23  ;;  %v4019_v8 = vsel %vm4015_vm9, %v3999_v59, %v4002_v62 }
 0x3b3   : > { %9734 = vsinq.f32 %v3865_v35  ;;  %v4021_v34 = vsel %vm4017_vm10, %v4005_v10, %v4020_v29  ;;  %v4028_v9 = vsel %vm4018_vm5, %v4014_v27, 1326507024  ;;  %v4026_v57 = vsel %vm4016_vm12, %v4023_v33, %v4025_v45 }
 0x3b4   : > { %v4154_v14 = vclz %v8458_v21  ;;  %v4029_v55 = vsel %vm4017_vm10, %v4011_v19, %v4028_v9  ;;  %v4031_v6 = vshll.u32 %v3991_v44, 8  ;;  %v3866_v48 = vsel %vm13435_vm3, 0, %v13423_v49 }
 0x3b5   : > { %v4030_v61 = vsel %vm4016_vm12, %v4027_v17, %v4029_v55  ;;  %vm4822_vm14 = vcmp.eq.s32.totalorder %v4806_v37, %v16321_v63  ;;  %v4022_v38 = vsel %vm4016_vm12, %v4019_v8, %v4021_v34  ;;  %v3870_v46 = vand.u32 3, %v3866_v48 }
 0x3b6   : > { %v8459_v43 = vadd.s32 4294967294, %v4154_v14  ;;  %v13500_v36 = vmul.u32.u64.low %v4031_v6, %v4030_v61  ;;  %v13501_v41 = vmul.u32.u64.high %v4031_v6, %v4030_v61, %v13500_v36  ;;  %vm13505_vm7 = vmpackc.low %vm4822_vm14, %vm4821_vm13  ;;  %v4142_v4 = vadd.s32 %v13396_v12, %v13394_v58 }
 0x3b7   : > { %v13511_v16 = vmul.u32.u64.low %v4031_v6, %v4026_v57  ;;  %v13512_v49 = vmul.u32.u64.high %v4031_v6, %v4026_v57, %v13511_v16  ;;  %v4038_v60 = vmul.u32 %v4031_v6, %v4022_v38  ;;  %vm3875_vm1 = vcmp.eq.s32.totalorder %v3870_v46, 2 }
 0x3b8   : > { %vm8460_vm15 = vcmp.lt.s32.totalorder %v8459_v43, 0  ;;  %vm3871_vm2 = vcmp.lt.s32.totalorder %v3870_v46, 2  ;;  %vm3872_vm3 = vcmp.eq.s32.totalorder %v3870_v46, 0  ;;  %vm3869_vm5 = vweird.f32 %v16360_v56 }
 0x3b9   : > { %v4157_v59 = vsel %vm8460_vm15, 0, %v8459_v43  ;;  %vm4040_vm0 = vc.u32 %v13501_v41, %v13511_v16  ;;  %v4041_v20 = vadd.s32 1, %v13512_v49  ;;  %vm2521_vm9 = vcmp.lt.f32.partialorder %v16377_v0, 5.0  ;;  %v2257_v43 = vpop.permute.xlu0 %2256 }
 0x3ba   : > { %v4158_v18 = vsub.s32 32, %v4157_v59  ;;  %v4159_v19 = vshll.u32 %v4150_v54, %v4157_v59  ;;  %v4162_v32 = vsub.s32 4294967266, %v4157_v59  ;;  %vm4088_vm10 = vcmp.lt.s32.totalorder %v12416_v26, 0 }
 0x3bb   : > { %v4042_v58 = vsel %vm4040_vm0, %v4041_v20, %v13512_v49  ;;  %vm13527_vm12 = vcmp.le.f32.partialorder %v4086_v30, 0.7853982  ;;  %v4172_v8 = vsub.s32 4, %v13451_v2  ;;  %v4039_v38 = vadd.s32 %v13511_v16, %v13501_v41 }
 0x3bc   : > { %v9733_v7 = vpop.eup %9732  ;;  %v4160_v15 = vshrl.u32 %v4142_v4, %v4158_v18  ;;  %v4163_v3 = vadd.s32 127, %v4162_v32  ;;  %v4043_v13 = vadd.s32 %v4042_v58, %v4038_v60 }
 0x3bd   : > { %v9735_v62 = vpop.eup %9734  ;;  %v3876_v47 = vxor.u32 2147483648, %v9733_v7  ;;  %v4173_v6 = vsel %vm4088_vm10, %v4172_v8, %v13451_v2  ;;  %v2267_v20 = vpop.permute.xlu0 %2266 }
 0x3be   : > { %v3873_v12 = vxor.u32 2147483648, %v9735_v62  ;;  %v4161_v10 = vor.u32 %v4160_v15, %v4159_v19  ;;  %v4164_v23 = vshll.u32 %v4163_v3, 23  ;;  %v4044_v1 = vadd.s32 536870912, %v4043_v13 }
 0x3bf   : > { %v3877_v54 = vsel %vm3875_vm1, %v3876_v47, %v9735_v62  ;;  %v4175_v48 = vsel %vm13527_vm12, 0, %v4173_v6  ;;  %vm4178_vm1 = vweird.f32 %v12416_v26  ;;  %v9843_v6 = vld [vmem:[%s16182_s6 + $0x38] sm:$0xff] }
 0x3c0   : > { %v3874_v24 = vsel %vm3872_vm3, %v9733_v7, %v3873_v12  ;;  %v4165_v44 = vor.u32 4788187, %v4164_v23  ;;  %v4168_v27 = vcvt.s32.f32 %v4161_v10  ;;  %v13520_v28 = vshrl.u32 %v4044_v1, 30 }
 0x3c1   : > { %v3878_v5 = vsel %vm3871_vm2, %v3874_v24, %v3877_v54  ;;  %v4179_v36 = vand.u32 3, %v4175_v48  ;;  %v16380_v54 = vld [vmem:[#allocation57_spill] sm:$0xff]  ;;  %vm3985_vm3 = vcmp.lt.s32.totalorder %v16371_v51, 0 }
 0x3c2   : > { %v3879_v11 = vsel %vm3869_vm5, nan, %v3878_v5  ;;  %v4166_v29 = vand.u32 2147483647, %v4165_v44  ;;  %v4046_v45 = vshll.u32 %v13520_v28, 30  ;;  %vm2524_vm2 = vcmp.lt.f32.partialorder %v16380_v54, 5.0  ;;  %v9848_v54 = vld [vmem:[%s16182_s6 + $0x10] sm:$0xff] }
 0x3c3   : > { %v4201_v35 = vadd.f32 1.0, %v3879_v11  ;;  %vm4184_vm14 = vcmp.eq.s32.totalorder %v4179_v36, 2  ;;  %vm4181_vm15 = vcmp.eq.s32.totalorder %v4179_v36, 0  ;;  %vm4180_vm0 = vcmp.lt.s32.totalorder %v4179_v36, 2 }
 0x3c4   : > { %v4169_v33 = vmul.f32 %v4168_v27, %v4166_v29  ;;  %v4047_v34 = vsub.s32 %v4043_v13, %v4046_v45  ;;  %v2277_v13 = vpop.permute.xlu0 %2276  ;;  %vm13544_vm5 = vcmp.le.f32.partialorder %v3983_v50, 0.7853982  ;;  %v4069_v1 = vsub.s32 4, %v13520_v28  ;;  %v2252_v29 = vpop.permute.xlu1 %2251 }
 0x3c5   : > { %v4217_v21 = vmul.f32 0.5, %v4201_v35  ;;  %v9840_v35 = vld [vmem:[%s16182_s6 + $0x8] sm:$0xff] }
 0x3c6   : > { %v4170_v17 = vxor.u32 2147483648, %v4169_v33  ;;  %v4049_v57 = vsub.s32 0, %v4047_v34  ;;  %v13552_v0 = vmul.f32 %v9840_v35, %v2257_v43  ;;  %v4070_v45 = vsel %vm3985_vm3, %v4069_v1, %v13520_v28  ;;  %v9842_v28 = vld [vmem:[%s16182_s6 + $0x28] sm:$0xff]  ;;  %v8919_v35 = vpop.f32.mrb[16].mxu0 }
 0x3c7   : > { %v4233_v9 = vsel %vm2521_vm9, %v4217_v21, 0.0  ;;  %v9841_v21 = vld [vmem:[%s16182_s6 + $0x18] sm:$0xff] }
 0x3c8   : > { %4677 = vperm.xlu1 %9496, %v4233_v9   ;;  %v4171_v14 = vsel %vm4088_vm10, %v4170_v17, %v4169_v33  ;;  %v8454_v37 = vmin.u32 %v4049_v57, %v4047_v34  ;;  %v2287_v33 = vpop.permute.xlu0 %2286  ;;  %v13562_v56 = vmul.f32 %v9841_v21, %v2267_v20  ;;  %v4072_v17 = vsel %vm13544_vm5, 0, %v4070_v45  ;;  %v2262_v8 = vpop.permute.xlu1 %2261 }
 0x3c9   : > { %v4174_v55 = vsel %vm13527_vm12, %v12416_v26, %v4171_v14  ;;  %v4076_v9 = vand.u32 3, %v4072_v17  ;;  %v13570_v14 = vmul.f32 %v9842_v28, %v2277_v13  ;;  %v1481_v13 = vpop.f32.mrb[0].mxu1  ;;  %v1642_v17 = vpop.f32.mrb[17].mxu0 }
 0x3ca   : > { %9736 = vcosq.f32 %v4174_v55  ;;  %v4051_v30 = vclz %v8454_v37  ;;  %v13576_v37 = vmul.f32 %v9843_v6, %v2287_v33 }
 0x3cb   : > { %9738 = vsinq.f32 %v4174_v55  ;;  %vm4081_vm9 = vcmp.eq.s32.totalorder %v4076_v9, 2  ;;  %vm4078_vm10 = vcmp.eq.s32.totalorder %v4076_v9, 0  ;;  %vm4077_vm12 = vcmp.lt.s32.totalorder %v4076_v9, 2 }
 0x3cc   : > { %v8455_v61 = vadd.s32 4294967294, %v4051_v30  ;;  %v2272_v55 = vpop.permute.xlu1 %2271 }
 0x3ce   : > { %vm8456_vm13 = vcmp.lt.s32.totalorder %v8455_v61, 0 }
 0x3cf   : > { %v4054_v49 = vsel %vm8456_vm13, 0, %v8455_v61  ;;  %vm4075_vm13 = vweird.f32 %v16371_v51 }
 0x3d0   : > { %v4055_v46 = vsub.s32 32, %v4054_v49  ;;  %v4056_v4 = vshll.u32 %v4047_v34, %v4054_v49  ;;  %v4059_v59 = vsub.s32 4294967266, %v4054_v49  ;;  %v2297_v34 = vpop.permute.xlu0 %2296  ;;  %v9844_v49 = vld [vmem:[%s16182_s6 + $0x48] sm:$0xff] }
 0x3d2   : > { %v4057_v2 = vshrl.u32 %v4039_v38, %v4055_v46  ;;  %v4060_v19 = vadd.s32 127, %v4059_v59  ;;  %v13583_v46 = vmul.f32 %v9844_v49, %v2297_v34  ;;  %v16061_v49 = vmov 2  }
 0x3d4   : > { %v9737_v18 = vpop.eup %9736  ;;  %v4058_v15 = vor.u32 %v4057_v2, %v4056_v4  ;;  %v4061_v3 = vshll.u32 %v4060_v19, 23  ;;  %v2307_v61 = vpop.permute.xlu0 %2306 }
 0x3d5   : > { %v9739_v32 = vpop.eup %9738  ;;  %v4185_v60 = vxor.u32 2147483648, %v9737_v18 }
 0x3d6   : > { %v4182_v7 = vxor.u32 2147483648, %v9739_v32  ;;  %v4062_v62 = vor.u32 4788187, %v4061_v3  ;;  %v4065_v47 = vcvt.s32.f32 %v4058_v15 }
 0x3d7   : > { %v4186_v41 = vsel %vm4184_vm14, %v4185_v60, %v9739_v32  ;;  %v16383_v32 = vld [vmem:[#allocation54_spill] sm:$0xff] }
 0x3d8   : > { %v4183_v16 = vsel %vm4181_vm15, %v9737_v18, %v4182_v7  ;;  %v4063_v10 = vand.u32 2147483647, %v4062_v62  ;;  %v2282_v18 = vpop.permute.xlu1 %2281  ;;  %v2317_v19 = vpop.permute.xlu0 %2316  ;;  %vm2523_vm14 = vcmp.lt.f32.partialorder %v16383_v32, 5.0  ;;  %v16384_v7 = vlaneseq }
 0x3d9   : > { %v4187_v58 = vsel %vm4180_vm0, %v4183_v16, %v4186_v41  ;;  %v9846_v41 = vld [vmem:[%s16182_s6] sm:$0xff] }
 0x3da   : > { %v4188_v12 = vsel %vm4178_vm1, nan, %v4187_v58  ;;  %v4066_v24 = vmul.f32 %v4065_v47, %v4063_v10  ;;  %v13593_v15 = vshrl.u32 %v16384_v7, 7  ;;  %v13598_v16 = vmul.f32 %v9846_v41, %v2252_v29  ;;  %v9847_v47 = vld [vmem:[%s16182_s6 + $0x68] sm:$0xff]  ;;  %v1398_v10 = vld [vmem:[%s10660_s22] sm:$0x7]  ;;  %v1483_v29 = vpop.f32.mrb[1].mxu1 }
 0x3db   : > { %v4204_v23 = vadd.f32 1.0, %v4188_v12  ;;  %v13604_v58 = vmul.f32 %v9847_v47, %v2317_v19 }
 0x3dc   : > { %v4067_v26 = vxor.u32 2147483648, %v4066_v24  ;;  %16385 = vst [vmem:[#allocation62_spill] sm:$0xff] %v13593_v15  ;;  %v2292_v62 = vpop.permute.xlu1 %2291  ;;  %v2327_v12 = vpop.permute.xlu0 %2326 }
 0x3dd   : > { %v4220_v44 = vmul.f32 0.5, %v4204_v23  ;;  %v13608_v23 = vsub.s32 0, %v13593_v15 }
 0x3de   : > { %v4068_v11 = vsel %vm3985_vm3, %v4067_v26, %v4066_v24  ;;  %v13614_v24 = vmul.f32 %v9848_v54, %v2262_v8  ;;  %v1487_v8 = vpop.f32.mrb[2].mxu1  ;;  %vm4810_vm3 = vcmp.eq.s32.totalorder %v12604_v42, %v16321_v63 }
 0x3df   : > { %v4236_v5 = vsel %vm2524_vm2, %v4220_v44, 0.0  ;;  %v4071_v50 = vsel %vm13544_vm5, %v16371_v51, %v4068_v11  ;;  %v9845_v51 = vld [vmem:[%s16182_s6 + $0x58] sm:$0xff]  ;;  %16386 = vst [vmem:[#allocation32_spill] sm:$0xff] %v13608_v23  ;;  %v13623_v26 = vrot.slane %v1398_v10, %v13608_v23  ;;  %v13629_v11 = vsub.s32 2, %v13593_v15 }
 0x3e0   : > { %4692 = vperm.xlu0 %9495, %v4236_v5   ;;  %9740 = vcosq.f32 %v4071_v50  ;;  %v13590_v60 = vmul.f32 %v9845_v51, %v2307_v61  ;;  %v9849_v44 = vld [vmem:[%s16182_s6 + $0x78] sm:$0xff]  ;;  %v2302_v1 = vpop.permute.xlu1 %2301  ;;  %v13626_v5 = vsub.s32 1, %v13593_v15  ;;  %v1489_v61 = vpop.f32.mrb[3].mxu1 }
 0x3e1   : > { %9742 = vsinq.f32 %v4071_v50  ;;  %v13620_v27 = vmul.f32 %v9849_v44, %v2327_v12  ;;  %16388 = vst [vmem:[#allocation55_spill] sm:$0xff] %v13629_v11  ;;  %v9850_v50 = vld [vmem:[%s16182_s6 + $0x20] sm:$0xff]  ;;  %v13642_v21 = vrot.slane %v1398_v10, %v13629_v11  ;;  %v1482_v34 = vadd.f32 %v1481_v13, %v13623_v26  ;;  %v1727_v12 = vld [vmem:[#allocation18 + $0x30] sm:$0xff] }
 0x3e2   : > { %16387 = vst [vmem:[#allocation38_spill] sm:$0xff] %v13626_v5  ;;  %v13635_v33 = vmul.f32 %v9850_v50, %v2272_v55  ;;  %v13639_v45 = vrot.slane %v1398_v10, %v13626_v5  ;;  %v1488_v9 = vadd.f32 %v1487_v8, %v13623_v26  ;;  %v9851_v55 = vld [vmem:[%s16182_s6 + $0x30] sm:$0xff]  ;;  %v9852_v13 = vld [vmem:[%s16182_s6 + $0x40] sm:$0xff] }
 0x3e3   : > { %v1648_v28 = vadd.f32 %v8919_v35, %v13642_v21  ;;  %v13651_v6 = vmul.f32 %v9851_v55, %v2282_v18  ;;  %v1493_v18 = vpop.f32.mrb[4].mxu1  ;;  %v1730_v10 = vld [vmem:[#allocation18 + $0x48] sm:$0xff]  ;;  %v13664_v54 = vmul.f32 %v9852_v13, %v2292_v62 }
 0x3e4   : > { %5305 = vperm.xlu0 %9495, %v13552_v0   ;;  %v1495_v41 = vpop.f32.mrb[5].mxu1  ;;  %v1778_v35 = vpack.c.bf16 %v1730_v10, %v1727_v12  ;;  %v9853_v62 = vld [vmem:[%s16182_s6 + $0x50] sm:$0xff]  ;;  %v9854_v12 = vld [vmem:[%s16182_s6 + $0x60] sm:$0xff] }
 0x3e5   : > { %v1499_v50 = vpop.f32.mrb[6].mxu1 }
 0x3e8   : > { %5315 = vperm.xlu0 %9495, %v13562_v56  }
 0x3ea   : > { %v9741_v57 = vpop.eup %9740 }
 0x3eb   : > { %v9743_v30 = vpop.eup %9742  ;;  %v4082_v48 = vxor.u32 2147483648, %v9741_v57 }
 0x3ec   : > { %5325 = vperm.xlu0 %9495, %v13570_v14   ;;  %v4079_v43 = vxor.u32 2147483648, %v9743_v30 }
 0x3ed   : > { %v4083_v36 = vsel %vm4081_vm9, %v4082_v48, %v9743_v30  ;;  %v1484_v30 = vadd.f32 %v1483_v29, %v13639_v45  ;;  %v1769_v48 = vpack.c.bf16 %v1488_v9, %v1482_v34  ;;  %v1500_v34 = vadd.f32 %v1499_v50, %v13623_v26 }
 0x3ee   : > { %v4080_v38 = vsel %vm4078_vm10, %v9741_v57, %v4079_v43  ;;  %v1643_v57 = vadd.f32 %v1642_v17, %v13642_v21  ;;  %v8922_v43 = vpop.f32.mrb[18].mxu0  ;;  %v1494_v17 = vadd.f32 %v1493_v18, %v13623_v26  ;;  %v13674_v9 = vmul.f32 %v9853_v62, %v2302_v1 }
 0x3ef   : > { %v4084_v4 = vsel %vm4077_vm12, %v4080_v38, %v4083_v36  ;;  %v1721_v36 = vld [vmem:[#allocation18] sm:$0xff]  ;;  %v1724_v38 = vld [vmem:[#allocation18 + $0x18] sm:$0xff]  ;;  %v1652_v19 = vpop.f32.mrb[19].mxu0  ;;  %v16059_v1 = vmov 1   ;;  %vm4812_vm10 = vcmp.eq.s32.totalorder %v12631_v22, %v16321_v63 }
 0x3f0   : > { %5335 = vperm.xlu0 %9495, %v13576_v37   ;;  %v4085_v59 = vsel %vm4075_vm13, nan, %v4084_v4  ;;  %v1771_v4 = vpack.c.bf16 %v1648_v28, %v1643_v57  ;;  %v1653_v32 = vadd.f32 %v1652_v19, %v13642_v21  ;;  %v1772_v51 = vpack.c.bf16 %v1724_v38, %v1721_v36  ;;  %v8925_v47 = vpop.f32.mrb[20].mxu0  ;;  %v1736_v36 = vld [vmem:[#allocation18 + $0x78] sm:$0xff] }
 0x3f1   : > { %v4203_v2 = vadd.f32 1.0, %v4085_v59  ;;  %v1490_v59 = vadd.f32 %v1489_v61, %v13639_v45  ;;  %v1668_v44 = vadd.f32 %v8925_v47, %v13642_v21  ;;  %v1662_v29 = vpop.f32.mrb[21].mxu0  ;;  %v1496_v28 = vadd.f32 %v1495_v41, %v13639_v45  ;;  %v1739_v41 = vld [vmem:[#allocation18 + $0x90] sm:$0xff]  ;;  %v1742_v47 = vld [vmem:[#allocation18 + $0xa8] sm:$0xff] }
 0x3f2   : > { %5024 = vmatprep.subr.bf16.mxu0 %v1772_v51  ;;  %v1663_v8 = vadd.f32 %v1662_v29, %v13642_v21  ;;  %v1775_v55 = vpack.c.bf16 %v1500_v34, %v1494_v17  ;;  %v8928_v61 = vpop.f32.mrb[22].mxu0 }
 0x3f3   : > { %v4219_v20 = vmul.f32 0.5, %v4203_v2  ;;  %v1658_v2 = vadd.f32 %v8922_v43, %v13642_v21  ;;  %v1770_v7 = vpack.c.bf16 %v1490_v59, %v1484_v30  ;;  %5025 = vmatpush1.bf16.msra.mxu0 %v1771_v4  ;;  %v1501_v30 = vpop.f32.mrb[7].mxu1  ;;  %v1733_v43 = vld [vmem:[#allocation18 + $0x60] sm:$0xff]  ;;  %v1672_v4 = vpop.f32.mrb[23].mxu0 }
 0x3f4   : > { %5345 = vperm.xlu0 %9495, %v13583_v46   ;;  %5026 = vmatprep.subr.bf16.mxu0 %v1778_v35  ;;  %v1783_v57 = vpack.c.bf16 %v1668_v44, %v1663_v8  ;;  %v1502_v38 = vadd.f32 %v1501_v30, %v13639_v45  ;;  %v1784_v59 = vpack.c.bf16 %v1736_v36, %v1733_v43  ;;  %v9855_v8 = vld [vmem:[%s16182_s6 + $0x70] sm:$0xff]  ;;  %v1748_v43 = vld [vmem:[#allocation18 + $0xd8] sm:$0xff] }
 0x3f5   : > { %v4235_v3 = vsel %vm2523_vm14, %v4219_v20, 0.0  ;;  %v2312_v20 = vpop.permute.xlu1 %2311  ;;  %4911 = vmatprep.subr.bf16.mxu1 %v1770_v7  ;;  %v1673_v19 = vadd.f32 %v1672_v4, %v13642_v21 }
 0x3f6   : > { %4687 = vperm.xlu1 %9496, %v4235_v3   ;;  %v1777_v3 = vpack.c.bf16 %v1658_v2, %v1653_v32  ;;  %4912 = vmatpush1.bf16.msra.mxu1 %v1769_v48  ;;  %v1678_v48 = vadd.f32 %v8928_v61, %v13642_v21  ;;  %v1505_v2 = vpop.f32.mrb[8].mxu1  ;;  %v1776_v32 = vpack.c.bf16 %v1502_v38, %v1496_v28  ;;  %v1745_v61 = vld [vmem:[#allocation18 + $0xc0] sm:$0xff] }
 0x3f7   : > { %v1507_v7 = vpop.f32.mrb[9].mxu1  ;;  %v13687_v10 = vmul.f32 %v9854_v12, %v2312_v20  ;;  %v1506_v35 = vadd.f32 %v1505_v2, %v13623_v26  ;;  %v1796_v4 = vpack.c.bf16 %v1748_v43, %v1745_v61  ;;  %v1766_v61 = vld [vmem:[#allocation18 + $0x168] sm:$0xff] }
 0x3f8   : > { %5355 = vperm.xlu0 %9495, %v13590_v60   ;;  %5027 = vmatpush1.bf16.msra.mxu0 %v1777_v3  ;;  %v1789_v51 = vpack.c.bf16 %v1678_v48, %v1673_v19  ;;  %v8931_v3 = vpop.f32.mrb[24].mxu0  ;;  %v1511_v29 = vpop.f32.mrb[10].mxu1  ;;  %v1508_v20 = vadd.f32 %v1507_v7, %v13639_v45  ;;  %v1751_v7 = vld [vmem:[#allocation18 + $0xf0] sm:$0xff] }
 0x3f9   : > { %v2322_v18 = vpop.permute.xlu1 %2321  ;;  %5028 = vmatprep.subr.bf16.mxu0 %v1784_v59  ;;  %v1688_v13 = vadd.f32 %v8931_v3, %v13642_v21  ;;  %v1682_v44 = vpop.f32.mrb[25].mxu0  ;;  %4913 = vmatprep.subr.bf16.mxu1 %v1776_v32  ;;  %v1512_v17 = vadd.f32 %v1511_v29, %v13623_v26  ;;  %v1754_v3 = vld [vmem:[#allocation18 + $0x108] sm:$0xff] }
 0x3fa   : > { %5300 = vperm.xlu1 %9496, %v13598_v16   ;;  %v1683_v50 = vadd.f32 %v1682_v44, %v13642_v21  ;;  %v13696_v34 = vmul.f32 %v9855_v8, %v2322_v18  ;;  %4914 = vmatpush1.bf16.msra.mxu1 %v1775_v55  ;;  %v8934_v30 = vpop.f32.mrb[26].mxu0  ;;  %v1802_v12 = vpack.c.bf16 %v1754_v3, %v1751_v7  ;;  %v1760_v44 = vld [vmem:[#allocation18 + $0x138] sm:$0xff] }
 0x3fb   : > { %v1781_v28 = vpack.c.bf16 %v1512_v17, %v1506_v35  ;;  %v1698_v38 = vadd.f32 %v8934_v30, %v13642_v21  ;;  %v1692_v48 = vpop.f32.mrb[27].mxu0  ;;  %v1763_v30 = vld [vmem:[#allocation18 + $0x150] sm:$0xff] }
 0x3fc   : > { %5365 = vperm.xlu0 %9495, %v13604_v58   ;;  %5029 = vmatpush1.bf16.msra.mxu0 %v1783_v57  ;;  %v1795_v62 = vpack.c.bf16 %v1688_v13, %v1683_v50  ;;  %v1513_v57 = vpop.f32.mrb[11].mxu1  ;;  %v1693_v2 = vadd.f32 %v1692_v48, %v13642_v21  ;;  %v8937_v32 = vpop.f32.mrb[28].mxu0  ;;  %v1814_v7 = vpack.c.bf16 %v1766_v61, %v1763_v30 }
 0x3fd   : > { %v1514_v36 = vadd.f32 %v1513_v57, %v13639_v45  ;;  %v1517_v59 = vpop.f32.mrb[12].mxu1  ;;  %v13996_v31 = vpop.permute.xlu1 %4617 }
 0x3fe   : > { %5310 = vperm.xlu1 %9496, %v13614_v24   ;;  %v1801_v55 = vpack.c.bf16 %v1698_v38, %v1693_v2  ;;  %v1519_v18 = vpop.f32.mrb[13].mxu1 }
 0x3ff   : > { %v1782_v19 = vpack.c.bf16 %v1514_v36, %v1508_v20  ;;  %v1523_v13 = vpop.f32.mrb[14].mxu1  ;;  %v1520_v17 = vadd.f32 %v1519_v18, %v13639_v45 }
 0x400   : > { %5375 = vperm.xlu0 %9495, %v13620_v27   ;;  %v1524_v35 = vadd.f32 %v1523_v13, %v13623_v26  ;;  %v1525_v50 = vpop.f32.mrb[15].mxu1 }
 0x401   : > { %4915 = vmatprep.subr.bf16.mxu1 %v1782_v19  ;;  %v1526_v8 = vadd.f32 %v1525_v50, %v13639_v45  ;;  %v1529_v57 = vpop.f32.mrb[16].mxu1  ;;  %v14002_v52 = vpop.permute.xlu1 %4627 }
 0x402   : > { %5320 = vperm.xlu1 %9496, %v13635_v33   ;;  %4916 = vmatpush1.bf16.msra.mxu1 %v1781_v28  ;;  %v1530_v18 = vadd.f32 %v1529_v57, %v13623_v26 }
 0x403   : > { %v1788_v28 = vpack.c.bf16 %v1526_v8, %v1520_v17 }
 0x404   : > { %9498 = vset.pattern.permute.xlu0 %v16061_v49 }
 0x405   : > { %5543 = vperm.xlu0 %9498, %v13552_v0   ;;  %4917 = vmatprep.subr.bf16.mxu1 %v1788_v28  ;;  %v14004_v53 = vpop.permute.xlu1 %4637 }
 0x406   : > { %5330 = vperm.xlu1 %9496, %v13651_v6  }
 0x409   : > { %5547 = vperm.xlu0 %9498, %v13614_v24  }
 0x40a   : > { %5340 = vperm.xlu1 %9496, %v13664_v54  }
 0x40d   : > { %9501 = vset.pattern.permute.xlu0 %v16059_v1 }
 0x40e   : > { %5435 = vperm.xlu0 %9501, %v13614_v24   ;;  %5350 = vperm.xlu1 %9496, %v13674_v9   ;;  %v1790_v24 = vpack.c.bf16 %v1742_v47, %v1739_v41  ;;  %v1757_v41 = vld [vmem:[#allocation18 + $0x120] sm:$0xff]  ;;  %v1702_v47 = vpop.f32.mrb[29].mxu0 }
 0x40f   : > { %v1703_v29 = vadd.f32 %v1702_v47, %v13642_v21  ;;  %v8940_v20 = vpop.f32.mrb[30].mxu0 }
 0x410   : > { %5030 = vmatprep.subr.bf16.mxu0 %v1790_v24  ;;  %v1518_v24 = vadd.f32 %v1517_v59, %v13623_v26  ;;  %v1718_v38 = vadd.f32 %v8940_v20, %v13642_v21  ;;  %v1712_v48 = vpop.f32.mrb[31].mxu0 }
 0x411   : > { %5031 = vmatpush1.bf16.msra.mxu0 %v1789_v51  ;;  %v1708_v51 = vadd.f32 %v8937_v32, %v13642_v21  ;;  %v1713_v59 = vadd.f32 %v1712_v48, %v13642_v21  ;;  %v13718_v2 = vpop.f32.mrb[32].mxu0  ;;  %v16389_v48 = vld [vmem:[#allocation37_spill] sm:$0xff] }
 0x412   : > { %9504 = vset.pattern.permute.xlu0 %v16061_v49  ;;  %5360 = vperm.xlu1 %9496, %v13687_v10   ;;  %v1787_v36 = vpack.c.bf16 %v1524_v35, %v1518_v24  ;;  %v13722_v32 = vpop.f32.mrb[33].mxu0  ;;  %vm4807_vm15 = vcmp.eq.s32.totalorder %v16389_v48, %v16321_v63 }
 0x413   : > { %5559 = vperm.xlu0 %9504, %v13570_v14   ;;  %5032 = vmatprep.subr.bf16.mxu0 %v1796_v4  ;;  %v1807_v43 = vpack.c.bf16 %v1708_v51, %v1703_v29  ;;  %v1531_v4 = vpop.f32.mrb[17].mxu1  ;;  %v1813_v51 = vpack.c.bf16 %v1718_v38, %v1713_v59  ;;  %v13727_v47 = vpop.f32.mrb[34].mxu0 }
 0x414   : > { %v1535_v19 = vpop.f32.mrb[18].mxu1  ;;  %4918 = vmatpush1.bf16.msra.mxu1 %v1787_v36  ;;  %v13729_v13 = vpop.f32.mrb[35].mxu0 }
 0x415   : > { %5033 = vmatpush1.bf16.msra.mxu0 %v1795_v62  ;;  %v1808_v62 = vpack.c.bf16 %v1760_v44, %v1757_v41  ;;  %v1536_v3 = vadd.f32 %v1535_v19, %v13623_v26  ;;  %v1537_v41 = vpop.f32.mrb[19].mxu1  ;;  %v13732_v29 = vpop.f32.mrb[36].mxu0 }
 0x416   : > { %5370 = vperm.xlu1 %9496, %v13696_v34   ;;  %5034 = vmatprep.subr.bf16.mxu0 %v1802_v12  ;;  %v1538_v21 = vadd.f32 %v1537_v41, %v13639_v45  ;;  %v1541_v12 = vpop.f32.mrb[20].mxu1  ;;  %v13736_v17 = vpop.f32.mrb[37].mxu0 }
 0x417   : > { %5563 = vperm.xlu0 %9504, %v13651_v6   ;;  %v1543_v44 = vpop.f32.mrb[21].mxu1  ;;  %v1542_v50 = vadd.f32 %v1541_v12, %v13623_v26  ;;  %v13742_v30 = vpop.f32.mrb[38].mxu0 }
 0x418   : > { %v1547_v35 = vpop.f32.mrb[22].mxu1 }
 0x419   : > { %5035 = vmatpush1.bf16.msra.mxu0 %v1801_v55  ;;  %v1793_v55 = vpack.c.bf16 %v1536_v3, %v1530_v18  ;;  %v1548_v8 = vadd.f32 %v1547_v35, %v13623_v26  ;;  %v1549_v20 = vpop.f32.mrb[23].mxu1 }
 0x41a   : > { %9497 = vset.pattern.permute.xlu1 %v16061_v49  ;;  %5036 = vmatprep.subr.bf16.mxu0 %v1808_v62  ;;  %v1544_v62 = vadd.f32 %v1543_v44, %v13639_v45  ;;  %v1550_v57 = vadd.f32 %v1549_v20, %v13639_v45  ;;  %v1553_v61 = vpop.f32.mrb[24].mxu1  ;;  %v16065_v44 = vmov 1.0|1.0  }
 0x41b   : > { %9507 = vset.pattern.permute.xlu0 %v16059_v1  ;;  %5539 = vperm.xlu1 %9497, %v13598_v16   ;;  %v1799_v36 = vpack.c.bf16 %v1548_v8, %v1542_v50  ;;  %v1555_v38 = vpop.f32.mrb[25].mxu1  ;;  %v1554_v19 = vadd.f32 %v1553_v61, %v13623_v26 }
 0x41c   : > { %5451 = vperm.xlu0 %9507, %v13651_v6   ;;  %v1532_v6 = vadd.f32 %v1531_v4, %v13639_v45  ;;  %v16390_v4 = vld [vmem:[#allocation56_spill] sm:$0xff]  ;;  %v1559_v59 = vpop.f32.mrb[26].mxu1  ;;  %v1556_v41 = vadd.f32 %v1555_v38, %v13639_v45 }
 0x41d   : > { %5037 = vmatpush1.bf16.msra.mxu0 %v1807_v43  ;;  %v13744_v43 = vpop.f32.mrb[39].mxu0  ;;  %vm4808_vm0 = vcmp.eq.s32.totalorder %v16390_v4, %v16321_v63  ;;  %v1561_v3 = vpop.f32.mrb[27].mxu1 }
 0x41e   : > { %v1794_v24 = vpack.c.bf16 %v1538_v21, %v1532_v6  ;;  %5038 = vmatprep.subr.bf16.mxu0 %v1814_v7  ;;  %v13751_v28 = vpop.f32.mrb[40].mxu0  ;;  %v1560_v7 = vadd.f32 %v1559_v59, %v13623_v26  ;;  %v1562_v6 = vadd.f32 %v1561_v3, %v13639_v45  ;;  %v1565_v12 = vpop.f32.mrb[28].mxu1  ;;  %vm13769_vm1 = vmpackc.low %vm4808_vm0, %vm4807_vm15 }
 0x41f   : > { %9499 = vset.pattern.permute.xlu1 %v16059_v1  ;;  %v13755_v18 = vpop.f32.mrb[41].mxu0  ;;  %v1567_v35 = vpop.f32.mrb[29].mxu1 }
 0x420   : > { %5467 = vperm.xlu0 %9507, %v13674_v9   ;;  %5427 = vperm.xlu1 %9499, %v13598_v16   ;;  %v1800_v16 = vpack.c.bf16 %v1550_v57, %v1544_v62  ;;  %v13761_v21 = vpop.f32.mrb[42].mxu0  ;;  %v1571_v20 = vpop.f32.mrb[30].mxu1  ;;  %v16393_v62 = vld [vmem:[#allocation39_spill] sm:$0xff]  ;;  %v1568_v42 = vadd.f32 %v1567_v35, %v13639_v45 }
 0x421   : > { %4919 = vmatprep.subr.bf16.mxu1 %v1794_v24  ;;  %5039 = vmatpush1.bf16.msra.mxu0 %v1813_v51  ;;  %v1806_v24 = vpack.c.bf16 %v1562_v6, %v1556_v41  ;;  %vm4809_vm2 = vcmp.eq.s32.totalorder %v16393_v62, %v16321_v63  ;;  %v1572_v57 = vadd.f32 %v1571_v20, %v13623_v26  ;;  %v1573_v38 = vpop.f32.mrb[31].mxu1  ;;  %v1726_v35 = vld [vmem:[#allocation18 + $0x28] sm:$0xff] }
 0x422   : > { %4920 = vmatpush1.bf16.msra.mxu1 %v1793_v55  ;;  %v1805_v55 = vpack.c.bf16 %v1560_v7, %v1554_v19  ;;  %vm13793_vm5 = vmpackc.low %vm4810_vm3, %vm4809_vm2  ;;  %v16396_v19 = vld [vmem:[#allocation63_spill] sm:$0xff] }
 0x423   : > { %4921 = vmatprep.subr.bf16.mxu1 %v1800_v16  ;;  %v13808_v16 = vpop.f32.mrb[32].mxu1  ;;  %vm4811_vm9 = vcmp.eq.s32.totalorder %v16396_v19, %v16321_v63  ;;  %v1722_v20 = vld [vmem:[#allocation18 + $0x8] sm:$0xff]  ;;  %v1729_v19 = vld [vmem:[#allocation18 + $0x40] sm:$0xff]  ;;  %v14014_v63 = vpop.permute.xlu0 %4622 }
 0x424   : > { %9512 = vset.pattern.permute.xlu0 %v16061_v49  ;;  %5431 = vperm.xlu1 %9499, %v13552_v0   ;;  %v13773_v0 = vpop.f32.mrb[43].mxu0  ;;  %vm13828_vm12 = vmpackc.low %vm4812_vm10, %vm4811_vm9 }
 0x425   : > { %5575 = vperm.xlu0 %9512, %v13583_v46   ;;  %8526 = vmatmul.mubr.msk.bf16.vlgmr.msra.gmra.mrb[64].mxu0 %vm13769_vm1, %v16065_v44  ;;  %v13781_v50 = vpop.f32.mrb[44].mxu0 }
 0x426   : > { %4922 = vmatpush1.bf16.msra.mxu1 %v1799_v36  ;;  %5066 = vmatprep.mubr.bf16.mxu0 %v16343_v39  ;;  %v13784_v8 = vpop.f32.mrb[45].mxu0 }
 0x427   : > { %4923 = vmatprep.subr.bf16.mxu1 %v1806_v24  ;;  %v13798_v48 = vpop.f32.mrb[46].mxu0  ;;  %v1723_v24 = vld [vmem:[#allocation18 + $0x10] sm:$0xff] }
 0x428   : > { %9500 = vset.pattern.permute.xlu1 %v16061_v49  ;;  %v13806_v4 = vpop.f32.mrb[47].mxu0  ;;  %v1774_v62 = vpack.c.bf16 %v1726_v35, %v1723_v24  ;;  %v1732_v24 = vld [vmem:[#allocation18 + $0x58] sm:$0xff] }
 0x429   : > { %5579 = vperm.xlu0 %9512, %v13674_v9   ;;  %5551 = vperm.xlu1 %9500, %v13562_v56   ;;  %v1566_v9 = vadd.f32 %v1565_v12, %v13623_v26  ;;  %v1574_v26 = vadd.f32 %v1573_v38, %v13639_v45  ;;  %v13819_v45 = vpop.f32.mrb[33].mxu1  ;;  %v1728_v35 = vld [vmem:[#allocation18 + $0x38] sm:$0xff] }
 0x42a   : > { %4924 = vmatpush1.bf16.msra.mxu1 %v1805_v55  ;;  %v13825_v3 = vpop.f32.mrb[34].mxu1 }
 0x42b   : > { %v1811_v61 = vpack.c.bf16 %v1572_v57, %v1566_v9  ;;  %v1812_v59 = vpack.c.bf16 %v1574_v26, %v1568_v42  ;;  %v13839_v41 = vpop.f32.mrb[35].mxu1  ;;  %v1725_v57 = vld [vmem:[#allocation18 + $0x20] sm:$0xff] }
 0x42c   : > { %v13847_v6 = vpop.f32.mrb[36].mxu1 }
 0x42d   : > { %5591 = vperm.xlu0 %9512, %v13604_v58   ;;  %9502 = vset.pattern.permute.xlu1 %v16059_v1  ;;  %v13853_v55 = vpop.f32.mrb[37].mxu1 }
 0x42e   : > { %5439 = vperm.xlu1 %9502, %v13562_v56   ;;  %8528 = vmatmul.mubr.msk.bf16.gmra.mrb[68].mxu0 %vm13793_vm5, %v16065_v44  ;;  %v13817_v56 = vpop.f32.mrb[48].mxu0  ;;  %v13858_v9 = vpop.f32.mrb[38].mxu1 }
 0x42f   : > { %5076 = vmatprep.mubr.bf16.mxu0 %v16343_v39  ;;  %16397 = vst [vmem:[#allocation60_spill] sm:$0xff] %v13817_v56  ;;  %4925 = vmatprep.subr.bf16.mxu1 %v1812_v59  ;;  %v13823_v7 = vpop.f32.mrb[49].mxu0 }
 0x430   : > { %16398 = vst [vmem:[#allocation59_spill] sm:$0xff] %v13823_v7  ;;  %4926 = vmatpush1.bf16.msra.mxu1 %v1811_v61  ;;  %v13837_v22 = vpop.f32.mrb[50].mxu0  ;;  %v1773_v61 = vpack.c.bf16 %v1725_v57, %v1722_v20  ;;  %v1780_v57 = vpack.c.bf16 %v1732_v24, %v1729_v19 }
 0x431   : > { %5595 = vperm.xlu0 %9512, %v13696_v34   ;;  %16401 = vst [vmem:[#allocation86_spill] sm:$0xff] %v13837_v22  ;;  %5137 = vmatprep.subr.bf16.mxu1 %v1774_v62 }
 0x432   : > { %9503 = vset.pattern.permute.xlu1 %v16061_v49 }
 0x433   : > { %5555 = vperm.xlu1 %9503, %v13635_v33   ;;  %8510 = vmatmul.mubr.msk.bf16.vlgmr.msra.gmra.mrb[48].mxu1 %vm13769_vm1, %v16065_v44 }
 0x434   : > { %4953 = vmatprep.mubr.bf16.mxu1 %v16343_v39  ;;  %5138 = vmatpush1.bf16.msra.mxu1 %v1773_v61  ;;  %v1731_v61 = vld [vmem:[#allocation18 + $0x50] sm:$0xff] }
 0x435   : > { %9517 = vset.pattern.permute.xlu0 %v16059_v1  ;;  %5139 = vmatprep.subr.bf16.mxu1 %v1780_v57 }
 0x436   : > { %5483 = vperm.xlu0 %9517, %v13696_v34   ;;  %8530 = vmatmul.mubr.msk.bf16.gmra.mrb[72].mxu0 %vm13828_vm12, %v16065_v44  ;;  %v13842_v34 = vpop.f32.mrb[51].mxu0 }
 0x437   : > { %9505 = vset.pattern.permute.xlu1 %v16059_v1  ;;  %5086 = vmatprep.mubr.bf16.mxu0 %v16343_v39  ;;  %16402 = vst [vmem:[#allocation44_spill] sm:$0xff] %v13842_v34  ;;  %v13851_v12 = vpop.f32.mrb[52].mxu0 }
 0x438   : > { %5443 = vperm.xlu1 %9505, %v13635_v33   ;;  %16403 = vst [vmem:[#allocation69_spill] sm:$0xff] %v13851_v12  ;;  %v13856_v33 = vpop.f32.mrb[53].mxu0 }
 0x439   : > { %16404 = vst [vmem:[#allocation65_spill] sm:$0xff] %v13856_v33  ;;  %v13865_v38 = vpop.f32.mrb[54].mxu0  ;;  %v1737_v33 = vld [vmem:[#allocation18 + $0x80] sm:$0xff] }
 0x43a   : > { %9519 = vset.pattern.permute.xlu0 %v16061_v49  ;;  %16405 = vst [vmem:[#allocation31_spill] sm:$0xff] %v13865_v38  ;;  %v13873_v42 = vpop.f32.mrb[55].mxu0 }
 0x43b   : > { %8512 = vmatmul.mubr.msk.bf16.gmra.mrb[52].mxu1 %vm13793_vm5, %v16065_v44  ;;  %16406 = vst [vmem:[#allocation67_spill] sm:$0xff] %v13873_v42  ;;  %v13879_v59 = vpop.f32.mrb[56].mxu0 }
 0x43c   : > { %5447 = vperm.xlu1 %9505, %v13570_v14   ;;  %v13867_v14 = vpop.f32.mrb[39].mxu1  ;;  %4963 = vmatprep.mubr.bf16.mxu1 %v16343_v39  ;;  %16407 = vst [vmem:[#allocation41_spill] sm:$0xff] %v13879_v59  ;;  %v13887_v62 = vpop.f32.mrb[57].mxu0  ;;  %v1734_v59 = vld [vmem:[#allocation18 + $0x68] sm:$0xff] }
 0x43d   : > { %v13875_v26 = vpop.f32.mrb[40].mxu1  ;;  %16408 = vst [vmem:[#allocation61_spill] sm:$0xff] %v13887_v62  ;;  %v13897_v15 = vpop.f32.mrb[58].mxu0  ;;  %v1785_v12 = vpack.c.bf16 %v1737_v33, %v1734_v59  ;;  %v1744_v33 = vld [vmem:[#allocation18 + $0xb8] sm:$0xff] }
 0x43e   : > { %8532 = vmatmul.mubr.msk.bf16.gmra.mrb[76].mxu0 %vm12692_vm8, %v16065_v44  ;;  %v13885_v20 = vpop.f32.mrb[41].mxu1  ;;  %16410 = vst [vmem:[#allocation34_spill] sm:$0xff] %v13897_v15  ;;  %v13902_v19 = vpop.f32.mrb[59].mxu0  ;;  %v1738_v15 = vld [vmem:[#allocation18 + $0x88] sm:$0xff] }
 0x43f   : > { %5096 = vmatprep.mubr.bf16.mxu0 %v16343_v39  ;;  %16411 = vst [vmem:[#allocation66_spill] sm:$0xff] %v13902_v19 }
 0x440   : > { %9506 = vset.pattern.permute.xlu1 %v16061_v49  ;;  %v1779_v49 = vpack.c.bf16 %v1731_v61, %v1728_v35  ;;  %v16413_v35 = vmov 1   ;;  %v1735_v61 = vld [vmem:[#allocation18 + $0x70] sm:$0xff] }
 0x441   : > { %5567 = vperm.xlu1 %9506, %v13576_v37   ;;  %v1786_v42 = vpack.c.bf16 %v1738_v15, %v1735_v61  ;;  %v1741_v15 = vld [vmem:[#allocation18 + $0xa0] sm:$0xff]  ;;  %v1747_v61 = vld [vmem:[#allocation18 + $0xd0] sm:$0xff] }
 0x442   : > { %5140 = vmatpush1.bf16.msra.mxu1 %v1779_v49  ;;  %v13911_v49 = vpop.f32.mrb[60].mxu0 }
 0x443   : > { %8514 = vmatmul.mubr.msk.bf16.gmra.mrb[56].mxu1 %vm13828_vm12, %v16065_v44  ;;  %16414 = vst [vmem:[#allocation48_spill] sm:$0xff] %v13911_v49  ;;  %v13916_v19 = vpop.f32.mrb[61].mxu0  ;;  %5141 = vmatprep.subr.bf16.mxu1 %v1786_v42  ;;  %v1740_v42 = vld [vmem:[#allocation18 + $0x98] sm:$0xff] }
 0x444   : > { %4973 = vmatprep.mubr.bf16.mxu1 %v16343_v39  ;;  %16416 = vst [vmem:[#allocation73_spill] sm:$0xff] %v13916_v19  ;;  %v13924_v49 = vpop.f32.mrb[62].mxu0 }
 0x445   : > { %9508 = vset.pattern.permute.xlu1 %v16059_v1  ;;  %v13890_v1 = vpop.f32.mrb[42].mxu1  ;;  %16418 = vst [vmem:[#allocation76_spill] sm:$0xff] %v13924_v49 }
 0x446   : > { %5455 = vperm.xlu1 %9508, %v13576_v37   ;;  %8534 = vmatmul.mubr.msk.bf16.gmra.mrb[80].mxu0 %vm12950_vm4, %v16065_v44  ;;  %v16409_v37 = vmov 2   ;;  %v13899_v62 = vpop.f32.mrb[43].mxu1 }
 0x447   : > { %5106 = vmatprep.mubr.bf16.mxu0 %v16343_v39  ;;  %v13904_v24 = vpop.f32.mrb[44].mxu1  ;;  %5142 = vmatpush1.bf16.msra.mxu1 %v1785_v12  ;;  %v1743_v12 = vld [vmem:[#allocation18 + $0xb0] sm:$0xff] }
 0x448   : > { %16412 = vst [vmem:[#allocation64_spill] sm:$0xff] %v13904_v24  ;;  %v13913_v57 = vpop.f32.mrb[45].mxu1  ;;  %v1791_v59 = vpack.c.bf16 %v1743_v12, %v1740_v42  ;;  %v1749_v42 = vld [vmem:[#allocation18 + $0xe0] sm:$0xff] }
 0x449   : > { %16415 = vst [vmem:[#allocation77_spill] sm:$0xff] %v13913_v57  ;;  %v13918_v38 = vpop.f32.mrb[46].mxu1  ;;  %v1753_v12 = vld [vmem:[#allocation18 + $0x100] sm:$0xff] }
 0x44a   : > { %9509 = vset.pattern.permute.xlu1 %v16409_v37  ;;  %16417 = vst [vmem:[#allocation33_spill] sm:$0xff] %v13918_v38  ;;  %v13926_v34 = vpop.f32.mrb[47].mxu1 }
 0x44b   : > { %5571 = vperm.xlu1 %9509, %v13664_v54   ;;  %8516 = vmatmul.mubr.msk.bf16.gmra.mrb[60].mxu1 %vm12692_vm8, %v16065_v44  ;;  %16419 = vst [vmem:[#allocation83_spill] sm:$0xff] %v13926_v34 }
 0x44c   : > { %4983 = vmatprep.mubr.bf16.mxu1 %v16343_v39 }
 0x44e   : > { %8536 = vmatmul.mubr.msk.bf16.gmra.mrb[84].mxu0 %vm13184_vm6, %v16065_v44 }
 0x44f   : > { %9510 = vset.pattern.permute.xlu1 %v16413_v35  ;;  %5116 = vmatprep.mubr.bf16.mxu0 %v16343_v39 }
 0x450   : > { %5459 = vperm.xlu1 %9510, %v13664_v54   ;;  %v13929_v54 = vpop.f32.mrb[63].mxu0 }
 0x451   : > { %16420 = vst [vmem:[#allocation46_spill] sm:$0xff] %v13929_v54  ;;  %v1752_v54 = vld [vmem:[#allocation18 + $0xf8] sm:$0xff] }
 0x453   : > { %8518 = vmatmul.mubr.msk.bf16.gmra.mrb[64].mxu1 %vm12950_vm4, %v16065_v44 }
 0x454   : > { %5463 = vperm.xlu1 %9510, %v13583_v46   ;;  %v1792_v46 = vpack.c.bf16 %v1744_v33, %v1741_v15  ;;  %4993 = vmatprep.mubr.bf16.mxu1 %v16343_v39  ;;  %v1750_v15 = vld [vmem:[#allocation18 + $0xe8] sm:$0xff] }
 0x455   : > { %v1746_v33 = vld [vmem:[#allocation18 + $0xc8] sm:$0xff] }
 0x456   : > { %8538 = vmatmul.mubr.msk.bf16.gmra.mrb[88].mxu0 %vm13402_vm11, %v16065_v44  ;;  %5143 = vmatprep.subr.bf16.mxu1 %v1792_v46  ;;  %v1797_v46 = vpack.c.bf16 %v1749_v42, %v1746_v33  ;;  %v1761_v42 = vld [vmem:[#allocation18 + $0x140] sm:$0xff] }
 0x457   : > { %5126 = vmatprep.mubr.bf16.mxu0 %v16343_v39  ;;  %5144 = vmatpush1.bf16.msra.mxu1 %v1791_v59  ;;  %v1756_v59 = vld [vmem:[#allocation18 + $0x118] sm:$0xff] }
 0x458   : > { %9511 = vset.pattern.permute.xlu1 %v16409_v37 }
 0x459   : > { %5583 = vperm.xlu1 %9511, %v13590_v60  }
 0x45b   : > { %8520 = vmatmul.mubr.msk.bf16.gmra.mrb[68].mxu1 %vm13184_vm6, %v16065_v44 }
 0x45c   : > { %5003 = vmatprep.mubr.bf16.mxu1 %v16343_v39 }
 0x45d   : > { %9513 = vset.pattern.permute.xlu1 %v16413_v35 }
 0x45e   : > { %5471 = vperm.xlu1 %9513, %v13590_v60   ;;  %8540 = vmatmul.mubr.msk.bf16.gmra.mrb[92].mxu0 %vm13505_vm7, %v16065_v44  ;;  %v1798_v60 = vpack.c.bf16 %v1750_v15, %v1747_v61  ;;  %v1804_v61 = vpack.c.bf16 %v1756_v59, %v1753_v12  ;;  %v1755_v15 = vld [vmem:[#allocation18 + $0x110] sm:$0xff]  ;;  %v1768_v12 = vld [vmem:[#allocation18 + $0x178] sm:$0xff] }
 0x45f   : > { %5856 = vmatprep.mubr.bf16.mxu0 %v16343_v39  ;;  %v1803_v33 = vpack.c.bf16 %v1755_v15, %v1752_v54  ;;  %v1767_v15 = vld [vmem:[#allocation18 + $0x170] sm:$0xff] }
 0x460   : > { %5145 = vmatprep.subr.bf16.mxu1 %v1798_v60  ;;  %v1762_v60 = vld [vmem:[#allocation18 + $0x148] sm:$0xff] }
 0x461   : > { %5146 = vmatpush1.bf16.msra.mxu1 %v1797_v46  ;;  %v1765_v46 = vld [vmem:[#allocation18 + $0x160] sm:$0xff] }
 0x462   : > { %9514 = vset.pattern.permute.xlu1 %v16409_v37  ;;  %5147 = vmatprep.subr.bf16.mxu1 %v1804_v61  ;;  %v1816_v59 = vpack.c.bf16 %v1768_v12, %v1765_v46  ;;  %v1764_v61 = vld [vmem:[#allocation18 + $0x158] sm:$0xff] }
 0x463   : > { %5587 = vperm.xlu1 %9514, %v13687_v10   ;;  %8522 = vmatmul.mubr.msk.bf16.gmra.mrb[72].mxu1 %vm13402_vm11, %v16065_v44 }
 0x464   : > { %5013 = vmatprep.mubr.bf16.mxu1 %v16343_v39 }
 0x465   : > { %5148 = vmatpush1.bf16.msra.mxu1 %v1803_v33  ;;  %v1815_v33 = vpack.c.bf16 %v1767_v15, %v1764_v61 }
 0x467   : > { %9515 = vset.pattern.permute.xlu1 %v16413_v35 }
 0x468   : > { %5475 = vperm.xlu1 %9515, %v13687_v10   ;;  %v1759_v10 = vld [vmem:[#allocation18 + $0x130] sm:$0xff] }
 0x469   : > { %v1810_v54 = vpack.c.bf16 %v1762_v60, %v1759_v10  ;;  %v14020_v10 = vpop.permute.xlu0 %4632 }
 0x46b   : > { %8524 = vmatmul.mubr.msk.bf16.gmra.mrb[76].mxu1 %vm13505_vm7, %v16065_v44  ;;  %5149 = vmatprep.subr.bf16.mxu1 %v1810_v54  ;;  %v4243_v54 = vld [vmem:[%s10610_s21] sm:$0x7] }
 0x46c   : > { %5479 = vperm.xlu1 %9515, %v13604_v58   ;;  %5169 = vmatprep.mubr.bf16.mxu1 %v16343_v39  ;;  %v1758_v58 = vld [vmem:[#allocation18 + $0x128] sm:$0xff]  ;;  %v14030_v46 = vrot.slane %v4243_v54, %v13629_v11 }
 0x46e   : > { %v4542_v61 = vadd.f32 %v13808_v16, %v14030_v46 }
 0x470   : > { %9516 = vset.pattern.permute.xlu1 %v16409_v37  ;;  %v1809_v37 = vpack.c.bf16 %v1761_v42, %v1758_v58  ;;  %v14024_v58 = vpop.permute.xlu0 %4642  ;;  %v4700_v11 = vmul.f32 %v14014_v63, %v4542_v61  ;;  %v14060_v61 = vrot.slane %v4243_v54, %v13608_v23 }
 0x471   : > { %5599 = vperm.xlu1 %9516, %v13620_v27  }
 0x472   : > { %5150 = vmatpush1.bf16.msra.mxu1 %v1809_v37  ;;  %v4537_v37 = vadd.f32 %v13819_v45, %v14030_v46  ;;  %v4547_v45 = vadd.f32 %v13839_v41, %v14030_v46  ;;  %v14068_v41 = vrot.slane %v4243_v54, %v13626_v5  ;;  %v4382_v5 = vadd.f32 %v13727_v47, %v14060_v61 }
 0x473   : > { %5151 = vmatprep.subr.bf16.mxu1 %v1816_v59 }
 0x474   : > { %v14032_v12 = vpop.permute.xlu0 %4652  ;;  %v4378_v54 = vadd.f32 %v13722_v32, %v14068_v41 }
 0x475   : > { %9518 = vset.pattern.permute.xlu1 %v16413_v35 }
 0x476   : > { %5487 = vperm.xlu1 %9518, %v13620_v27   ;;  %5152 = vmatpush1.bf16.msra.mxu1 %v1815_v33  ;;  %v14006_v27 = vpop.permute.xlu1 %4647  ;;  %v4697_v33 = vmul.f32 %v13996_v31, %v4537_v37  ;;  %v4552_v37 = vadd.f32 %v13825_v3, %v14030_v46  ;;  %v4557_v3 = vadd.f32 %v13853_v55, %v14030_v46 }
 0x477   : > { %v4696_v47 = vmul.f32 %v13996_v31, %v4378_v54 }
 0x478   : > { %v14040_v15 = vpop.permute.xlu0 %4662  ;;  %v4709_v55 = vmul.f32 %v14004_v53, %v4557_v3  ;;  %v4567_v3 = vadd.f32 %v13867_v14, %v14030_v46  ;;  %v4572_v14 = vadd.f32 %v13858_v9, %v14030_v46  ;;  %v4396_v9 = vadd.f32 %v13744_v43, %v14068_v41 }
 0x479   : > { %8542 = vmatmul.mubr.msk.bf16.vlgmr.msra.gmra.mrb[80].mxu1 %vm13769_vm1, %v16065_v44 }
 0x47a   : > { %5179 = vmatprep.mubr.bf16.mxu1 %v16343_v39  ;;  %v14008_v51 = vpop.permute.xlu1 %4657 }
 0x47c   : > { %v14052_v16 = vpop.permute.xlu0 %4672 }
 0x47e   : > { %v14010_v40 = vpop.permute.xlu1 %4667 }
 0x481   : > { %8544 = vmatmul.mubr.msk.bf16.gmra.mrb[84].mxu1 %vm13793_vm5, %v16065_v44 }
 0x482   : > { %5189 = vmatprep.mubr.bf16.mxu1 %v16343_v39  ;;  %v14012_v36 = vpop.permute.xlu1 %4677 }
 0x483   : > { %16421 = vst [vmem:[#allocation36_spill] sm:$0xff] %v14012_v36 }
 0x486   : > { %v14016_v35 = vpop.permute.xlu1 %4687 }
 0x487   : > { %16422 = vst [vmem:[#allocation71_spill] sm:$0xff] %v14016_v35 }
 0x489   : > { %8546 = vmatmul.mubr.msk.bf16.gmra.mrb[88].mxu1 %vm13828_vm12, %v16065_v44 }
 0x48a   : > { %5199 = vmatprep.mubr.bf16.mxu1 %v16343_v39  ;;  %v14018_v25 = vpop.permute.xlu1 %5300 }
 0x48e   : > { %v14022_v60 = vpop.permute.xlu1 %5310 }
 0x491   : > { %8548 = vmatmul.mubr.msk.bf16.gmra.mrb[92].mxu1 %vm12692_vm8, %v16065_v44 }
 0x492   : > { %5209 = vmatprep.mubr.bf16.mxu1 %v16343_v39  ;;  %v14027_v42 = vpop.permute.xlu1 %5320 }
 0x496   : > { %v14036_v59 = vpop.permute.xlu1 %5330 }
 0x497   : > { %16423 = vst [vmem:[#allocation74_spill] sm:$0xff] %v14036_v59  ;;  %v14070_v59 = vpop.permute.xlu0 %4682 }
 0x498   : > { %16427 = vst [vmem:[#allocation35_spill] sm:$0xff] %v14070_v59 }
 0x499   : > { %8550 = vmatmul.mubr.msk.bf16.gmra.mrb[96].mxu1 %vm12950_vm4, %v16065_v44 }
 0x49a   : > { %5219 = vmatprep.mubr.bf16.mxu1 %v16343_v39  ;;  %v14046_v35 = vpop.permute.xlu1 %5340 }
 0x49b   : > { %16424 = vst [vmem:[#allocation70_spill] sm:$0xff] %v14046_v35  ;;  %v14091_v23 = vpop.permute.xlu0 %4692 }
 0x49c   : > { %16429 = vst [vmem:[#allocation82_spill] sm:$0xff] %v14091_v23 }
 0x49e   : > { %v14057_v36 = vpop.permute.xlu1 %5350 }
 0x49f   : > { %16426 = vst [vmem:[#allocation79_spill] sm:$0xff] %v14057_v36 }
 0x4a1   : > { %8552 = vmatmul.mubr.msk.bf16.gmra.mrb[100].mxu1 %vm13184_vm6, %v16065_v44 }
 0x4a2   : > { %5229 = vmatprep.mubr.bf16.mxu1 %v16343_v39 }
 0x4a9   : > { %8554 = vmatmul.mubr.msk.bf16.gmra.mrb[104].mxu1 %vm13402_vm11, %v16065_v44 }
 0x4aa   : > { %5239 = vmatprep.mubr.bf16.mxu1 %v16343_v39 }
 0x4b1   : > { %8556 = vmatmul.mubr.msk.bf16.gmra.mrb[108].mxu1 %vm13505_vm7, %v16065_v44 }
 0x4b2   : > { %5969 = vmatprep.mubr.bf16.mxu1 %v16343_v39 }
 0x4f8   : > { %v5058_v44 = vpop.f32.mrb[64].mxu0 }
 0x4f9   : > { %v14043_v39 = vmul.f32 %v5058_v44, %v4697_v33  ;;  %v5060_v49 = vpop.f32.mrb[65].mxu0  ;;  %v4703_v44 = vmul.f32 %v14002_v52, %v4547_v45 }
 0x4fa   : > { %v5062_v19 = vpop.f32.mrb[66].mxu0 }
 0x4fb   : > { %v14050_v38 = vmul.f32 %v5062_v19, %v4700_v11  ;;  %v5064_v34 = vpop.f32.mrb[67].mxu0  ;;  %v4706_v11 = vmul.f32 %v14020_v10, %v4552_v37  ;;  %v14084_v37 = vpop.permute.xlu1 %5360 }
 0x4fc   : > { %16428 = vst [vmem:[#allocation85_spill] sm:$0xff] %v14084_v37 }
 0x4fd   : > { %16425 = vst [vmem:[#allocation58_spill] sm:$0xff] %v14050_v38 }
 0x4ff   : > { %v14110_v57 = vpop.permute.xlu1 %5370 }
 0x501   : > { %v5068_v33 = vpop.f32.mrb[68].mxu0 }
 0x502   : > { %v14062_v35 = vmul.f32 %v5068_v33, %v4703_v44  ;;  %v14064_v22 = vpop.f32.mrb[69].mxu0  ;;  %v4376_v44 = vadd.f32 %v13718_v2, %v14060_v61  ;;  %v4562_v33 = vadd.f32 %v13847_v6, %v14030_v46 }
 0x503   : > { %v5072_v19 = vpop.f32.mrb[70].mxu0 }
 0x504   : > { %v14074_v45 = vmul.f32 %v5072_v19, %v4706_v11  ;;  %v14076_v36 = vpop.f32.mrb[71].mxu0  ;;  %v4384_v11 = vadd.f32 %v13729_v13, %v14068_v41  ;;  %v4712_v6 = vmul.f32 %v14024_v58, %v4562_v33  ;;  %v4695_v32 = vmul.f32 %v13996_v31, %v4376_v44 }
 0x505   : > { %v4388_v31 = vadd.f32 %v13732_v29, %v14060_v61  ;;  %v4715_v29 = vmul.f32 %v14006_v27, %v4567_v3 }
 0x506   : > { %v4945_v7 = vpop.f32.mrb[48].mxu1  ;;  %v4699_v44 = vmul.f32 %v14014_v63, %v4384_v11  ;;  %v4394_v11 = vadd.f32 %v13742_v30, %v14060_v61  ;;  %v4718_v30 = vmul.f32 %v14032_v12, %v4572_v14 }
 0x507   : > { %v5250_v23 = vmul.f32 %v4945_v7, %v4695_v32  ;;  %v4390_v7 = vadd.f32 %v13736_v17, %v14068_v41  ;;  %v4701_v3 = vmul.f32 %v14002_v52, %v4388_v31  ;;  %v4705_v31 = vmul.f32 %v14020_v10, %v4396_v9 }
 0x509   : > { %v5078_v19 = vpop.f32.mrb[72].mxu0  ;;  %v4702_v43 = vmul.f32 %v14002_v52, %v4390_v7  ;;  %v4400_v52 = vadd.f32 %v13751_v28, %v14060_v61  ;;  %v4406_v28 = vadd.f32 %v13761_v21, %v14060_v61 }
 0x50a   : > { %v14093_v2 = vmul.f32 %v5078_v19, %v4709_v55  ;;  %v14095_v59 = vpop.f32.mrb[73].mxu0  ;;  %v4947_v55 = vpop.f32.mrb[49].mxu1  ;;  %v4698_v19 = vmul.f32 %v14014_v63, %v4382_v5  ;;  %v5394_v5 = vmul.f32 %v14043_v39, %v5060_v49 }
 0x50b   : > { %v5082_v37 = vpop.f32.mrb[74].mxu0  ;;  %v14107_v56 = vmul.f32 %v4947_v55, %v4696_v47  ;;  %v4949_v33 = vpop.f32.mrb[50].mxu1  ;;  %v5395_v55 = vmul.f32 %v14050_v38, %v5064_v34  ;;  %v4577_v34 = vadd.f32 %v13885_v20, %v14030_v46  ;;  %v4582_v20 = vadd.f32 %v13875_v26, %v14030_v46 }
 0x50c   : > { %v14102_v24 = vmul.f32 %v5082_v37, %v4712_v6  ;;  %v14104_v13 = vpop.f32.mrb[75].mxu0  ;;  %v5251_v54 = vmul.f32 %v4949_v33, %v4698_v19  ;;  %v4951_v37 = vpop.f32.mrb[51].mxu1 }
 0x50d   : > { %v5378_v6 = vmul.f32 %v14018_v25, %v14107_v56  ;;  %v14121_v32 = vmul.f32 %v4951_v37, %v4699_v44  ;;  %v5306_v63 = vpop.permute.xlu0 %5305  ;;  %v14130_v33 = vpop.permute.xlu1 %5539  ;;  %v4721_v26 = vmul.f32 %v14008_v51, %v4577_v34  ;;  %v4724_v21 = vmul.f32 %v14040_v15, %v4582_v20 }
 0x50e   : > { %v5650_v47 = vpack.c.bf16 %v5251_v54, %v5250_v23  ;;  %v4955_v54 = vpop.f32.mrb[52].mxu1 }
 0x50f   : > { %16430 = vst [vmem:[#allocation30_spill] sm:$0xff] %v14121_v32  ;;  %v5379_v49 = vmul.f32 %v5306_v63, %v14121_v32  ;;  %v5410_v19 = vadd.f32 %v5394_v5, %v5378_v6  ;;  %v5252_v6 = vmul.f32 %v4955_v54, %v4701_v3 }
 0x511   : > { %v5088_v17 = vpop.f32.mrb[76].mxu0  ;;  %v5411_v37 = vadd.f32 %v5395_v55, %v5379_v49  ;;  %v4402_v49 = vadd.f32 %v13755_v18, %v14068_v41  ;;  %v4408_v18 = vadd.f32 %v13773_v0, %v14068_v41  ;;  %v14169_v54 = vpop.permute.xlu1 %5427 }
 0x512   : > { %v14132_v25 = vmul.f32 %v5088_v17, %v4715_v29  ;;  %v14134_v44 = vpop.f32.mrb[77].mxu0  ;;  %v4957_v29 = vpop.f32.mrb[53].mxu1  ;;  %v4704_v17 = vmul.f32 %v14020_v10, %v4394_v11  ;;  %v5396_v11 = vmul.f32 %v14062_v35, %v14064_v22  ;;  %v5397_v22 = vmul.f32 %v14074_v45, %v14076_v36 }
 0x513   : > { %v5092_v23 = vpop.f32.mrb[78].mxu0  ;;  %v14146_v38 = vmul.f32 %v4957_v29, %v4702_v43  ;;  %v4959_v14 = vpop.f32.mrb[54].mxu1  ;;  %v5651_v32 = vpack.c.bf16 %v5411_v37, %v5410_v19  ;;  %v4708_v0 = vmul.f32 %v14004_v53, %v4402_v49  ;;  %v4587_v36 = vadd.f32 %v13899_v62, %v14030_v46 }
 0x514   : > { %v14141_v63 = vmul.f32 %v5092_v23, %v4718_v30  ;;  %v14143_v5 = vpop.f32.mrb[79].mxu0  ;;  %v5253_v7 = vmul.f32 %v4959_v14, %v4704_v17  ;;  %v4961_v55 = vpop.f32.mrb[55].mxu1  ;;  %v4592_v62 = vadd.f32 %v13890_v1, %v14030_v46 }
 0x515   : > { %v5380_v30 = vmul.f32 %v14022_v60, %v14146_v38  ;;  %v14159_v3 = vmul.f32 %v4961_v55, %v4705_v31  ;;  %5824 = vmatprep.subr.bf16.mxu0 %v5651_v32  ;;  %v5316_v10 = vpop.permute.xlu0 %5315  ;;  %v4727_v1 = vmul.f32 %v14010_v40, %v4587_v36 }
 0x516   : > { %v5654_v9 = vpack.c.bf16 %v5253_v7, %v5252_v6  ;;  %5825 = vmatpush1.bf16.msra.mxu0 %v5650_v47  ;;  %v4707_v47 = vmul.f32 %v14004_v53, %v4400_v52  ;;  %v4965_v34 = vpop.f32.mrb[56].mxu1  ;;  %v4710_v7 = vmul.f32 %v14024_v58, %v4406_v28  ;;  %v4711_v52 = vmul.f32 %v14024_v58, %v4408_v18 }
 0x517   : > { %v5381_v60 = vmul.f32 %v5316_v10, %v14159_v3  ;;  %v5412_v23 = vadd.f32 %v5396_v11, %v5380_v30  ;;  %v4967_v31 = vpop.f32.mrb[57].mxu1  ;;  %v4412_v53 = vadd.f32 %v13781_v50, %v14060_v61  ;;  %v4414_v10 = vadd.f32 %v13784_v8, %v14068_v41 }
 0x518   : > { %v5254_v14 = vmul.f32 %v4965_v34, %v4707_v47  ;;  %v14185_v55 = vmul.f32 %v4967_v31, %v4708_v0  ;;  %v4969_v20 = vpop.f32.mrb[58].mxu1  ;;  %v5398_v28 = vmul.f32 %v14093_v2, %v14095_v59  ;;  %v4418_v50 = vadd.f32 %v13798_v48, %v14060_v61 }
 0x519   : > { %v5098_v19 = vpop.f32.mrb[80].mxu0  ;;  %v5413_v6 = vadd.f32 %v5397_v22, %v5381_v60  ;;  %v5255_v49 = vmul.f32 %v4969_v20, %v4710_v7  ;;  %v4971_v30 = vpop.f32.mrb[59].mxu1  ;;  %v4420_v8 = vadd.f32 %v13806_v4, %v14068_v41  ;;  %v5399_v59 = vmul.f32 %v14102_v24, %v14104_v13  ;;  %v16433_v13 = vld [vmem:[#allocation77_spill] sm:$0xff] }
 0x51a   : > { %v14171_v32 = vmul.f32 %v5098_v19, %v4721_v26  ;;  %v14173_v43 = vpop.f32.mrb[81].mxu0  ;;  %v5382_v26 = vmul.f32 %v14027_v42, %v14185_v55  ;;  %v14198_v22 = vmul.f32 %v4971_v30, %v4711_v52  ;;  %v5326_v58 = vpop.permute.xlu0 %5325  ;;  %v4730_v48 = vmul.f32 %v14052_v16, %v4592_v62  ;;  %v16435_v30 = vld [vmem:[#allocation64_spill] sm:$0xff] }
 0x51b   : > { %v5102_v37 = vpop.f32.mrb[82].mxu0  ;;  %v5655_v11 = vpack.c.bf16 %v5413_v6, %v5412_v23  ;;  %v5658_v18 = vpack.c.bf16 %v5255_v49, %v5254_v14  ;;  %v14208_v23 = vpop.permute.xlu1 %5431  ;;  %v4714_v4 = vmul.f32 %v14006_v27, %v4414_v10  ;;  %v4597_v6 = vadd.f32 %v16433_v13, %v14030_v46 }
 0x51c   : > { %16431 = vst [vmem:[#allocation50_spill] sm:$0xff] %v14171_v32  ;;  %v14180_v29 = vmul.f32 %v5102_v37, %v4724_v21  ;;  %v14182_v17 = vpop.f32.mrb[83].mxu0  ;;  %v5383_v42 = vmul.f32 %v5326_v58, %v14198_v22  ;;  %v5414_v60 = vadd.f32 %v5398_v28, %v5382_v26  ;;  %v4716_v20 = vmul.f32 %v14032_v12, %v4418_v50  ;;  %v16436_v58 = vld [vmem:[#allocation59_spill] sm:$0xff] }
 0x51d   : > { %5826 = vmatprep.subr.bf16.mxu0 %v5655_v11  ;;  %v4602_v10 = vadd.f32 %v16435_v30, %v14030_v46  ;;  %v5400_v50 = vmul.f32 %v14132_v25, %v14134_v44  ;;  %v5401_v44 = vmul.f32 %v14141_v63, %v14143_v5  ;;  %v16442_v5 = vld [vmem:[#allocation83_spill] sm:$0xff] }
 0x51e   : > { %16432 = vst [vmem:[#allocation81_spill] sm:$0xff] %v14180_v29  ;;  %5827 = vmatpush1.bf16.msra.mxu0 %v5654_v9  ;;  %v4713_v9 = vmul.f32 %v14006_v27, %v4412_v53  ;;  %v4975_v34 = vpop.f32.mrb[60].mxu1  ;;  %v5415_v0 = vadd.f32 %v5399_v59, %v5383_v42  ;;  %v4717_v53 = vmul.f32 %v14032_v12, %v4420_v8  ;;  %v16434_v27 = vld [vmem:[#allocation60_spill] sm:$0xff]  ;;  %v16437_v59 = vld [vmem:[#allocation74_spill] sm:$0xff]  ;;  %v5336_v12 = vpop.permute.xlu0 %5335 }
 0x51f   : > { %v4977_v7 = vpop.f32.mrb[61].mxu1  ;;  %v4424_v49 = vadd.f32 %v16434_v27, %v14060_v61  ;;  %v16438_v8 = vld [vmem:[#allocation86_spill] sm:$0xff] }
 0x520   : > { %v5256_v31 = vmul.f32 %v4975_v34, %v4713_v9  ;;  %v14224_v52 = vmul.f32 %v4977_v7, %v4714_v4  ;;  %v4979_v11 = vpop.f32.mrb[62].mxu1  ;;  %v5659_v62 = vpack.c.bf16 %v5415_v0, %v5414_v60  ;;  %v4430_v60 = vadd.f32 %v16438_v8, %v14060_v61  ;;  %v16440_v34 = vld [vmem:[#allocation44_spill] sm:$0xff] }
 0x521   : > { %v5108_v19 = vpop.f32.mrb[84].mxu0  ;;  %v5257_v28 = vmul.f32 %v4979_v11, %v4716_v20  ;;  %v4981_v26 = vpop.f32.mrb[63].mxu1  ;;  %v4432_v4 = vadd.f32 %v16440_v34, %v14068_v41  ;;  %v16444_v34 = vld [vmem:[#allocation33_spill] sm:$0xff] }
 0x522   : > { %v14210_v21 = vmul.f32 %v5108_v19, %v4727_v1  ;;  %v14212_v47 = vpop.f32.mrb[85].mxu0  ;;  %v4426_v1 = vadd.f32 %v16436_v58, %v14068_v41  ;;  %v5384_v19 = vmul.f32 %v16437_v59, %v14224_v52  ;;  %v14237_v42 = vmul.f32 %v4981_v26, %v4717_v53  ;;  %5828 = vmatprep.subr.bf16.mxu0 %v5659_v62  ;;  %v14247_v20 = vpop.permute.xlu1 %5551  ;;  %v16441_v62 = vld [vmem:[#allocation35_spill] sm:$0xff] }
 0x523   : > { %v5112_v37 = vpop.f32.mrb[86].mxu0  ;;  %5829 = vmatpush1.bf16.msra.mxu0 %v5658_v18  ;;  %v4719_v18 = vmul.f32 %v14008_v51, %v4424_v49  ;;  %v4607_v26 = vadd.f32 %v16442_v5, %v14030_v46  ;;  %v4723_v49 = vmul.f32 %v14040_v15, %v4432_v4  ;;  %v16448_v4 = vld [vmem:[#allocation31_spill] sm:$0xff] }
 0x524   : > { %v14219_v36 = vmul.f32 %v5112_v37, %v4730_v48  ;;  %v14221_v14 = vpop.f32.mrb[87].mxu0  ;;  %v16439_v48 = vld [vmem:[#allocation36_spill] sm:$0xff]  ;;  %v5662_v37 = vpack.c.bf16 %v5257_v28, %v5256_v31  ;;  %v5385_v13 = vmul.f32 %v5336_v12, %v14237_v42  ;;  %v5416_v7 = vadd.f32 %v5400_v50, %v5384_v19 }
 0x525   : > { %v4733_v9 = vmul.f32 %v16439_v48, %v4597_v6  ;;  %v4736_v6 = vmul.f32 %v16441_v62, %v4602_v10  ;;  %v4720_v30 = vmul.f32 %v14008_v51, %v4426_v1  ;;  %v4722_v12 = vmul.f32 %v14040_v15, %v4430_v60  ;;  %v16443_v51 = vld [vmem:[#allocation69_spill] sm:$0xff]  ;;  %v5346_v15 = vpop.permute.xlu0 %5345 }
 0x526   : > { %v4985_v27 = vpop.f32.mrb[64].mxu1  ;;  %v5417_v28 = vadd.f32 %v5401_v44, %v5385_v13  ;;  %v4436_v1 = vadd.f32 %v16443_v51, %v14060_v61  ;;  %v4612_v44 = vadd.f32 %v16444_v34, %v14030_v46  ;;  %v5402_v60 = vmul.f32 %v14171_v32, %v14173_v43  ;;  %v14286_v34 = vpop.permute.xlu1 %5439 }
 0x527   : > { %v5258_v59 = vmul.f32 %v4985_v27, %v4719_v18  ;;  %v4987_v19 = vpop.f32.mrb[65].mxu1  ;;  %v5403_v43 = vmul.f32 %v14180_v29, %v14182_v17 }
 0x528   : > { %v14263_v8 = vmul.f32 %v4987_v19, %v4720_v30  ;;  %v4989_v10 = vpop.f32.mrb[66].mxu1  ;;  %v16450_v19 = vld [vmem:[#allocation67_spill] sm:$0xff] }
 0x529   : > { %v5118_v0 = vpop.f32.mrb[88].mxu0  ;;  %v4991_v13 = vpop.f32.mrb[67].mxu1 }
 0x52a   : > { %v14249_v11 = vmul.f32 %v5118_v0, %v4733_v9  ;;  %v14251_v53 = vpop.f32.mrb[89].mxu0  ;;  %v5663_v9 = vpack.c.bf16 %v5417_v28, %v5416_v7  ;;  %v5259_v0 = vmul.f32 %v4989_v10, %v4722_v12  ;;  %v14276_v30 = vmul.f32 %v4991_v13, %v4723_v49  ;;  %v16449_v28 = vld [vmem:[#allocation71_spill] sm:$0xff] }
 0x52b   : > { %v5122_v31 = vpop.f32.mrb[90].mxu0  ;;  %v4442_v7 = vadd.f32 %v16448_v4, %v14060_v61  ;;  %v4739_v46 = vmul.f32 %v16449_v28, %v4607_v26  ;;  %v4444_v12 = vadd.f32 %v16450_v19, %v14068_v41 }
 0x52c   : > { %v14258_v58 = vmul.f32 %v5122_v31, %v4736_v6  ;;  %v14260_v50 = vpop.f32.mrb[91].mxu0  ;;  %v16445_v6 = vld [vmem:[#allocation65_spill] sm:$0xff]  ;;  %v16446_v31 = vld [vmem:[#allocation70_spill] sm:$0xff]  ;;  %16447 = vst [vmem:[#allocation52_spill] sm:$0xff] %v14276_v30  ;;  %5830 = vmatprep.subr.bf16.mxu0 %v5663_v9  ;;  %v5666_v5 = vpack.c.bf16 %v5259_v0, %v5258_v59  ;;  %v5387_v51 = vmul.f32 %v5346_v15, %v14276_v30 }
 0x52d   : > { %v4438_v18 = vadd.f32 %v16445_v6, %v14068_v41  ;;  %v5386_v27 = vmul.f32 %v16446_v31, %v14263_v8  ;;  %5831 = vmatpush1.bf16.msra.mxu0 %v5662_v37  ;;  %v16451_v6 = vld [vmem:[#allocation82_spill] sm:$0xff]  ;;  %v4725_v37 = vmul.f32 %v14010_v40, %v4436_v1  ;;  %v4728_v15 = vmul.f32 %v14052_v16, %v4442_v7  ;;  %v16452_v1 = vld [vmem:[#allocation41_spill] sm:$0xff] }
 0x52e   : > { %v4742_v26 = vmul.f32 %v16451_v6, %v4612_v44  ;;  %v4995_v0 = vpop.f32.mrb[68].mxu1  ;;  %v5419_v4 = vadd.f32 %v5403_v43, %v5387_v51  ;;  %v4729_v44 = vmul.f32 %v14052_v16, %v4444_v12  ;;  %v4448_v30 = vadd.f32 %v16452_v1, %v14060_v61  ;;  %v16455_v16 = vld [vmem:[#allocation34_spill] sm:$0xff] }
 0x52f   : > { %v5418_v49 = vadd.f32 %v5402_v60, %v5386_v27  ;;  %v4726_v31 = vmul.f32 %v14010_v40, %v4438_v18  ;;  %v5260_v60 = vmul.f32 %v4995_v0, %v4725_v37  ;;  %v4997_v27 = vpop.f32.mrb[69].mxu1  ;;  %v16453_v18 = vld [vmem:[#allocation61_spill] sm:$0xff]  ;;  %v5404_v51 = vmul.f32 %v14210_v21, %v14212_v47  ;;  %v14315_v0 = vpop.permute.xlu1 %5555 }
 0x530   : > { %v4450_v43 = vadd.f32 %v16453_v18, %v14068_v41  ;;  %v4454_v12 = vadd.f32 %v16455_v16, %v14060_v61  ;;  %v5405_v47 = vmul.f32 %v14219_v36, %v14221_v14 }
 0x531   : > { %v5128_v10 = vpop.f32.mrb[92].mxu0  ;;  %v5667_v29 = vpack.c.bf16 %v5419_v4, %v5418_v49 }
 0x532   : > { %v14288_v9 = vmul.f32 %v5128_v10, %v4739_v46  ;;  %v14290_v13 = vpop.f32.mrb[93].mxu0  ;;  %v14300_v46 = vmul.f32 %v4997_v27, %v4726_v31  ;;  %v4999_v10 = vpop.f32.mrb[70].mxu1  ;;  %v16456_v31 = vld [vmem:[#allocation66_spill] sm:$0xff] }
 0x533   : > { %v5132_v59 = vpop.f32.mrb[94].mxu0  ;;  %v5261_v32 = vmul.f32 %v4999_v10, %v4728_v15  ;;  %v5001_v40 = vpop.f32.mrb[71].mxu1  ;;  %5832 = vmatprep.subr.bf16.mxu0 %v5667_v29  ;;  %v4456_v4 = vadd.f32 %v16456_v31, %v14068_v41  ;;  %v4731_v10 = vmul.f32 %v16439_v48, %v4448_v30 }
 0x534   : > { %v14295_v17 = vmul.f32 %v5132_v59, %v4742_v26  ;;  %v14297_v19 = vpop.f32.mrb[95].mxu0  ;;  %v16454_v26 = vld [vmem:[#allocation79_spill] sm:$0xff]  ;;  %v14311_v37 = vmul.f32 %v5001_v40, %v4729_v44  ;;  %v5356_v59 = vpop.permute.xlu0 %5355  ;;  %5833 = vmatpush1.bf16.msra.mxu0 %v5666_v5  ;;  %v4732_v44 = vmul.f32 %v16439_v48, %v4450_v43  ;;  %v4734_v5 = vmul.f32 %v16441_v62, %v4454_v12  ;;  %v16458_v48 = vld [vmem:[#allocation73_spill] sm:$0xff] }
 0x535   : > { %v5388_v7 = vmul.f32 %v16454_v26, %v14300_v46  ;;  %v5670_v49 = vpack.c.bf16 %v5261_v32, %v5260_v60  ;;  %v4735_v26 = vmul.f32 %v16441_v62, %v4456_v4  ;;  %v14330_v31 = vpop.permute.xlu1 %5443  ;;  %v4462_v43 = vadd.f32 %v16458_v48, %v14068_v41  ;;  %v16460_v62 = vld [vmem:[#allocation76_spill] sm:$0xff] }
 0x536   : > { %v5389_v27 = vmul.f32 %v5356_v59, %v14311_v37  ;;  %v5005_v29 = vpop.f32.mrb[72].mxu1  ;;  %v16457_v59 = vld [vmem:[#allocation48_spill] sm:$0xff]  ;;  %v5406_v12 = vmul.f32 %v14249_v11, %v14251_v53  ;;  %v4466_v4 = vadd.f32 %v16460_v62, %v14060_v61  ;;  %v5409_v62 = vmul.f32 %v14295_v17, %v14297_v19 }
 0x537   : > { %v5420_v15 = vadd.f32 %v5404_v51, %v5388_v7  ;;  %v5262_v40 = vmul.f32 %v5005_v29, %v4731_v10  ;;  %v5007_v32 = vpop.f32.mrb[73].mxu1  ;;  %v4460_v51 = vadd.f32 %v16457_v59, %v14060_v61  ;;  %v16461_v29 = vld [vmem:[#allocation46_spill] sm:$0xff] }
 0x538   : > { %v5421_v1 = vadd.f32 %v5405_v47, %v5389_v27  ;;  %v14325_v60 = vmul.f32 %v5007_v32, %v4732_v44  ;;  %v5009_v18 = vpop.f32.mrb[74].mxu1  ;;  %v5366_v14 = vpop.permute.xlu0 %5365  ;;  %v16459_v47 = vld [vmem:[#allocation85_spill] sm:$0xff]  ;;  %v4468_v44 = vadd.f32 %v16461_v29, %v14068_v41  ;;  %v16462_v29 = vld [vmem:[#allocation62_spill] sm:$0xff] }
 0x539   : > { %v5263_v7 = vmul.f32 %v5009_v18, %v4734_v5  ;;  %v5011_v30 = vpop.f32.mrb[75].mxu1  ;;  %v4737_v5 = vmul.f32 %v16449_v28, %v4460_v51  ;;  %v5408_v51 = vmul.f32 %v14288_v9, %v14290_v13 }
 0x53a   : > { %v5671_v16 = vpack.c.bf16 %v5421_v1, %v5420_v15  ;;  %v5390_v27 = vmul.f32 %v16459_v47, %v14325_v60  ;;  %v14338_v10 = vmul.f32 %v5011_v30, %v4735_v26  ;;  %v5407_v1 = vmul.f32 %v14258_v58, %v14260_v50 }
 0x53b   : > { %v5674_v15 = vpack.c.bf16 %v5263_v7, %v5262_v40  ;;  %v4738_v26 = vmul.f32 %v16449_v28, %v4462_v43  ;;  %v14350_v40 = vpop.permute.xlu1 %5447  ;;  %v4741_v50 = vmul.f32 %v16451_v6, %v4468_v44  ;;  %v5684_v44 = vadd.s32 8, %v16462_v29 }
 0x53c   : > { %5834 = vmatprep.subr.bf16.mxu0 %v5671_v16  ;;  %v5391_v32 = vmul.f32 %v5366_v14, %v14338_v10  ;;  %v5422_v53 = vadd.f32 %v5406_v12, %v5390_v27  ;;  %v5376_v59 = vpop.permute.xlu0 %5375 }
 0x53d   : > { %5835 = vmatpush1.bf16.msra.mxu0 %v5670_v49  ;;  %v4740_v49 = vmul.f32 %v16451_v6, %v4466_v4 }
 0x53e   : > { %v5015_v18 = vpop.f32.mrb[76].mxu1  ;;  %v5423_v16 = vadd.f32 %v5407_v1, %v5391_v32  ;;  %v16464_v32 = vmov 0 }
 0x53f   : > { %v5264_v30 = vmul.f32 %v5015_v18, %v4737_v5  ;;  %v5017_v61 = vpop.f32.mrb[77].mxu1  ;;  %v14370_v13 = vpop.permute.xlu1 %5567  ;;  %v5686_v18 = vadd.s32 24, %v16462_v29 }
 0x540   : > { %v14352_v41 = vmul.f32 %v5017_v61, %v4738_v26  ;;  %v5019_v7 = vpop.f32.mrb[78].mxu1  ;;  %v5675_v14 = vpack.c.bf16 %v5423_v16, %v5422_v53  ;;  %v5544_v27 = vpop.permute.xlu0 %5543  ;;  %v5685_v53 = vadd.s32 16, %v16462_v29  ;;  %v6374_v26 = vld [vmem:[%s10633_s26 + $0x8] sm:$0xff]  ;;  %v6376_v16 = vld [vmem:[%s10633_s26 + $0x18] sm:$0xff]  ;;  %v6375_v61 = vld [vmem:[%s10633_s26 + $0x10] sm:$0xff] }
 0x541   : > { %v5265_v48 = vmul.f32 %v5019_v7, %v4740_v49  ;;  %v5021_v12 = vpop.f32.mrb[79].mxu1  ;;  %v6378_v49 = vld [vmem:[%s10633_s26 + $0x28] sm:$0xff]  ;;  %v6380_v7 = vld [vmem:[%s10633_s26 + $0x38] sm:$0xff] }
 0x542   : > { %v5392_v28 = vmul.f32 %v14110_v57, %v14352_v41  ;;  %v14359_v43 = vmul.f32 %v5021_v12, %v4741_v50  ;;  %5836 = vmatprep.subr.bf16.mxu0 %v5675_v14  ;;  %v14368_v57 = vld [vmem:[%s16463_s2] ss:$0 sm:$0xff]  ;;  %v16468_v14 = vmov 1.0|1.0   ;;  %v14398_v12 = vpack.c.bf16 %v6380_v7, %v6378_v49  ;;  %v16471_v49 = vld [vmem:[#allocation30_spill] sm:$0xff] }
 0x543   : > { %v5678_v47 = vpack.c.bf16 %v5265_v48, %v5264_v30  ;;  %5837 = vmatpush1.bf16.msra.mxu0 %v5674_v15  ;;  %vm5704_vm8 = vcmp.eq.s32.totalorder %v16462_v29, %v14368_v57  ;;  %vm5705_vm4 = vcmp.eq.s32.totalorder %v5684_v44, %v14368_v57  ;;  %v14382_v5 = vpop.permute.xlu1 %5455  ;;  %v14388_v30 = vpack.c.bf16 %v6376_v16, %v6374_v26 }
 0x544   : > { %v5393_v6 = vmul.f32 %v5376_v59, %v14359_v43  ;;  %v5424_v4 = vadd.f32 %v5408_v51, %v5392_v28  ;;  %v14375_v19 = vpop.permute.xlu0 %5547  ;;  %vm14377_vm6 = vmpackc.low %vm5705_vm4, %vm5704_vm8  ;;  %v6373_v59 = vld [vmem:[%s10633_s26] sm:$0xff]  ;;  %v6379_v28 = vld [vmem:[%s10633_s26 + $0x30] sm:$0xff]  ;;  %v16470_v44 = vmov 0   ;;  %vm5706_vm11 = vcmp.eq.s32.totalorder %v5685_v53, %v14368_v57 }
 0x545   : > { %v16465_v32 = vsel %vm14377_vm6, 4294967295, %v16464_v32  ;;  %16467 = vst [vmem:[#allocation75_spill] sm:$0xff] %v14388_v30  ;;  %v14396_v48 = vpack.c.bf16 %v6375_v61, %v6373_v59  ;;  %v6377_v51 = vld [vmem:[%s10633_s26 + $0x20] sm:$0xff]  ;;  %v5602_v26 = vmul.f32 %v14130_v33, %v14107_v56  ;;  %vm5707_vm7 = vcmp.eq.s32.totalorder %v5686_v18, %v14368_v57  ;;  %v6383_v33 = vld [vmem:[%s10633_s26 + $0x50] sm:$0xff] }
 0x546   : > { %v5425_v15 = vadd.f32 %v5409_v62, %v5393_v6  ;;  %16466 = vst [vmem:[#allocation42_spill] sm:$0xff] %v16465_v32  ;;  %v5490_v62 = vmul.f32 %v14169_v54, %v14107_v56  ;;  %v14415_v54 = vpack.c.bf16 %v6379_v28, %v6377_v51  ;;  %v5491_v7 = vmul.f32 %v14208_v23, %v16471_v49  ;;  %vm14436_vm13 = vmpackc.low %vm5707_vm7, %vm5706_vm11  ;;  %v6385_v53 = vld [vmem:[%s10633_s26 + $0x60] sm:$0xff]  ;;  %v6387_v18 = vld [vmem:[%s10633_s26 + $0x70] sm:$0xff] }
 0x547   : > { %16469 = vst [vmem:[#allocation80_spill] sm:$0xff] %v14396_v48  ;;  %v5603_v51 = vmul.f32 %v5544_v27, %v16471_v49  ;;  %v5687_v23 = vadd.s32 32, %v16462_v29 }
 0x548   : > { %v5679_v1 = vpack.c.bf16 %v5425_v15, %v5424_v4  ;;  %v6384_v15 = vld [vmem:[%s10633_s26 + $0x58] sm:$0xff] }
 0x549   : > { %vm5708_vm14 = vcmp.eq.s32.totalorder %v5687_v23, %v14368_v57 }
 0x54a   : > { %5838 = vmatprep.subr.bf16.mxu0 %v5679_v1  ;;  %v5436_v1 = vpop.permute.xlu0 %5435 }
 0x54b   : > { %5839 = vmatpush1.bf16.msra.mxu0 %v5678_v47  ;;  %v6382_v47 = vld [vmem:[%s10633_s26 + $0x48] sm:$0xff] }
 0x54c   : > { %v5171_v50 = vpop.f32.mrb[80].mxu1  ;;  %9130 = vmatprep.subr.bf16.mxu0 %v14388_v30  ;;  %v14421_v56 = vpack.c.bf16 %v6384_v15, %v6382_v47  ;;  %v16473_v47 = vmov 0  ;;  %v5688_v15 = vadd.s32 40, %v16462_v29 }
 0x54d   : > { %v5506_v6 = vmul.f32 %v14043_v39, %v5171_v50  ;;  %v5173_v4 = vpop.f32.mrb[81].mxu1  ;;  %v16472_v50 = vld [vmem:[#allocation58_spill] sm:$0xff]  ;;  %v16474_v47 = vsel %vm14436_vm13, 4294967295, %v16473_v47 }
 0x54e   : > { %8575 = vmatmul.mubr.msk.bf16.vlgmr.msra.gmra.mrb[96].mxu0 %vm14377_vm6, %v16468_v14  ;;  %v5618_v16 = vmul.f32 %v14043_v39, %v5173_v4  ;;  %v5175_v59 = vpop.f32.mrb[82].mxu1  ;;  %v6381_v39 = vld [vmem:[%s10633_s26 + $0x40] sm:$0xff]  ;;  %v14425_v4 = vpop.permute.xlu1 %5571  ;;  %16475 = vst [vmem:[#allocation78_spill] sm:$0xff] %v16474_v47  ;;  %vm5709_vm15 = vcmp.eq.s32.totalorder %v5688_v15, %v14368_v57 }
 0x54f   : > { %5866 = vmatprep.mubr.bf16.mxu0 %v16470_v44  ;;  %9132 = vmatpush1.bf16.msra.mxu0 %v14396_v48  ;;  %v5522_v61 = vadd.f32 %v5506_v6, %v5490_v62  ;;  %v5507_v32 = vmul.f32 %v16472_v50, %v5175_v59  ;;  %v5177_v30 = vpop.f32.mrb[83].mxu1  ;;  %v6386_v62 = vld [vmem:[%s10633_s26 + $0x68] sm:$0xff]  ;;  %v6388_v6 = vld [vmem:[%s10633_s26 + $0x78] sm:$0xff]  ;;  %vm14487_vm0 = vmpackc.low %vm5709_vm15, %vm5708_vm14 }
 0x550   : > { %9134 = vmatprep.subr.bf16.mxu0 %v14398_v12  ;;  %v5634_v48 = vadd.f32 %v5618_v16, %v5602_v26  ;;  %v5619_v28 = vmul.f32 %v16472_v50, %v5177_v30  ;;  %v14442_v30 = vpack.c.bf16 %v6383_v33, %v6381_v39  ;;  %v14449_v16 = vpop.permute.xlu0 %5559  ;;  %v6390_v50 = vld [vmem:[%s10633_s26 + $0x88] sm:$0xff]  ;;  %v6392_v39 = vld [vmem:[%s10633_s26 + $0x98] sm:$0xff]  ;;  %v6393_v15 = vld [vmem:[%s10633_s26 + $0xa0] sm:$0xff] }
 0x551   : > { %v5523_v59 = vadd.f32 %v5507_v32, %v5491_v7  ;;  %v14445_v32 = vpack.c.bf16 %v6388_v6, %v6386_v62 }
 0x552   : > { %v5635_v27 = vadd.f32 %v5619_v28, %v5603_v51  ;;  %v5604_v28 = vmul.f32 %v14375_v19, %v14146_v38 }
 0x553   : > { %9136 = vmatpush1.bf16.msra.mxu0 %v14415_v54  ;;  %v5652_v26 = vpack.c.bf16 %v5523_v59, %v5522_v61  ;;  %v5492_v61 = vmul.f32 %v5436_v1, %v14146_v38  ;;  %v5493_v1 = vmul.f32 %v14286_v34, %v14159_v3  ;;  %v14469_v38 = vpack.c.bf16 %v6387_v18, %v6385_v53 }
 0x554   : > { %9138 = vmatprep.subr.bf16.mxu0 %v14421_v56  ;;  %v5181_v49 = vpop.f32.mrb[84].mxu1  ;;  %v5653_v7 = vpack.c.bf16 %v5635_v27, %v5634_v48  ;;  %v14463_v48 = vpop.permute.xlu1 %5459  ;;  %v5605_v34 = vmul.f32 %v14247_v20, %v14159_v3  ;;  %v5689_v18 = vadd.s32 48, %v16462_v29 }
 0x555   : > { %v5508_v33 = vmul.f32 %v14062_v35, %v5181_v49  ;;  %v5183_v51 = vpop.f32.mrb[85].mxu1  ;;  %v14473_v49 = vpack.c.bf16 %v6392_v39, %v6390_v50  ;;  %v5690_v50 = vadd.s32 56, %v16462_v29  ;;  %v5564_v3 = vpop.permute.xlu0 %5563 }
 0x556   : > { %8577 = vmatmul.mubr.msk.bf16.gmra.mrb[100].mxu0 %vm14436_vm13, %v16468_v14  ;;  %v5620_v62 = vmul.f32 %v14062_v35, %v5183_v51  ;;  %v5185_v6 = vpop.f32.mrb[86].mxu1  ;;  %5937 = vmatprep.subr.bf16.mxu1 %v5653_v7  ;;  %v6389_v35 = vld [vmem:[%s10633_s26 + $0x80] sm:$0xff]  ;;  %v6391_v51 = vld [vmem:[%s10633_s26 + $0x90] sm:$0xff]  ;;  %v6394_v7 = vld [vmem:[%s10633_s26 + $0xa8] sm:$0xff]  ;;  %vm5710_vm1 = vcmp.eq.s32.totalorder %v5689_v18, %v14368_v57 }
 0x557   : > { %5876 = vmatprep.mubr.bf16.mxu0 %v16470_v44  ;;  %9140 = vmatpush1.bf16.msra.mxu0 %v14442_v30  ;;  %v5524_v19 = vadd.f32 %v5508_v33, %v5492_v61  ;;  %v5509_v59 = vmul.f32 %v14074_v45, %v5185_v6  ;;  %v5187_v27 = vpop.f32.mrb[87].mxu1  ;;  %v6396_v61 = vld [vmem:[%s10633_s26 + $0xb8] sm:$0xff]  ;;  %vm5711_vm2 = vcmp.eq.s32.totalorder %v5690_v50, %v14368_v57 }
 0x558   : > { %5938 = vmatpush1.bf16.msra.mxu1 %v5652_v26  ;;  %9142 = vmatprep.subr.bf16.mxu0 %v14445_v32  ;;  %v5636_v47 = vadd.f32 %v5620_v62, %v5604_v28  ;;  %v5621_v53 = vmul.f32 %v14074_v45, %v5187_v27  ;;  %v14493_v45 = vpack.c.bf16 %v6391_v51, %v6389_v35  ;;  %v6395_v28 = vld [vmem:[%s10633_s26 + $0xb0] sm:$0xff]  ;;  %v14500_v62 = vpop.permute.xlu1 %5463  ;;  %v6400_v27 = vld [vmem:[%s10633_s26 + $0xd8] sm:$0xff]  ;;  %vm14534_vm3 = vmpackc.low %vm5711_vm2, %vm5710_vm1 }
 0x559   : > { %v5525_v33 = vadd.f32 %v5509_v59, %v5493_v1  ;;  %v14496_v23 = vpack.c.bf16 %v6396_v61, %v6394_v7  ;;  %v6398_v59 = vld [vmem:[%s10633_s26 + $0xc8] sm:$0xff]  ;;  %v5495_v7 = vmul.f32 %v14350_v40, %v14198_v22  ;;  %v5607_v40 = vmul.f32 %v14449_v16, %v14198_v22  ;;  %v6229_v26 = vld [vmem:[#allocation18] sm:$0xff] }
 0x55a   : > { %v5637_v20 = vadd.f32 %v5621_v53, %v5605_v34  ;;  %v5606_v34 = vmul.f32 %v14315_v0, %v14185_v55  ;;  %v14523_v0 = vpack.c.bf16 %v6400_v27, %v6398_v59 }
 0x55b   : > { %9144 = vmatpush1.bf16.msra.mxu0 %v14469_v38  ;;  %v5656_v39 = vpack.c.bf16 %v5525_v33, %v5524_v19  ;;  %v5494_v19 = vmul.f32 %v14330_v31, %v14185_v55  ;;  %v14519_v31 = vpack.c.bf16 %v6395_v28, %v6393_v15  ;;  %v5691_v28 = vadd.s32 64, %v16462_v29 }
 0x55c   : > { %9146 = vmatprep.subr.bf16.mxu0 %v14473_v49  ;;  %v5191_v6 = vpop.f32.mrb[88].mxu1  ;;  %v5657_v1 = vpack.c.bf16 %v5637_v20, %v5636_v47  ;;  %v6397_v20 = vld [vmem:[%s10633_s26 + $0xc0] sm:$0xff]  ;;  %v14539_v59 = vpop.permute.xlu1 %5583 }
 0x55d   : > { %v5510_v35 = vmul.f32 %v14093_v2, %v5191_v6  ;;  %v5193_v51 = vpop.f32.mrb[89].mxu1  ;;  %v5452_v6 = vpop.permute.xlu0 %5451  ;;  %vm5712_vm5 = vcmp.eq.s32.totalorder %v5691_v28, %v14368_v57 }
 0x55e   : > { %8579 = vmatmul.mubr.msk.bf16.gmra.mrb[104].mxu0 %vm14487_vm0, %v16468_v14  ;;  %v5622_v47 = vmul.f32 %v14093_v2, %v5193_v51  ;;  %v5195_v53 = vpop.f32.mrb[90].mxu1  ;;  %5939 = vmatprep.subr.bf16.mxu1 %v5657_v1  ;;  %v6399_v2 = vld [vmem:[%s10633_s26 + $0xd0] sm:$0xff]  ;;  %v5496_v50 = vmul.f32 %v5452_v6, %v14224_v52 }
 0x55f   : > { %5886 = vmatprep.mubr.bf16.mxu0 %v16470_v44  ;;  %9148 = vmatpush1.bf16.msra.mxu0 %v14493_v45  ;;  %v5526_v61 = vadd.f32 %v5510_v35, %v5494_v19  ;;  %v5511_v33 = vmul.f32 %v14102_v24, %v5195_v53  ;;  %v5197_v55 = vpop.f32.mrb[91].mxu1  ;;  %v5692_v19 = vadd.s32 72, %v16462_v29  ;;  %v14543_v22 = vpack.c.bf16 %v6399_v2, %v6397_v20 }
 0x560   : > { %5940 = vmatpush1.bf16.msra.mxu1 %v5656_v39  ;;  %9150 = vmatprep.subr.bf16.mxu0 %v14496_v23  ;;  %v5638_v51 = vadd.f32 %v5622_v47, %v5606_v34  ;;  %v5623_v1 = vmul.f32 %v14102_v24, %v5197_v55  ;;  %v5608_v53 = vmul.f32 %v5564_v3, %v14224_v52  ;;  %v5472_v6 = vpop.permute.xlu1 %5471 }
 0x561   : > { %v5527_v15 = vadd.f32 %v5511_v33, %v5495_v7  ;;  %v5468_v47 = vpop.permute.xlu0 %5467  ;;  %vm5713_vm9 = vcmp.eq.s32.totalorder %v5692_v19, %v14368_v57  ;;  %v5497_v55 = vmul.f32 %v14382_v5, %v14237_v42  ;;  %v5609_v52 = vmul.f32 %v14370_v13, %v14237_v42  ;;  %v16482_v42 = vld [vmem:[#allocation50_spill] sm:$0xff] }
 0x562   : > { %v5639_v27 = vadd.f32 %v5623_v1, %v5607_v40  ;;  %vm14565_vm10 = vmpackc.low %vm5713_vm9, %vm5712_vm5  ;;  %v5693_v5 = vadd.s32 80, %v16462_v29 }
 0x563   : > { %9152 = vmatpush1.bf16.msra.mxu0 %v14519_v31  ;;  %v5660_v24 = vpack.c.bf16 %v5527_v15, %v5526_v61  ;;  %v5694_v15 = vadd.s32 88, %v16462_v29 }
 0x564   : > { %9154 = vmatprep.subr.bf16.mxu0 %v14523_v0  ;;  %v5201_v16 = vpop.f32.mrb[92].mxu1  ;;  %v5661_v18 = vpack.c.bf16 %v5639_v27, %v5638_v51  ;;  %vm5714_vm12 = vcmp.eq.s32.totalorder %v5693_v5, %v14368_v57 }
 0x565   : > { %v5512_v35 = vmul.f32 %v14132_v25, %v5201_v16  ;;  %v5203_v34 = vpop.f32.mrb[93].mxu1  ;;  %v5576_v19 = vpop.permute.xlu0 %5575  ;;  %vm5715_vm8 = vcmp.eq.s32.totalorder %v5694_v15, %v14368_v57 }
 0x566   : > { %8581 = vmatmul.mubr.msk.bf16.gmra.mrb[108].mxu0 %vm14534_vm3, %v16468_v14  ;;  %v5624_v7 = vmul.f32 %v14132_v25, %v5203_v34  ;;  %v5205_v61 = vpop.f32.mrb[94].mxu1  ;;  %5941 = vmatprep.subr.bf16.mxu1 %v5661_v18  ;;  %v5588_v18 = vpop.permute.xlu1 %5587  ;;  %vm14588_vm4 = vmpackc.low %vm5715_vm8, %vm5714_vm12 }
 0x567   : > { %5896 = vmatprep.mubr.bf16.mxu0 %v16470_v44  ;;  %9156 = vmatpush1.bf16.msra.mxu0 %v14543_v22  ;;  %v5528_v33 = vadd.f32 %v5512_v35, %v5496_v50  ;;  %v5513_v20 = vmul.f32 %v14141_v63, %v5205_v61  ;;  %v5207_v2 = vpop.f32.mrb[95].mxu1  ;;  %v5610_v50 = vmul.f32 %v14425_v4, %v14263_v8  ;;  %v16484_v61 = vld [vmem:[#allocation81_spill] sm:$0xff] }
 0x568   : > { %5942 = vmatpush1.bf16.msra.mxu1 %v5660_v24  ;;  %v5640_v51 = vadd.f32 %v5624_v7, %v5608_v53  ;;  %v5625_v25 = vmul.f32 %v14141_v63, %v5207_v2  ;;  %v5498_v63 = vmul.f32 %v14463_v48, %v14263_v8  ;;  %v16483_v7 = vld [vmem:[#allocation52_spill] sm:$0xff] }
 0x569   : > { %v5529_v3 = vadd.f32 %v5513_v20, %v5497_v55  ;;  %v5499_v48 = vmul.f32 %v14500_v62, %v16483_v7  ;;  %v5611_v2 = vmul.f32 %v5576_v19, %v16483_v7  ;;  %v5696_v62 = vadd.s32 104, %v16462_v29 }
 0x56a   : > { %v5641_v1 = vadd.f32 %v5625_v25, %v5609_v52  ;;  %v5580_v52 = vpop.permute.xlu0 %5579  ;;  %v5476_v5 = vpop.permute.xlu1 %5475  ;;  %v5500_v19 = vmul.f32 %v5468_v47, %v14300_v46 }
 0x56b   : > { %v5664_v27 = vpack.c.bf16 %v5529_v3, %v5528_v33  ;;  %v5695_v3 = vadd.s32 96, %v16462_v29  ;;  %vm5717_vm7 = vcmp.eq.s32.totalorder %v5696_v62, %v14368_v57 }
 0x56c   : > { %v5211_v24 = vpop.f32.mrb[96].mxu1  ;;  %v5665_v16 = vpack.c.bf16 %v5641_v1, %v5640_v51 }
 0x56d   : > { %v5514_v13 = vmul.f32 %v16482_v42, %v5211_v24  ;;  %v5213_v28 = vpop.f32.mrb[97].mxu1  ;;  %vm5716_vm11 = vcmp.eq.s32.totalorder %v5695_v3, %v14368_v57 }
 0x56e   : > { %8583 = vmatmul.mubr.msk.bf16.gmra.mrb[112].mxu0 %vm14565_vm10, %v16468_v14  ;;  %v5626_v35 = vmul.f32 %v16482_v42, %v5213_v28  ;;  %v5215_v34 = vpop.f32.mrb[98].mxu1  ;;  %5943 = vmatprep.subr.bf16.mxu1 %v5665_v16  ;;  %vm14609_vm14 = vmpackc.low %vm5717_vm7, %vm5716_vm11 }
 0x56f   : > { %5906 = vmatprep.mubr.bf16.mxu0 %v16470_v44  ;;  %v5530_v53 = vadd.f32 %v5514_v13, %v5498_v63  ;;  %v5515_v33 = vmul.f32 %v16484_v61, %v5215_v34  ;;  %v5217_v55 = vpop.f32.mrb[99].mxu1  ;;  %5944 = vmatpush1.bf16.msra.mxu1 %v5664_v27  ;;  %v5612_v63 = vmul.f32 %v5580_v52, %v14300_v46  ;;  %v5592_v34 = vpop.permute.xlu0 %5591 }
 0x570   : > { %v5642_v20 = vadd.f32 %v5626_v35, %v5610_v50  ;;  %v5627_v8 = vmul.f32 %v16484_v61, %v5217_v55  ;;  %v5501_v50 = vmul.f32 %v5472_v6, %v14311_v37  ;;  %v5613_v46 = vmul.f32 %v14539_v59, %v14311_v37  ;;  %v5480_v61 = vpop.permute.xlu1 %5479 }
 0x571   : > { %v5531_v4 = vadd.f32 %v5515_v33, %v5499_v48  ;;  %v5697_v6 = vadd.s32 112, %v16462_v29  ;;  %v5698_v55 = vadd.s32 120, %v16462_v29  ;;  %v5614_v52 = vmul.f32 %v5588_v18, %v14325_v60 }
 0x572   : > { %v5643_v25 = vadd.f32 %v5627_v8, %v5611_v2  ;;  %v5503_v62 = vmul.f32 %v5480_v61, %v14338_v10 }
 0x573   : > { %v5668_v1 = vpack.c.bf16 %v5531_v4, %v5530_v53  ;;  %v5596_v4 = vpop.permute.xlu0 %5595  ;;  %vm5718_vm15 = vcmp.eq.s32.totalorder %v5697_v6, %v14368_v57  ;;  %vm5719_vm1 = vcmp.eq.s32.totalorder %v5698_v55, %v14368_v57 }
 0x574   : > { %v5221_v15 = vpop.f32.mrb[100].mxu1  ;;  %v5669_v27 = vpack.c.bf16 %v5643_v25, %v5642_v20  ;;  %vm14629_vm2 = vmpackc.low %vm5719_vm1, %vm5718_vm15 }
 0x575   : > { %v5516_v24 = vmul.f32 %v14210_v21, %v5221_v15  ;;  %v5223_v16 = vpop.f32.mrb[101].mxu1  ;;  %v5600_v15 = vpop.permute.xlu1 %5599 }
 0x576   : > { %8585 = vmatmul.mubr.msk.bf16.gmra.mrb[116].mxu0 %vm14588_vm4, %v16468_v14  ;;  %v5628_v42 = vmul.f32 %v14210_v21, %v5223_v16  ;;  %v5225_v13 = vpop.f32.mrb[102].mxu1  ;;  %5945 = vmatprep.subr.bf16.mxu1 %v5669_v27 }
 0x577   : > { %5916 = vmatprep.mubr.bf16.mxu0 %v16470_v44  ;;  %v5532_v28 = vadd.f32 %v5516_v24, %v5500_v19  ;;  %v5517_v47 = vmul.f32 %v14219_v36, %v5225_v13  ;;  %v5227_v35 = vpop.f32.mrb[103].mxu1  ;;  %5946 = vmatpush1.bf16.msra.mxu1 %v5668_v1  ;;  %v5615_v19 = vmul.f32 %v5592_v34, %v14338_v10  ;;  %v5484_v16 = vpop.permute.xlu0 %5483 }
 0x578   : > { %v5644_v53 = vadd.f32 %v5628_v42, %v5612_v63  ;;  %v5629_v21 = vmul.f32 %v14219_v36, %v5227_v35  ;;  %v5502_v36 = vmul.f32 %v5476_v5, %v14325_v60  ;;  %v5504_v13 = vmul.f32 %v5484_v16, %v14352_v41 }
 0x579   : > { %v5533_v7 = vadd.f32 %v5517_v47, %v5501_v50  ;;  %v5488_v50 = vpop.permute.xlu1 %5487  ;;  %v5616_v47 = vmul.f32 %v5596_v4, %v14352_v41  ;;  %v6401_v4 = vld [vmem:[%s10633_s26 + $0xe0] sm:$0xff] }
 0x57a   : > { %v5645_v33 = vadd.f32 %v5629_v21, %v5613_v46  ;;  %v5505_v46 = vmul.f32 %v5488_v50, %v14359_v43 }
 0x57b   : > { %v5672_v20 = vpack.c.bf16 %v5533_v7, %v5532_v28 }
 0x57c   : > { %v5231_v2 = vpop.f32.mrb[104].mxu1  ;;  %v5673_v8 = vpack.c.bf16 %v5645_v33, %v5644_v53  ;;  %v5617_v33 = vmul.f32 %v5600_v15, %v14359_v43  ;;  %v16494_v43 = vld [vmem:[#allocation80_spill] sm:$0xff] }
 0x57d   : > { %v5518_v37 = vmul.f32 %v14249_v11, %v5231_v2  ;;  %v5233_v59 = vpop.f32.mrb[105].mxu1 }
 0x57e   : > { %8587 = vmatmul.mubr.msk.bf16.gmra.mrb[120].mxu0 %vm14609_vm14, %v16468_v14  ;;  %v5630_v25 = vmul.f32 %v14249_v11, %v5233_v59  ;;  %v5235_v29 = vpop.f32.mrb[106].mxu1  ;;  %5947 = vmatprep.subr.bf16.mxu1 %v5673_v8  ;;  %v6268_v8 = vld [vmem:[#allocation18 + $0x138] sm:$0xff] }
 0x57f   : > { %5926 = vmatprep.mubr.bf16.mxu0 %v16470_v44  ;;  %v5534_v3 = vadd.f32 %v5518_v37, %v5502_v36  ;;  %v5519_v1 = vmul.f32 %v14258_v58, %v5235_v29  ;;  %v5237_v5 = vpop.f32.mrb[107].mxu1  ;;  %5948 = vmatpush1.bf16.msra.mxu1 %v5672_v20  ;;  %v6402_v36 = vld [vmem:[%s10633_s26 + $0xe8] sm:$0xff]  ;;  %v6404_v37 = vld [vmem:[%s10633_s26 + $0xf8] sm:$0xff] }
 0x580   : > { %v5646_v27 = vadd.f32 %v5630_v25, %v5614_v52  ;;  %v5631_v60 = vmul.f32 %v14258_v58, %v5237_v5  ;;  %v16491_v58 = vmov 0.0   ;;  %v14664_v59 = vpack.c.bf16 %v6404_v37, %v6402_v36  ;;  %v6403_v52 = vld [vmem:[%s10633_s26 + $0xf0] sm:$0xff] }
 0x581   : > { %v5535_v11 = vadd.f32 %v5519_v1, %v5503_v62  ;;  %v14671_v25 = vpack.c.bf16 %v6403_v52, %v6401_v4  ;;  %v6232_v62 = vld [vmem:[#allocation18 + $0x18] sm:$0xff] }
 0x582   : > { %v5647_v24 = vadd.f32 %v5631_v60, %v5615_v19  ;;  %9158 = vmatprep.subr.bf16.mxu0 %v14664_v59  ;;  %v6238_v19 = vld [vmem:[#allocation18 + $0x48] sm:$0xff]  ;;  %v6241_v60 = vld [vmem:[#allocation18 + $0x60] sm:$0xff] }
 0x583   : > { %v5676_v57 = vpack.c.bf16 %v5535_v11, %v5534_v3  ;;  %9160 = vmatpush1.bf16.msra.mxu0 %v14671_v25 }
 0x584   : > { %v5241_v63 = vpop.f32.mrb[108].mxu1  ;;  %v5677_v42 = vpack.c.bf16 %v5647_v24, %v5646_v27 }
 0x585   : > { %v5520_v10 = vmul.f32 %v14288_v9, %v5241_v63  ;;  %v5243_v28 = vpop.f32.mrb[109].mxu1 }
 0x586   : > { %8589 = vmatmul.mubr.msk.bf16.gmra.mrb[124].mxu0 %vm14629_vm2, %v16468_v14  ;;  %v5632_v35 = vmul.f32 %v14288_v9, %v5243_v28  ;;  %v5245_v34 = vpop.f32.mrb[110].mxu1  ;;  %5949 = vmatprep.subr.bf16.mxu1 %v5677_v42  ;;  %v16492_v9 = vld [vmem:[#allocation75_spill] sm:$0xff] }
 0x587   : > { %6481 = vmatprep.mubr.f32.mxu0 %v16491_v58  ;;  %v5536_v53 = vadd.f32 %v5520_v10, %v5504_v13  ;;  %v5521_v21 = vmul.f32 %v14295_v17, %v5245_v34  ;;  %v5247_v7 = vpop.f32.mrb[111].mxu1  ;;  %5950 = vmatpush1.bf16.msra.mxu1 %v5676_v57  ;;  %v6244_v57 = vld [vmem:[#allocation18 + $0x78] sm:$0xff]  ;;  %v6250_v13 = vld [vmem:[#allocation18 + $0xa8] sm:$0xff] }
 0x588   : > { %v5648_v61 = vadd.f32 %v5632_v35, %v5616_v47  ;;  %v5633_v6 = vmul.f32 %v14295_v17, %v5247_v7  ;;  %9194 = vmatprep.subr.bf16.mxu0 %v16492_v9  ;;  %v6256_v47 = vld [vmem:[#allocation18 + $0xd8] sm:$0xff]  ;;  %v6259_v35 = vld [vmem:[#allocation18 + $0xf0] sm:$0xff] }
 0x589   : > { %v5537_v55 = vadd.f32 %v5521_v21, %v5505_v46  ;;  %v6271_v17 = vld [vmem:[#allocation18 + $0x150] sm:$0xff] }
 0x58a   : > { %v5649_v20 = vadd.f32 %v5633_v6, %v5617_v33  ;;  %v6265_v6 = vld [vmem:[#allocation18 + $0x120] sm:$0xff] }
 0x58b   : > { %v5680_v2 = vpack.c.bf16 %v5537_v55, %v5536_v53 }
 0x58c   : > { %v5681_v41 = vpack.c.bf16 %v5649_v20, %v5648_v61  ;;  %v6262_v61 = vld [vmem:[#allocation18 + $0x108] sm:$0xff] }
 0x58e   : > { %5951 = vmatprep.subr.bf16.mxu1 %v5681_v41 }
 0x58f   : > { %5952 = vmatpush1.bf16.msra.mxu1 %v5680_v2 }
 0x590   : > { %9162 = vmatprep.subr.bf16.mxu1 %v16492_v9 }
 0x592   : > { %8591 = vmatmul.mubr.msk.bf16.vlgmr.msra.gmra.mrb[112].mxu1 %vm14377_vm6, %v16468_v14 }
 0x593   : > { %5979 = vmatprep.mubr.bf16.mxu1 %v16470_v44  ;;  %9164 = vmatpush1.bf16.msra.mxu1 %v16494_v43 }
 0x594   : > { %9166 = vmatprep.subr.bf16.mxu1 %v14398_v12 }
 0x597   : > { %9168 = vmatpush1.bf16.msra.mxu1 %v14415_v54 }
 0x598   : > { %9170 = vmatprep.subr.bf16.mxu1 %v14421_v56 }
 0x59a   : > { %8593 = vmatmul.mubr.msk.bf16.gmra.mrb[116].mxu1 %vm14436_vm13, %v16468_v14 }
 0x59b   : > { %5989 = vmatprep.mubr.bf16.mxu1 %v16470_v44  ;;  %9172 = vmatpush1.bf16.msra.mxu1 %v14442_v30 }
 0x59c   : > { %9174 = vmatprep.subr.bf16.mxu1 %v14445_v32 }
 0x59f   : > { %9176 = vmatpush1.bf16.msra.mxu1 %v14469_v38 }
 0x5a0   : > { %9178 = vmatprep.subr.bf16.mxu1 %v14473_v49 }
 0x5a2   : > { %8595 = vmatmul.mubr.msk.bf16.gmra.mrb[120].mxu1 %vm14487_vm0, %v16468_v14 }
 0x5a3   : > { %5999 = vmatprep.mubr.bf16.mxu1 %v16470_v44  ;;  %9180 = vmatpush1.bf16.msra.mxu1 %v14493_v45 }
 0x5a4   : > { %9182 = vmatprep.subr.bf16.mxu1 %v14496_v23 }
 0x5a7   : > { %9184 = vmatpush1.bf16.msra.mxu1 %v14519_v31 }
 0x5a8   : > { %9186 = vmatprep.subr.bf16.mxu1 %v14523_v0 }
 0x5aa   : > { %8597 = vmatmul.mubr.msk.bf16.gmra.mrb[124].mxu1 %vm14534_vm3, %v16468_v14 }
 0x5ab   : > { %6009 = vmatprep.mubr.bf16.mxu1 %v16470_v44  ;;  %9188 = vmatpush1.bf16.msra.mxu1 %v14543_v22 }
 0x5ac   : > { %9190 = vmatprep.subr.bf16.mxu1 %v14664_v59 }
 0x5af   : > { %9192 = vmatpush1.bf16.msra.mxu1 %v14671_v25 }
 0x5b2   : > { %8599 = vmatmul.mubr.msk.bf16.gmra.mrb[128].mxu1 %vm14565_vm10, %v16468_v14 }
 0x5b3   : > { %6019 = vmatprep.mubr.bf16.mxu1 %v16470_v44 }
 0x5ba   : > { %8601 = vmatmul.mubr.msk.bf16.gmra.mrb[132].mxu1 %vm14588_vm4, %v16468_v14 }
 0x5bb   : > { %6029 = vmatprep.mubr.bf16.mxu1 %v16470_v44 }
 0x5c2   : > { %8603 = vmatmul.mubr.msk.bf16.gmra.mrb[136].mxu1 %vm14609_vm14, %v16468_v14 }
 0x5c3   : > { %6039 = vmatprep.mubr.bf16.mxu1 %v16470_v44 }
 0x5ca   : > { %8605 = vmatmul.mubr.msk.bf16.gmra.mrb[140].mxu1 %vm14629_vm2, %v16468_v14  ;;  %v6235_v14 = vld [vmem:[#allocation18 + $0x30] sm:$0xff] }
 0x5cb   : > { %6706 = vmatprep.mubr.f32.mxu1 %v16491_v58 }
 0x621   : > { %v14704_v39 = vpop.f32.mrb[96].mxu0 }
 0x622   : > { %v5860_v40 = vpop.f32.mrb[97].mxu0 }
 0x623   : > { %v6325_v51 = vadd.f32 %v6229_v26, %v5860_v40  ;;  %v14706_v29 = vpop.f32.mrb[98].mxu0  ;;  %v6230_v40 = vld [vmem:[#allocation18 + $0x8] sm:$0xff] }
 0x624   : > { %v5864_v3 = vpop.f32.mrb[99].mxu0 }
 0x625   : > { %6482 = vmatmul.mubr.f32.vlgmr.msra.gmra.mrb[128].mxu0 %v6325_v51  ;;  %v6328_v44 = vadd.f32 %v6232_v62, %v5864_v3  ;;  %v6231_v51 = vld [vmem:[#allocation18 + $0x10] sm:$0xff] }
 0x626   : > { %6487 = vmatprep.mubr.f32.mxu0 %v16491_v58  ;;  %9196 = vmatpush1.bf16.msra.mxu0 %v16494_v43 }
 0x627   : > { %9198 = vmatprep.subr.bf16.mxu0 %v14398_v12 }
 0x629   : > { %v14711_v48 = vpop.f32.mrb[100].mxu0  ;;  %6488 = vmatmul.mubr.f32.gmra.mrb[130].mxu0 %v6328_v44 }
 0x62a   : > { %v5870_v1 = vpop.f32.mrb[101].mxu0  ;;  %6493 = vmatprep.mubr.f32.mxu0 %v16491_v58  ;;  %9200 = vmatpush1.bf16.msra.mxu0 %v14415_v54 }
 0x62b   : > { %v6331_v5 = vadd.f32 %v6235_v14, %v5870_v1  ;;  %v14715_v15 = vpop.f32.mrb[102].mxu0  ;;  %9202 = vmatprep.subr.bf16.mxu0 %v14421_v56 }
 0x62c   : > { %v5874_v27 = vpop.f32.mrb[103].mxu0 }
 0x62d   : > { %6494 = vmatmul.mubr.f32.gmra.mrb[132].mxu0 %v6331_v5  ;;  %v6334_v12 = vadd.f32 %v6238_v19, %v5874_v27  ;;  %v6233_v5 = vld [vmem:[#allocation18 + $0x20] sm:$0xff]  ;;  %v6234_v19 = vld [vmem:[#allocation18 + $0x28] sm:$0xff] }
 0x62e   : > { %6499 = vmatprep.mubr.f32.mxu0 %v16491_v58  ;;  %9204 = vmatpush1.bf16.msra.mxu0 %v14442_v30 }
 0x62f   : > { %9206 = vmatprep.subr.bf16.mxu0 %v14445_v32  ;;  %v6247_v32 = vld [vmem:[#allocation18 + $0x90] sm:$0xff] }
 0x631   : > { %v14721_v11 = vpop.f32.mrb[104].mxu0  ;;  %6500 = vmatmul.mubr.f32.gmra.mrb[134].mxu0 %v6334_v12 }
 0x632   : > { %v5880_v54 = vpop.f32.mrb[105].mxu0  ;;  %6505 = vmatprep.mubr.f32.mxu0 %v16491_v58  ;;  %9208 = vmatpush1.bf16.msra.mxu0 %v14469_v38 }
 0x633   : > { %v6337_v56 = vadd.f32 %v6241_v60, %v5880_v54  ;;  %v14725_v18 = vpop.f32.mrb[106].mxu0  ;;  %9210 = vmatprep.subr.bf16.mxu0 %v14473_v49  ;;  %v6236_v54 = vld [vmem:[#allocation18 + $0x38] sm:$0xff] }
 0x634   : > { %v5884_v24 = vpop.f32.mrb[107].mxu0 }
 0x635   : > { %6506 = vmatmul.mubr.f32.gmra.mrb[136].mxu0 %v6337_v56  ;;  %v6340_v30 = vadd.f32 %v6244_v57, %v5884_v24  ;;  %v6237_v56 = vld [vmem:[#allocation18 + $0x40] sm:$0xff] }
 0x636   : > { %6511 = vmatprep.mubr.f32.mxu0 %v16491_v58  ;;  %9212 = vmatpush1.bf16.msra.mxu0 %v14493_v45 }
 0x637   : > { %9214 = vmatprep.subr.bf16.mxu0 %v14496_v23  ;;  %v6253_v23 = vld [vmem:[#allocation18 + $0xc0] sm:$0xff] }
 0x639   : > { %v14731_v16 = vpop.f32.mrb[108].mxu0  ;;  %6512 = vmatmul.mubr.f32.gmra.mrb[138].mxu0 %v6340_v30 }
 0x63a   : > { %v5890_v38 = vpop.f32.mrb[109].mxu0  ;;  %6517 = vmatprep.mubr.f32.mxu0 %v16491_v58  ;;  %9216 = vmatpush1.bf16.msra.mxu0 %v14519_v31 }
 0x63b   : > { %v6343_v49 = vadd.f32 %v6247_v32, %v5890_v38  ;;  %v14735_v63 = vpop.f32.mrb[110].mxu0  ;;  %9218 = vmatprep.subr.bf16.mxu0 %v14523_v0 }
 0x63c   : > { %v5894_v42 = vpop.f32.mrb[111].mxu0 }
 0x63d   : > { %6518 = vmatmul.mubr.f32.gmra.mrb[140].mxu0 %v6343_v49  ;;  %v6346_v45 = vadd.f32 %v6250_v13, %v5894_v42  ;;  %v6239_v49 = vld [vmem:[#allocation18 + $0x50] sm:$0xff]  ;;  %v6240_v13 = vld [vmem:[#allocation18 + $0x58] sm:$0xff] }
 0x63e   : > { %6523 = vmatprep.mubr.f32.mxu0 %v16491_v58  ;;  %9220 = vmatpush1.bf16.msra.mxu0 %v14543_v22 }
 0x63f   : > { %9222 = vmatprep.subr.bf16.mxu0 %v14664_v59 }
 0x641   : > { %v14741_v10 = vpop.f32.mrb[112].mxu0  ;;  %6524 = vmatmul.mubr.f32.gmra.mrb[142].mxu0 %v6346_v45 }
 0x642   : > { %v5900_v31 = vpop.f32.mrb[113].mxu0  ;;  %6529 = vmatprep.mubr.f32.mxu0 %v16491_v58  ;;  %9224 = vmatpush1.bf16.msra.mxu0 %v14671_v25  ;;  %v6274_v25 = vld [vmem:[#allocation18 + $0x168] sm:$0xff] }
 0x643   : > { %v6349_v0 = vadd.f32 %v6253_v23, %v5900_v31  ;;  %v14745_v28 = vpop.f32.mrb[114].mxu0  ;;  %v6242_v31 = vld [vmem:[#allocation18 + $0x68] sm:$0xff] }
 0x644   : > { %v5904_v50 = vpop.f32.mrb[115].mxu0 }
 0x645   : > { %6530 = vmatmul.mubr.f32.gmra.mrb[144].mxu0 %v6349_v0  ;;  %v6352_v22 = vadd.f32 %v6256_v47, %v5904_v50  ;;  %v6243_v0 = vld [vmem:[#allocation18 + $0x70] sm:$0xff] }
 0x646   : > { %6535 = vmatprep.mubr.f32.mxu0 %v16491_v58 }
 0x649   : > { %v14748_v34 = vpop.f32.mrb[116].mxu0  ;;  %6536 = vmatmul.mubr.f32.gmra.mrb[146].mxu0 %v6352_v22 }
 0x64a   : > { %v5910_v53 = vpop.f32.mrb[117].mxu0  ;;  %6541 = vmatprep.mubr.f32.mxu0 %v16491_v58 }
 0x64b   : > { %v6355_v46 = vadd.f32 %v6259_v35, %v5910_v53  ;;  %v14751_v21 = vpop.f32.mrb[118].mxu0 }
 0x64c   : > { %16496 = vst [vmem:[#allocation72_spill] sm:$0xff] %v14751_v21  ;;  %v5914_v7 = vpop.f32.mrb[119].mxu0 }
 0x64d   : > { %6542 = vmatmul.mubr.f32.gmra.mrb[148].mxu0 %v6355_v46  ;;  %v6358_v33 = vadd.f32 %v6262_v61, %v5914_v7  ;;  %v6245_v46 = vld [vmem:[#allocation18 + $0x80] sm:$0xff]  ;;  %v6246_v61 = vld [vmem:[#allocation18 + $0x88] sm:$0xff] }
 0x64e   : > { %6547 = vmatprep.mubr.f32.mxu0 %v16491_v58 }
 0x651   : > { %v14754_v55 = vpop.f32.mrb[120].mxu0  ;;  %6548 = vmatmul.mubr.f32.gmra.mrb[150].mxu0 %v6358_v33 }
 0x652   : > { %16497 = vst [vmem:[#allocation40_spill] sm:$0xff] %v14754_v55  ;;  %v5920_v20 = vpop.f32.mrb[121].mxu0  ;;  %6553 = vmatprep.mubr.f32.mxu0 %v16491_v58 }
 0x653   : > { %v6361_v2 = vadd.f32 %v6265_v6, %v5920_v20  ;;  %v14757_v41 = vpop.f32.mrb[122].mxu0  ;;  %v6248_v20 = vld [vmem:[#allocation18 + $0x98] sm:$0xff] }
 0x654   : > { %16498 = vst [vmem:[#allocation68_spill] sm:$0xff] %v14757_v41  ;;  %v5924_v9 = vpop.f32.mrb[123].mxu0 }
 0x655   : > { %6554 = vmatmul.mubr.f32.gmra.mrb[152].mxu0 %v6361_v2  ;;  %v6364_v43 = vadd.f32 %v6268_v8, %v5924_v9  ;;  %v6249_v2 = vld [vmem:[#allocation18 + $0xa0] sm:$0xff] }
 0x656   : > { %6559 = vmatprep.mubr.f32.mxu0 %v16491_v58 }
 0x659   : > { %v14760_v36 = vpop.f32.mrb[124].mxu0  ;;  %6560 = vmatmul.mubr.f32.gmra.mrb[154].mxu0 %v6364_v43 }
 0x65a   : > { %16499 = vst [vmem:[#allocation49_spill] sm:$0xff] %v14760_v36  ;;  %v5930_v37 = vpop.f32.mrb[125].mxu0  ;;  %6565 = vmatprep.mubr.f32.mxu0 %v16491_v58 }
 0x65b   : > { %v6367_v59 = vadd.f32 %v6271_v17, %v5930_v37  ;;  %v14763_v4 = vpop.f32.mrb[126].mxu0 }
 0x65c   : > { %16500 = vst [vmem:[#allocation45_spill] sm:$0xff] %v14763_v4  ;;  %v5934_v52 = vpop.f32.mrb[127].mxu0 }
 0x65d   : > { %6566 = vmatmul.mubr.f32.gmra.mrb[156].mxu0 %v6367_v59  ;;  %v6370_v26 = vadd.f32 %v6274_v25, %v5934_v52  ;;  %v6251_v59 = vld [vmem:[#allocation18 + $0xb0] sm:$0xff]  ;;  %v6252_v25 = vld [vmem:[#allocation18 + $0xb8] sm:$0xff] }
 0x65e   : > { %6571 = vmatprep.mubr.f32.mxu0 %v16491_v58 }
 0x661   : > { %6572 = vmatmul.mubr.f32.gmra.mrb[158].mxu0 %v6370_v26 }
 0x662   : > { %6931 = vmatprep.mubr.f32.mxu0 %v16491_v58 }
 0x665   : > { %v5971_v3 = vpop.f32.mrb[112].mxu1 }
 0x666   : > { %v6326_v62 = vadd.f32 %v6230_v40, %v5971_v3  ;;  %v5973_v44 = vpop.f32.mrb[113].mxu1  ;;  %v6255_v3 = vld [vmem:[#allocation18 + $0xd0] sm:$0xff] }
 0x667   : > { %v6327_v14 = vadd.f32 %v6231_v51, %v5973_v44  ;;  %v5975_v1 = vpop.f32.mrb[114].mxu1  ;;  %v6254_v51 = vld [vmem:[#allocation18 + $0xc8] sm:$0xff] }
 0x668   : > { %6707 = vmatmul.mubr.f32.vlgmr.msra.gmra.mrb[144].mxu1 %v6326_v62  ;;  %v5977_v27 = vpop.f32.mrb[115].mxu1  ;;  %v6329_v12 = vadd.f32 %v6233_v5, %v5975_v1 }
 0x669   : > { %6712 = vmatprep.mubr.f32.mxu1 %v16491_v58  ;;  %6932 = vmatmul.mubr.f32.vlgmr.msra.gmra.mrb[160].mxu0 %v6327_v14  ;;  %v6330_v60 = vadd.f32 %v6234_v19, %v5977_v27  ;;  %v6257_v27 = vld [vmem:[#allocation18 + $0xe0] sm:$0xff] }
 0x66a   : > { %6937 = vmatprep.mubr.f32.mxu0 %v16491_v58 }
 0x66c   : > { %6713 = vmatmul.mubr.f32.gmra.mrb[146].mxu1 %v6329_v12  ;;  %v6258_v12 = vld [vmem:[#allocation18 + $0xe8] sm:$0xff] }
 0x66d   : > { %v5981_v24 = vpop.f32.mrb[116].mxu1  ;;  %6718 = vmatprep.mubr.f32.mxu1 %v16491_v58  ;;  %6938 = vmatmul.mubr.f32.gmra.mrb[162].mxu0 %v6330_v60 }
 0x66e   : > { %v6332_v57 = vadd.f32 %v6236_v54, %v5981_v24  ;;  %v5983_v30 = vpop.f32.mrb[117].mxu1  ;;  %6943 = vmatprep.mubr.f32.mxu0 %v16491_v58  ;;  %v6261_v24 = vld [vmem:[#allocation18 + $0x100] sm:$0xff] }
 0x66f   : > { %v6333_v32 = vadd.f32 %v6237_v56, %v5983_v30  ;;  %v5985_v38 = vpop.f32.mrb[118].mxu1  ;;  %v6260_v56 = vld [vmem:[#allocation18 + $0xf8] sm:$0xff] }
 0x670   : > { %6719 = vmatmul.mubr.f32.gmra.mrb[148].mxu1 %v6332_v57  ;;  %v5987_v42 = vpop.f32.mrb[119].mxu1  ;;  %v6335_v45 = vadd.f32 %v6239_v49, %v5985_v38 }
 0x671   : > { %6724 = vmatprep.mubr.f32.mxu1 %v16491_v58  ;;  %6944 = vmatmul.mubr.f32.gmra.mrb[164].mxu0 %v6333_v32  ;;  %v6336_v23 = vadd.f32 %v6240_v13, %v5987_v42  ;;  %v6263_v42 = vld [vmem:[#allocation18 + $0x110] sm:$0xff] }
 0x672   : > { %6949 = vmatprep.mubr.f32.mxu0 %v16491_v58 }
 0x674   : > { %6725 = vmatmul.mubr.f32.gmra.mrb[150].mxu1 %v6335_v45  ;;  %v6264_v45 = vld [vmem:[#allocation18 + $0x118] sm:$0xff] }
 0x675   : > { %v5991_v50 = vpop.f32.mrb[120].mxu1  ;;  %6730 = vmatprep.mubr.f32.mxu1 %v16491_v58  ;;  %6950 = vmatmul.mubr.f32.gmra.mrb[166].mxu0 %v6336_v23 }
 0x676   : > { %v6338_v47 = vadd.f32 %v6242_v31, %v5991_v50  ;;  %v5993_v22 = vpop.f32.mrb[121].mxu1  ;;  %6955 = vmatprep.mubr.f32.mxu0 %v16491_v58  ;;  %v6267_v50 = vld [vmem:[#allocation18 + $0x130] sm:$0xff] }
 0x677   : > { %v6339_v35 = vadd.f32 %v6243_v0, %v5993_v22  ;;  %v5995_v53 = vpop.f32.mrb[122].mxu1  ;;  %v6266_v0 = vld [vmem:[#allocation18 + $0x128] sm:$0xff] }
 0x678   : > { %6731 = vmatmul.mubr.f32.gmra.mrb[152].mxu1 %v6338_v47  ;;  %v5997_v7 = vpop.f32.mrb[123].mxu1  ;;  %v6341_v33 = vadd.f32 %v6245_v46, %v5995_v53  ;;  %v7236_v53 = vld [vmem:[%s10635_s17 + $0x80] sm:$0xff]  ;;  %v7237_v46 = vld [vmem:[%s10635_s17 + $0x88] sm:$0xff] }
 0x679   : > { %6736 = vmatprep.mubr.f32.mxu1 %v16491_v58  ;;  %6956 = vmatmul.mubr.f32.gmra.mrb[168].mxu0 %v6339_v35  ;;  %v6342_v6 = vadd.f32 %v6246_v61, %v5997_v7  ;;  %v7220_v7 = vld [vmem:[%s10635_s17] sm:$0xff] }
 0x67a   : > { %6961 = vmatprep.mubr.f32.mxu0 %v16491_v58 }
 0x67c   : > { %6737 = vmatmul.mubr.f32.gmra.mrb[154].mxu1 %v6341_v33 }
 0x67d   : > { %v6001_v9 = vpop.f32.mrb[124].mxu1  ;;  %6742 = vmatprep.mubr.f32.mxu1 %v16491_v58  ;;  %6962 = vmatmul.mubr.f32.gmra.mrb[170].mxu0 %v6342_v6  ;;  %v6269_v6 = vld [vmem:[#allocation18 + $0x140] sm:$0xff] }
 0x67e   : > { %v6344_v8 = vadd.f32 %v6248_v20, %v6001_v9  ;;  %v6003_v43 = vpop.f32.mrb[125].mxu1  ;;  %6967 = vmatprep.mubr.f32.mxu0 %v16491_v58  ;;  %v9225_v20 = vpack.c.bf16 %v7237_v46, %v7236_v53  ;;  %v7229_v53 = vld [vmem:[%s10635_s17 + $0x48] sm:$0xff] }
 0x67f   : > { %v6345_v17 = vadd.f32 %v6249_v2, %v6003_v43  ;;  %v6005_v37 = vpop.f32.mrb[126].mxu1  ;;  %v7221_v2 = vld [vmem:[%s10635_s17 + $0x8] sm:$0xff] }
 0x680   : > { %6743 = vmatmul.mubr.f32.gmra.mrb[156].mxu1 %v6344_v8  ;;  %v6007_v52 = vpop.f32.mrb[127].mxu1  ;;  %v6347_v26 = vadd.f32 %v6251_v59, %v6005_v37  ;;  %v6270_v8 = vld [vmem:[#allocation18 + $0x148] sm:$0xff]  ;;  %v9227_v43 = vpack.c.bf16 %v7221_v2, %v7220_v7  ;;  %9226 = vmatprep.subr.bf16.mxu1 %v9225_v20  ;;  %v6272_v59 = vld [vmem:[#allocation18 + $0x158] sm:$0xff]  ;;  %v7246_v7 = vld [vmem:[%s10635_s17 + $0xd0] sm:$0xff] }
 0x681   : > { %6748 = vmatprep.mubr.f32.mxu1 %v16491_v58  ;;  %6968 = vmatmul.mubr.f32.gmra.mrb[172].mxu0 %v6345_v17  ;;  %v6348_v40 = vadd.f32 %v6252_v25, %v6007_v52  ;;  %v6273_v52 = vld [vmem:[#allocation18 + $0x160] sm:$0xff]  ;;  %v7231_v20 = vld [vmem:[%s10635_s17 + $0x58] sm:$0xff] }
 0x682   : > { %6973 = vmatprep.mubr.f32.mxu0 %v16491_v58  ;;  %9228 = vmatpush3.bf16.msra.mxu1 %v9227_v43 }
 0x684   : > { %6749 = vmatmul.mubr.f32.gmra.mrb[158].mxu1 %v6347_v26 }
 0x685   : > { %v6011_v62 = vpop.f32.mrb[128].mxu1  ;;  %6754 = vmatprep.mubr.f32.mxu1 %v16491_v58  ;;  %6974 = vmatmul.mubr.f32.gmra.mrb[174].mxu0 %v6348_v40 }
 0x686   : > { %v6350_v44 = vadd.f32 %v6254_v51, %v6011_v62  ;;  %v6013_v14 = vpop.f32.mrb[129].mxu1  ;;  %6979 = vmatprep.mubr.f32.mxu0 %v16491_v58  ;;  %v7238_v51 = vld [vmem:[%s10635_s17 + $0x90] sm:$0xff] }
 0x687   : > { %v6351_v1 = vadd.f32 %v6255_v3, %v6013_v14  ;;  %v6015_v5 = vpop.f32.mrb[130].mxu1  ;;  %v7239_v3 = vld [vmem:[%s10635_s17 + $0x98] sm:$0xff]  ;;  %v7222_v62 = vld [vmem:[%s10635_s17 + $0x10] sm:$0xff] }
 0x688   : > { %6755 = vmatmul.mubr.f32.gmra.mrb[160].mxu1 %v6350_v44  ;;  %v6017_v19 = vpop.f32.mrb[131].mxu1  ;;  %v6353_v60 = vadd.f32 %v6257_v27, %v6015_v5  ;;  %v9229_v5 = vpack.c.bf16 %v7239_v3, %v7238_v51  ;;  %v7223_v27 = vld [vmem:[%s10635_s17 + $0x18] sm:$0xff] }
 0x689   : > { %6760 = vmatprep.mubr.f32.mxu1 %v16491_v58  ;;  %6980 = vmatmul.mubr.f32.gmra.mrb[176].mxu0 %v6351_v1  ;;  %v6354_v54 = vadd.f32 %v6258_v12, %v6017_v19  ;;  %v6275_v1 = vld [vmem:[#allocation18 + $0x170] sm:$0xff]  ;;  %v6276_v12 = vld [vmem:[#allocation18 + $0x178] sm:$0xff] }
 0x68a   : > { %6985 = vmatprep.mubr.f32.mxu0 %v16491_v58  ;;  %9230 = vmatprep.subr.bf16.mxu1 %v9229_v5  ;;  %v7235_v51 = vld [vmem:[%s10635_s17 + $0x78] sm:$0xff] }
 0x68c   : > { %6761 = vmatmul.mubr.f32.gmra.mrb[162].mxu1 %v6353_v60  ;;  %v9231_v60 = vpack.c.bf16 %v7223_v27, %v7222_v62  ;;  %v6405_v62 = vld [vmem:[%s10651_s24] sm:$0x3] }
 0x68d   : > { %v6021_v57 = vpop.f32.mrb[132].mxu1  ;;  %6766 = vmatprep.mubr.f32.mxu1 %v16491_v58  ;;  %6986 = vmatmul.mubr.f32.gmra.mrb[178].mxu0 %v6354_v54 }
 0x68e   : > { %v6356_v30 = vadd.f32 %v6260_v56, %v6021_v57  ;;  %v6023_v32 = vpop.f32.mrb[133].mxu1  ;;  %6991 = vmatprep.mubr.f32.mxu0 %v16491_v58  ;;  %9232 = vmatpush3.bf16.msra.mxu1 %v9231_v60  ;;  %v7241_v57 = vld [vmem:[%s10635_s17 + $0xa8] sm:$0xff] }
 0x68f   : > { %v6357_v38 = vadd.f32 %v6261_v24, %v6023_v32  ;;  %v6025_v49 = vpop.f32.mrb[134].mxu1  ;;  %v7240_v24 = vld [vmem:[%s10635_s17 + $0xa0] sm:$0xff] }
 0x690   : > { %6767 = vmatmul.mubr.f32.gmra.mrb[164].mxu1 %v6356_v30  ;;  %v6027_v13 = vpop.f32.mrb[135].mxu1  ;;  %v6359_v23 = vadd.f32 %v6263_v42, %v6025_v49  ;;  %v7224_v30 = vld [vmem:[%s10635_s17 + $0x20] sm:$0xff]  ;;  %v9233_v32 = vpack.c.bf16 %v7241_v57, %v7240_v24  ;;  %v7242_v42 = vld [vmem:[%s10635_s17 + $0xb0] sm:$0xff] }
 0x691   : > { %6772 = vmatprep.mubr.f32.mxu1 %v16491_v58  ;;  %6992 = vmatmul.mubr.f32.gmra.mrb[180].mxu0 %v6357_v38  ;;  %v6360_v31 = vadd.f32 %v6264_v45, %v6027_v13  ;;  %v7225_v38 = vld [vmem:[%s10635_s17 + $0x28] sm:$0xff]  ;;  %v7243_v13 = vld [vmem:[%s10635_s17 + $0xb8] sm:$0xff]  ;;  %v7226_v45 = vld [vmem:[%s10635_s17 + $0x30] sm:$0xff] }
 0x692   : > { %6997 = vmatprep.mubr.f32.mxu0 %v16491_v58  ;;  %v9235_v49 = vpack.c.bf16 %v7225_v38, %v7224_v30  ;;  %9234 = vmatprep.subr.bf16.mxu1 %v9233_v32 }
 0x694   : > { %6773 = vmatmul.mubr.f32.gmra.mrb[166].mxu1 %v6359_v23  ;;  %v9237_v23 = vpack.c.bf16 %v7243_v13, %v7242_v42 }
 0x695   : > { %v6031_v47 = vpop.f32.mrb[136].mxu1  ;;  %6778 = vmatprep.mubr.f32.mxu1 %v16491_v58  ;;  %6998 = vmatmul.mubr.f32.gmra.mrb[182].mxu0 %v6360_v31  ;;  %v7227_v31 = vld [vmem:[%s10635_s17 + $0x38] sm:$0xff] }
 0x696   : > { %v6362_v22 = vadd.f32 %v6266_v0, %v6031_v47  ;;  %v6033_v35 = vpop.f32.mrb[137].mxu1  ;;  %7003 = vmatprep.mubr.f32.mxu0 %v16491_v58  ;;  %9236 = vmatpush3.bf16.msra.mxu1 %v9235_v49  ;;  %v9239_v0 = vpack.c.bf16 %v7227_v31, %v7226_v45  ;;  %v7245_v47 = vld [vmem:[%s10635_s17 + $0xc8] sm:$0xff] }
 0x697   : > { %v6363_v61 = vadd.f32 %v6267_v50, %v6033_v35  ;;  %v6035_v33 = vpop.f32.mrb[138].mxu1  ;;  %9238 = vmatprep.subr.bf16.mxu1 %v9237_v23  ;;  %v7244_v50 = vld [vmem:[%s10635_s17 + $0xc0] sm:$0xff] }
 0x698   : > { %6779 = vmatmul.mubr.f32.gmra.mrb[168].mxu1 %v6362_v22  ;;  %v6037_v9 = vpop.f32.mrb[139].mxu1  ;;  %v6365_v17 = vadd.f32 %v6269_v6, %v6035_v33  ;;  %v9241_v22 = vpack.c.bf16 %v7245_v47, %v7244_v50  ;;  %v7228_v35 = vld [vmem:[%s10635_s17 + $0x40] sm:$0xff]  ;;  %v7230_v6 = vld [vmem:[%s10635_s17 + $0x50] sm:$0xff] }
 0x699   : > { %6784 = vmatprep.mubr.f32.mxu1 %v16491_v58  ;;  %7004 = vmatmul.mubr.f32.gmra.mrb[184].mxu0 %v6363_v61  ;;  %v6366_v37 = vadd.f32 %v6270_v8, %v6037_v9  ;;  %v9243_v46 = vpack.c.bf16 %v7229_v53, %v7228_v35  ;;  %v7247_v61 = vld [vmem:[%s10635_s17 + $0xd8] sm:$0xff]  ;;  %v9247_v2 = vpack.c.bf16 %v7231_v20, %v7230_v6  ;;  %v7248_v9 = vld [vmem:[%s10635_s17 + $0xe0] sm:$0xff]  ;;  %v7249_v8 = vld [vmem:[%s10635_s17 + $0xe8] sm:$0xff] }
 0x69a   : > { %7009 = vmatprep.mubr.f32.mxu0 %v16491_v58  ;;  %9240 = vmatpush3.bf16.msra.mxu1 %v9239_v0  ;;  %v9245_v33 = vpack.c.bf16 %v7247_v61, %v7246_v7  ;;  %v9249_v43 = vpack.c.bf16 %v7249_v8, %v7248_v9 }
 0x69b   : > { %9242 = vmatprep.subr.bf16.mxu1 %v9241_v22 }
 0x69c   : > { %6785 = vmatmul.mubr.f32.gmra.mrb[170].mxu1 %v6365_v17  ;;  %v7232_v17 = vld [vmem:[%s10635_s17 + $0x60] sm:$0xff] }
 0x69d   : > { %v6041_v25 = vpop.f32.mrb[140].mxu1  ;;  %6790 = vmatprep.mubr.f32.mxu1 %v16491_v58  ;;  %7010 = vmatmul.mubr.f32.gmra.mrb[186].mxu0 %v6366_v37  ;;  %v7233_v37 = vld [vmem:[%s10635_s17 + $0x68] sm:$0xff] }
 0x69e   : > { %v6368_v26 = vadd.f32 %v6272_v59, %v6041_v25  ;;  %v6043_v40 = vpop.f32.mrb[141].mxu1  ;;  %7015 = vmatprep.mubr.f32.mxu0 %v16491_v58  ;;  %9244 = vmatpush3.bf16.msra.mxu1 %v9243_v46  ;;  %v9251_v59 = vpack.c.bf16 %v7233_v37, %v7232_v17  ;;  %v7251_v25 = vld [vmem:[%s10635_s17 + $0xf8] sm:$0xff] }
 0x69f   : > { %v6369_v44 = vadd.f32 %v6273_v52, %v6043_v40  ;;  %v6045_v14 = vpop.f32.mrb[142].mxu1  ;;  %9246 = vmatprep.subr.bf16.mxu1 %v9245_v33  ;;  %v7250_v52 = vld [vmem:[%s10635_s17 + $0xf0] sm:$0xff] }
 0x6a0   : > { %6791 = vmatmul.mubr.f32.gmra.mrb[172].mxu1 %v6368_v26  ;;  %v6047_v19 = vpop.f32.mrb[143].mxu1  ;;  %v6371_v54 = vadd.f32 %v6275_v1, %v6045_v14  ;;  %v9253_v26 = vpack.c.bf16 %v7251_v25, %v7250_v52  ;;  %v7234_v40 = vld [vmem:[%s10635_s17 + $0x70] sm:$0xff]  ;;  %v16502_v1 = vld [vmem:[#allocation38_spill] sm:$0xff] }
 0x6a1   : > { %6796 = vmatprep.mubr.f32.mxu1 %v16491_v58  ;;  %7016 = vmatmul.mubr.f32.gmra.mrb[188].mxu0 %v6369_v44  ;;  %v6372_v56 = vadd.f32 %v6276_v12, %v6047_v19  ;;  %v9255_v3 = vpack.c.bf16 %v7235_v51, %v7234_v40  ;;  %v16501_v44 = vld [vmem:[#allocation32_spill] sm:$0xff]  ;;  %v14835_v5 = vrot.slane %v6405_v62, %v16502_v1 }
 0x6a2   : > { %7021 = vmatprep.mubr.f32.mxu0 %v16491_v58  ;;  %9248 = vmatpush3.bf16.msra.mxu1 %v9247_v2  ;;  %v14832_v14 = vrot.slane %v6405_v62, %v16501_v44  ;;  %v6187_v44 = vld [vmem:[#allocation17 + $0x30] sm:$0xff] }
 0x6a3   : > { %9250 = vmatprep.subr.bf16.mxu1 %v9249_v43 }
 0x6a4   : > { %6797 = vmatmul.mubr.f32.gmra.mrb[174].mxu1 %v6371_v54 }
 0x6a5   : > { %7022 = vmatmul.mubr.f32.gmra.mrb[190].mxu0 %v6372_v56 }
 0x6a6   : > { %7645 = vmatprep.mubr.f32.mxu0 %v16491_v58  ;;  %9252 = vmatpush3.bf16.msra.mxu1 %v9251_v59 }
 0x6a7   : > { %9254 = vmatprep.subr.bf16.mxu1 %v9253_v26 }
 0x6aa   : > { %9256 = vmatpush3.bf16.msra.mxu1 %v9255_v3 }
 0x6f8   : > { %v6483_v27 = vpop.f32.mrb[128].mxu0 }
 0x6f9   : > { %v14838_v19 = vadd.f32 %v6483_v27, %v14832_v14  ;;  %v6485_v12 = vpop.f32.mrb[129].mxu0 }
 0x6fa   : > { %v14841_v60 = vadd.f32 %v6485_v12, %v14835_v5 }
 0x6fc   : > { %16503 = vst [vmem:[#allocation53_spill] sm:$0xff] %v14841_v60  ;;  %v14845_v54 = vmul.f32 %v14841_v60, %v14838_v19  ;;  %v6489_v56 = vpop.f32.mrb[130].mxu0  ;;  %v6186_v60 = vld [vmem:[#allocation17 + $0x28] sm:$0xff] }
 0x6fd   : > { %v14848_v24 = vadd.f32 %v6489_v56, %v14832_v14  ;;  %v6491_v57 = vpop.f32.mrb[131].mxu0 }
 0x6fe   : > { %v14851_v30 = vadd.f32 %v6491_v57, %v14835_v5 }
 0x700   : > { %16504 = vst [vmem:[#allocation43_spill] sm:$0xff] %v14851_v30  ;;  %v14855_v32 = vmul.f32 %v14851_v30, %v14848_v24  ;;  %v6495_v38 = vpop.f32.mrb[132].mxu0 }
 0x701   : > { %v14858_v49 = vadd.f32 %v6495_v38, %v14832_v14  ;;  %v6497_v42 = vpop.f32.mrb[133].mxu0 }
 0x702   : > { %v14861_v13 = vadd.f32 %v6497_v42, %v14835_v5 }
 0x704   : > { %16505 = vst [vmem:[#allocation84_spill] sm:$0xff] %v14861_v13  ;;  %v14865_v45 = vmul.f32 %v14861_v13, %v14858_v49  ;;  %v6501_v23 = vpop.f32.mrb[134].mxu0 }
 0x705   : > { %v14868_v31 = vadd.f32 %v6501_v23, %v14832_v14  ;;  %v6503_v0 = vpop.f32.mrb[135].mxu0 }
 0x706   : > { %v14871_v50 = vadd.f32 %v6503_v0, %v14835_v5 }
 0x708   : > { %16506 = vst [vmem:[#allocation51_spill] sm:$0xff] %v14871_v50  ;;  %v14875_v47 = vmul.f32 %v14871_v50, %v14868_v31  ;;  %v6507_v22 = vpop.f32.mrb[136].mxu0  ;;  %v7532_v50 = vld [vmem:[%s10667_s28 + $0x80] sm:$0xff] }
 0x709   : > { %v14878_v35 = vadd.f32 %v6507_v22, %v14832_v14  ;;  %v6509_v53 = vpop.f32.mrb[137].mxu0 }
 0x70a   : > { %v14881_v46 = vadd.f32 %v6509_v53, %v14835_v5 }
 0x70c   : > { %16507 = vst [vmem:[#allocation47_spill] sm:$0xff] %v14881_v46  ;;  %v14885_v7 = vmul.f32 %v14881_v46, %v14878_v35  ;;  %v6513_v61 = vpop.f32.mrb[138].mxu0 }
 0x70d   : > { %v14888_v33 = vadd.f32 %v6513_v61, %v14832_v14  ;;  %v6515_v6 = vpop.f32.mrb[139].mxu0 }
 0x70e   : > { %v14891_v20 = vadd.f32 %v6515_v6, %v14835_v5 }
 0x710   : > { %16508 = vst [vmem:[#allocation57_spill] sm:$0xff] %v14891_v20  ;;  %v14895_v2 = vmul.f32 %v14891_v20, %v14888_v33  ;;  %v6519_v9 = vpop.f32.mrb[140].mxu0 }
 0x711   : > { %v14898_v8 = vadd.f32 %v6519_v9, %v14832_v14  ;;  %v6521_v43 = vpop.f32.mrb[141].mxu0 }
 0x712   : > { %v14901_v17 = vadd.f32 %v6521_v43, %v14835_v5 }
 0x714   : > { %16509 = vst [vmem:[#allocation54_spill] sm:$0xff] %v14901_v17  ;;  %v14905_v37 = vmul.f32 %v14901_v17, %v14898_v8  ;;  %v6525_v59 = vpop.f32.mrb[142].mxu0  ;;  %v7525_v17 = vld [vmem:[%s10667_s28 + $0x48] sm:$0xff] }
 0x715   : > { %v14908_v52 = vadd.f32 %v6525_v59, %v14832_v14  ;;  %v6527_v25 = vpop.f32.mrb[143].mxu0 }
 0x716   : > { %v14911_v26 = vadd.f32 %v6527_v25, %v14835_v5  ;;  %v7517_v25 = vld [vmem:[%s10667_s28 + $0x8] sm:$0xff] }
 0x718   : > { %16510 = vst [vmem:[#allocation37_spill] sm:$0xff] %v14911_v26  ;;  %v14915_v40 = vmul.f32 %v14911_v26, %v14908_v52  ;;  %v6531_v51 = vpop.f32.mrb[144].mxu0  ;;  %v7522_v26 = vld [vmem:[%s10667_s28 + $0x30] sm:$0xff] }
 0x719   : > { %v14918_v3 = vadd.f32 %v6531_v51, %v14832_v14  ;;  %v6533_v62 = vpop.f32.mrb[145].mxu0  ;;  %v7520_v51 = vld [vmem:[%s10667_s28 + $0x20] sm:$0xff] }
 0x71a   : > { %v14921_v27 = vadd.f32 %v6533_v62, %v14835_v5  ;;  %v7516_v62 = vld [vmem:[%s10667_s28] sm:$0xff] }
 0x71c   : > { %16511 = vst [vmem:[#allocation56_spill] sm:$0xff] %v14921_v27  ;;  %v14925_v12 = vmul.f32 %v14921_v27, %v14918_v3  ;;  %v6537_v56 = vpop.f32.mrb[146].mxu0 }
 0x71d   : > { %v14928_v57 = vadd.f32 %v6537_v56, %v14832_v14  ;;  %v6539_v38 = vpop.f32.mrb[147].mxu0 }
 0x71e   : > { %v14931_v42 = vadd.f32 %v6539_v38, %v14835_v5  ;;  %v9257_v38 = vpack.c.bf16 %v7520_v51, %v7517_v25  ;;  %v9263_v51 = vpack.c.bf16 %v7525_v17, %v7522_v26 }
 0x720   : > { %16512 = vst [vmem:[#allocation39_spill] sm:$0xff] %v14931_v42  ;;  %v14935_v23 = vmul.f32 %v14931_v42, %v14928_v57  ;;  %v6543_v0 = vpop.f32.mrb[148].mxu0  ;;  %v7526_v42 = vld [vmem:[%s10667_s28 + $0x50] sm:$0xff]  ;;  %9258 = vmatprep.subr.bf16.mxu0 %v9257_v38 }
 0x721   : > { %v14938_v22 = vadd.f32 %v6543_v0, %v14832_v14  ;;  %v6545_v53 = vpop.f32.mrb[149].mxu0  ;;  %v7519_v0 = vld [vmem:[%s10667_s28 + $0x18] sm:$0xff] }
 0x722   : > { %v14941_v61 = vadd.f32 %v6545_v53, %v14835_v5  ;;  %v7523_v53 = vld [vmem:[%s10667_s28 + $0x38] sm:$0xff]  ;;  %v9259_v27 = vpack.c.bf16 %v7519_v0, %v7516_v62  ;;  %v7528_v0 = vld [vmem:[%s10667_s28 + $0x60] sm:$0xff] }
 0x724   : > { %16513 = vst [vmem:[#allocation63_spill] sm:$0xff] %v14941_v61  ;;  %v14945_v6 = vmul.f32 %v14941_v61, %v14938_v22  ;;  %v6549_v9 = vpop.f32.mrb[150].mxu0  ;;  %v9261_v61 = vpack.c.bf16 %v7526_v42, %v7523_v53  ;;  %9260 = vmatpush1.bf16.msra.mxu0 %v9259_v27  ;;  %v7531_v53 = vld [vmem:[%s10667_s28 + $0x78] sm:$0xff] }
 0x725   : > { %v14948_v43 = vadd.f32 %v6549_v9, %v14832_v14  ;;  %v6551_v59 = vpop.f32.mrb[151].mxu0  ;;  %v7529_v9 = vld [vmem:[%s10667_s28 + $0x68] sm:$0xff]  ;;  %v9267_v30 = vpack.c.bf16 %v7531_v53, %v7528_v0 }
 0x726   : > { %v14954_v56 = vadd.f32 %v6551_v59, %v14835_v5  ;;  %9262 = vmatprep.subr.bf16.mxu0 %v9261_v61  ;;  %v9265_v42 = vpack.c.bf16 %v7532_v50, %v7529_v9 }
 0x728   : > { %16514 = vst [vmem:[#allocation77_spill] sm:$0xff] %v14954_v56  ;;  %v14964_v20 = vmul.f32 %v14954_v56, %v14948_v43  ;;  %v6555_v46 = vpop.f32.mrb[152].mxu0  ;;  %9264 = vmatpush1.bf16.msra.mxu0 %v9263_v51 }
 0x729   : > { %v14968_v59 = vadd.f32 %v6555_v46, %v14832_v14  ;;  %v6557_v25 = vpop.f32.mrb[153].mxu0  ;;  %9266 = vmatprep.subr.bf16.mxu0 %v9265_v42 }
 0x72a   : > { %v14971_v62 = vadd.f32 %v6557_v25, %v14835_v5 }
 0x72c   : > { %16515 = vst [vmem:[#allocation60_spill] sm:$0xff] %v14971_v62  ;;  %v14977_v56 = vmul.f32 %v14971_v62, %v14968_v59  ;;  %v6561_v13 = vpop.f32.mrb[154].mxu0  ;;  %9268 = vmatpush1.bf16.msra.mxu0 %v9267_v30  ;;  %v6181_v30 = vld [vmem:[#allocation17] sm:$0xff] }
 0x72d   : > { %v14980_v38 = vadd.f32 %v6561_v13, %v14832_v14  ;;  %v6563_v46 = vpop.f32.mrb[155].mxu0 }
 0x72e   : > { %v14983_v17 = vadd.f32 %v6563_v46, %v14835_v5  ;;  %v6182_v46 = vld [vmem:[#allocation17 + $0x8] sm:$0xff] }
 0x730   : > { %16516 = vst [vmem:[#allocation64_spill] sm:$0xff] %v14983_v17  ;;  %v14987_v50 = vmul.f32 %v14983_v17, %v14980_v38  ;;  %v6567_v26 = vpop.f32.mrb[156].mxu0  ;;  %v6185_v17 = vld [vmem:[#allocation17 + $0x20] sm:$0xff] }
 0x731   : > { %v14990_v27 = vadd.f32 %v6567_v26, %v14832_v14  ;;  %v6569_v61 = vpop.f32.mrb[157].mxu0  ;;  %v6183_v26 = vld [vmem:[#allocation17 + $0x10] sm:$0xff] }
 0x732   : > { %v14993_v13 = vadd.f32 %v6569_v61, %v14835_v5  ;;  %v6184_v61 = vld [vmem:[#allocation17 + $0x18] sm:$0xff] }
 0x733   : > { %v15020_v4 = vadd.f32 %v6184_v61, %v14715_v15  ;;  %v15038_v15 = vadd.f32 %v6187_v44, %v14731_v16 }
 0x734   : > { %16517 = vst [vmem:[#allocation59_spill] sm:$0xff] %v14993_v13  ;;  %v14997_v9 = vmul.f32 %v14993_v13, %v14990_v27  ;;  %v6573_v25 = vpop.f32.mrb[158].mxu0  ;;  %v15010_v13 = vadd.f32 %v6181_v30, %v14704_v39 }
 0x735   : > { %v15000_v51 = vadd.f32 %v6573_v25, %v14832_v14  ;;  %v6575_v42 = vpop.f32.mrb[159].mxu0  ;;  %v15013_v25 = vadd.f32 %v6182_v46, %v14706_v29  ;;  %v15027_v29 = vadd.f32 %v6185_v17, %v14721_v11  ;;  %v6579_v11 = vmul.f32 %v14848_v24, %v14848_v24 }
 0x736   : > { %v15003_v0 = vadd.f32 %v6575_v42, %v14835_v5 }
 0x738   : > { %16518 = vst [vmem:[#allocation74_spill] sm:$0xff] %v15003_v0  ;;  %v15007_v53 = vmul.f32 %v15003_v0, %v15000_v51  ;;  %v15017_v0 = vadd.f32 %v6183_v26, %v14711_v48  ;;  %v15035_v48 = vadd.f32 %v6186_v60, %v14725_v18  ;;  %v6580_v18 = vmul.f32 %v14858_v49, %v14858_v49 }
 0x739   : > { %v15063_v49 = vmul.f32 %v14878_v35, %v14878_v35  ;;  %v15078_v35 = vmul.f32 %v14898_v8, %v14898_v8  ;;  %v15093_v8 = vmul.f32 %v14908_v52, %v14908_v52  ;;  %v15108_v52 = vmul.f32 %v14928_v57, %v14928_v57 }
 0x73a   : > { %v15123_v57 = vmul.f32 %v14938_v22, %v14938_v22 }
 0x73b   : > { %v6708_v62 = vpop.f32.mrb[144].mxu1 }
 0x73c   : > { %v6709_v42 = vadd.f32 %v6708_v62, %v14832_v14  ;;  %v6710_v1 = vpop.f32.mrb[145].mxu1  ;;  %v6933_v58 = vpop.f32.mrb[160].mxu0  ;;  %v6578_v62 = vmul.f32 %v14838_v19, %v14838_v19 }
 0x73d   : > { %v15023_v36 = vadd.f32 %v6710_v1, %v14835_v5  ;;  %v6934_v39 = vadd.f32 %v6933_v58, %v14832_v14  ;;  %v6935_v30 = vpop.f32.mrb[161].mxu0 }
 0x73e   : > { %v6803_v46 = vmul.f32 %v6709_v42, %v6709_v42  ;;  %v15032_v41 = vadd.f32 %v6935_v30, %v14835_v5 }
 0x73f   : > { %16519 = vst [vmem:[#allocation86_spill] sm:$0xff] %v15023_v36  ;;  %v6835_v1 = vmul.f32 %v15023_v36, %v6709_v42  ;;  %v7028_v58 = vmul.f32 %v6934_v39, %v6934_v39  ;;  %v6714_v26 = vpop.f32.mrb[146].mxu1  ;;  %v6581_v42 = vmul.f32 %v14868_v31, %v14868_v31 }
 0x740   : > { %16520 = vst [vmem:[#allocation36_spill] sm:$0xff] %v15032_v41  ;;  %v6819_v17 = vadd.f32 %v6803_v46, %v6578_v62  ;;  %v6715_v19 = vadd.f32 %v6714_v26, %v14832_v14  ;;  %v15045_v61 = vmul.f32 %v15032_v41, %v6934_v39  ;;  %v6716_v30 = vpop.f32.mrb[147].mxu1  ;;  %v6939_v55 = vpop.f32.mrb[162].mxu0 }
 0x741   : > { %v15050_v16 = vadd.f32 %v6835_v1, %v14845_v54  ;;  %v15053_v44 = vadd.f32 %v6716_v30, %v14835_v5  ;;  %v6940_v60 = vadd.f32 %v6939_v55, %v14832_v14  ;;  %v6941_v24 = vpop.f32.mrb[163].mxu0  ;;  %v15067_v54 = vmul.f32 %v14888_v33, %v14888_v33 }
 0x742   : > { %v7044_v62 = vadd.f32 %v7028_v58, %v6819_v17  ;;  %v6804_v39 = vmul.f32 %v6715_v19, %v6715_v19  ;;  %v15059_v46 = vadd.f32 %v6941_v24, %v14835_v5 }
 0x743   : > { %16521 = vst [vmem:[#allocation44_spill] sm:$0xff] %v15053_v44  ;;  %v6836_v1 = vmul.f32 %v15053_v44, %v6715_v19  ;;  %v7029_v55 = vmul.f32 %v6940_v60, %v6940_v60  ;;  %v6720_v26 = vpop.f32.mrb[148].mxu1 }
 0x744   : > { %16522 = vst [vmem:[#allocation35_spill] sm:$0xff] %v15059_v46  ;;  %v15070_v30 = vadd.f32 1e-08, %v7044_v62  ;;  %v6820_v31 = vadd.f32 %v6804_v39, %v6579_v11  ;;  %v6721_v58 = vadd.f32 %v6720_v26, %v14832_v14  ;;  %v15074_v17 = vmul.f32 %v15059_v46, %v6940_v60  ;;  %v6722_v24 = vpop.f32.mrb[149].mxu1  ;;  %v6945_v41 = vpop.f32.mrb[164].mxu0 }
 0x745   : > { %v15081_v33 = vadd.f32 %v6836_v1, %v14855_v32  ;;  %v15084_v19 = vadd.f32 %v6722_v24, %v14835_v5  ;;  %v6946_v62 = vadd.f32 %v6945_v41, %v14832_v14  ;;  %v6947_v11 = vpop.f32.mrb[165].mxu0  ;;  %v15097_v32 = vmul.f32 %v14918_v3, %v14918_v3 }
 0x746   : > { %v7045_v39 = vadd.f32 %v7029_v55, %v6820_v31  ;;  %v6805_v26 = vmul.f32 %v6721_v58, %v6721_v58  ;;  %v15088_v60 = vadd.f32 %v6947_v11, %v14835_v5  ;;  %9744 = vrsqrt.f32 %v15070_v30 }
 0x747   : > { %16523 = vst [vmem:[#allocation83_spill] sm:$0xff] %v15084_v19  ;;  %v6837_v1 = vmul.f32 %v15084_v19, %v6721_v58  ;;  %v7030_v24 = vmul.f32 %v6946_v62, %v6946_v62  ;;  %v6726_v41 = vpop.f32.mrb[150].mxu1  ;;  %vm7110_vm6 = vcmp.eq.f32.partialorder %v15070_v30, inf  ;;  %vm7112_vm13 = vcmp.eq.f32.partialorder %v15070_v30, 0.0 }
 0x748   : > { %16524 = vst [vmem:[#allocation69_spill] sm:$0xff] %v15088_v60  ;;  %v15100_v46 = vadd.f32 1e-08, %v7045_v39  ;;  %v6821_v55 = vadd.f32 %v6805_v26, %v6580_v18  ;;  %v6727_v31 = vadd.f32 %v6726_v41, %v14832_v14  ;;  %v15104_v11 = vmul.f32 %v15088_v60, %v6946_v62  ;;  %v6728_v44 = vpop.f32.mrb[151].mxu1  ;;  %v6951_v36 = vpop.f32.mrb[166].mxu0 }
 0x749   : > { %v15111_v3 = vadd.f32 %v6837_v1, %v14865_v45  ;;  %v15114_v58 = vadd.f32 %v6728_v44, %v14835_v5  ;;  %v6952_v39 = vadd.f32 %v6951_v36, %v14832_v14  ;;  %v6953_v18 = vpop.f32.mrb[167].mxu0  ;;  %v15127_v45 = vmul.f32 %v14948_v43, %v14948_v43 }
 0x74a   : > { %16525 = vst [vmem:[#allocation33_spill] sm:$0xff] %v15104_v11  ;;  %v7046_v26 = vadd.f32 %v7030_v24, %v6821_v55  ;;  %v6806_v41 = vmul.f32 %v6727_v31, %v6727_v31  ;;  %v15118_v62 = vadd.f32 %v6953_v18, %v14835_v5  ;;  %9746 = vrsqrt.f32 %v15100_v46 }
 0x74b   : > { %16526 = vst [vmem:[#allocation65_spill] sm:$0xff] %v15111_v3  ;;  %16527 = vst [vmem:[#allocation70_spill] sm:$0xff] %v15114_v58  ;;  %v6838_v44 = vmul.f32 %v15114_v58, %v6727_v31  ;;  %v7031_v1 = vmul.f32 %v6952_v39, %v6952_v39  ;;  %v6732_v36 = vpop.f32.mrb[152].mxu1  ;;  %vm7117_vm0 = vcmp.eq.f32.partialorder %v15100_v46, inf  ;;  %vm7119_vm3 = vcmp.eq.f32.partialorder %v15100_v46, 0.0 }
 0x74c   : > { %16528 = vst [vmem:[#allocation31_spill] sm:$0xff] %v15118_v62  ;;  %v15130_v60 = vadd.f32 1e-08, %v7046_v26  ;;  %v6822_v24 = vadd.f32 %v6806_v41, %v6581_v42  ;;  %v6733_v55 = vadd.f32 %v6732_v36, %v14832_v14  ;;  %v15134_v18 = vmul.f32 %v15118_v62, %v6952_v39  ;;  %v6734_v19 = vpop.f32.mrb[153].mxu1  ;;  %v6957_v21 = vpop.f32.mrb[168].mxu0 }
 0x74d   : > { %v15137_v22 = vadd.f32 %v6838_v44, %v14875_v47  ;;  %v15140_v43 = vadd.f32 %v6734_v19, %v14835_v5  ;;  %v6958_v31 = vadd.f32 %v6957_v21, %v14832_v14  ;;  %v6959_v58 = vpop.f32.mrb[169].mxu0  ;;  %v7113_v19 = vand.u32 2147483648, %v15070_v30 }
 0x74e   : > { %v7047_v26 = vadd.f32 %v7031_v1, %v6822_v24  ;;  %v6807_v42 = vmul.f32 %v6733_v55, %v6733_v55  ;;  %v15145_v41 = vadd.f32 %v6959_v58, %v14835_v5  ;;  %9748 = vrsqrt.f32 %v15130_v60 }
 0x74f   : > { %16529 = vst [vmem:[#allocation71_spill] sm:$0xff] %v15140_v43  ;;  %v6839_v39 = vmul.f32 %v15140_v43, %v6733_v55  ;;  %v7032_v36 = vmul.f32 %v6958_v31, %v6958_v31  ;;  %v6738_v47 = vpop.f32.mrb[154].mxu1  ;;  %vm7124_vm5 = vcmp.eq.f32.partialorder %v15130_v60, inf  ;;  %vm7126_vm9 = vcmp.eq.f32.partialorder %v15130_v60, 0.0 }
 0x750   : > { %16530 = vst [vmem:[#allocation67_spill] sm:$0xff] %v15145_v41  ;;  %v9745_v44 = vpop.eup %9744  ;;  %v15151_v21 = vadd.f32 1e-08, %v7047_v26  ;;  %v6823_v62 = vadd.f32 %v6807_v42, %v15063_v49  ;;  %v6739_v1 = vadd.f32 %v6738_v47, %v14832_v14  ;;  %v15156_v58 = vmul.f32 %v15145_v41, %v6958_v31  ;;  %v6740_v24 = vpop.f32.mrb[155].mxu1 }
 0x751   : > { %v6963_v11 = vpop.f32.mrb[170].mxu0  ;;  %v15160_v55 = vadd.f32 %v6839_v39, %v14885_v7  ;;  %v15163_v43 = vadd.f32 %v6740_v24, %v14835_v5  ;;  %v7109_v49 = vmul.f32 %v9745_v44, %v15070_v30  ;;  %v7120_v41 = vand.u32 2147483648, %v15100_v46 }
 0x752   : > { %16531 = vst [vmem:[#allocation82_spill] sm:$0xff] %v15156_v58  ;;  %v6964_v26 = vadd.f32 %v6963_v11, %v14832_v14  ;;  %v6965_v3 = vpop.f32.mrb[171].mxu0  ;;  %v7048_v42 = vadd.f32 %v7032_v36, %v6823_v62  ;;  %v6808_v31 = vmul.f32 %v6739_v1, %v6739_v1  ;;  %9750 = vrsqrt.f32 %v15151_v21 }
 0x753   : > { %16532 = vst [vmem:[#allocation41_spill] sm:$0xff] %v15160_v55  ;;  %16533 = vst [vmem:[#allocation61_spill] sm:$0xff] %v15163_v43  ;;  %v15169_v47 = vadd.f32 %v6965_v3, %v14835_v5  ;;  %v6840_v7 = vmul.f32 %v15163_v43, %v6739_v1  ;;  %v6744_v58 = vpop.f32.mrb[156].mxu1  ;;  %v7111_v11 = vsel %vm7110_vm6, %v15070_v30, %v7109_v49  ;;  %v7127_v30 = vand.u32 2147483648, %v15130_v60 }
 0x754   : > { %v7033_v39 = vmul.f32 %v6964_v26, %v6964_v26  ;;  %v9747_v44 = vpop.eup %9746  ;;  %v6824_v24 = vadd.f32 %v6808_v31, %v15067_v54  ;;  %v6745_v62 = vadd.f32 %v6744_v58, %v14832_v14  ;;  %v6746_v36 = vpop.f32.mrb[157].mxu1  ;;  %v7114_v54 = vsel %vm7112_vm13, %v7113_v19, %v7111_v11 }
 0x755   : > { %16534 = vst [vmem:[#allocation79_spill] sm:$0xff] %v15169_v47  ;;  %v15180_v3 = vmul.f32 %v15169_v47, %v6964_v26  ;;  %v6969_v55 = vpop.f32.mrb[172].mxu0  ;;  %v15184_v1 = vadd.f32 %v6840_v7, %v14895_v2  ;;  %v15187_v43 = vadd.f32 %v6746_v36, %v14835_v5  ;;  %7323 = vmatprep.mubr.f32.mxu1 %v7114_v54  ;;  %v15197_v7 = vadd.f32 1e-08, %v7048_v42 }
 0x756   : > { %v6970_v49 = vadd.f32 %v6969_v55, %v14832_v14  ;;  %v6971_v31 = vpop.f32.mrb[173].mxu0  ;;  %v7049_v58 = vadd.f32 %v7033_v39, %v6824_v24  ;;  %v6809_v26 = vmul.f32 %v6745_v62, %v6745_v62  ;;  %v7116_v2 = vmul.f32 %v9747_v44, %v15100_v46  ;;  %7324 = vmatmul.mubr.f32.vlgmr.msra.gmra.mrb[176].mxu1 %v15010_v13 }
 0x757   : > { %16535 = vst [vmem:[#allocation34_spill] sm:$0xff] %v15180_v3  ;;  %v15194_v47 = vadd.f32 %v6971_v31, %v14835_v5  ;;  %v6841_v36 = vmul.f32 %v15187_v43, %v6745_v62  ;;  %v6750_v55 = vpop.f32.mrb[158].mxu1  ;;  %vm7131_vm10 = vcmp.eq.f32.partialorder %v15151_v21, inf  ;;  %vm7133_vm12 = vcmp.eq.f32.partialorder %v15151_v21, 0.0 }
 0x758   : > { %v7034_v3 = vmul.f32 %v6970_v49, %v6970_v49  ;;  %v9749_v19 = vpop.eup %9748  ;;  %v6825_v39 = vadd.f32 %v6809_v26, %v15078_v35  ;;  %v6751_v11 = vadd.f32 %v6750_v55, %v14832_v14  ;;  %v6752_v54 = vpop.f32.mrb[159].mxu1  ;;  %v7118_v35 = vsel %vm7117_vm0, %v15100_v46, %v7116_v2 }
 0x759   : > { %16536 = vst [vmem:[#allocation66_spill] sm:$0xff] %v15194_v47  ;;  %v15205_v24 = vmul.f32 %v15194_v47, %v6970_v49  ;;  %v6975_v44 = vpop.f32.mrb[174].mxu0  ;;  %v15209_v42 = vadd.f32 %v6841_v36, %v14905_v37  ;;  %v15212_v62 = vadd.f32 %v6752_v54, %v14835_v5  ;;  %v7121_v55 = vsel %vm7119_vm3, %v7120_v41, %v7118_v35 }
 0x75a   : > { %v6976_v13 = vadd.f32 %v6975_v44, %v14832_v14  ;;  %v6977_v31 = vpop.f32.mrb[175].mxu0  ;;  %v15218_v26 = vadd.f32 %v7034_v3, %v6825_v39  ;;  %v6810_v49 = vmul.f32 %v6751_v11, %v6751_v11  ;;  %7328 = vmatprep.mubr.f32.mxu1 %v7121_v55  ;;  %v7123_v44 = vmul.f32 %v9749_v19, %v15130_v60 }
 0x75b   : > { %v15223_v47 = vadd.f32 %v6977_v31, %v14835_v5  ;;  %v6842_v37 = vmul.f32 %v15212_v62, %v6751_v11  ;;  %v6756_v54 = vpop.f32.mrb[160].mxu1  ;;  %v15228_v2 = vadd.f32 1e-08, %v7049_v58  ;;  %7329 = vmatmul.mubr.f32.gmra.mrb[178].mxu1 %v15013_v25  ;;  %9752 = vrsqrt.f32 %v15197_v7 }
 0x75c   : > { %v7035_v36 = vmul.f32 %v6976_v13, %v6976_v13  ;;  %v6826_v3 = vadd.f32 %v6810_v49, %v15093_v8  ;;  %v6757_v39 = vadd.f32 %v6756_v54, %v14832_v14  ;;  %v6758_v41 = vpop.f32.mrb[161].mxu1  ;;  %v6981_v11 = vpop.f32.mrb[176].mxu0  ;;  %v7125_v8 = vsel %vm7124_vm5, %v15130_v60, %v7123_v44 }
 0x75d   : > { %v15233_v46 = vmul.f32 %v15223_v47, %v6976_v13  ;;  %v9751_v35 = vpop.eup %9750  ;;  %v15237_v31 = vadd.f32 %v6842_v37, %v14915_v40  ;;  %v15240_v19 = vadd.f32 %v6758_v41, %v14835_v5  ;;  %v6982_v58 = vadd.f32 %v6981_v11, %v14832_v14  ;;  %v6983_v49 = vpop.f32.mrb[177].mxu0 }
 0x75e   : > { %v7051_v13 = vadd.f32 %v7035_v36, %v6826_v3  ;;  %v6811_v55 = vmul.f32 %v6757_v39, %v6757_v39  ;;  %v7128_v25 = vsel %vm7126_vm9, %v7127_v30, %v7125_v8  ;;  %v15249_v54 = vadd.f32 %v6983_v49, %v14835_v5 }
 0x75f   : > { %16537 = vst [vmem:[#allocation48_spill] sm:$0xff] %v15240_v19  ;;  %v6843_v40 = vmul.f32 %v15240_v19, %v6757_v39  ;;  %v7036_v37 = vmul.f32 %v6982_v58, %v6982_v58  ;;  %7333 = vmatprep.mubr.f32.mxu1 %v7128_v25  ;;  %v6762_v41 = vpop.f32.mrb[162].mxu1  ;;  %v7130_v11 = vmul.f32 %v9751_v35, %v15151_v21  ;;  %v7134_v39 = vand.u32 2147483648, %v15151_v21 }
 0x760   : > { %16538 = vst [vmem:[#allocation73_spill] sm:$0xff] %v15249_v54  ;;  %v6827_v44 = vadd.f32 %v6811_v55, %v15097_v32  ;;  %v6763_v36 = vadd.f32 %v6762_v41, %v14832_v14  ;;  %v15257_v3 = vmul.f32 %v15249_v54, %v6982_v58  ;;  %7334 = vmatmul.mubr.f32.gmra.mrb[180].mxu1 %v15017_v0  ;;  %v6764_v60 = vpop.f32.mrb[163].mxu1  ;;  %v6987_v30 = vpop.f32.mrb[178].mxu0  ;;  %9754 = vrsqrt.f32 %v15228_v2 }
 0x761   : > { %v15262_v8 = vadd.f32 %v6843_v40, %v14925_v12  ;;  %v15265_v35 = vadd.f32 %v6764_v60, %v14835_v5  ;;  %v6988_v49 = vadd.f32 %v6987_v30, %v14832_v14  ;;  %v7132_v32 = vsel %vm7131_vm10, %v15151_v21, %v7130_v11  ;;  %v6989_v58 = vpop.f32.mrb[179].mxu0 }
 0x762   : > { %v7052_v55 = vadd.f32 %v7036_v37, %v6827_v44  ;;  %v6812_v25 = vmul.f32 %v6763_v36, %v6763_v36  ;;  %v7135_v0 = vsel %vm7133_vm12, %v7134_v39, %v7132_v32  ;;  %v15274_v41 = vadd.f32 %v6989_v58, %v14835_v5 }
 0x763   : > { %16539 = vst [vmem:[#allocation85_spill] sm:$0xff] %v15265_v35  ;;  %v15278_v12 = vmul.f32 %v14968_v59, %v14968_v59  ;;  %v15282_v40 = vmul.f32 %v14980_v38, %v14980_v38  ;;  %v6844_v60 = vmul.f32 %v15265_v35, %v6763_v36  ;;  %v7037_v11 = vmul.f32 %v6988_v49, %v6988_v49  ;;  %v6768_v37 = vpop.f32.mrb[164].mxu1 }
 0x764   : > { %16540 = vst [vmem:[#allocation76_spill] sm:$0xff] %v15274_v41  ;;  %7338 = vmatprep.mubr.f32.mxu1 %v7135_v0  ;;  %v15287_v21 = vmul.f32 %v14990_v27, %v14990_v27  ;;  %v6828_v44 = vadd.f32 %v6812_v25, %v15108_v52  ;;  %v6769_v30 = vadd.f32 %v6768_v37, %v14832_v14  ;;  %v6770_v38 = vpop.f32.mrb[165].mxu1  ;;  %v6993_v39 = vpop.f32.mrb[180].mxu0  ;;  %vm7138_vm8 = vcmp.eq.f32.partialorder %v15197_v7, inf }
 0x765   : > { %v15292_v59 = vmul.f32 %v15274_v41, %v6988_v49  ;;  %7339 = vmatmul.mubr.f32.gmra.mrb[182].mxu1 %v15020_v4  ;;  %v15297_v36 = vmul.f32 %v15000_v51, %v15000_v51  ;;  %v15300_v32 = vadd.f32 %v6844_v60, %v14935_v23  ;;  %v15303_v27 = vadd.f32 %v6770_v38, %v14835_v5  ;;  %v6995_v58 = vpop.f32.mrb[181].mxu0  ;;  %v9753_v41 = vpop.eup %9752 }
 0x766   : > { %v6994_v52 = vadd.f32 %v6993_v39, %v14832_v14  ;;  %v7053_v25 = vadd.f32 %v7037_v11, %v6828_v44  ;;  %v6813_v49 = vmul.f32 %v6769_v30, %v6769_v30  ;;  %v15307_v0 = vadd.f32 %v6995_v58, %v14835_v5 }
 0x767   : > { %16541 = vst [vmem:[#allocation46_spill] sm:$0xff] %v15303_v27  ;;  %v15311_v4 = vadd.f32 1e-08, %v15218_v26  ;;  %v15313_v51 = vadd.f32 1e-08, %v7051_v13  ;;  %v6845_v23 = vmul.f32 %v15303_v27, %v6769_v30  ;;  %v6774_v37 = vpop.f32.mrb[166].mxu1 }
 0x768   : > { %16542 = vst [vmem:[#allocation62_spill] sm:$0xff] %v15307_v0  ;;  %v7038_v60 = vmul.f32 %v6994_v52, %v6994_v52  ;;  %v6829_v38 = vadd.f32 %v6813_v49, %v15123_v57  ;;  %v6775_v11 = vadd.f32 %v6774_v37, %v14832_v14  ;;  %v15320_v44 = vmul.f32 %v15307_v0, %v6994_v52  ;;  %v6776_v39 = vpop.f32.mrb[167].mxu1  ;;  %v6999_v58 = vpop.f32.mrb[182].mxu0 }
 0x769   : > { %v15323_v26 = vadd.f32 %v6845_v23, %v14945_v6  ;;  %vm7140_vm4 = vcmp.eq.f32.partialorder %v15197_v7, 0.0  ;;  %v15327_v13 = vadd.f32 %v6776_v39, %v14835_v5  ;;  %v7000_v57 = vadd.f32 %v6999_v58, %v14832_v14  ;;  %v7001_v30 = vpop.f32.mrb[183].mxu0 }
 0x76a   : > { %v7054_v49 = vadd.f32 %v7038_v60, %v6829_v38  ;;  %v7137_v37 = vmul.f32 %v9753_v41, %v15197_v7  ;;  %v6814_v27 = vmul.f32 %v6775_v11, %v6775_v11  ;;  %v15332_v52 = vadd.f32 %v7001_v30, %v14835_v5 }
 0x76b   : > { %16543 = vst [vmem:[#allocation30_spill] sm:$0xff] %v15327_v13  ;;  %v7141_v0 = vand.u32 2147483648, %v15197_v7  ;;  %v6846_v6 = vmul.f32 %v15327_v13, %v6775_v11  ;;  %v7039_v23 = vmul.f32 %v7000_v57, %v7000_v57  ;;  %v6780_v35 = vpop.f32.mrb[168].mxu1  ;;  %9756 = vrsqrt.f32 %v15311_v4 }
 0x76c   : > { %16544 = vst [vmem:[#allocation58_spill] sm:$0xff] %v15332_v52  ;;  %v15337_v39 = vadd.f32 1e-08, %v7052_v55  ;;  %v7139_v60 = vsel %vm7138_vm8, %v15197_v7, %v7137_v37  ;;  %v6830_v41 = vadd.f32 %v6814_v27, %v15127_v45  ;;  %v6781_v38 = vadd.f32 %v6780_v35, %v14832_v14  ;;  %v6782_v58 = vpop.f32.mrb[169].mxu1  ;;  %v7005_v30 = vpop.f32.mrb[184].mxu0 }
 0x76d   : > { %v7142_v54 = vsel %vm7140_vm4, %v7141_v0, %v7139_v60  ;;  %v15347_v11 = vadd.f32 %v6846_v6, %v14964_v20  ;;  %v15350_v13 = vmul.f32 %v15332_v52, %v7000_v57  ;;  %v15353_v55 = vadd.f32 %v6782_v58, %v14835_v5  ;;  %v7007_v19 = vpop.f32.mrb[185].mxu0  ;;  %v9755_v0 = vpop.eup %9754 }
 0x76e   : > { %7343 = vmatprep.mubr.f32.mxu1 %v7142_v54  ;;  %v7055_v37 = vadd.f32 %v7039_v23, %v6830_v41  ;;  %vm7145_vm11 = vcmp.eq.f32.partialorder %v15228_v2, inf  ;;  %v6815_v45 = vmul.f32 %v6781_v38, %v6781_v38  ;;  %v7006_v35 = vadd.f32 %v7005_v30, %v14832_v14 }
 0x76f   : > { %16545 = vst [vmem:[#allocation50_spill] sm:$0xff] %v15353_v55  ;;  %7344 = vmatmul.mubr.f32.gmra.mrb[184].mxu1 %v15027_v29  ;;  %vm7147_vm7 = vcmp.eq.f32.partialorder %v15228_v2, 0.0  ;;  %v6847_v20 = vmul.f32 %v15353_v55, %v6781_v38  ;;  %v6786_v7 = vpop.f32.mrb[170].mxu1  ;;  %v15361_v27 = vadd.f32 %v7007_v19, %v14835_v5  ;;  %9758 = vrsqrt.f32 %v15313_v51 }
 0x770   : > { %v15364_v54 = vadd.f32 1e-08, %v7053_v25  ;;  %v6831_v57 = vadd.f32 %v6815_v45, %v15278_v12  ;;  %v7040_v6 = vmul.f32 %v7006_v35, %v7006_v35  ;;  %v6787_v23 = vadd.f32 %v6786_v7, %v14832_v14  ;;  %v6788_v60 = vpop.f32.mrb[171].mxu1  ;;  %v7011_v29 = vpop.f32.mrb[186].mxu0 }
 0x771   : > { %16546 = vst [vmem:[#allocation52_spill] sm:$0xff] %v15361_v27  ;;  %v7144_v41 = vmul.f32 %v9755_v0, %v15228_v2  ;;  %v15370_v38 = vadd.f32 %v6847_v20, %v14977_v56  ;;  %v15373_v19 = vmul.f32 %v15361_v27, %v7006_v35  ;;  %v15376_v58 = vadd.f32 %v6788_v60, %v14835_v5  ;;  %v7013_v25 = vpop.f32.mrb[187].mxu0 }
 0x772   : > { %v7148_v30 = vand.u32 2147483648, %v15228_v2  ;;  %v7056_v12 = vadd.f32 %v7040_v6, %v6831_v57  ;;  %v6816_v45 = vmul.f32 %v6787_v23, %v6787_v23  ;;  %v7012_v7 = vadd.f32 %v7011_v29, %v14832_v14 }
 0x773   : > { %16547 = vst [vmem:[#allocation81_spill] sm:$0xff] %v15376_v58  ;;  %v15380_v55 = vadd.f32 1e-08, %v7054_v49  ;;  %v7146_v56 = vsel %vm7145_vm11, %v15228_v2, %v7144_v41  ;;  %vm7152_vm14 = vcmp.eq.f32.partialorder %v15311_v4, inf  ;;  %v6848_v35 = vmul.f32 %v15376_v58, %v6787_v23  ;;  %v6792_v20 = vpop.f32.mrb[172].mxu1 }
 0x774   : > { %v7149_v0 = vsel %vm7147_vm7, %v7148_v30, %v7146_v56  ;;  %vm7154_vm15 = vcmp.eq.f32.partialorder %v15311_v4, 0.0  ;;  %v6832_v57 = vadd.f32 %v6816_v45, %v15282_v40  ;;  %v7041_v6 = vmul.f32 %v7012_v7, %v7012_v7  ;;  %v6794_v60 = vpop.f32.mrb[173].mxu1  ;;  %v7017_v49 = vpop.f32.mrb[188].mxu0 }
 0x775   : > { %v9757_v29 = vpop.eup %9756  ;;  %7348 = vmatprep.mubr.f32.mxu1 %v7149_v0  ;;  %v15392_v27 = vadd.f32 %v6848_v35, %v14987_v50  ;;  %v6793_v41 = vadd.f32 %v6792_v20, %v14832_v14  ;;  %v15396_v23 = vadd.f32 %v7013_v25, %v14835_v5  ;;  %v15399_v2 = vadd.f32 %v6794_v60, %v14835_v5  ;;  %v7019_v30 = vpop.f32.mrb[189].mxu0 }
 0x776   : > { %7349 = vmatmul.mubr.f32.gmra.mrb[186].mxu1 %v15035_v48  ;;  %v7151_v40 = vmul.f32 %v9757_v29, %v15311_v4  ;;  %v7057_v45 = vadd.f32 %v7041_v6, %v6832_v57  ;;  %v7018_v56 = vadd.f32 %v7017_v49, %v14832_v14  ;;  %9760 = vrsqrt.f32 %v15337_v39 }
 0x777   : > { %16548 = vst [vmem:[#allocation75_spill] sm:$0xff] %v15396_v23  ;;  %16549 = vst [vmem:[#allocation42_spill] sm:$0xff] %v15399_v2  ;;  %v7155_v50 = vand.u32 2147483648, %v15311_v4  ;;  %v6817_v35 = vmul.f32 %v6793_v41, %v6793_v41  ;;  %v15407_v20 = vmul.f32 %v15396_v23, %v7012_v7  ;;  %v6849_v25 = vmul.f32 %v15399_v2, %v6793_v41  ;;  %v6798_v0 = vpop.f32.mrb[174].mxu1  ;;  %v6188_v2 = vld [vmem:[#allocation17 + $0x38] sm:$0xff] }
 0x778   : > { %v15410_v60 = vadd.f32 1e-08, %v7055_v37  ;;  %v7153_v48 = vsel %vm7152_vm14, %v15311_v4, %v7151_v40  ;;  %vm7159_vm1 = vcmp.eq.f32.partialorder %v15313_v51, inf  ;;  %v7042_v57 = vmul.f32 %v7018_v56, %v7018_v56  ;;  %v6800_v6 = vpop.f32.mrb[175].mxu1  ;;  %v7023_v49 = vpop.f32.mrb[190].mxu0 }
 0x779   : > { %v9759_v29 = vpop.eup %9758  ;;  %v7156_v58 = vsel %vm7154_vm15, %v7155_v50, %v7153_v48  ;;  %vm7161_vm2 = vcmp.eq.f32.partialorder %v15313_v51, 0.0  ;;  %v6833_v7 = vadd.f32 %v6817_v35, %v15287_v21  ;;  %v15421_v37 = vadd.f32 %v6849_v25, %v14997_v9  ;;  %v7025_v41 = vpop.f32.mrb[191].mxu0 }
 0x77a   : > { %7353 = vmatprep.mubr.f32.mxu1 %v7156_v58  ;;  %v7158_v40 = vmul.f32 %v9759_v29, %v15313_v51  ;;  %v6799_v23 = vadd.f32 %v6798_v0, %v14832_v14  ;;  %v15426_v52 = vadd.f32 %v7019_v30, %v14835_v5  ;;  %v15429_v4 = vadd.f32 %v6800_v6, %v14835_v5  ;;  %v6191_v29 = vld [vmem:[#allocation17 + $0x50] sm:$0xff] }
 0x77b   : > { %7354 = vmatmul.mubr.f32.gmra.mrb[188].mxu1 %v15038_v15  ;;  %v7162_v21 = vand.u32 2147483648, %v15313_v51  ;;  %v7058_v50 = vadd.f32 %v7042_v57, %v6833_v7  ;;  %v7024_v9 = vadd.f32 %v7023_v49, %v14832_v14  ;;  %9762 = vrsqrt.f32 %v15364_v54 }
 0x77c   : > { %v7160_v58 = vsel %vm7159_vm1, %v15313_v51, %v7158_v40  ;;  %v6818_v35 = vmul.f32 %v6799_v23, %v6799_v23  ;;  %v15439_v30 = vmul.f32 %v15426_v52, %v7018_v56  ;;  %v6850_v25 = vmul.f32 %v15429_v4, %v6799_v23 }
 0x77d   : > { %v6220_v0 = vadd.f32 %v6188_v2, %v14735_v63  ;;  %v15443_v15 = vadd.f32 1e-08, %v7056_v12  ;;  %v7163_v48 = vsel %vm7161_vm2, %v7162_v21, %v7160_v58  ;;  %v7043_v14 = vmul.f32 %v7024_v9, %v7024_v9  ;;  %v6189_v12 = vld [vmem:[#allocation17 + $0x40] sm:$0xff]  ;;  %v6190_v2 = vld [vmem:[#allocation17 + $0x48] sm:$0xff] }
 0x77e   : > { %7358 = vmatprep.mubr.f32.mxu1 %v7163_v48  ;;  %v6834_v57 = vadd.f32 %v6818_v35, %v15297_v36  ;;  %v6866_v6 = vadd.f32 %v6850_v25, %v15007_v53  ;;  %v15450_v49 = vadd.f32 %v7025_v41, %v14835_v5  ;;  %v15452_v56 = vadd.f32 1e-08, %v7057_v45  ;;  %v16550_v35 = vld [vmem:[#allocation65_spill] sm:$0xff]  ;;  %v16552_v48 = vld [vmem:[#allocation34_spill] sm:$0xff] }
 0x77f   : > { %7359 = vmatmul.mubr.f32.gmra.mrb[190].mxu1 %v6220_v0  ;;  %9764 = vrsqrt.f32 %v15380_v55  ;;  %v15457_v36 = vadd.f32 1e-08, %v7058_v50  ;;  %vm7166_vm6 = vcmp.eq.f32.partialorder %v15337_v39, inf  ;;  %v7169_v5 = vand.u32 2147483648, %v15337_v39  ;;  %v16551_v25 = vld [vmem:[#allocation33_spill] sm:$0xff] }
 0x780   : > { %v9761_v63 = vpop.eup %9760  ;;  %v7059_v23 = vadd.f32 %v7043_v14, %v6834_v57  ;;  %v7075_v51 = vmul.f32 %v15450_v49, %v7024_v9  ;;  %9766 = vrsqrt.f32 %v15410_v60  ;;  %v6221_v7 = vadd.f32 %v6189_v12, %v14741_v10  ;;  %v16554_v57 = vld [vmem:[#allocation82_spill] sm:$0xff] }
 0x781   : > { %v7165_v53 = vmul.f32 %v9761_v63, %v15337_v39  ;;  %9768 = vrsqrt.f32 %v15443_v15  ;;  %vm7168_vm13 = vcmp.eq.f32.partialorder %v15337_v39, 0.0  ;;  %v6222_v40 = vadd.f32 %v6190_v2, %v14745_v28 }
 0x782   : > { %v15463_v45 = vadd.f32 1e-08, %v7059_v23  ;;  %9770 = vrsqrt.f32 %v15452_v56  ;;  %v6223_v21 = vadd.f32 %v6191_v29, %v14748_v34  ;;  %vm7173_vm0 = vcmp.eq.f32.partialorder %v15364_v54, inf }
 0x783   : > { %v7167_v41 = vsel %vm7166_vm6, %v15337_v39, %v7165_v53  ;;  %vm7175_vm3 = vcmp.eq.f32.partialorder %v15364_v54, 0.0  ;;  %v7176_v58 = vand.u32 2147483648, %v15364_v54  ;;  %vm7180_vm5 = vcmp.eq.f32.partialorder %v15380_v55, inf }
 0x784   : > { %v7170_v50 = vsel %vm7168_vm13, %v7169_v5, %v7167_v41  ;;  %9772 = vrsqrt.f32 %v15457_v36  ;;  %vm7182_vm9 = vcmp.eq.f32.partialorder %v15380_v55, 0.0  ;;  %v15481_v28 = vadd.f32 %v15074_v17, %v15081_v33  ;;  %v16553_v33 = vld [vmem:[#allocation41_spill] sm:$0xff]  ;;  %v6193_v5 = vld [vmem:[#allocation17 + $0x60] sm:$0xff] }
 0x785   : > { %v9763_v9 = vpop.eup %9762  ;;  %7363 = vmatprep.mubr.f32.mxu1 %v7170_v50  ;;  %9774 = vrsqrt.f32 %v15463_v45  ;;  %v15485_v34 = vadd.f32 %v15045_v61, %v15050_v16  ;;  %v15489_v39 = vadd.f32 %v15134_v18, %v15137_v22  ;;  %v15493_v0 = vadd.f32 %v16551_v25, %v16550_v35  ;;  %v16557_v25 = vld [vmem:[#allocation68_spill] sm:$0xff] }
 0x786   : > { %7364 = vmatmul.mubr.f32.gmra.mrb[192].mxu1 %v6221_v7  ;;  %v7172_v10 = vmul.f32 %v9763_v9, %v15364_v54  ;;  %v15497_v14 = vadd.f32 %v16552_v48, %v15184_v1  ;;  %v15504_v61 = vadd.f32 %v16554_v57, %v16553_v33  ;;  %v15508_v16 = vadd.f32 %v15233_v46, %v15237_v31 }
 0x787   : > { %v15512_v18 = vadd.f32 %v15205_v24, %v15209_v42  ;;  %v15518_v63 = vadd.f32 %v15292_v59, %v15300_v32  ;;  %v15522_v12 = vadd.f32 %v15257_v3, %v15262_v8  ;;  %v15526_v46 = vadd.f32 %v15350_v13, %v15347_v11 }
 0x788   : > { %v7174_v17 = vsel %vm7173_vm0, %v15364_v54, %v7172_v10  ;;  %v15531_v42 = vadd.f32 %v15320_v44, %v15323_v26  ;;  %v15535_v59 = vadd.f32 %v15407_v20, %v15392_v27  ;;  %v15539_v3 = vadd.f32 %v15373_v19, %v15370_v38 }
 0x789   : > { %v9765_v22 = vpop.eup %9764  ;;  %v7177_v1 = vsel %vm7175_vm3, %v7176_v58, %v7174_v17  ;;  %v7183_v32 = vand.u32 2147483648, %v15380_v55  ;;  %v15543_v11 = vadd.f32 %v7075_v51, %v6866_v6  ;;  %v15547_v44 = vadd.f32 %v15439_v30, %v15421_v37  ;;  %v6192_v37 = vld [vmem:[#allocation17 + $0x58] sm:$0xff]  ;;  %v6195_v17 = vld [vmem:[#allocation17 + $0x70] sm:$0xff] }
 0x78a   : > { %v9767_v31 = vpop.eup %9766  ;;  %7368 = vmatprep.mubr.f32.mxu1 %v7177_v1  ;;  %v7179_v24 = vmul.f32 %v9765_v22, %v15380_v55  ;;  %vm7187_vm10 = vcmp.eq.f32.partialorder %v15410_v60, inf  ;;  %v7190_v27 = vand.u32 2147483648, %v15410_v60  ;;  %vm7189_vm12 = vcmp.eq.f32.partialorder %v15410_v60, 0.0 }
 0x78b   : > { %v9769_v8 = vpop.eup %9768  ;;  %7369 = vmatmul.mubr.f32.gmra.mrb[194].mxu1 %v6222_v40  ;;  %v7186_v13 = vmul.f32 %v9767_v31, %v15410_v60  ;;  %vm7194_vm8 = vcmp.eq.f32.partialorder %v15443_v15, inf  ;;  %v7197_v2 = vand.u32 2147483648, %v15443_v15  ;;  %vm7196_vm4 = vcmp.eq.f32.partialorder %v15443_v15, 0.0  ;;  %v6196_v31 = vld [vmem:[#allocation17 + $0x78] sm:$0xff] }
 0x78c   : > { %v7181_v26 = vsel %vm7180_vm5, %v15380_v55, %v7179_v24  ;;  %v7193_v54 = vmul.f32 %v9769_v8, %v15443_v15  ;;  %v9771_v38 = vpop.eup %9770  ;;  %v16555_v55 = vld [vmem:[#allocation72_spill] sm:$0xff]  ;;  %vm7201_vm11 = vcmp.eq.f32.partialorder %v15452_v56, inf  ;;  %v7204_v40 = vand.u32 2147483648, %v15452_v56  ;;  %v16559_v24 = vld [vmem:[#allocation45_spill] sm:$0xff] }
 0x78d   : > { %v7184_v19 = vsel %vm7182_vm9, %v7183_v32, %v7181_v26  ;;  %v7188_v20 = vsel %vm7187_vm10, %v15410_v60, %v7186_v13  ;;  %v7200_v23 = vmul.f32 %v9771_v38, %v15452_v56  ;;  %v6224_v53 = vadd.f32 %v6192_v37, %v16555_v55  ;;  %v7535_v32 = vld [vmem:[%s10667_s28 + $0x98] sm:$0xff]  ;;  %v7538_v13 = vld [vmem:[%s10667_s28 + $0xb0] sm:$0xff]  ;;  %v7544_v37 = vld [vmem:[%s10667_s28 + $0xe0] sm:$0xff] }
 0x78e   : > { %7373 = vmatprep.mubr.f32.mxu1 %v7184_v19  ;;  %v7191_v30 = vsel %vm7189_vm12, %v7190_v27, %v7188_v20  ;;  %v7195_v6 = vsel %vm7194_vm8, %v15443_v15, %v7193_v54  ;;  %v9773_v51 = vpop.eup %9772  ;;  %vm7203_vm7 = vcmp.eq.f32.partialorder %v15452_v56, 0.0  ;;  %vm7208_vm14 = vcmp.eq.f32.partialorder %v15457_v36, inf  ;;  %v6194_v15 = vld [vmem:[#allocation17 + $0x68] sm:$0xff]  ;;  %v7518_v54 = vld [vmem:[%s10667_s28 + $0x10] sm:$0xff]  ;;  %v7527_v55 = vld [vmem:[%s10667_s28 + $0x58] sm:$0xff] }
 0x78f   : > { %7374 = vmatmul.mubr.f32.gmra.mrb[196].mxu1 %v6223_v21  ;;  %v9775_v29 = vpop.eup %9774  ;;  %v7198_v60 = vsel %vm7196_vm4, %v7197_v2, %v7195_v6  ;;  %v7202_v7 = vsel %vm7201_vm11, %v15452_v56, %v7200_v23  ;;  %v7207_v41 = vmul.f32 %v9773_v51, %v15457_v36  ;;  %v16556_v21 = vld [vmem:[#allocation40_spill] sm:$0xff]  ;;  %v7211_v35 = vand.u32 2147483648, %v15457_v36  ;;  %v7537_v27 = vld [vmem:[%s10667_s28 + $0xa8] sm:$0xff]  ;;  %v7540_v23 = vld [vmem:[%s10667_s28 + $0xc0] sm:$0xff] }
 0x790   : > { %7378 = vmatprep.mubr.f32.mxu1 %v7191_v30  ;;  %v6225_v50 = vadd.f32 %v6193_v5, %v16556_v21  ;;  %v7205_v9 = vsel %vm7203_vm7, %v7204_v40, %v7202_v7  ;;  %v7214_v10 = vmul.f32 %v9775_v29, %v15463_v45  ;;  %vm7210_vm15 = vcmp.eq.f32.partialorder %v15457_v36, 0.0  ;;  %v7521_v19 = vld [vmem:[%s10667_s28 + $0x28] sm:$0xff]  ;;  %v7543_v51 = vld [vmem:[%s10667_s28 + $0xd8] sm:$0xff]  ;;  %v7524_v2 = vld [vmem:[%s10667_s28 + $0x40] sm:$0xff] }
 0x791   : > { %v7209_v58 = vsel %vm7208_vm14, %v15457_v36, %v7207_v41  ;;  %v6226_v48 = vadd.f32 %v6194_v15, %v16557_v25  ;;  %vm7215_vm1 = vcmp.eq.f32.partialorder %v15463_v45, inf  ;;  %v7218_v57 = vand.u32 2147483648, %v15463_v45  ;;  %v16558_v36 = vld [vmem:[#allocation49_spill] sm:$0xff]  ;;  %v7541_v20 = vld [vmem:[%s10667_s28 + $0xc8] sm:$0xff]  ;;  %v7550_v41 = vld [vmem:[%s10667_s28 + $0x110] sm:$0xff] }
 0x792   : > { %v7212_v56 = vsel %vm7210_vm15, %v7211_v35, %v7209_v58  ;;  %v7216_v33 = vsel %vm7215_vm1, %v15463_v45, %v7214_v10  ;;  %vm7217_vm2 = vcmp.eq.f32.partialorder %v15463_v45, 0.0  ;;  %v6227_v22 = vadd.f32 %v6195_v17, %v16558_v36  ;;  %v7534_v45 = vld [vmem:[%s10667_s28 + $0x90] sm:$0xff]  ;;  %v7547_v7 = vld [vmem:[%s10667_s28 + $0xf8] sm:$0xff]  ;;  %v7536_v15 = vld [vmem:[%s10667_s28 + $0xa0] sm:$0xff] }
 0x793   : > { %7379 = vmatmul.mubr.f32.gmra.mrb[198].mxu1 %v6224_v53  ;;  %v7219_v1 = vsel %vm7217_vm2, %v7218_v57, %v7216_v33  ;;  %v6228_v8 = vadd.f32 %v6196_v31, %v16559_v24  ;;  %v9269_v26 = vpack.c.bf16 %v7538_v13, %v7535_v32  ;;  %v9271_v38 = vpack.c.bf16 %v7537_v27, %v7534_v45  ;;  %v7530_v53 = vld [vmem:[%s10667_s28 + $0x70] sm:$0xff]  ;;  %v7539_v10 = vld [vmem:[%s10667_s28 + $0xb8] sm:$0xff]  ;;  %v7556_v33 = vld [vmem:[%s10667_s28 + $0x140] sm:$0xff] }
 0x794   : > { %7383 = vmatprep.mubr.f32.mxu1 %v7198_v60  ;;  %v9289_v30 = vpack.c.bf16 %v7521_v19, %v7518_v54  ;;  %v9273_v6 = vpack.c.bf16 %v7544_v37, %v7541_v20  ;;  %v9275_v29 = vpack.c.bf16 %v7543_v51, %v7540_v23  ;;  %v7533_v60 = vld [vmem:[%s10667_s28 + $0x88] sm:$0xff]  ;;  %v9293_v5 = vpack.c.bf16 %v7527_v55, %v7524_v2  ;;  %v7542_v25 = vld [vmem:[%s10667_s28 + $0xd0] sm:$0xff]  ;;  %v7552_v36 = vld [vmem:[%s10667_s28 + $0x120] sm:$0xff] }
 0x795   : > { %9270 = vmatprep.subr.bf16.mxu0 %v9269_v26  ;;  %v9277_v40 = vpack.c.bf16 %v7550_v41, %v7547_v7  ;;  %v9297_v21 = vpack.c.bf16 %v7533_v60, %v7530_v53  ;;  %v9301_v35 = vpack.c.bf16 %v7539_v10, %v7536_v15  ;;  %v7551_v24 = vld [vmem:[%s10667_s28 + $0x118] sm:$0xff]  ;;  %v7562_v13 = vld [vmem:[%s10667_s28 + $0x170] sm:$0xff]  ;;  %v7557_v27 = vld [vmem:[%s10667_s28 + $0x148] sm:$0xff] }
 0x796   : > { %9272 = vmatpush1.bf16.msra.mxu0 %v9271_v38  ;;  %9290 = vmatprep.subr.bf16.mxu1 %v9289_v30  ;;  %v7559_v32 = vld [vmem:[%s10667_s28 + $0x158] sm:$0xff]  ;;  %v7554_v26 = vld [vmem:[%s10667_s28 + $0x130] sm:$0xff]  ;;  %v7561_v38 = vld [vmem:[%s10667_s28 + $0x168] sm:$0xff] }
 0x797   : > { %7384 = vmatmul.mubr.f32.gmra.mrb[200].mxu1 %v6225_v50  ;;  %9274 = vmatprep.subr.bf16.mxu0 %v9273_v6  ;;  %v7546_v50 = vld [vmem:[%s10667_s28 + $0xf0] sm:$0xff]  ;;  %v9285_v45 = vpack.c.bf16 %v7562_v13, %v7559_v32  ;;  %v9313_v19 = vpack.c.bf16 %v7557_v27, %v7554_v26  ;;  %v7560_v37 = vld [vmem:[%s10667_s28 + $0x160] sm:$0xff]  ;;  %v15624_v51 = vld [vmem:[%s959_s15] ss:$0 sm:$0xff] }
 0x798   : > { %7388 = vmatprep.mubr.f32.mxu1 %v7205_v9  ;;  %9292 = vmatpush3.bf16.msra.mxu1 %v9289_v30  ;;  %v7549_v9 = vld [vmem:[%s10667_s28 + $0x108] sm:$0xff]  ;;  %v7558_v54 = vld [vmem:[%s10667_s28 + $0x150] sm:$0xff]  ;;  %v7563_v30 = vld [vmem:[%s10667_s28 + $0x178] sm:$0xff] }
 0x799   : > { %9294 = vmatprep.subr.bf16.mxu1 %v9293_v5  ;;  %v9279_v58 = vpack.c.bf16 %v7549_v9, %v7546_v50  ;;  %v9287_v20 = vpack.c.bf16 %v7561_v38, %v7558_v54  ;;  %v9317_v6 = vpack.c.bf16 %v7563_v30, %v7560_v37  ;;  %v16560_v30 = vmov 0.0  }
 0x79a   : > { %9276 = vmatpush1.bf16.msra.mxu0 %v9275_v29 }
 0x79b   : > { %7389 = vmatmul.mubr.f32.gmra.mrb[202].mxu1 %v6226_v48  ;;  %9278 = vmatprep.subr.bf16.mxu0 %v9277_v40  ;;  %v7545_v48 = vld [vmem:[%s10667_s28 + $0xe8] sm:$0xff] }
 0x79c   : > { %7393 = vmatprep.mubr.f32.mxu1 %v7212_v56  ;;  %9296 = vmatpush3.bf16.msra.mxu1 %v9293_v5  ;;  %v7553_v56 = vld [vmem:[%s10667_s28 + $0x128] sm:$0xff]  ;;  %v9305_v17 = vpack.c.bf16 %v7545_v48, %v7542_v25 }
 0x79d   : > { %9298 = vmatprep.subr.bf16.mxu1 %v9297_v21  ;;  %v9281_v57 = vpack.c.bf16 %v7556_v33, %v7553_v56 }
 0x79e   : > { %9280 = vmatpush1.bf16.msra.mxu0 %v9279_v58 }
 0x79f   : > { %7394 = vmatmul.mubr.f32.gmra.mrb[204].mxu1 %v6227_v22  ;;  %9282 = vmatprep.subr.bf16.mxu0 %v9281_v57  ;;  %v7555_v22 = vld [vmem:[%s10667_s28 + $0x138] sm:$0xff] }
 0x7a0   : > { %7398 = vmatprep.mubr.f32.mxu1 %v7219_v1  ;;  %9300 = vmatpush3.bf16.msra.mxu1 %v9297_v21  ;;  %v7548_v1 = vld [vmem:[%s10667_s28 + $0x100] sm:$0xff]  ;;  %v9283_v31 = vpack.c.bf16 %v7555_v22, %v7552_v36  ;;  %s10204_s28 = smov [#allocation17]  }
 0x7a1   : > { %9302 = vmatprep.subr.bf16.mxu1 %v9301_v35  ;;  %s8037_s24 = sshll.u32 %s10204_s28, 4  ;;  %s15822_s24 = int_to_ptr.vmem [resolvable:$true] %s8037_s24 }
 0x7a2   : > { %9284 = vmatpush1.bf16.msra.mxu0 %v9283_v31 }
 0x7a3   : > { %7399 = vmatmul.mubr.f32.gmra.mrb[206].mxu1 %v6228_v8  ;;  %v9309_v8 = vpack.c.bf16 %v7551_v24, %v7548_v1  ;;  %9286 = vmatprep.subr.bf16.mxu0 %v9285_v45 }
 0x7a4   : > { %9304 = vmatpush3.bf16.msra.mxu1 %v9301_v35 }
 0x7a5   : > { %9306 = vmatprep.subr.bf16.mxu1 %v9305_v17 }
 0x7a6   : > { %9288 = vmatpush1.bf16.msra.mxu0 %v9287_v20 }
 0x7a8   : > { %9308 = vmatpush3.bf16.msra.mxu1 %v9305_v17 }
 0x7a9   : > { %9310 = vmatprep.subr.bf16.mxu1 %v9309_v8 }
 0x7ac   : > { %9312 = vmatpush3.bf16.msra.mxu1 %v9309_v8 }
 0x7ad   : > { %9314 = vmatprep.subr.bf16.mxu1 %v9313_v19 }
 0x7b0   : > { %9316 = vmatpush3.bf16.msra.mxu1 %v9313_v19 }
 0x7b1   : > { %9318 = vmatprep.subr.bf16.mxu1 %v9317_v6 }
 0x7b4   : > { %9320 = vmatpush3.bf16.msra.mxu1 %v9317_v6 }
 0x829   : > { %v8749_v23 = vpop.f32.mrb[176].mxu1 }
 0x82a   : > { %v8750_v2 = vpop.f32.mrb[177].mxu1 }
 0x82b   : > { %v8751_v29 = vadd.f32 %v8750_v2, %v8749_v23 }
 0x82d   : > { %v7326_v55 = vadd.f32 %v8751_v29, %v15624_v51 }
 0x82e   : > { %v8752_v53 = vpop.f32.mrb[178].mxu1 }
 0x82f   : > { %v8607_v60 = vmul.f32 -1.442695, %v7326_v55  ;;  %v8753_v5 = vpop.f32.mrb[179].mxu1 }
 0x830   : > { %v8754_v7 = vadd.f32 %v8753_v5, %v8752_v53 }
 0x831   : > { %9776 = vpow2.f32 %v8607_v60 }
 0x832   : > { %v7331_v41 = vadd.f32 %v8754_v7, %v15624_v51 }
 0x833   : > { %v8755_v40 = vpop.f32.mrb[180].mxu1 }
 0x834   : > { %v8756_v21 = vpop.f32.mrb[181].mxu1  ;;  %v8608_v50 = vmul.f32 -1.442695, %v7331_v41 }
 0x835   : > { %v8757_v9 = vadd.f32 %v8756_v21, %v8755_v40 }
 0x836   : > { %9778 = vpow2.f32 %v8608_v50 }
 0x837   : > { %v7336_v15 = vadd.f32 %v8757_v9, %v15624_v51 }
 0x838   : > { %v8758_v58 = vpop.f32.mrb[182].mxu1 }
 0x839   : > { %v8759_v10 = vpop.f32.mrb[183].mxu1  ;;  %v8609_v35 = vmul.f32 -1.442695, %v7336_v15 }
 0x83a   : > { %v8760_v25 = vadd.f32 %v8759_v10, %v8758_v58 }
 0x83b   : > { %9780 = vpow2.f32 %v8609_v35  ;;  %v9777_v56 = vpop.eup %9776 }
 0x83c   : > { %v7341_v48 = vadd.f32 %v8760_v25, %v15624_v51  ;;  %v7452_v17 = vadd.f32 1.0, %v9777_v56 }
 0x83e   : > { %v8610_v33 = vmul.f32 -1.442695, %v7341_v48  ;;  %9782 = vrcp.f32 %v7452_v17 }
 0x840   : > { %9784 = vpow2.f32 %v8610_v33  ;;  %v9779_v57 = vpop.eup %9778 }
 0x841   : > { %v7453_v36 = vadd.f32 1.0, %v9779_v57 }
 0x842   : > { %v8761_v22 = vpop.f32.mrb[184].mxu1 }
 0x843   : > { %v8762_v1 = vpop.f32.mrb[185].mxu1  ;;  %9786 = vrcp.f32 %v7453_v36 }
 0x844   : > { %v8763_v31 = vadd.f32 %v8762_v1, %v8761_v22 }
 0x845   : > { %v9781_v24 = vpop.eup %9780 }
 0x846   : > { %v7454_v8 = vadd.f32 1.0, %v9781_v24  ;;  %v15631_v32 = vadd.f32 %v8763_v31, %v15624_v51 }
 0x848   : > { %9788 = vrcp.f32 %v7454_v8  ;;  %v8611_v13 = vmul.f32 -1.442695, %v15631_v32  ;;  %v9783_v26 = vpop.eup %9782 }
 0x849   : > { %v8764_v45 = vpop.f32.mrb[186].mxu1  ;;  %v7500_v54 = vmul.f32 %v9783_v26, %v7326_v55 }
 0x84a   : > { %v9785_v27 = vpop.eup %9784  ;;  %9790 = vpow2.f32 %v8611_v13  ;;  %v8765_v38 = vpop.f32.mrb[187].mxu1 }
 0x84b   : > { %v7455_v19 = vadd.f32 1.0, %v9785_v27  ;;  %v8766_v20 = vadd.f32 %v8765_v38, %v8764_v45  ;;  %7646 = vmatmul.mubr.f32.vlgmr.msra.gmra.mrb[192].mxu0 %v7500_v54  ;;  %9001 = vmatprep.mubr.f32.mxu1 %v7500_v54 }
 0x84c   : > { %7651 = vmatprep.mubr.f32.mxu0 %v16560_v30 }
 0x84d   : > { %9792 = vrcp.f32 %v7455_v19  ;;  %v15635_v37 = vadd.f32 %v8766_v20, %v15624_v51  ;;  %v9787_v6 = vpop.eup %9786 }
 0x84e   : > { %v8767_v23 = vpop.f32.mrb[188].mxu1  ;;  %v7501_v53 = vmul.f32 %v9787_v6, %v7331_v41 }
 0x84f   : > { %v8612_v2 = vmul.f32 -1.442695, %v15635_v37  ;;  %v8768_v29 = vpop.f32.mrb[189].mxu1 }
 0x850   : > { %v8769_v60 = vadd.f32 %v8768_v29, %v8767_v23  ;;  %7652 = vmatmul.mubr.f32.gmra.mrb[194].mxu0 %v7501_v53  ;;  %9002 = vmatmul.mubr.f32.vlgmr.msra.gmra.mrb[208].mxu1 %v7501_v53 }
 0x851   : > { %9794 = vpow2.f32 %v8612_v2  ;;  %7657 = vmatprep.mubr.f32.mxu0 %v16560_v30 }
 0x852   : > { %v9789_v55 = vpop.eup %9788  ;;  %v15640_v5 = vadd.f32 %v8769_v60, %v15624_v51  ;;  %v8770_v7 = vpop.f32.mrb[190].mxu1 }
 0x853   : > { %v8771_v40 = vpop.f32.mrb[191].mxu1  ;;  %v7502_v21 = vmul.f32 %v9789_v55, %v7336_v15 }
 0x854   : > { %v9791_v50 = vpop.eup %9790  ;;  %v8613_v9 = vmul.f32 -1.442695, %v15640_v5  ;;  %v8772_v58 = vadd.f32 %v8771_v40, %v8770_v7 }
 0x855   : > { %v7456_v10 = vadd.f32 1.0, %v9791_v50  ;;  %7658 = vmatmul.mubr.f32.gmra.mrb[196].mxu0 %v7502_v21  ;;  %9004 = vmatprep.mubr.f32.mxu1 %v7502_v21 }
 0x856   : > { %9796 = vpow2.f32 %v8613_v9  ;;  %v15645_v41 = vadd.f32 %v8772_v58, %v15624_v51  ;;  %7663 = vmatprep.mubr.f32.mxu0 %v16560_v30 }
 0x857   : > { %v9793_v35 = vpop.eup %9792  ;;  %9798 = vrcp.f32 %v7456_v10 }
 0x858   : > { %v8614_v25 = vmul.f32 -1.442695, %v15645_v41  ;;  %v7503_v56 = vmul.f32 %v9793_v35, %v7341_v48 }
 0x859   : > { %v8773_v17 = vpop.f32.mrb[192].mxu1 }
 0x85a   : > { %9800 = vpow2.f32 %v8614_v25  ;;  %v8774_v15 = vpop.f32.mrb[193].mxu1  ;;  %7664 = vmatmul.mubr.f32.gmra.mrb[198].mxu0 %v7503_v56  ;;  %9005 = vmatmul.mubr.f32.gmra.mrb[210].mxu1 %v7503_v56 }
 0x85b   : > { %v9795_v33 = vpop.eup %9794  ;;  %v8775_v57 = vadd.f32 %v8774_v15, %v8773_v17  ;;  %7669 = vmatprep.mubr.f32.mxu0 %v16560_v30 }
 0x85c   : > { %v7457_v36 = vadd.f32 1.0, %v9795_v33 }
 0x85d   : > { %v15651_v22 = vadd.f32 %v8775_v57, %v15624_v51 }
 0x85e   : > { %9802 = vrcp.f32 %v7457_v36  ;;  %v8776_v1 = vpop.f32.mrb[194].mxu1 }
 0x85f   : > { %v8615_v31 = vmul.f32 -1.442695, %v15651_v22  ;;  %v8777_v24 = vpop.f32.mrb[195].mxu1 }
 0x860   : > { %v9797_v8 = vpop.eup %9796  ;;  %v8778_v48 = vadd.f32 %v8777_v24, %v8776_v1 }
 0x861   : > { %v9799_v13 = vpop.eup %9798  ;;  %v7458_v26 = vadd.f32 1.0, %v9797_v8  ;;  %9804 = vpow2.f32 %v8615_v31 }
 0x862   : > { %v15655_v45 = vadd.f32 %v8778_v48, %v15624_v51  ;;  %v8779_v27 = vpop.f32.mrb[196].mxu1  ;;  %v7504_v54 = vmul.f32 %v9799_v13, %v15631_v32 }
 0x863   : > { %9806 = vrcp.f32 %v7458_v26  ;;  %v8780_v38 = vpop.f32.mrb[197].mxu1 }
 0x864   : > { %v9801_v19 = vpop.eup %9800  ;;  %v8616_v20 = vmul.f32 -1.442695, %v15655_v45  ;;  %v8781_v6 = vadd.f32 %v8780_v38, %v8779_v27  ;;  %7670 = vmatmul.mubr.f32.gmra.mrb[200].mxu0 %v7504_v54  ;;  %9007 = vmatprep.mubr.f32.mxu1 %v7504_v54 }
 0x865   : > { %v7459_v23 = vadd.f32 1.0, %v9801_v19  ;;  %7675 = vmatprep.mubr.f32.mxu0 %v16560_v30 }
 0x866   : > { %9808 = vpow2.f32 %v8616_v20  ;;  %v15661_v2 = vadd.f32 %v8781_v6, %v15624_v51  ;;  %v8782_v29 = vpop.f32.mrb[198].mxu1 }
 0x867   : > { %9810 = vrcp.f32 %v7459_v23  ;;  %v8783_v53 = vpop.f32.mrb[199].mxu1 }
 0x868   : > { %v9803_v60 = vpop.eup %9802  ;;  %v8617_v32 = vmul.f32 -1.442695, %v15661_v2  ;;  %v8784_v55 = vadd.f32 %v8783_v53, %v8782_v29 }
 0x869   : > { %v7505_v7 = vmul.f32 %v9803_v60, %v15635_v37 }
 0x86a   : > { %9812 = vpow2.f32 %v8617_v32  ;;  %v15666_v40 = vadd.f32 %v8784_v55, %v15624_v51  ;;  %v8785_v21 = vpop.f32.mrb[200].mxu1 }
 0x86b   : > { %v9805_v50 = vpop.eup %9804  ;;  %v8786_v9 = vpop.f32.mrb[201].mxu1  ;;  %7676 = vmatmul.mubr.f32.gmra.mrb[202].mxu0 %v7505_v7  ;;  %9008 = vmatmul.mubr.f32.gmra.mrb[212].mxu1 %v7505_v7 }
 0x86c   : > { %v7460_v58 = vadd.f32 1.0, %v9805_v50  ;;  %v8618_v10 = vmul.f32 -1.442695, %v15666_v40  ;;  %v8787_v35 = vadd.f32 %v8786_v9, %v8785_v21  ;;  %7681 = vmatprep.mubr.f32.mxu0 %v16560_v30 }
 0x86d   : > { %v9807_v25 = vpop.eup %9806 }
 0x86e   : > { %9814 = vrcp.f32 %v7460_v58  ;;  %v15671_v56 = vadd.f32 %v8787_v35, %v15624_v51  ;;  %v8788_v37 = vpop.f32.mrb[202].mxu1  ;;  %v7506_v17 = vmul.f32 %v9807_v25, %v15640_v5 }
 0x86f   : > { %9816 = vpow2.f32 %v8618_v10  ;;  %v8789_v15 = vpop.f32.mrb[203].mxu1 }
 0x870   : > { %v9809_v33 = vpop.eup %9808  ;;  %v8619_v57 = vmul.f32 -1.442695, %v15671_v56  ;;  %v8790_v36 = vadd.f32 %v8789_v15, %v8788_v37  ;;  %7682 = vmatmul.mubr.f32.gmra.mrb[204].mxu0 %v7506_v17  ;;  %9010 = vmatprep.mubr.f32.mxu1 %v7506_v17 }
 0x871   : > { %v9811_v1 = vpop.eup %9810  ;;  %v7461_v31 = vadd.f32 1.0, %v9809_v33  ;;  %7687 = vmatprep.mubr.f32.mxu0 %v16560_v30 }
 0x872   : > { %9818 = vpow2.f32 %v8619_v57  ;;  %v15677_v24 = vadd.f32 %v8790_v36, %v15624_v51  ;;  %v8791_v8 = vpop.f32.mrb[204].mxu1  ;;  %v7507_v48 = vmul.f32 %v9811_v1, %v15645_v41 }
 0x873   : > { %9820 = vrcp.f32 %v7461_v31  ;;  %v8792_v5 = vpop.f32.mrb[205].mxu1 }
 0x874   : > { %v9813_v13 = vpop.eup %9812  ;;  %v8620_v26 = vmul.f32 -1.442695, %v15677_v24  ;;  %v8793_v27 = vadd.f32 %v8792_v5, %v8791_v8  ;;  %7688 = vmatmul.mubr.f32.gmra.mrb[206].mxu0 %v7507_v48  ;;  %9011 = vmatmul.mubr.f32.gmra.mrb[214].mxu1 %v7507_v48  ;;  %v7564_v8 = vld [vmem:[%s10665_s14] sm:$0x7]  ;;  %v16561_v48 = vld [vmem:[#allocation38_spill] sm:$0xff]  ;;  %s10203_s14 = smov [#allocation18]  }
 0x875   : > { %v7462_v54 = vadd.f32 1.0, %v9813_v13  ;;  %7693 = vmatprep.mubr.f32.mxu0 %v16560_v30  ;;  %v15699_v5 = vrot.slane %v7564_v8, %v16561_v48  ;;  %s8050_s27 = sshll.u32 %s10203_s14, 4  ;;  %s15820_s27 = int_to_ptr.vmem [resolvable:$true] %s8050_s27 }
 0x876   : > { %9822 = vpow2.f32 %v8620_v26  ;;  %v7396_v38 = vadd.f32 %v8793_v27, %v15624_v51  ;;  %v8794_v19 = vpop.f32.mrb[206].mxu1  ;;  %v16562_v27 = vld [vmem:[#allocation55_spill] sm:$0xff]  ;;  %s10052_s15 = scalar_lea.vmem %s15820_s27, 6144  ;;  %p10059_p1 = scmp.lt.s32.totalorder %s15820_s27, %s15820_s27 }
 0x877   : > { %9824 = vrcp.f32 %v7462_v54  ;;  %v8795_v20 = vpop.f32.mrb[207].mxu1  ;;  %v15703_v54 = vrot.slane %v7564_v8, %v16562_v27  ;;  %p10053_p0 = scmp.ne.s32.totalorder %s15820_s27, %s10052_s15  ;;  %p10060_p4 = scmp.lt.s32.totalorder %s10052_s15, %s10052_s15 }
 0x878   : > { %v9815_v6 = vpop.eup %9814  ;;  %v8621_v23 = vmul.f32 -1.442695, %v7396_v38  ;;  %v8796_v41 = vadd.f32 %v8795_v20, %v8794_v19  ;;  %v16564_v20 = vld [vmem:[#allocation53_spill] sm:$0xff] }
 0x879   : > { %v9817_v29 = vpop.eup %9816  ;;  %v7508_v53 = vmul.f32 %v9815_v6, %v15651_v22  ;;  %p10054_p13 = pnand %p10053_p0, %p9417_p7  ;;  %p10061_p5 = por %p10060_p4, %p10059_p1 }
 0x87a   : > { %v7463_v60 = vadd.f32 1.0, %v9817_v29  ;;  %9826 = vpow2.f32 %v8621_v23  ;;  %v7401_v32 = vadd.f32 %v8796_v41, %v15624_v51  ;;  %v16566_v41 = vld [vmem:[#allocation36_spill] sm:$0xff] }
 0x87b   : > { %7694 = vmatmul.mubr.f32.gmra.mrb[208].mxu0 %v7508_v53  ;;  %9013 = vmatprep.mubr.f32.mxu1 %v7508_v53  ;;  %p10055_p2 = pneg %p10054_p13 }
 0x87c   : > { %v9819_v55 = vpop.eup %9818  ;;  %9828 = vrcp.f32 %v7463_v60  ;;  %v8622_v7 = vmul.f32 -1.442695, %v7401_v32  ;;  %7699 = vmatprep.mubr.f32.mxu0 %v16560_v30 }
 0x87d   : > { %v9821_v21 = vpop.eup %9820  ;;  %v7464_v50 = vadd.f32 1.0, %v9819_v55  ;;  %p10062_p9 = pnand %p10061_p5, %p10055_p2 }
 0x87e   : > { %9830 = vpow2.f32 %v8622_v7  ;;  %v7509_v9 = vmul.f32 %v9821_v21, %v15655_v45 }
 0x87f   : > { %9832 = vrcp.f32 %v7464_v50 }
 0x880   : > { %v9823_v58 = vpop.eup %9822  ;;  %7700 = vmatmul.mubr.f32.gmra.mrb[210].mxu0 %v7509_v9  ;;  %9014 = vmatmul.mubr.f32.gmra.mrb[216].mxu1 %v7509_v9 }
 0x881   : > { %v9825_v22 = vpop.eup %9824  ;;  %v7465_v10 = vadd.f32 1.0, %v9823_v58  ;;  %7705 = vmatprep.mubr.f32.mxu0 %v16560_v30 }
 0x882   : > { %v7510_v51 = vmul.f32 %v9825_v22, %v15661_v2 }
 0x883   : > { %9834 = vrcp.f32 %v7465_v10  ;;  %v16567_v10 = vld [vmem:[#allocation43_spill] sm:$0xff] }
 0x884   : > { %v9827_v35 = vpop.eup %9826  ;;  %7706 = vmatmul.mubr.f32.gmra.mrb[212].mxu0 %v7510_v51  ;;  %9016 = vmatprep.mubr.f32.mxu1 %v7510_v51 }
 0x885   : > { %v7466_v25 = vadd.f32 1.0, %v9827_v35  ;;  %7711 = vmatprep.mubr.f32.mxu0 %v16560_v30  ;;  %v16568_v35 = vld [vmem:[#allocation44_spill] sm:$0xff] }
 0x886   : > { %v9829_v37 = vpop.eup %9828 }
 0x887   : > { %9836 = vrcp.f32 %v7466_v25  ;;  %v7511_v45 = vmul.f32 %v9829_v37, %v15666_v40  ;;  %v16569_v37 = vld [vmem:[#allocation35_spill] sm:$0xff] }
 0x888   : > { %v9831_v17 = vpop.eup %9830 }
 0x889   : > { %v9833_v15 = vpop.eup %9832  ;;  %v7467_v33 = vadd.f32 1.0, %v9831_v17  ;;  %7712 = vmatmul.mubr.f32.gmra.mrb[214].mxu0 %v7511_v45  ;;  %9017 = vmatmul.mubr.f32.gmra.mrb[218].mxu1 %v7511_v45 }
 0x88a   : > { %7717 = vmatprep.mubr.f32.mxu0 %v16560_v30  ;;  %v7512_v2 = vmul.f32 %v9833_v15, %v15671_v56 }
 0x88b   : > { %9838 = vrcp.f32 %v7467_v33 }
 0x88c   : > { %9019 = vmatprep.mubr.f32.mxu1 %v7512_v2 }
 0x88d   : > { %v9835_v57 = vpop.eup %9834  ;;  %7718 = vmatmul.mubr.f32.gmra.mrb[216].mxu0 %v7512_v2 }
 0x88e   : > { %7723 = vmatprep.mubr.f32.mxu0 %v16560_v30  ;;  %v7513_v36 = vmul.f32 %v9835_v57, %v15677_v24 }
 0x890   : > { %9020 = vmatmul.mubr.f32.gmra.mrb[220].mxu1 %v7513_v36 }
 0x891   : > { %v9837_v40 = vpop.eup %9836  ;;  %7724 = vmatmul.mubr.f32.gmra.mrb[218].mxu0 %v7513_v36 }
 0x892   : > { %7729 = vmatprep.mubr.f32.mxu0 %v16560_v30  ;;  %v7514_v1 = vmul.f32 %v9837_v40, %v7396_v38  ;;  %v16563_v38 = vld [vmem:[#allocation32_spill] sm:$0xff] }
 0x893   : > { %v15706_v19 = vrot.slane %v7564_v8, %v16563_v38 }
 0x894   : > { %9022 = vmatprep.mubr.f32.mxu1 %v7514_v1 }
 0x895   : > { %v9839_v31 = vpop.eup %9838  ;;  %7730 = vmatmul.mubr.f32.gmra.mrb[220].mxu0 %v7514_v1  ;;  %v16571_v1 = vld [vmem:[#allocation83_spill] sm:$0xff] }
 0x896   : > { %7735 = vmatprep.mubr.f32.mxu0 %v16560_v30  ;;  %v7515_v56 = vmul.f32 %v9839_v31, %v7401_v32  ;;  %v16565_v30 = vld [vmem:[#allocation86_spill] sm:$0xff] }
 0x898   : > { %9023 = vmatmul.mubr.f32.gmra.mrb[222].mxu1 %v7515_v56 }
 0x899   : > { %7736 = vmatmul.mubr.f32.gmra.mrb[222].mxu0 %v7515_v56  ;;  %v16572_v56 = vld [vmem:[#allocation69_spill] sm:$0xff] }
 0x91e   : > { %v7647_v13 = vpop.f32.mrb[192].mxu0 }
 0x91f   : > { %v7649_v24 = vpop.f32.mrb[193].mxu0  ;;  %v7648_v9 = vadd.f32 %v7647_v13, %v15706_v19 }
 0x920   : > { %v7650_v26 = vadd.f32 %v7649_v24, %v15699_v5 }
 0x922   : > { %v7935_v6 = vmul.f32 %v7650_v26, %v16564_v20  ;;  %v7951_v23 = vmul.f32 %v7650_v26, %v16565_v30  ;;  %v7967_v29 = vmul.f32 %v7650_v26, %v16566_v41 }
 0x923   : > { %v7653_v53 = vpop.f32.mrb[194].mxu0  ;;  %v9003_v60 = vpop.f32.mrb[208].mxu1 }
 0x924   : > { %7983 = vst [vmem:[#allocation18] sm:$0xff] %v7935_v6  ;;  %7984 = vst [vmem:[#allocation18 + $0x8] sm:$0xff] %v7951_v23  ;;  %v7814_v32 = vadd.f32 %v9003_v60, %v15703_v54  ;;  %v7655_v55 = vpop.f32.mrb[195].mxu0  ;;  %v7808_v7 = vpop.f32.mrb[209].mxu1  ;;  %v7654_v58 = vadd.f32 %v7653_v53, %v15706_v19  ;;  %v16573_v23 = vld [vmem:[#allocation51_spill] sm:$0xff] }
 0x925   : > { %7985 = vst [vmem:[#allocation18 + $0x10] sm:$0xff] %v7967_v29  ;;  %v7656_v21 = vadd.f32 %v7655_v55, %v15699_v5  ;;  %v7809_v50 = vadd.f32 %v7808_v7, %v15703_v54  ;;  %v16574_v29 = vld [vmem:[#allocation70_spill] sm:$0xff]  ;;  %v16575_v60 = vld [vmem:[#allocation31_spill] sm:$0xff] }
 0x926   : > { %v7888_v22 = vmul.f32 %v7814_v32, %v15481_v28  ;;  %v16570_v28 = vld [vmem:[#allocation84_spill] sm:$0xff] }
 0x927   : > { %v7936_v51 = vmul.f32 %v7656_v21, %v16567_v10  ;;  %v7952_v25 = vmul.f32 %v7656_v21, %v16568_v35  ;;  %v7968_v45 = vmul.f32 %v7656_v21, %v16569_v37  ;;  %v7887_v17 = vmul.f32 %v7809_v50, %v15485_v34  ;;  %v16577_v10 = vld [vmem:[#allocation71_spill] sm:$0xff] }
 0x928   : > { %v7659_v15 = vpop.f32.mrb[196].mxu0  ;;  %v7904_v33 = vadd.f32 %v7888_v22, %v7654_v58  ;;  %v16578_v35 = vld [vmem:[#allocation67_spill] sm:$0xff] }
 0x929   : > { %v7661_v2 = vpop.f32.mrb[197].mxu0  ;;  %7986 = vst [vmem:[#allocation18 + $0x18] sm:$0xff] %v7936_v51  ;;  %7987 = vst [vmem:[#allocation18 + $0x20] sm:$0xff] %v7952_v25  ;;  %v7903_v57 = vadd.f32 %v7887_v17, %v7648_v9  ;;  %v7660_v20 = vadd.f32 %v7659_v15, %v15706_v19 }
 0x92a   : > { %7988 = vst [vmem:[#allocation18 + $0x28] sm:$0xff] %v7968_v45  ;;  %v7662_v36 = vadd.f32 %v7661_v2, %v15699_v5  ;;  %7920 = vst [vmem:[#allocation17 + $0x8] sm:$0xff] %v7904_v33 }
 0x92b   : > { %7919 = vst [vmem:[#allocation17] sm:$0xff] %v7903_v57 }
 0x92c   : > { %v7937_v40 = vmul.f32 %v7662_v36, %v16570_v28  ;;  %v7953_v31 = vmul.f32 %v7662_v36, %v16571_v1  ;;  %v7969_v8 = vmul.f32 %v7662_v36, %v16572_v56 }
 0x92d   : > { %v7665_v48 = vpop.f32.mrb[198].mxu0  ;;  %v9006_v13 = vpop.f32.mrb[210].mxu1 }
 0x92e   : > { %7989 = vst [vmem:[#allocation18 + $0x30] sm:$0xff] %v7937_v40  ;;  %7990 = vst [vmem:[#allocation18 + $0x38] sm:$0xff] %v7953_v31  ;;  %v7824_v34 = vadd.f32 %v9006_v13, %v15703_v54  ;;  %v7667_v24 = vpop.f32.mrb[199].mxu0  ;;  %v7818_v26 = vpop.f32.mrb[211].mxu1  ;;  %v7666_v6 = vadd.f32 %v7665_v48, %v15706_v19  ;;  %v16579_v40 = vld [vmem:[#allocation57_spill] sm:$0xff] }
 0x92f   : > { %7991 = vst [vmem:[#allocation18 + $0x40] sm:$0xff] %v7969_v8  ;;  %v7668_v27 = vadd.f32 %v7667_v24, %v15699_v5  ;;  %v7819_v38 = vadd.f32 %v7818_v26, %v15703_v54  ;;  %v16580_v31 = vld [vmem:[#allocation61_spill] sm:$0xff]  ;;  %v16581_v8 = vld [vmem:[#allocation79_spill] sm:$0xff] }
 0x930   : > { %v7890_v30 = vmul.f32 %v7824_v34, %v15489_v39  ;;  %v16576_v39 = vld [vmem:[#allocation47_spill] sm:$0xff] }
 0x931   : > { %v7938_v41 = vmul.f32 %v7668_v27, %v16573_v23  ;;  %v7954_v53 = vmul.f32 %v7668_v27, %v16574_v29  ;;  %v7970_v32 = vmul.f32 %v7668_v27, %v16575_v60  ;;  %v7889_v55 = vmul.f32 %v7819_v38, %v15493_v0 }
 0x932   : > { %v7906_v7 = vadd.f32 %v7890_v30, %v7666_v6  ;;  %v16583_v30 = vld [vmem:[#allocation66_spill] sm:$0xff] }
 0x933   : > { %7992 = vst [vmem:[#allocation18 + $0x48] sm:$0xff] %v7938_v41  ;;  %7993 = vst [vmem:[#allocation18 + $0x50] sm:$0xff] %v7954_v53  ;;  %v7905_v21 = vadd.f32 %v7889_v55, %v7660_v20 }
 0x934   : > { %7994 = vst [vmem:[#allocation18 + $0x58] sm:$0xff] %v7970_v32  ;;  %7922 = vst [vmem:[#allocation17 + $0x18] sm:$0xff] %v7906_v7 }
 0x935   : > { %7921 = vst [vmem:[#allocation17 + $0x10] sm:$0xff] %v7905_v21 }
 0x937   : > { %v7671_v50 = vpop.f32.mrb[200].mxu0 }
 0x938   : > { %v7673_v9 = vpop.f32.mrb[201].mxu0  ;;  %v7672_v57 = vadd.f32 %v7671_v50, %v15706_v19  ;;  %v16584_v50 = vld [vmem:[#allocation37_spill] sm:$0xff] }
 0x939   : > { %v7674_v58 = vadd.f32 %v7673_v9, %v15699_v5 }
 0x93b   : > { %v7939_v22 = vmul.f32 %v7674_v58, %v16576_v39  ;;  %v7955_v51 = vmul.f32 %v7674_v58, %v16577_v10  ;;  %v7971_v25 = vmul.f32 %v7674_v58, %v16578_v35 }
 0x93d   : > { %7995 = vst [vmem:[#allocation18 + $0x60] sm:$0xff] %v7939_v22  ;;  %7996 = vst [vmem:[#allocation18 + $0x68] sm:$0xff] %v7955_v51 }
 0x93e   : > { %7997 = vst [vmem:[#allocation18 + $0x70] sm:$0xff] %v7971_v25  ;;  %v7677_v0 = vpop.f32.mrb[202].mxu0  ;;  %v9009_v37 = vpop.f32.mrb[212].mxu1 }
 0x93f   : > { %v7834_v45 = vadd.f32 %v9009_v37, %v15703_v54  ;;  %v7679_v17 = vpop.f32.mrb[203].mxu0  ;;  %v7828_v15 = vpop.f32.mrb[213].mxu1  ;;  %v7678_v36 = vadd.f32 %v7677_v0, %v15706_v19 }
 0x940   : > { %v7680_v33 = vadd.f32 %v7679_v17, %v15699_v5  ;;  %v7829_v2 = vadd.f32 %v7828_v15, %v15703_v54 }
 0x941   : > { %v7892_v28 = vmul.f32 %v7834_v45, %v15497_v14  ;;  %v16582_v14 = vld [vmem:[#allocation54_spill] sm:$0xff]  ;;  %v16586_v45 = vld [vmem:[#allocation48_spill] sm:$0xff] }
 0x942   : > { %v7940_v1 = vmul.f32 %v7680_v33, %v16579_v40  ;;  %v7956_v56 = vmul.f32 %v7680_v33, %v16580_v31  ;;  %v7972_v48 = vmul.f32 %v7680_v33, %v16581_v8  ;;  %v7891_v13 = vmul.f32 %v7829_v2, %v15504_v61 }
 0x943   : > { %v7908_v34 = vadd.f32 %v7892_v28, %v7678_v36  ;;  %v7683_v24 = vpop.f32.mrb[204].mxu0 }
 0x944   : > { %7998 = vst [vmem:[#allocation18 + $0x78] sm:$0xff] %v7940_v1  ;;  %7999 = vst [vmem:[#allocation18 + $0x80] sm:$0xff] %v7956_v56  ;;  %v7907_v26 = vadd.f32 %v7891_v13, %v7672_v57  ;;  %v7685_v27 = vpop.f32.mrb[205].mxu0  ;;  %v7684_v7 = vadd.f32 %v7683_v24, %v15706_v19  ;;  %v16588_v56 = vld [vmem:[#allocation39_spill] sm:$0xff] }
 0x945   : > { %8000 = vst [vmem:[#allocation18 + $0x88] sm:$0xff] %v7972_v48  ;;  %7924 = vst [vmem:[#allocation17 + $0x28] sm:$0xff] %v7908_v34  ;;  %v7686_v38 = vadd.f32 %v7685_v27, %v15699_v5  ;;  %v16589_v48 = vld [vmem:[#allocation85_spill] sm:$0xff]  ;;  %v16590_v34 = vld [vmem:[#allocation76_spill] sm:$0xff] }
 0x946   : > { %7923 = vst [vmem:[#allocation17 + $0x20] sm:$0xff] %v7907_v26 }
 0x947   : > { %v7941_v20 = vmul.f32 %v7686_v38, %v16582_v14  ;;  %v7957_v6 = vmul.f32 %v7686_v38, %v15187_v43  ;;  %v7973_v23 = vmul.f32 %v7686_v38, %v16583_v30  ;;  %v7689_v41 = vpop.f32.mrb[206].mxu0  ;;  %v9012_v29 = vpop.f32.mrb[214].mxu1 }
 0x948   : > { %v7844_v61 = vadd.f32 %v9012_v29, %v15703_v54  ;;  %v7691_v53 = vpop.f32.mrb[207].mxu0  ;;  %v7838_v60 = vpop.f32.mrb[215].mxu1  ;;  %v7690_v21 = vadd.f32 %v7689_v41, %v15706_v19  ;;  %v16593_v29 = vld [vmem:[#allocation62_spill] sm:$0xff] }
 0x949   : > { %8001 = vst [vmem:[#allocation18 + $0x90] sm:$0xff] %v7941_v20  ;;  %8002 = vst [vmem:[#allocation18 + $0x98] sm:$0xff] %v7957_v6  ;;  %v7692_v32 = vadd.f32 %v7691_v53, %v15699_v5  ;;  %v7839_v55 = vadd.f32 %v7838_v60, %v15703_v54 }
 0x94a   : > { %8003 = vst [vmem:[#allocation18 + $0xa0] sm:$0xff] %v7973_v23  ;;  %v7894_v43 = vmul.f32 %v7844_v61, %v15508_v16  ;;  %v16585_v16 = vld [vmem:[#allocation56_spill] sm:$0xff]  ;;  %v16592_v23 = vld [vmem:[#allocation46_spill] sm:$0xff] }
 0x94b   : > { %v7942_v9 = vmul.f32 %v7692_v32, %v16584_v50  ;;  %v7958_v58 = vmul.f32 %v7692_v32, %v15212_v62  ;;  %v7974_v39 = vmul.f32 %v7692_v32, %v15223_v47  ;;  %v7893_v22 = vmul.f32 %v7839_v55, %v15512_v18  ;;  %v16587_v62 = vld [vmem:[#allocation73_spill] sm:$0xff] }
 0x94c   : > { %v7910_v10 = vadd.f32 %v7894_v43, %v7690_v21 }
 0x94d   : > { %8004 = vst [vmem:[#allocation18 + $0xa8] sm:$0xff] %v7942_v9  ;;  %8005 = vst [vmem:[#allocation18 + $0xb0] sm:$0xff] %v7958_v58  ;;  %v7909_v51 = vadd.f32 %v7893_v22, %v7684_v7  ;;  %v16594_v58 = vld [vmem:[#allocation77_spill] sm:$0xff]  ;;  %v16595_v22 = vld [vmem:[#allocation30_spill] sm:$0xff] }
 0x94e   : > { %8006 = vst [vmem:[#allocation18 + $0xb8] sm:$0xff] %v7974_v39  ;;  %7926 = vst [vmem:[#allocation17 + $0x38] sm:$0xff] %v7910_v10  ;;  %v7695_v35 = vpop.f32.mrb[208].mxu0 }
 0x94f   : > { %7925 = vst [vmem:[#allocation17 + $0x30] sm:$0xff] %v7909_v51  ;;  %v7697_v25 = vpop.f32.mrb[209].mxu0  ;;  %v7696_v40 = vadd.f32 %v7695_v35, %v15706_v19  ;;  %v16596_v51 = vld [vmem:[#allocation58_spill] sm:$0xff] }
 0x950   : > { %v7698_v0 = vadd.f32 %v7697_v25, %v15699_v5 }
 0x952   : > { %v7943_v37 = vmul.f32 %v7698_v0, %v16585_v16  ;;  %v7959_v17 = vmul.f32 %v7698_v0, %v16586_v45  ;;  %v7975_v15 = vmul.f32 %v7698_v0, %v16587_v62 }
 0x953   : > { %v7701_v47 = vpop.f32.mrb[210].mxu0  ;;  %v9015_v33 = vpop.f32.mrb[216].mxu1 }
 0x954   : > { %8007 = vst [vmem:[#allocation18 + $0xc0] sm:$0xff] %v7943_v37  ;;  %8008 = vst [vmem:[#allocation18 + $0xc8] sm:$0xff] %v7959_v17  ;;  %v7854_v18 = vadd.f32 %v9015_v33, %v15703_v54  ;;  %v7703_v2 = vpop.f32.mrb[211].mxu0  ;;  %v7848_v57 = vpop.f32.mrb[217].mxu1  ;;  %v7702_v1 = vadd.f32 %v7701_v47, %v15706_v19  ;;  %v16598_v47 = vld [vmem:[#allocation50_spill] sm:$0xff] }
 0x955   : > { %8009 = vst [vmem:[#allocation18 + $0xd0] sm:$0xff] %v7975_v15  ;;  %v7704_v36 = vadd.f32 %v7703_v2, %v15699_v5  ;;  %v7849_v28 = vadd.f32 %v7848_v57, %v15703_v54 }
 0x956   : > { %v7896_v31 = vmul.f32 %v7854_v18, %v15518_v63  ;;  %v16591_v63 = vld [vmem:[#allocation63_spill] sm:$0xff]  ;;  %v16599_v18 = vld [vmem:[#allocation52_spill] sm:$0xff] }
 0x957   : > { %v7944_v8 = vmul.f32 %v7704_v36, %v16588_v56  ;;  %v7960_v13 = vmul.f32 %v7704_v36, %v16589_v48  ;;  %v7976_v24 = vmul.f32 %v7704_v36, %v16590_v34  ;;  %v7895_v26 = vmul.f32 %v7849_v28, %v15522_v12  ;;  %v7707_v27 = vpop.f32.mrb[212].mxu0  ;;  %v16600_v34 = vld [vmem:[#allocation64_spill] sm:$0xff] }
 0x958   : > { %v7912_v38 = vadd.f32 %v7896_v31, %v7702_v1  ;;  %v7709_v14 = vpop.f32.mrb[213].mxu0  ;;  %v7708_v43 = vadd.f32 %v7707_v27, %v15706_v19 }
 0x959   : > { %8010 = vst [vmem:[#allocation18 + $0xd8] sm:$0xff] %v7944_v8  ;;  %8011 = vst [vmem:[#allocation18 + $0xe0] sm:$0xff] %v7960_v13  ;;  %v7911_v20 = vadd.f32 %v7895_v26, %v7696_v40  ;;  %v7710_v6 = vadd.f32 %v7709_v14, %v15699_v5  ;;  %v16601_v26 = vld [vmem:[#allocation81_spill] sm:$0xff] }
 0x95a   : > { %8012 = vst [vmem:[#allocation18 + $0xe8] sm:$0xff] %v7976_v24  ;;  %7928 = vst [vmem:[#allocation17 + $0x48] sm:$0xff] %v7912_v38  ;;  %v16602_v38 = vld [vmem:[#allocation75_spill] sm:$0xff] }
 0x95b   : > { %7927 = vst [vmem:[#allocation17 + $0x40] sm:$0xff] %v7911_v20  ;;  %v7945_v30 = vmul.f32 %v7710_v6, %v16591_v63  ;;  %v7961_v41 = vmul.f32 %v7710_v6, %v16592_v23  ;;  %v7977_v61 = vmul.f32 %v7710_v6, %v16593_v29  ;;  %v16603_v23 = vld [vmem:[#allocation59_spill] sm:$0xff] }
 0x95c   : > { %v7713_v53 = vpop.f32.mrb[214].mxu0  ;;  %v9018_v60 = vpop.f32.mrb[218].mxu1 }
 0x95d   : > { %8013 = vst [vmem:[#allocation18 + $0xf0] sm:$0xff] %v7945_v30  ;;  %8014 = vst [vmem:[#allocation18 + $0xf8] sm:$0xff] %v7961_v41  ;;  %v7864_v12 = vadd.f32 %v9018_v60, %v15703_v54  ;;  %v7715_v32 = vpop.f32.mrb[215].mxu0  ;;  %v7858_v55 = vpop.f32.mrb[219].mxu1  ;;  %v7714_v50 = vadd.f32 %v7713_v53, %v15706_v19  ;;  %v16604_v41 = vld [vmem:[#allocation42_spill] sm:$0xff] }
 0x95e   : > { %8015 = vst [vmem:[#allocation18 + $0x100] sm:$0xff] %v7977_v61  ;;  %v7716_v7 = vadd.f32 %v7715_v32, %v15699_v5  ;;  %v7859_v21 = vadd.f32 %v7858_v55, %v15703_v54 }
 0x95f   : > { %v7898_v9 = vmul.f32 %v7864_v12, %v15526_v46  ;;  %v16597_v46 = vld [vmem:[#allocation60_spill] sm:$0xff] }
 0x960   : > { %v7946_v39 = vmul.f32 %v7716_v7, %v16594_v58  ;;  %v7962_v10 = vmul.f32 %v7716_v7, %v16595_v22  ;;  %v7978_v35 = vmul.f32 %v7716_v7, %v16596_v51  ;;  %v7897_v25 = vmul.f32 %v7859_v21, %v15531_v42  ;;  %v7719_v0 = vpop.f32.mrb[216].mxu0 }
 0x961   : > { %v7914_v16 = vadd.f32 %v7898_v9, %v7714_v50  ;;  %v7721_v37 = vpop.f32.mrb[217].mxu0  ;;  %v7720_v8 = vadd.f32 %v7719_v0, %v15706_v19  ;;  %v16605_v9 = vld [vmem:[#allocation74_spill] sm:$0xff] }
 0x962   : > { %8016 = vst [vmem:[#allocation18 + $0x108] sm:$0xff] %v7946_v39  ;;  %8017 = vst [vmem:[#allocation18 + $0x110] sm:$0xff] %v7962_v10  ;;  %v7913_v45 = vadd.f32 %v7897_v25, %v7708_v43  ;;  %v7722_v17 = vadd.f32 %v7721_v37, %v15699_v5 }
 0x963   : > { %8018 = vst [vmem:[#allocation18 + $0x118] sm:$0xff] %v7978_v35  ;;  %7930 = vst [vmem:[#allocation17 + $0x58] sm:$0xff] %v7914_v16  ;;  %v9021_v62 = vpop.f32.mrb[220].mxu1 }
 0x964   : > { %7929 = vst [vmem:[#allocation17 + $0x50] sm:$0xff] %v7913_v45  ;;  %v7947_v15 = vmul.f32 %v7722_v17, %v16597_v46  ;;  %v7963_v33 = vmul.f32 %v7722_v17, %v16598_v47  ;;  %v7979_v2 = vmul.f32 %v7722_v17, %v16599_v18  ;;  %v7725_v57 = vpop.f32.mrb[218].mxu0  ;;  %v7874_v42 = vadd.f32 %v9021_v62, %v15703_v54  ;;  %v7868_v36 = vpop.f32.mrb[221].mxu1 }
 0x965   : > { %v7727_v28 = vpop.f32.mrb[219].mxu0  ;;  %v7869_v40 = vadd.f32 %v7868_v36, %v15703_v54  ;;  %v7726_v1 = vadd.f32 %v7725_v57, %v15706_v19 }
 0x966   : > { %8019 = vst [vmem:[#allocation18 + $0x120] sm:$0xff] %v7947_v15  ;;  %8020 = vst [vmem:[#allocation18 + $0x128] sm:$0xff] %v7963_v33  ;;  %v7900_v31 = vmul.f32 %v7874_v42, %v15535_v59  ;;  %v7728_v56 = vadd.f32 %v7727_v28, %v15699_v5 }
 0x967   : > { %8021 = vst [vmem:[#allocation18 + $0x130] sm:$0xff] %v7979_v2  ;;  %v7899_v48 = vmul.f32 %v7869_v40, %v15539_v3 }
 0x968   : > { %v7916_v13 = vadd.f32 %v7900_v31, %v7726_v1  ;;  %v7948_v24 = vmul.f32 %v7728_v56, %v16600_v34  ;;  %v7964_v27 = vmul.f32 %v7728_v56, %v16601_v26  ;;  %v7980_v14 = vmul.f32 %v7728_v56, %v16602_v38  ;;  %v7731_v20 = vpop.f32.mrb[220].mxu0 }
 0x969   : > { %v7915_v6 = vadd.f32 %v7899_v48, %v7720_v8  ;;  %v7733_v63 = vpop.f32.mrb[221].mxu0 }
 0x96a   : > { %7932 = vst [vmem:[#allocation17 + $0x68] sm:$0xff] %v7916_v13  ;;  %8022 = vst [vmem:[#allocation18 + $0x138] sm:$0xff] %v7948_v24  ;;  %v7734_v59 = vadd.f32 %v7733_v63, %v15699_v5 }
 0x96b   : > { %8023 = vst [vmem:[#allocation18 + $0x140] sm:$0xff] %v7964_v27  ;;  %8024 = vst [vmem:[#allocation18 + $0x148] sm:$0xff] %v7980_v14  ;;  %v9024_v30 = vpop.f32.mrb[222].mxu1 }
 0x96c   : > { %7931 = vst [vmem:[#allocation17 + $0x60] sm:$0xff] %v7915_v6  ;;  %v7949_v3 = vmul.f32 %v7734_v59, %v16603_v23  ;;  %v7965_v29 = vmul.f32 %v7734_v59, %v16604_v41  ;;  %v7981_v61 = vmul.f32 %v7734_v59, %v15426_v52  ;;  %v7737_v53 = vpop.f32.mrb[222].mxu0  ;;  %v7884_v60 = vadd.f32 %v9024_v30, %v15703_v54  ;;  %v7878_v12 = vpop.f32.mrb[223].mxu1 }
 0x96d   : > { %v7739_v32 = vpop.f32.mrb[223].mxu0  ;;  %v7879_v55 = vadd.f32 %v7878_v12, %v15703_v54  ;;  %v7738_v7 = vadd.f32 %v7737_v53, %v15706_v19  ;;  %v7732_v52 = vadd.f32 %v7731_v20, %v15706_v19 }
 0x96e   : > { %8025 = vst [vmem:[#allocation18 + $0x150] sm:$0xff] %v7949_v3  ;;  %8026 = vst [vmem:[#allocation18 + $0x158] sm:$0xff] %v7965_v29  ;;  %v7902_v21 = vmul.f32 %v7884_v60, %v15543_v11  ;;  %v7740_v43 = vadd.f32 %v7739_v32, %v15699_v5 }
 0x96f   : > { %8027 = vst [vmem:[#allocation18 + $0x160] sm:$0xff] %v7981_v61  ;;  %v7901_v50 = vmul.f32 %v7879_v55, %v15547_v44 }
 0x970   : > { %v7918_v54 = vadd.f32 %v7902_v21, %v7738_v7  ;;  %v7950_v58 = vmul.f32 %v7740_v43, %v16605_v9  ;;  %v7966_v39 = vmul.f32 %v7740_v43, %v15429_v4  ;;  %v7982_v22 = vmul.f32 %v7740_v43, %v15450_v49 }
 0x971   : > { %v7917_v11 = vadd.f32 %v7901_v50, %v7732_v52 }
 0x972   : > { %7934 = vst [vmem:[#allocation17 + $0x78] sm:$0xff] %v7918_v54  ;;  %8028 = vst [vmem:[#allocation18 + $0x168] sm:$0xff] %v7950_v58 }
 0x973   : > { %8029 = vst [vmem:[#allocation18 + $0x170] sm:$0xff] %v7966_v39  ;;  %8030 = vst [vmem:[#allocation18 + $0x178] sm:$0xff] %v7982_v22 }
 0x974   : > { %7933 = vst [vmem:[#allocation17 + $0x70] sm:$0xff] %v7917_v11 }
 0x975   : > { %10065 = shalt.err (!%p10062_p9)
}
 0x976   : > { %s16606_s22 = sld [smem:[#allocation103_spill]] }
 0x97c   : > { %s10066_s20 = scalar_lea.hbm %s16606_s22, 6144 }
 0x97d   : > { %p10067_p8 = scmp.ne.s32.totalorder %s16606_s22, %s10066_s20  ;;  %p10072_p3 = scmp.lt.u32.totalorder %s10066_s20, %s16606_s22 }
 0x97f   : > { %p10068_p6 = pnand %p10067_p8, %p9417_p7 }
 0x981   : > { %p10069_p10 = pneg %p10068_p6 }
 0x983   : > { %p10074_p11 = pnand %p10072_p3, %p10069_p10 }
 0x985   : > { %10077 = shalt.err (!%p10074_p11)
}
 0x986   : > { %s10205_s10 = smov 384   ;;  %s10206_s18 = smov 24  }
 0x987   : > { %9412 = dma.vmem_to_hbm [thread:$0]  (%p9417_p7), %s15820_s27, 6144, %s16606_s22, [#allocation19], %s10205_s10, %s10205_s10, %s10206_s18  }
 0x988   : > { %s10078_s1 = scalar_lea.vmem %s15822_s24, 2048  ;;  %p10085_p2 = scmp.lt.s32.totalorder %s15822_s24, %s15822_s24 }
 0x989   : > { %p10079_p12 = scmp.ne.s32.totalorder %s15822_s24, %s10078_s1  ;;  %p10086_p1 = scmp.lt.s32.totalorder %s10078_s1, %s10078_s1 }
 0x98b   : > { %p10080_p0 = pnand %p10079_p12, %p9417_p7  ;;  %p10087_p4 = por %p10086_p1, %p10085_p2 }
 0x98d   : > { %p10081_p13 = pneg %p10080_p0 }
 0x98f   : > { %p10088_p5 = pnand %p10087_p4, %p10081_p13 }
 0x991   : > { %10091 = shalt.err (!%p10088_p5)
}
 0x992   : > { %s16607_s30 = sld [smem:[#allocation102_spill]] }
 0x998   : > { %s10092_s2 = scalar_lea.hbm %s16607_s30, 2048 }
 0x999   : > { %p10093_p9 = scmp.ne.s32.totalorder %s16607_s30, %s10092_s2  ;;  %p10098_p10 = scmp.lt.u32.totalorder %s10092_s2, %s16607_s30 }
 0x99b   : > { %p10094_p8 = pnand %p10093_p9, %p9417_p7 }
 0x99d   : > { %p10095_p6 = pneg %p10094_p8 }
 0x99f   : > { %p10100_p3 = pnand %p10098_p10, %p10095_p6 }
 0x9a1   : > { %10103 = shalt.err (!%p10100_p3)
}
 0x9a2   : > { %s10207_s28 = smov 128   ;;  %s10208_s15 = smov 8  }
 0x9a3   : > { %9410 = dma.vmem_to_hbm [thread:$0]  (%p9417_p7), %s15822_s24, 2048, %s16607_s30, [#allocation7], %s10207_s28, %s10207_s28, %s10208_s15  }
 0x9a4   : > { %10145 = dma.done.wait (%p9417_p7), [#allocation7], 2048  }
 0x9a5   : > { %10147 = vsyncadd (%p9417_p7), [#allocation7], 4294965248 }
 0x9a6   : > { %10149 = dma.done.wait (%p9417_p7), [#allocation19], 6144  }
 0x9a7   : > { %10151 = vsyncadd (%p9417_p7), [#allocation19], 4294961152 }
 0x9a8 PF: > { %s42_s29 = sadd.s32 1, %s10174_s29   ;;  %s16608_s20 = sld [smem:[#allocation26_spill]] }
 0x9a9   : > { %p39_p11 = scmp.ge.s32.totalorder %s42_s29, 5   ;;  %s16609_s26 = sld [smem:[#allocation29_spill]] }
 0x9aa   : > { %s16610_s27 = sld [smem:[#allocation27_spill]]  ;;  %s16611_s28 = sld [smem:[#allocation28_spill]] }
 0x9ab   : > { %s16612_s24 = smov %s10158_s25  ;;  %41 = sbr.rel (!%p39_p11) target bundleno = 30 (0x1e), region = 265 }
 0x9ae   : > { %s16613_s25 = smov %s16608_s20 }
 0x9b2   :  { %8070 = vsyncpa [#allocation6], 1 }
 0x9b3   :  { %8072 = vsyncpa [#allocation6 + $0x1], 1 }
 0x9b4   :  { %8073 = vsyncpa [#allocation9], 1 }
 0x9b5   :  { %8075 = vsyncpa [#allocation9 + $0x1], 1 }
 0x9b6   :  { %8076 = vsyncpa [#allocation12], 1 }
 0x9b7   :  { %8078 = vsyncpa [#allocation12 + $0x1], 1 }
 0x9b8   :  { %8079 = vsyncpa [#allocation15], 1 }
 0x9b9   :  { %8081 = vsyncpa [#allocation15 + $0x1], 1 }
 0x9ba   :  { %8082 = vsyncpa [#allocation7], 1 }
 0x9bb   :  { %8084 = vsyncpa [#allocation7 + $0x1], 1 }
 0x9bc   :  { %8085 = vsyncpa [#allocation19], 1 }

</bundles_post_ra>
